<compile_context>
chip_gen: v5e
topology: v5e:2x2
jax: 0.10.0
libtpu: 0.0.40
codegen_flags: <defaults>
</compile_context>

<pallas_src>
import functools

import numpy as np
import jax
import jax.numpy as jnp
from jax.experimental import pallas as pl
from jax.experimental.pallas import tpu as pltpu

# ----------------------- constants from ANI2xt.__init__ -----------------------
HARTREE2EV = 27.211386245988

Rcr = 5.2
Rca = 3.5
EtaR = 16.0
ShfR = np.array([0.9, 1.16875, 1.4375, 1.70625, 1.975, 2.24375, 2.5125, 2.78125,
                 3.05, 3.31875, 3.5875, 3.85625, 4.125, 4.39375, 4.6625, 4.93125],
                dtype=np.float32)
Zeta = 32.0
ShfZ = np.array([0.19634954, 0.58904862, 0.9817477, 1.3744468,
                 1.7671459, 2.1598449, 2.552544, 2.9452431], dtype=np.float32)
EtaA = 8.0
ShfA = np.array([0.9, 1.55, 2.2, 2.85], dtype=np.float32)

NUM_SPECIES = 7                                         # H, C, N, O, F, S, Cl
NUM_PAIRS = NUM_SPECIES * (NUM_SPECIES + 1) // 2        # 28
RADIAL_DIM = NUM_SPECIES * ShfR.shape[0]                # 112
ANGULAR_DIM = NUM_PAIRS * ShfA.shape[0] * ShfZ.shape[0]  # 896
AEV_DIM = RADIAL_DIM + ANGULAR_DIM                      # 1008  (== torchani aev_length)
AEV_PAD = 1024                                          # zero-padded to 8 full 128-lane vregs

SELF_ENERGIES = np.array([-0.6002, -38.1224, -54.7241, -75.2086,
                          -99.8006, -398.1251, -460.1375], dtype=np.float32)

# per-species hidden sizes: H, C, N, O, F, S, Cl
LAYER_SIZES = [(256, 192, 160), (224, 192, 160), (192, 160, 128), (192, 160, 128),
               (160, 128, 96), (160, 128, 96), (160, 128, 96)]
H1, H2, H3 = 256, 192, 160                              # zero-padded common sizes
CELU_ALPHA = 0.1

# Atom rows per grid step.  Multiple of 128 so the MXU sees full M tiles; 256 keeps the
# per-step overhead small while bounding the per-species padding waste (<= 7*TILE_N rows).
TILE_N = 256

# unordered species-pair index table (triu-with-repetition enumeration)
_PAIR_INDEX = np.zeros((NUM_SPECIES, NUM_SPECIES), np.int32)
_p = 0
for _a in range(NUM_SPECIES):
    for _b in range(_a, NUM_SPECIES):
        _PAIR_INDEX[_a, _b] = _p
        _PAIR_INDEX[_b, _a] = _p
        _p += 1


# ----------------------- deterministic synthetic parameters -------------------
def make_params():
    rng = np.random.default_rng(0)
    W1 = np.zeros((NUM_SPECIES, AEV_PAD, H1), np.float32)   # extra 16 input rows stay zero
    B1 = np.zeros((NUM_SPECIES, 1, H1), np.float32)
    W2 = np.zeros((NUM_SPECIES, H1, H2), np.float32)
    B2 = np.zeros((NUM_SPECIES, 1, H2), np.float32)
    W3 = np.zeros((NUM_SPECIES, H2, H3), np.float32)
    B3 = np.zeros((NUM_SPECIES, 1, H3), np.float32)
    W4 = np.zeros((NUM_SPECIES, H3, 1), np.float32)
    B4 = np.zeros((NUM_SPECIES, 1, 1), np.float32)

    def lin(fan_in, fan_out):
        bound = 1.0 / np.sqrt(fan_in)
        w = rng.uniform(-bound, bound, size=(fan_in, fan_out)).astype(np.float32)
        b = rng.uniform(-bound, bound, size=(fan_out,)).astype(np.float32)
        return w, b

    for s, (h1, h2, h3) in enumerate(LAYER_SIZES):
        w, b = lin(AEV_DIM, h1); W1[s, :AEV_DIM, :h1] = w; B1[s, 0, :h1] = b
        w, b = lin(h1, h2);      W2[s, :h1, :h2] = w;      B2[s, 0, :h2] = b
        w, b = lin(h2, h3);      W3[s, :h2, :h3] = w;      B3[s, 0, :h3] = b
        w, b = lin(h3, 1);       W4[s, :h3, :] = w;        B4[s, 0, :] = b

    def T(w):
        return np.ascontiguousarray(w.transpose(0, 2, 1))

    # weights in bf16 (MXU peak, half the DMA bytes); biases stay f32; accumulation is f32.
    return dict(
        W1=jnp.asarray(W1, jnp.bfloat16), B1=jnp.asarray(B1),
        W2=jnp.asarray(W2, jnp.bfloat16), B2=jnp.asarray(B2),
        W3=jnp.asarray(W3, jnp.bfloat16), B3=jnp.asarray(B3),
        W4T=jnp.asarray(T(W4), jnp.bfloat16), B4=jnp.asarray(B4),
        W1T=jnp.asarray(T(W1), jnp.bfloat16),
        W2T=jnp.asarray(T(W2), jnp.bfloat16),
        W3T=jnp.asarray(T(W3), jnp.bfloat16),
    )


# ----------------------- Pallas kernels: grouped per-species MLP --------------
def _celu(z):
    # exp argument clamped to <= 0 so the unused branch never produces inf
    return jnp.where(z > 0, z,
                     CELU_ALPHA * (jnp.exp(jnp.minimum(z, 0.0) * (1.0 / CELU_ALPHA)) - 1.0))


def _mlp_fwd_kernel(ts_ref, aev_ref, w1, b1, w2, b2, w3, b3, w4t, b4, out_ref):
    # ts_ref (scalar prefetch) is only consumed by the index_maps.
    del ts_ref
    x = aev_ref[...].astype(jnp.bfloat16)                                   # (T, 1024)
    a1 = _celu(jnp.dot(x, w1[0], preferred_element_type=jnp.float32) + b1[0])
    a2 = _celu(jnp.dot(a1.astype(jnp.bfloat16), w2[0],
                       preferred_element_type=jnp.float32) + b2[0])
    a3 = _celu(jnp.dot(a2.astype(jnp.bfloat16), w3[0],
                       preferred_element_type=jnp.float32) + b3[0])
    # final 160 -> 1 layer as a VPU/XLU reduction instead of a width-1 MXU pass
    e = jnp.sum(a3 * w4t[0].astype(jnp.float32), axis=-1, keepdims=True) + b4[0]
    out_ref[...] = e                                                        # (T, 1)


def _mlp_bwd_kernel(ts_ref, aev_ref, g_ref, w1, b1, w2, b2, w3, b3,
                    w1t, w2t, w3t, w4t, daev_ref):
    del ts_ref
    inv_a = 1.0 / CELU_ALPHA
    x = aev_ref[...].astype(jnp.bfloat16)

    z1 = jnp.dot(x, w1[0], preferred_element_type=jnp.float32) + b1[0]
    ex1 = jnp.exp(jnp.minimum(z1, 0.0) * inv_a)          # one exp shared by celu & dcelu
    a1 = jnp.where(z1 > 0, z1, CELU_ALPHA * (ex1 - 1.0))

    z2 = jnp.dot(a1.astype(jnp.bfloat16), w2[0], preferred_element_type=jnp.float32) + b2[0]
    ex2 = jnp.exp(jnp.minimum(z2, 0.0) * inv_a)
    a2 = jnp.where(z2 > 0, z2, CELU_ALPHA * (ex2 - 1.0))

    z3 = jnp.dot(a2.astype(jnp.bfloat16), w3[0], preferred_element_type=jnp.float32) + b3[0]
    ex3 = jnp.exp(jnp.minimum(z3, 0.0) * inv_a)

    g = g_ref[...]                                                          # (T, 1) f32
    d3 = (g * w4t[0].astype(jnp.float32)) * jnp.where(z3 > 0, 1.0, ex3)     # (T, H3)
    d2 = jnp.dot(d3.astype(jnp.bfloat16), w3t[0],
                 preferred_element_type=jnp.float32) * jnp.where(z2 > 0, 1.0, ex2)
    d1 = jnp.dot(d2.astype(jnp.bfloat16), w2t[0],
                 preferred_element_type=jnp.float32) * jnp.where(z1 > 0, 1.0, ex1)
    daev_ref[...] = jnp.dot(d1.astype(jnp.bfloat16), w1t[0],
                            preferred_element_type=jnp.float32)             # (T, 1024)


def _species_spec(shape):
    # weight / bias stacks: block = one species slice, selected via the prefetched
    # per-tile species id.  Sorted atom order keeps the block index constant across
    # consecutive tiles of the same species, so the weights stay resident (no re-DMA).
    nd = len(shape)
    return pl.BlockSpec((1,) + tuple(shape[1:]),
                        lambda t, ts, _nd=nd: (ts[t],) + (0,) * (_nd - 1))


def _tile_spec(last_dim):
    # atom-tile operands/outputs: one TILE_N-row block per grid step
    return pl.BlockSpec((TILE_N, last_dim), lambda t, ts: (t, 0))


def make_atomic_energy_fn(params, n_pad):
    num_tiles = n_pad // TILE_N
    W1, B1 = params['W1'], params['B1']
    W2, B2 = params['W2'], params['B2']
    W3, B3 = params['W3'], params['B3']
    W4T, B4 = params['W4T'], params['B4']
    W1T, W2T, W3T = params['W1T'], params['W2T'], params['W3T']

    cparams = pltpu.CompilerParams(
        dimension_semantics=("parallel",),            # disjoint output tiles -> megacore-splittable
        vmem_limit_bytes=32 * 1024 * 1024)

    fwd_call = pl.pallas_call(
        _mlp_fwd_kernel,
        out_shape=jax.ShapeDtypeStruct((n_pad, 1), jnp.float32),
        grid_spec=pltpu.PrefetchScalarGridSpec(
            num_scalar_prefetch=1,
            grid=(num_tiles,),
            in_specs=[_tile_spec(AEV_PAD),
                      _species_spec(W1.shape), _species_spec(B1.shape),
                      _species_spec(W2.shape), _species_spec(B2.shape),
                      _species_spec(W3.shape), _species_spec(B3.shape),
                      _species_spec(W4T.shape), _species_spec(B4.shape)],
            out_specs=_tile_spec(1)),
        compiler_params=cparams,
    )

    bwd_call = pl.pallas_call(
        _mlp_bwd_kernel,
        out_shape=jax.ShapeDtypeStruct((n_pad, AEV_PAD), jnp.float32),
        grid_spec=pltpu.PrefetchScalarGridSpec(
            num_scalar_prefetch=1,
            grid=(num_tiles,),
            in_specs=[_tile_spec(AEV_PAD), _tile_spec(1),
                      _species_spec(W1.shape), _species_spec(B1.shape),
                      _species_spec(W2.shape), _species_spec(B2.shape),
                      _species_spec(W3.shape), _species_spec(B3.shape),
                      _species_spec(W1T.shape), _species_spec(W2T.shape),
                      _species_spec(W3T.shape), _species_spec(W4T.shape)],
            out_specs=_tile_spec(AEV_PAD)),
        compiler_params=cparams,
    )

    def _run_fwd(aev_sorted, tile_species_f):
        ts = tile_species_f.astype(jnp.int32)
        return fwd_call(ts, aev_sorted, W1, B1, W2, B2, W3, B3, W4T, B4)

    @jax.custom_vjp
    def atomic_energy(aev_sorted, tile_species_f):
        return _run_fwd(aev_sorted, tile_species_f)

    def fwd(aev_sorted, tile_species_f):
        return _run_fwd(aev_sorted, tile_species_f), (aev_sorted, tile_species_f)

    def bwd(res, g):
        aev_sorted, tile_species_f = res
        ts = tile_species_f.astype(jnp.int32)
        daev = bwd_call(ts, aev_sorted, g.astype(jnp.float32),
                        W1, B1, W2, B2, W3, B3, W1T, W2T, W3T, W4T)
        return daev, jnp.zeros_like(tile_species_f)

    atomic_energy.defvjp(fwd, bwd)
    return atomic_energy


# ----------------------- AEV (torchani AEVComputer semantics) -----------------
def _cutoff_cosine(dist, rc, mask):
    return jnp.where(mask & (dist <= rc), 0.5 * jnp.cos(jnp.pi * dist / rc) + 0.5, 0.0)


def compute_aev_single(species, coords):
    # species: (A,) int32 (-1 = padding), coords: (A, 3) float32 -> (A, 1008) float32
    # TODO(synk): the angular part still materializes an O(A^3 * ShfA*ShfZ) tensor in
    # plain XLA; for large molecules it should become a neighbor-list Pallas kernel.
    A = species.shape[0]
    valid = species >= 0
    sp = jnp.clip(species, 0, NUM_SPECIES - 1)

    vec = coords[None, :, :] - coords[:, None, :]          # vec[i, j] = r_j - r_i
    d2 = jnp.sum(vec * vec, axis=-1)
    eye = jnp.eye(A, dtype=bool)
    pair_ok = valid[:, None] & valid[None, :] & (~eye)
    dist = jnp.sqrt(jnp.where(pair_ok, d2, 1.0))           # safe sqrt for masked pairs

    # ---- radial: 0.25 * exp(-EtaR (R - ShfR)^2) * fc(R, Rcr), scattered by species(j)
    fc_r = _cutoff_cosine(dist, Rcr, pair_ok)              # (A, A)
    shfr = jnp.asarray(ShfR)
    rterm = 0.25 * jnp.exp(-EtaR * (dist[..., None] - shfr) ** 2) * fc_r[..., None]
    sp_onehot = jax.nn.one_hot(sp, NUM_SPECIES, dtype=coords.dtype) * valid[:, None]
    radial = jnp.einsum('js,ijr->isr', sp_onehot, rterm).reshape(A, RADIAL_DIM)

    # ---- angular: 2 ((1+cos(theta-ShfZ))/2)^Zeta exp(-EtaA((Rij+Rik)/2-ShfA)^2) fc fc
    in_cut = pair_ok & (dist <= Rca)
    jk = jnp.arange(A)[:, None] < jnp.arange(A)[None, :]
    trip = in_cut[:, :, None] & in_cut[:, None, :] & jk[None, :, :]    # (i, j, k), j<k

    dot_jk = jnp.einsum('ijd,ikd->ijk', vec, vec)
    denom = jnp.where(trip, dist[:, :, None] * dist[:, None, :], 1.0)
    cos_t = jnp.where(trip, 0.95 * dot_jk / denom, 0.0)    # 0.95 factor as in torchani
    angles = jnp.arccos(cos_t)

    fc_a = _cutoff_cosine(dist, Rca, pair_ok)
    fc_jk = fc_a[:, :, None] * fc_a[:, None, :]
    avg_d = 0.5 * (dist[:, :, None] + dist[:, None, :])

    shfz = jnp.asarray(ShfZ)
    shfa = jnp.asarray(ShfA)
    factor1 = ((1.0 + jnp.cos(angles[..., None] - shfz)) * 0.5) ** Zeta   # (...,Z)
    factor2 = jnp.exp(-EtaA * (avg_d[..., None] - shfa) ** 2)             # (...,S)
    term = (2.0 * factor1[..., None, :] * factor2[..., :, None]
            * fc_jk[..., None, None])                                     # (A,A,A,S,Z)
    term = term * trip[..., None, None].astype(coords.dtype)

    pair_idx = jnp.asarray(_PAIR_INDEX)[sp[:, None], sp[None, :]]         # (A, A)
    pair_onehot = jax.nn.one_hot(pair_idx, NUM_PAIRS, dtype=coords.dtype)
    pair_onehot = pair_onehot * (valid[:, None, None] & valid[None, :, None])
    angular = jnp.einsum('jkp,ijkaz->ipaz', pair_onehot, term).reshape(A, ANGULAR_DIM)

    return jnp.concatenate([radial, angular], axis=-1)


# ----------------------- full ANI2xt forward ----------------------------------
def make_energy_fn(params, batch, n_atoms):
    N = batch * n_atoms
    # each species group padded up to a TILE_N multiple + one spare tile region for padding atoms
    n_pad = ((N + TILE_N - 1) // TILE_N) * TILE_N + NUM_SPECIES * TILE_N
    num_tiles = n_pad // TILE_N
    atomic_energy = make_atomic_energy_fn(params, n_pad)
    self_e = jnp.asarray(SELF_ENERGIES)

    def energy_fn(species, coords):
        aev = jax.vmap(compute_aev_single)(species, coords)               # (B, A, 1008)
        aev_flat = aev.reshape(N, AEV_DIM)
        aev_flat = jnp.pad(aev_flat, ((0, 0), (0, AEV_PAD - AEV_DIM)))    # lane-pad K to 1024

        sp_flat = species.reshape(N)
        valid = sp_flat >= 0
        spc = jnp.where(valid, sp_flat, 0)

        # --- species-sorted (grouped) layout -----------------------------------
        onehot = ((sp_flat[:, None] == jnp.arange(NUM_SPECIES)[None, :]) &
                  valid[:, None]).astype(jnp.int32)                       # (N, 7)
        counts = onehot.sum(axis=0)                                       # (7,)
        padded_counts = ((counts + TILE_N - 1) // TILE_N) * TILE_N
        ends = jnp.cumsum(padded_counts)
        starts = ends - padded_counts
        rank = jnp.sum((jnp.cumsum(onehot, axis=0) - onehot) * onehot, axis=1)
        dest = jnp.where(valid, starts[spc] + rank, n_pad - 1)            # invalid -> unused slot

        aev_sorted = jnp.zeros((n_pad, AEV_PAD), jnp.float32).at[dest].set(
            jnp.where(valid[:, None], aev_flat, 0.0))

        tile_start = jnp.arange(num_tiles, dtype=jnp.int32) * TILE_N
        tile_species = jnp.minimum(
            jnp.sum((tile_start[:, None] >= ends[None, :]).astype(jnp.int32), axis=1),
            NUM_SPECIES - 1)

        # grouped per-species MLP (Pallas, custom fwd+bwd kernels)
        e_sorted = atomic_energy(aev_sorted, tile_species.astype(jnp.float32))  # (n_pad, 1)
        e_atom = e_sorted[:, 0][dest] * valid.astype(jnp.float32)               # (N,)
        nn_e = e_atom.reshape(batch, n_atoms).sum(axis=-1)

        # TODO(synk): torchani EnergyShifter runs in float64; computed in float32 here.
        shift = jnp.where(species >= 0,
                          self_e[jnp.clip(species, 0, NUM_SPECIES - 1)],
                          0.0).sum(axis=-1)
        return (nn_e + shift) * HARTREE2EV                                # (B,) in eV

    return energy_fn


def ani2xt_forward(params, species, coords):
    B, A, _ = coords.shape
    energy_fn = make_energy_fn(params, B, A)

    # single forward pass: energy and its gradient in one sweep (no duplicate AEV/MLP fwd)
    def total(c):
        e = energy_fn(species, c)
        return e.sum(), e

    grad, energy = jax.grad(total, has_aux=True)(coords)
    force = -grad
    # TODO(synk): StandaloneRepulsionCalculator parameters are external/unavailable;
    # repulsion energy and force contributions are zero here.
    rep_energy = jnp.zeros_like(energy)
    rep_force = jnp.zeros_like(force)
    return energy + rep_energy, force + rep_force


if __name__ == "__main__":
    B, A = 2, 8
    params = make_params()

    key = jax.random.PRNGKey(0)
    kc, ks = jax.random.split(key)
    coords = jax.random.normal(kc, (B, A, 3), dtype=jnp.float32) * 1.5
    species = jax.random.randint(ks, (B, A), 0, NUM_SPECIES, dtype=jnp.int32)
    species = species.at[1, A - 1].set(-1)        # one padded (dummy) atom

    fwd = jax.jit(functools.partial(ani2xt_forward, params))
    energy, force = fwd(species, coords)
    jax.block_until_ready((energy, force))

    assert energy.shape == (B,)
    assert force.shape == (B, A, 3)
    assert bool(jnp.all(jnp.isfinite(energy)))
    assert bool(jnp.all(jnp.isfinite(force)))
    print("KERNEL_OK")
</pallas_src>

<mosaic_0001>
module attributes {stable_mosaic.version = 11 : i64} {
  func.func @_mlp_fwd_kernel(%arg0: i32, %arg1: memref<8xi32, #tpu.memory_space<smem>>, %arg2: memref<256x1024xf32, #tpu.memory_space<vmem>>, %arg3: memref<1x1024x256xbf16, #tpu.memory_space<vmem>>, %arg4: memref<1x1x256xf32, #tpu.memory_space<vmem>>, %arg5: memref<1x256x192xbf16, #tpu.memory_space<vmem>>, %arg6: memref<1x1x192xf32, #tpu.memory_space<vmem>>, %arg7: memref<1x192x160xbf16, #tpu.memory_space<vmem>>, %arg8: memref<1x1x160xf32, #tpu.memory_space<vmem>>, %arg9: memref<1x1x160xbf16, #tpu.memory_space<vmem>>, %arg10: memref<1x1x1xf32, #tpu.memory_space<vmem>>, %arg11: memref<256x1xf32, #tpu.memory_space<vmem>>) attributes {dimension_semantics = [#tpu.dimension_semantics<parallel>], iteration_bounds = array<i64: 8>, scalar_prefetch = 1 : i64, scratch_operands = 0 : i64, tpu.core_type = #tpu.core_type<tc>, window_params = [{transform_indices = @transform_0, window_bounds = array<i64: 256, 1024>}, {transform_indices = @transform_1, window_bounds = array<i64: 1, 1024, 256>}, {transform_indices = @transform_2, window_bounds = array<i64: 1, 1, 256>}, {transform_indices = @transform_3, window_bounds = array<i64: 1, 256, 192>}, {transform_indices = @transform_4, window_bounds = array<i64: 1, 1, 192>}, {transform_indices = @transform_5, window_bounds = array<i64: 1, 192, 160>}, {transform_indices = @transform_6, window_bounds = array<i64: 1, 1, 160>}, {transform_indices = @transform_7, window_bounds = array<i64: 1, 1, 160>}, {transform_indices = @transform_8, window_bounds = array<i64: 1, 1, 1>}, {transform_indices = @transform_9, window_bounds = array<i64: 256, 1>}]} {
    %c0 = arith.constant 0 : index
    %c0_0 = arith.constant 0 : index
    %0 = vector.load %arg2[%c0, %c0_0] : memref<256x1024xf32, #tpu.memory_space<vmem>>, vector<256x1024xf32>
    %1 = arith.truncf %0 : vector<256x1024xf32> to vector<256x1024xbf16>
    %c0_1 = arith.constant 0 : index
    %c0_2 = arith.constant 0 : index
    %c0_3 = arith.constant 0 : index
    %2 = vector.load %arg3[%c0_1, %c0_2, %c0_3] : memref<1x1024x256xbf16, #tpu.memory_space<vmem>>, vector<1x1024x256xbf16>
    %3 = vector.shape_cast %2 : vector<1x1024x256xbf16> to vector<1024x256xbf16>
    %cst = arith.constant dense<0.000000e+00> : vector<256x256xf32>
    %4 = tpu.matmul %1, %3, %cst {dimension_numbers = #tpu.dot_dimension_numbers<[1], [0], [0], [1], [0, 0, 1, 1], [], []>} : vector<256x1024xbf16>, vector<1024x256xbf16>, vector<256x256xf32> -> vector<256x256xf32>
    %c0_4 = arith.constant 0 : index
    %c0_5 = arith.constant 0 : index
    %c0_6 = arith.constant 0 : index
    %5 = vector.load %arg4[%c0_4, %c0_5, %c0_6] : memref<1x1x256xf32, #tpu.memory_space<vmem>>, vector<1x1x256xf32>
    %6 = vector.shape_cast %5 : vector<1x1x256xf32> to vector<1x256xf32>
    %7 = vector.broadcast %6 : vector<1x256xf32> to vector<256x256xf32>
    %8 = arith.addf %4, %7 : vector<256x256xf32>
    %cst_7 = arith.constant 0.000000e+00 : f32
    %9 = vector.broadcast %cst_7 : f32 to vector<256x256xf32>
    %10 = arith.cmpf ogt, %8, %9 : vector<256x256xf32>
    %cst_8 = arith.constant 0.000000e+00 : f32
    %11 = vector.broadcast %cst_8 : f32 to vector<256x256xf32>
    %12 = arith.minimumf %8, %11 : vector<256x256xf32>
    %cst_9 = arith.constant 1.000000e+01 : f32
    %13 = vector.broadcast %cst_9 : f32 to vector<256x256xf32>
    %14 = arith.mulf %12, %13 : vector<256x256xf32>
    %15 = math.exp %14 : vector<256x256xf32>
    %cst_10 = arith.constant 1.000000e+00 : f32
    %16 = vector.broadcast %cst_10 : f32 to vector<256x256xf32>
    %17 = arith.subf %15, %16 : vector<256x256xf32>
    %cst_11 = arith.constant 1.000000e-01 : f32
    %18 = vector.broadcast %cst_11 : f32 to vector<256x256xf32>
    %19 = arith.mulf %18, %17 : vector<256x256xf32>
    %20 = arith.select %10, %8, %19 : vector<256x256xi1>, vector<256x256xf32>
    %21 = arith.truncf %20 : vector<256x256xf32> to vector<256x256xbf16>
    %c0_12 = arith.constant 0 : index
    %c0_13 = arith.constant 0 : index
    %c0_14 = arith.constant 0 : index
    %22 = vector.load %arg5[%c0_12, %c0_13, %c0_14] : memref<1x256x192xbf16, #tpu.memory_space<vmem>>, vector<1x256x192xbf16>
    %23 = vector.shape_cast %22 : vector<1x256x192xbf16> to vector<256x192xbf16>
    %cst_15 = arith.constant dense<0.000000e+00> : vector<256x192xf32>
    %24 = tpu.matmul %21, %23, %cst_15 {dimension_numbers = #tpu.dot_dimension_numbers<[1], [0], [0], [1], [0, 0, 1, 1], [], []>} : vector<256x256xbf16>, vector<256x192xbf16>, vector<256x192xf32> -> vector<256x192xf32>
    %c0_16 = arith.constant 0 : index
    %c0_17 = arith.constant 0 : index
    %c0_18 = arith.constant 0 : index
    %25 = vector.load %arg6[%c0_16, %c0_17, %c0_18] : memref<1x1x192xf32, #tpu.memory_space<vmem>>, vector<1x1x192xf32>
    %26 = vector.shape_cast %25 : vector<1x1x192xf32> to vector<1x192xf32>
    %27 = vector.broadcast %26 : vector<1x192xf32> to vector<256x192xf32>
    %28 = arith.addf %24, %27 : vector<256x192xf32>
    %cst_19 = arith.constant 0.000000e+00 : f32
    %29 = vector.broadcast %cst_19 : f32 to vector<256x192xf32>
    %30 = arith.cmpf ogt, %28, %29 : vector<256x192xf32>
    %cst_20 = arith.constant 0.000000e+00 : f32
    %31 = vector.broadcast %cst_20 : f32 to vector<256x192xf32>
    %32 = arith.minimumf %28, %31 : vector<256x192xf32>
    %cst_21 = arith.constant 1.000000e+01 : f32
    %33 = vector.broadcast %cst_21 : f32 to vector<256x192xf32>
    %34 = arith.mulf %32, %33 : vector<256x192xf32>
    %35 = math.exp %34 : vector<256x192xf32>
    %cst_22 = arith.constant 1.000000e+00 : f32
    %36 = vector.broadcast %cst_22 : f32 to vector<256x192xf32>
    %37 = arith.subf %35, %36 : vector<256x192xf32>
    %cst_23 = arith.constant 1.000000e-01 : f32
    %38 = vector.broadcast %cst_23 : f32 to vector<256x192xf32>
    %39 = arith.mulf %38, %37 : vector<256x192xf32>
    %40 = arith.select %30, %28, %39 : vector<256x192xi1>, vector<256x192xf32>
    %41 = arith.truncf %40 : vector<256x192xf32> to vector<256x192xbf16>
    %c0_24 = arith.constant 0 : index
    %c0_25 = arith.constant 0 : index
    %c0_26 = arith.constant 0 : index
    %42 = vector.load %arg7[%c0_24, %c0_25, %c0_26] : memref<1x192x160xbf16, #tpu.memory_space<vmem>>, vector<1x192x160xbf16>
    %43 = vector.shape_cast %42 : vector<1x192x160xbf16> to vector<192x160xbf16>
    %cst_27 = arith.constant dense<0.000000e+00> : vector<256x160xf32>
    %44 = tpu.matmul %41, %43, %cst_27 {dimension_numbers = #tpu.dot_dimension_numbers<[1], [0], [0], [1], [0, 0, 1, 1], [], []>} : vector<256x192xbf16>, vector<192x160xbf16>, vector<256x160xf32> -> vector<256x160xf32>
    %c0_28 = arith.constant 0 : index
    %c0_29 = arith.constant 0 : index
    %c0_30 = arith.constant 0 : index
    %45 = vector.load %arg8[%c0_28, %c0_29, %c0_30] : memref<1x1x160xf32, #tpu.memory_space<vmem>>, vector<1x1x160xf32>
    %46 = vector.shape_cast %45 : vector<1x1x160xf32> to vector<1x160xf32>
    %47 = vector.broadcast %46 : vector<1x160xf32> to vector<256x160xf32>
    %48 = arith.addf %44, %47 : vector<256x160xf32>
    %cst_31 = arith.constant 0.000000e+00 : f32
    %49 = vector.broadcast %cst_31 : f32 to vector<256x160xf32>
    %50 = arith.cmpf ogt, %48, %49 : vector<256x160xf32>
    %cst_32 = arith.constant 0.000000e+00 : f32
    %51 = vector.broadcast %cst_32 : f32 to vector<256x160xf32>
    %52 = arith.minimumf %48, %51 : vector<256x160xf32>
    %cst_33 = arith.constant 1.000000e+01 : f32
    %53 = vector.broadcast %cst_33 : f32 to vector<256x160xf32>
    %54 = arith.mulf %52, %53 : vector<256x160xf32>
    %55 = math.exp %54 : vector<256x160xf32>
    %cst_34 = arith.constant 1.000000e+00 : f32
    %56 = vector.broadcast %cst_34 : f32 to vector<256x160xf32>
    %57 = arith.subf %55, %56 : vector<256x160xf32>
    %cst_35 = arith.constant 1.000000e-01 : f32
    %58 = vector.broadcast %cst_35 : f32 to vector<256x160xf32>
    %59 = arith.mulf %58, %57 : vector<256x160xf32>
    %60 = arith.select %50, %48, %59 : vector<256x160xi1>, vector<256x160xf32>
    %c0_36 = arith.constant 0 : index
    %c0_37 = arith.constant 0 : index
    %c0_38 = arith.constant 0 : index
    %61 = vector.load %arg9[%c0_36, %c0_37, %c0_38] : memref<1x1x160xbf16, #tpu.memory_space<vmem>>, vector<1x1x160xbf16>
    %62 = vector.shape_cast %61 : vector<1x1x160xbf16> to vector<1x160xbf16>
    %63 = arith.extf %62 : vector<1x160xbf16> to vector<1x160xf32>
    %64 = vector.broadcast %63 : vector<1x160xf32> to vector<256x160xf32>
    %65 = arith.mulf %60, %64 : vector<256x160xf32>
    %cst_39 = arith.constant dense<0.000000e+00> : vector<256xf32>
    %66 = vector.multi_reduction <add>, %65, %cst_39 [1] : vector<256x160xf32> to vector<256xf32>
    %67 = vector.shape_cast %66 : vector<256xf32> to vector<256x1xf32>
    %c0_40 = arith.constant 0 : index
    %c0_41 = arith.constant 0 : index
    %c0_42 = arith.constant 0 : index
    %68 = vector.load %arg10[%c0_40, %c0_41, %c0_42] : memref<1x1x1xf32, #tpu.memory_space<vmem>>, vector<1x1x1xf32>
    %69 = vector.shape_cast %68 : vector<1x1x1xf32> to vector<1x1xf32>
    %70 = vector.broadcast %69 : vector<1x1xf32> to vector<256x1xf32>
    %71 = arith.addf %67, %70 : vector<256x1xf32>
    %c0_43 = arith.constant 0 : index
    %c0_44 = arith.constant 0 : index
    %72 = vector.load %arg11[%c0_43, %c0_44] : memref<256x1xf32, #tpu.memory_space<vmem>>, vector<256x1xf32>
    tpu.vector_store %arg11[%c0_43, %c0_44], %71 {strides = array<i32>} : memref<256x1xf32, #tpu.memory_space<vmem>>, vector<256x1xf32>,
    return
  }
  func.func @transform_0(%arg0: i32, %arg1: memref<8xi32, #tpu.memory_space<smem>>) -> (i32, i32) {
    %c0_i32 = arith.constant 0 : i32
    %c0_i32_0 = arith.constant 0 : i32
    return %arg0, %c0_i32 : i32, i32
  }
  func.func @transform_1(%arg0: i32, %arg1: memref<8xi32, #tpu.memory_space<smem>>) -> (i32, i32, i32) {
    %0 = arith.index_cast %arg0 : i32 to index
    %1 = memref.load %arg1[%0] : memref<8xi32, #tpu.memory_space<smem>>
    %c0_i32 = arith.constant 0 : i32
    %c0_i32_0 = arith.constant 0 : i32
    %c0_i32_1 = arith.constant 0 : i32
    return %1, %c0_i32, %c0_i32_0 : i32, i32, i32
  }
  func.func @transform_2(%arg0: i32, %arg1: memref<8xi32, #tpu.memory_space<smem>>) -> (i32, i32, i32) {
    %0 = arith.index_cast %arg0 : i32 to index
    %1 = memref.load %arg1[%0] : memref<8xi32, #tpu.memory_space<smem>>
    %c0_i32 = arith.constant 0 : i32
    %c0_i32_0 = arith.constant 0 : i32
    %c0_i32_1 = arith.constant 0 : i32
    return %1, %c0_i32, %c0_i32_0 : i32, i32, i32
  }
  func.func @transform_3(%arg0: i32, %arg1: memref<8xi32, #tpu.memory_space<smem>>) -> (i32, i32, i32) {
    %0 = arith.index_cast %arg0 : i32 to index
    %1 = memref.load %arg1[%0] : memref<8xi32, #tpu.memory_space<smem>>
    %c0_i32 = arith.constant 0 : i32
    %c0_i32_0 = arith.constant 0 : i32
    %c0_i32_1 = arith.constant 0 : i32
    return %1, %c0_i32, %c0_i32_0 : i32, i32, i32
  }
  func.func @transform_4(%arg0: i32, %arg1: memref<8xi32, #tpu.memory_space<smem>>) -> (i32, i32, i32) {
    %0 = arith.index_cast %arg0 : i32 to index
    %1 = memref.load %arg1[%0] : memref<8xi32, #tpu.memory_space<smem>>
    %c0_i32 = arith.constant 0 : i32
    %c0_i32_0 = arith.constant 0 : i32
    %c0_i32_1 = arith.constant 0 : i32
    return %1, %c0_i32, %c0_i32_0 : i32, i32, i32
  }
  func.func @transform_5(%arg0: i32, %arg1: memref<8xi32, #tpu.memory_space<smem>>) -> (i32, i32, i32) {
    %0 = arith.index_cast %arg0 : i32 to index
    %1 = memref.load %arg1[%0] : memref<8xi32, #tpu.memory_space<smem>>
    %c0_i32 = arith.constant 0 : i32
    %c0_i32_0 = arith.constant 0 : i32
    %c0_i32_1 = arith.constant 0 : i32
    return %1, %c0_i32, %c0_i32_0 : i32, i32, i32
  }
  func.func @transform_6(%arg0: i32, %arg1: memref<8xi32, #tpu.memory_space<smem>>) -> (i32, i32, i32) {
    %0 = arith.index_cast %arg0 : i32 to index
    %1 = memref.load %arg1[%0] : memref<8xi32, #tpu.memory_space<smem>>
    %c0_i32 = arith.constant 0 : i32
    %c0_i32_0 = arith.constant 0 : i32
    %c0_i32_1 = arith.constant 0 : i32
    return %1, %c0_i32, %c0_i32_0 : i32, i32, i32
  }
  func.func @transform_7(%arg0: i32, %arg1: memref<8xi32, #tpu.memory_space<smem>>) -> (i32, i32, i32) {
    %0 = arith.index_cast %arg0 : i32 to index
    %1 = memref.load %arg1[%0] : memref<8xi32, #tpu.memory_space<smem>>
    %c0_i32 = arith.constant 0 : i32
    %c0_i32_0 = arith.constant 0 : i32
    %c0_i32_1 = arith.constant 0 : i32
    return %1, %c0_i32, %c0_i32_0 : i32, i32, i32
  }
  func.func @transform_8(%arg0: i32, %arg1: memref<8xi32, #tpu.memory_space<smem>>) -> (i32, i32, i32) {
    %0 = arith.index_cast %arg0 : i32 to index
    %1 = memref.load %arg1[%0] : memref<8xi32, #tpu.memory_space<smem>>
    %c0_i32 = arith.constant 0 : i32
    %c0_i32_0 = arith.constant 0 : i32
    %c0_i32_1 = arith.constant 0 : i32
    return %1, %c0_i32, %c0_i32_0 : i32, i32, i32
  }
  func.func @transform_9(%arg0: i32, %arg1: memref<8xi32, #tpu.memory_space<smem>>) -> (i32, i32) {
    %c0_i32 = arith.constant 0 : i32
    %c0_i32_0 = arith.constant 0 : i32
    return %arg0, %c0_i32 : i32, i32
  }
}

module attributes {stable_mosaic.version = 11 : i64} {
  func.func @_mlp_bwd_kernel(%arg0: i32, %arg1: memref<8xi32, #tpu.memory_space<smem>>, %arg2: memref<256x1024xf32, #tpu.memory_space<vmem>>, %arg3: memref<256x1xf32, #tpu.memory_space<vmem>>, %arg4: memref<1x1024x256xbf16, #tpu.memory_space<vmem>>, %arg5: memref<1x1x256xf32, #tpu.memory_space<vmem>>, %arg6: memref<1x256x192xbf16, #tpu.memory_space<vmem>>, %arg7: memref<1x1x192xf32, #tpu.memory_space<vmem>>, %arg8: memref<1x192x160xbf16, #tpu.memory_space<vmem>>, %arg9: memref<1x1x160xf32, #tpu.memory_space<vmem>>, %arg10: memref<1x256x1024xbf16, #tpu.memory_space<vmem>>, %arg11: memref<1x192x256xbf16, #tpu.memory_space<vmem>>, %arg12: memref<1x160x192xbf16, #tpu.memory_space<vmem>>, %arg13: memref<1x1x160xbf16, #tpu.memory_space<vmem>>, %arg14: memref<256x1024xf32, #tpu.memory_space<vmem>>) attributes {dimension_semantics = [#tpu.dimension_semantics<parallel>], iteration_bounds = array<i64: 8>, scalar_prefetch = 1 : i64, scratch_operands = 0 : i64, tpu.core_type = #tpu.core_type<tc>, window_params = [{transform_indices = @transform_0, window_bounds = array<i64: 256, 1024>}, {transform_indices = @transform_1, window_bounds = array<i64: 256, 1>}, {transform_indices = @transform_2, window_bounds = array<i64: 1, 1024, 256>}, {transform_indices = @transform_3, window_bounds = array<i64: 1, 1, 256>}, {transform_indices = @transform_4, window_bounds = array<i64: 1, 256, 192>}, {transform_indices = @transform_5, window_bounds = array<i64: 1, 1, 192>}, {transform_indices = @transform_6, window_bounds = array<i64: 1, 192, 160>}, {transform_indices = @transform_7, window_bounds = array<i64: 1, 1, 160>}, {transform_indices = @transform_8, window_bounds = array<i64: 1, 256, 1024>}, {transform_indices = @transform_9, window_bounds = array<i64: 1, 192, 256>}, {transform_indices = @transform_10, window_bounds = array<i64: 1, 160, 192>}, {transform_indices = @transform_11, window_bounds = array<i64: 1, 1, 160>}, {transform_indices = @transform_12, window_bounds = array<i64: 256, 1024>}]} {
    %c0 = arith.constant 0 : index
    %c0_0 = arith.constant 0 : index
    %0 = vector.load %arg2[%c0, %c0_0] : memref<256x1024xf32, #tpu.memory_space<vmem>>, vector<256x1024xf32>
    %1 = arith.truncf %0 : vector<256x1024xf32> to vector<256x1024xbf16>
    %c0_1 = arith.constant 0 : index
    %c0_2 = arith.constant 0 : index
    %c0_3 = arith.constant 0 : index
    %2 = vector.load %arg4[%c0_1, %c0_2, %c0_3] : memref<1x1024x256xbf16, #tpu.memory_space<vmem>>, vector<1x1024x256xbf16>
    %3 = vector.shape_cast %2 : vector<1x1024x256xbf16> to vector<1024x256xbf16>
    %cst = arith.constant dense<0.000000e+00> : vector<256x256xf32>
    %4 = tpu.matmul %1, %3, %cst {dimension_numbers = #tpu.dot_dimension_numbers<[1], [0], [0], [1], [0, 0, 1, 1], [], []>} : vector<256x1024xbf16>, vector<1024x256xbf16>, vector<256x256xf32> -> vector<256x256xf32>
    %c0_4 = arith.constant 0 : index
    %c0_5 = arith.constant 0 : index
    %c0_6 = arith.constant 0 : index
    %5 = vector.load %arg5[%c0_4, %c0_5, %c0_6] : memref<1x1x256xf32, #tpu.memory_space<vmem>>, vector<1x1x256xf32>
    %6 = vector.shape_cast %5 : vector<1x1x256xf32> to vector<1x256xf32>
    %7 = vector.broadcast %6 : vector<1x256xf32> to vector<256x256xf32>
    %8 = arith.addf %4, %7 : vector<256x256xf32>
    %cst_7 = arith.constant 0.000000e+00 : f32
    %9 = vector.broadcast %cst_7 : f32 to vector<256x256xf32>
    %10 = arith.minimumf %8, %9 : vector<256x256xf32>
    %cst_8 = arith.constant 1.000000e+01 : f32
    %11 = vector.broadcast %cst_8 : f32 to vector<256x256xf32>
    %12 = arith.mulf %10, %11 : vector<256x256xf32>
    %13 = math.exp %12 : vector<256x256xf32>
    %cst_9 = arith.constant 0.000000e+00 : f32
    %14 = vector.broadcast %cst_9 : f32 to vector<256x256xf32>
    %15 = arith.cmpf ogt, %8, %14 : vector<256x256xf32>
    %cst_10 = arith.constant 1.000000e+00 : f32
    %16 = vector.broadcast %cst_10 : f32 to vector<256x256xf32>
    %17 = arith.subf %13, %16 : vector<256x256xf32>
    %cst_11 = arith.constant 1.000000e-01 : f32
    %18 = vector.broadcast %cst_11 : f32 to vector<256x256xf32>
    %19 = arith.mulf %18, %17 : vector<256x256xf32>
    %20 = arith.select %15, %8, %19 : vector<256x256xi1>, vector<256x256xf32>
    %21 = arith.truncf %20 : vector<256x256xf32> to vector<256x256xbf16>
    %c0_12 = arith.constant 0 : index
    %c0_13 = arith.constant 0 : index
    %c0_14 = arith.constant 0 : index
    %22 = vector.load %arg6[%c0_12, %c0_13, %c0_14] : memref<1x256x192xbf16, #tpu.memory_space<vmem>>, vector<1x256x192xbf16>
    %23 = vector.shape_cast %22 : vector<1x256x192xbf16> to vector<256x192xbf16>
    %cst_15 = arith.constant dense<0.000000e+00> : vector<256x192xf32>
    %24 = tpu.matmul %21, %23, %cst_15 {dimension_numbers = #tpu.dot_dimension_numbers<[1], [0], [0], [1], [0, 0, 1, 1], [], []>} : vector<256x256xbf16>, vector<256x192xbf16>, vector<256x192xf32> -> vector<256x192xf32>
    %c0_16 = arith.constant 0 : index
    %c0_17 = arith.constant 0 : index
    %c0_18 = arith.constant 0 : index
    %25 = vector.load %arg7[%c0_16, %c0_17, %c0_18] : memref<1x1x192xf32, #tpu.memory_space<vmem>>, vector<1x1x192xf32>
    %26 = vector.shape_cast %25 : vector<1x1x192xf32> to vector<1x192xf32>
    %27 = vector.broadcast %26 : vector<1x192xf32> to vector<256x192xf32>
    %28 = arith.addf %24, %27 : vector<256x192xf32>
    %cst_19 = arith.constant 0.000000e+00 : f32
    %29 = vector.broadcast %cst_19 : f32 to vector<256x192xf32>
    %30 = arith.minimumf %28, %29 : vector<256x192xf32>
    %cst_20 = arith.constant 1.000000e+01 : f32
    %31 = vector.broadcast %cst_20 : f32 to vector<256x192xf32>
    %32 = arith.mulf %30, %31 : vector<256x192xf32>
    %33 = math.exp %32 : vector<256x192xf32>
    %cst_21 = arith.constant 0.000000e+00 : f32
    %34 = vector.broadcast %cst_21 : f32 to vector<256x192xf32>
    %35 = arith.cmpf ogt, %28, %34 : vector<256x192xf32>
    %cst_22 = arith.constant 1.000000e+00 : f32
    %36 = vector.broadcast %cst_22 : f32 to vector<256x192xf32>
    %37 = arith.subf %33, %36 : vector<256x192xf32>
    %cst_23 = arith.constant 1.000000e-01 : f32
    %38 = vector.broadcast %cst_23 : f32 to vector<256x192xf32>
    %39 = arith.mulf %38, %37 : vector<256x192xf32>
    %40 = arith.select %35, %28, %39 : vector<256x192xi1>, vector<256x192xf32>
    %41 = arith.truncf %40 : vector<256x192xf32> to vector<256x192xbf16>
    %c0_24 = arith.constant 0 : index
    %c0_25 = arith.constant 0 : index
    %c0_26 = arith.constant 0 : index
    %42 = vector.load %arg8[%c0_24, %c0_25, %c0_26] : memref<1x192x160xbf16, #tpu.memory_space<vmem>>, vector<1x192x160xbf16>
    %43 = vector.shape_cast %42 : vector<1x192x160xbf16> to vector<192x160xbf16>
    %cst_27 = arith.constant dense<0.000000e+00> : vector<256x160xf32>
    %44 = tpu.matmul %41, %43, %cst_27 {dimension_numbers = #tpu.dot_dimension_numbers<[1], [0], [0], [1], [0, 0, 1, 1], [], []>} : vector<256x192xbf16>, vector<192x160xbf16>, vector<256x160xf32> -> vector<256x160xf32>
    %c0_28 = arith.constant 0 : index
    %c0_29 = arith.constant 0 : index
    %c0_30 = arith.constant 0 : index
    %45 = vector.load %arg9[%c0_28, %c0_29, %c0_30] : memref<1x1x160xf32, #tpu.memory_space<vmem>>, vector<1x1x160xf32>
    %46 = vector.shape_cast %45 : vector<1x1x160xf32> to vector<1x160xf32>
    %47 = vector.broadcast %46 : vector<1x160xf32> to vector<256x160xf32>
    %48 = arith.addf %44, %47 : vector<256x160xf32>
    %cst_31 = arith.constant 0.000000e+00 : f32
    %49 = vector.broadcast %cst_31 : f32 to vector<256x160xf32>
    %50 = arith.minimumf %48, %49 : vector<256x160xf32>
    %cst_32 = arith.constant 1.000000e+01 : f32
    %51 = vector.broadcast %cst_32 : f32 to vector<256x160xf32>
    %52 = arith.mulf %50, %51 : vector<256x160xf32>
    %53 = math.exp %52 : vector<256x160xf32>
    %c0_33 = arith.constant 0 : index
    %c0_34 = arith.constant 0 : index
    %54 = vector.load %arg3[%c0_33, %c0_34] : memref<256x1xf32, #tpu.memory_space<vmem>>, vector<256x1xf32>
    %c0_35 = arith.constant 0 : index
    %c0_36 = arith.constant 0 : index
    %c0_37 = arith.constant 0 : index
    %55 = vector.load %arg13[%c0_35, %c0_36, %c0_37] : memref<1x1x160xbf16, #tpu.memory_space<vmem>>, vector<1x1x160xbf16>
    %56 = vector.shape_cast %55 : vector<1x1x160xbf16> to vector<1x160xbf16>
    %57 = arith.extf %56 : vector<1x160xbf16> to vector<1x160xf32>
    %58 = vector.broadcast %54 : vector<256x1xf32> to vector<256x160xf32>
    %59 = vector.broadcast %57 : vector<1x160xf32> to vector<256x160xf32>
    %60 = arith.mulf %58, %59 : vector<256x160xf32>
    %cst_38 = arith.constant 0.000000e+00 : f32
    %61 = vector.broadcast %cst_38 : f32 to vector<256x160xf32>
    %62 = arith.cmpf ogt, %48, %61 : vector<256x160xf32>
    %cst_39 = arith.constant 1.000000e+00 : f32
    %63 = vector.broadcast %cst_39 : f32 to vector<256x160xf32>
    %64 = arith.select %62, %63, %53 : vector<256x160xi1>, vector<256x160xf32>
    %65 = arith.mulf %60, %64 : vector<256x160xf32>
    %66 = arith.truncf %65 : vector<256x160xf32> to vector<256x160xbf16>
    %c0_40 = arith.constant 0 : index
    %c0_41 = arith.constant 0 : index
    %c0_42 = arith.constant 0 : index
    %67 = vector.load %arg12[%c0_40, %c0_41, %c0_42] : memref<1x160x192xbf16, #tpu.memory_space<vmem>>, vector<1x160x192xbf16>
    %68 = vector.shape_cast %67 : vector<1x160x192xbf16> to vector<160x192xbf16>
    %cst_43 = arith.constant dense<0.000000e+00> : vector<256x192xf32>
    %69 = tpu.matmul %66, %68, %cst_43 {dimension_numbers = #tpu.dot_dimension_numbers<[1], [0], [0], [1], [0, 0, 1, 1], [], []>} : vector<256x160xbf16>, vector<160x192xbf16>, vector<256x192xf32> -> vector<256x192xf32>
    %cst_44 = arith.constant 0.000000e+00 : f32
    %70 = vector.broadcast %cst_44 : f32 to vector<256x192xf32>
    %71 = arith.cmpf ogt, %28, %70 : vector<256x192xf32>
    %cst_45 = arith.constant 1.000000e+00 : f32
    %72 = vector.broadcast %cst_45 : f32 to vector<256x192xf32>
    %73 = arith.select %71, %72, %33 : vector<256x192xi1>, vector<256x192xf32>
    %74 = arith.mulf %69, %73 : vector<256x192xf32>
    %75 = arith.truncf %74 : vector<256x192xf32> to vector<256x192xbf16>
    %c0_46 = arith.constant 0 : index
    %c0_47 = arith.constant 0 : index
    %c0_48 = arith.constant 0 : index
    %76 = vector.load %arg11[%c0_46, %c0_47, %c0_48] : memref<1x192x256xbf16, #tpu.memory_space<vmem>>, vector<1x192x256xbf16>
    %77 = vector.shape_cast %76 : vector<1x192x256xbf16> to vector<192x256xbf16>
    %cst_49 = arith.constant dense<0.000000e+00> : vector<256x256xf32>
    %78 = tpu.matmul %75, %77, %cst_49 {dimension_numbers = #tpu.dot_dimension_numbers<[1], [0], [0], [1], [0, 0, 1, 1], [], []>} : vector<256x192xbf16>, vector<192x256xbf16>, vector<256x256xf32> -> vector<256x256xf32>
    %cst_50 = arith.constant 0.000000e+00 : f32
    %79 = vector.broadcast %cst_50 : f32 to vector<256x256xf32>
    %80 = arith.cmpf ogt, %8, %79 : vector<256x256xf32>
    %cst_51 = arith.constant 1.000000e+00 : f32
    %81 = vector.broadcast %cst_51 : f32 to vector<256x256xf32>
    %82 = arith.select %80, %81, %13 : vector<256x256xi1>, vector<256x256xf32>
    %83 = arith.mulf %78, %82 : vector<256x256xf32>
    %84 = arith.truncf %83 : vector<256x256xf32> to vector<256x256xbf16>
    %c0_52 = arith.constant 0 : index
    %c0_53 = arith.constant 0 : index
    %c0_54 = arith.constant 0 : index
    %85 = vector.load %arg10[%c0_52, %c0_53, %c0_54] : memref<1x256x1024xbf16, #tpu.memory_space<vmem>>, vector<1x256x1024xbf16>
    %86 = vector.shape_cast %85 : vector<1x256x1024xbf16> to vector<256x1024xbf16>
    %cst_55 = arith.constant dense<0.000000e+00> : vector<256x1024xf32>
    %87 = tpu.matmul %84, %86, %cst_55 {dimension_numbers = #tpu.dot_dimension_numbers<[1], [0], [0], [1], [0, 0, 1, 1], [], []>} : vector<256x256xbf16>, vector<256x1024xbf16>, vector<256x1024xf32> -> vector<256x1024xf32>
    %c0_56 = arith.constant 0 : index
    %c0_57 = arith.constant 0 : index
    %88 = vector.load %arg14[%c0_56, %c0_57] : memref<256x1024xf32, #tpu.memory_space<vmem>>, vector<256x1024xf32>
    tpu.vector_store %arg14[%c0_56, %c0_57], %87 {strides = array<i32>} : memref<256x1024xf32, #tpu.memory_space<vmem>>, vector<256x1024xf32>,
    return
  }
  func.func @transform_0(%arg0: i32, %arg1: memref<8xi32, #tpu.memory_space<smem>>) -> (i32, i32) {
    %c0_i32 = arith.constant 0 : i32
    %c0_i32_0 = arith.constant 0 : i32
    return %arg0, %c0_i32 : i32, i32
  }
  func.func @transform_1(%arg0: i32, %arg1: memref<8xi32, #tpu.memory_space<smem>>) -> (i32, i32) {
    %c0_i32 = arith.constant 0 : i32
    %c0_i32_0 = arith.constant 0 : i32
    return %arg0, %c0_i32 : i32, i32
  }
  func.func @transform_2(%arg0: i32, %arg1: memref<8xi32, #tpu.memory_space<smem>>) -> (i32, i32, i32) {
    %0 = arith.index_cast %arg0 : i32 to index
    %1 = memref.load %arg1[%0] : memref<8xi32, #tpu.memory_space<smem>>
    %c0_i32 = arith.constant 0 : i32
    %c0_i32_0 = arith.constant 0 : i32
    %c0_i32_1 = arith.constant 0 : i32
    return %1, %c0_i32, %c0_i32_0 : i32, i32, i32
  }
  func.func @transform_3(%arg0: i32, %arg1: memref<8xi32, #tpu.memory_space<smem>>) -> (i32, i32, i32) {
    %0 = arith.index_cast %arg0 : i32 to index
    %1 = memref.load %arg1[%0] : memref<8xi32, #tpu.memory_space<smem>>
    %c0_i32 = arith.constant 0 : i32
    %c0_i32_0 = arith.constant 0 : i32
    %c0_i32_1 = arith.constant 0 : i32
    return %1, %c0_i32, %c0_i32_0 : i32, i32, i32
  }
  func.func @transform_4(%arg0: i32, %arg1: memref<8xi32, #tpu.memory_space<smem>>) -> (i32, i32, i32) {
    %0 = arith.index_cast %arg0 : i32 to index
    %1 = memref.load %arg1[%0] : memref<8xi32, #tpu.memory_space<smem>>
    %c0_i32 = arith.constant 0 : i32
    %c0_i32_0 = arith.constant 0 : i32
    %c0_i32_1 = arith.constant 0 : i32
    return %1, %c0_i32, %c0_i32_0 : i32, i32, i32
  }
  func.func @transform_5(%arg0: i32, %arg1: memref<8xi32, #tpu.memory_space<smem>>) -> (i32, i32, i32) {
    %0 = arith.index_cast %arg0 : i32 to index
    %1 = memref.load %arg1[%0] : memref<8xi32, #tpu.memory_space<smem>>
    %c0_i32 = arith.constant 0 : i32
    %c0_i32_0 = arith.constant 0 : i32
    %c0_i32_1 = arith.constant 0 : i32
    return %1, %c0_i32, %c0_i32_0 : i32, i32, i32
  }
  func.func @transform_6(%arg0: i32, %arg1: memref<8xi32, #tpu.memory_space<smem>>) -> (i32, i32, i32) {
    %0 = arith.index_cast %arg0 : i32 to index
    %1 = memref.load %arg1[%0] : memref<8xi32, #tpu.memory_space<smem>>
    %c0_i32 = arith.constant 0 : i32
    %c0_i32_0 = arith.constant 0 : i32
    %c0_i32_1 = arith.constant 0 : i32
    return %1, %c0_i32, %c0_i32_0 : i32, i32, i32
  }
  func.func @transform_7(%arg0: i32, %arg1: memref<8xi32, #tpu.memory_space<smem>>) -> (i32, i32, i32) {
    %0 = arith.index_cast %arg0 : i32 to index
    %1 = memref.load %arg1[%0] : memref<8xi32, #tpu.memory_space<smem>>
    %c0_i32 = arith.constant 0 : i32
    %c0_i32_0 = arith.constant 0 : i32
    %c0_i32_1 = arith.constant 0 : i32
    return %1, %c0_i32, %c0_i32_0 : i32, i32, i32
  }
  func.func @transform_8(%arg0: i32, %arg1: memref<8xi32, #tpu.memory_space<smem>>) -> (i32, i32, i32) {
    %0 = arith.index_cast %arg0 : i32 to index
    %1 = memref.load %arg1[%0] : memref<8xi32, #tpu.memory_space<smem>>
    %c0_i32 = arith.constant 0 : i32
    %c0_i32_0 = arith.constant 0 : i32
    %c0_i32_1 = arith.constant 0 : i32
    return %1, %c0_i32, %c0_i32_0 : i32, i32, i32
  }
  func.func @transform_9(%arg0: i32, %arg1: memref<8xi32, #tpu.memory_space<smem>>) -> (i32, i32, i32) {
    %0 = arith.index_cast %arg0 : i32 to index
    %1 = memref.load %arg1[%0] : memref<8xi32, #tpu.memory_space<smem>>
    %c0_i32 = arith.constant 0 : i32
    %c0_i32_0 = arith.constant 0 : i32
    %c0_i32_1 = arith.constant 0 : i32
    return %1, %c0_i32, %c0_i32_0 : i32, i32, i32
  }
  func.func @transform_10(%arg0: i32, %arg1: memref<8xi32, #tpu.memory_space<smem>>) -> (i32, i32, i32) {
    %0 = arith.index_cast %arg0 : i32 to index
    %1 = memref.load %arg1[%0] : memref<8xi32, #tpu.memory_space<smem>>
    %c0_i32 = arith.constant 0 : i32
    %c0_i32_0 = arith.constant 0 : i32
    %c0_i32_1 = arith.constant 0 : i32
    return %1, %c0_i32, %c0_i32_0 : i32, i32, i32
  }
  func.func @transform_11(%arg0: i32, %arg1: memref<8xi32, #tpu.memory_space<smem>>) -> (i32, i32, i32) {
    %0 = arith.index_cast %arg0 : i32 to index
    %1 = memref.load %arg1[%0] : memref<8xi32, #tpu.memory_space<smem>>
    %c0_i32 = arith.constant 0 : i32
    %c0_i32_0 = arith.constant 0 : i32
    %c0_i32_1 = arith.constant 0 : i32
    return %1, %c0_i32, %c0_i32_0 : i32, i32, i32
  }
  func.func @transform_12(%arg0: i32, %arg1: memref<8xi32, #tpu.memory_space<smem>>) -> (i32, i32) {
    %c0_i32 = arith.constant 0 : i32
    %c0_i32_0 = arith.constant 0 : i32
    return %arg0, %c0_i32 : i32, i32
  }
}

</mosaic_0001>

<bundles_post_ra>
// kernel: eq.40
= control target key start
LH: loop header
LB: loop body
LE: loop exit
PB: predicated region body
PF: predicated region fallthrough
CT: control target
= control target key end

     0   :  { %2 = vsyncpa [#allocation1], 0  ;;  %s62_s8 = smov [#allocation0]   ;;  %s80_s0 = inlined_call_operand.hbm [shape: s32[2,8], index: 0, kind: input, shape index: {}]   ;;  %s81_s1 = inlined_call_operand.vmem [shape: s32[16], index: 1, kind: output, shape index: {}]  }
   0x1   :  { %s6_s0 = sshll.u32 %s80_s0, 4  ;;  %s8_s9 = sshll.u32 %s62_s8, 4  ;;  %s7_s0 = int_to_ptr.hbm [resolvable:$true] %s6_s0  ;;  %s9_s9 = int_to_ptr.vmem [resolvable:$true] %s8_s9 }
   0x2   :  { %11 = dma.hbm_to_vmem [thread:$0]  %s7_s0, 32, %s9_s9, [#allocation1]  }
   0x3   :  { %60 = dma.done.wait [#allocation1], 32  }
   0x4   :  { %61 = vsyncadd [#allocation1], 4294967264  ;;  %v16_v0 = vld [vmem:[#allocation0] sm:$0x3]  ;;  %vm19_vm0 = vcmask 64512   ;;  %s63_s10 = smov 8  }
   0x5   :  { %17 = vst [vmem:[#allocation3] sm:$0x3] %v16_v0  ;;  %vm25_vm1 = vcmask 130112  }
   0xc   :  { %v18_v1 = vld [vmem:[#allocation3] sm:$0x1]   ;;  %v22_v2 = vld [vmem:[#allocation3 + $0x1] sm:$0x1]  }
   0xd   :  { %23 = vrot.lane.b32.xlu0 %v22_v2, %s63_s10  ;;  %20 = vst.msk [vmem:[#allocation2] sm:$0x1] %vm19_vm0, %v18_v1  }
  0x7f   :  { %v24_v3 = vpop.permute.xlu0 %23  }
  0x80   :  { %26 = vst.msk [vmem:[#allocation2] sm:$0x1] %vm25_vm1, %v24_v3  }
  0x87   :  { %v29_v4 = vld [vmem:[#allocation2] sm:$0x1] }
  0x88   :  { %32 = vst [vmem:[%s81_s1] sm:$0x1] %v29_v4 }
  0x89   :  { %33 = vsyncpa [#allocation1], 1 }

// kernel: jvp__.1
= control target key start
LH: loop header
LB: loop body
LE: loop exit
PB: predicated region body
PF: predicated region fallthrough
CT: control target
= control target key end

     0   :  { %s7845_s16 = smov [#allocation3]   ;;  %s10914_s0 = inlined_call_operand.vmem [shape: s32[8], index: 0, kind: input, shape index: {}]   ;;  %s10915_s1 = inlined_call_operand.vmem [shape: f32[2048,1024], index: 1, kind: input, shape index: {}]   ;;  %s10916_s2 = inlined_call_operand.vmem [shape: bf16[7,1024,256], index: 2, kind: input, shape index: {}]   ;;  %s10917_s3 = inlined_call_operand.vmem [shape: f32[7,1,256], index: 3, kind: input, shape index: {}]   ;;  %s10918_s4 = inlined_call_operand.vmem [shape: bf16[7,256,192], index: 4, kind: input, shape index: {}]   ;;  %s10919_s5 = inlined_call_operand.vmem [shape: f32[7,1,192], index: 5, kind: input, shape index: {}]   ;;  %s10920_s6 = inlined_call_operand.vmem [shape: bf16[7,192,160], index: 6, kind: input, shape index: {}]   ;;  %s10921_s7 = inlined_call_operand.vmem [shape: f32[7,1,160], index: 7, kind: input, shape index: {}]   ;;  %s10922_s8 = inlined_call_operand.vmem [shape: bf16[7,1,160], index: 8, kind: input, shape index: {}]   ;;  %s10923_s9 = inlined_call_operand.vmem [shape: f32[7,1,1], index: 9, kind: input, shape index: {}]   ;;  %s10924_s10 = inlined_call_operand.vmem [shape: f32[2048,1], index: 10, kind: output, shape index: {}]  }
   0x1   :  { %s16_s15 = sshll.u32 %s10914_s0, 4  ;;  %s17_s15 = int_to_ptr.vmem [resolvable:$true] %s16_s15 }
   0x2   :  { %19 = dma.vmem_to_smem %s17_s15, 16, %s7845_s16, [#allocation2] }
   0x3   :  { %7839 = dma.done.wait [#allocation2], 16 }
   0x4   :  { %7840 = vsyncadd [#allocation2], 4294967280 }
   0x5   :  { %22 = sfence }
   0x6   :  { %s7904_s17 = smov 0  }
   0x7 LB: > { %s7910_s18 = sadd.s32 4294967295, %s7843_s17   ;;  %p6262_p0 = scmp.ge.s32.totalorder %s7843_s17, 1  ;;  %s7843_s17 = sphi %s7904_s17, %s28_s17  }
   0x8   : > { %p404_p1 = scmp.lt.s32.totalorder %s7843_s17, 9 }
   0xa   : > { %p405_p2 = pnand %p6262_p0, %p404_p1 }
   0xc   : > { %408 = sbr.rel (%p405_p2) target bundleno = 1870 (0x74e), region = 56 }
  0x11   : > { %s490_s0 = sld [smem:[#allocation3 + %s7910_s18]]  ;;  %s6263_s23 = sshll.u32 %s7910_s18, 5 }
  0x12   : > { %p7955_p4 = scmp.lt.s32.totalorder %s6263_s23, 255  ;;  %s8175_s29 = sld [smem:[#allocation3 + %s7910_s18]] }
  0x13   : > { %s503_s14 = sld [smem:[#allocation3 + %s7910_s18]] }
  0x14   : > { %s11297_s23 = smov (!%p7955_p4, %s6263_s23), 255  ;;  %s9494_s20 = sld [smem:[#allocation3 + %s7910_s18]] }
  0x15   : > { %s7239_s25 = sshll.u32 %s11297_s23, 6  ;;  %s510_s26 = sld [smem:[#allocation3 + %s7910_s18]] }
  0x16   : > { %s7994_s28 = scalar_lea.vmem %s10915_s1, %s7239_s25  ;;  %s10177_s11 = sld [smem:[#allocation3 + %s7910_s18]] }
  0x17   : > { %p491_p3 = scmp.lt.s32.totalorder %s490_s0, 6  ;;  %s10237_s16 = sld [smem:[#allocation3 + %s7910_s18]] }
  0x18   : > { %p498_p5 = scmp.lt.s32.totalorder %s8175_s29, 6 }
  0x19   : > { %s11295_s0 = smov (!%p491_p3, %s490_s0), 6  ;;  %p504_p6 = scmp.lt.s32.totalorder %s503_s14, 6 }
  0x1a   : > { %s7240_s19 = sshll.u32 %s11295_s0, 10  ;;  %s11299_s29 = smov (!%p498_p5, %s8175_s29), 6 }
  0x1b   : > { %s7918_s22 = scalar_lea.vmem %s10916_s2, %s7240_s19  ;;  %s6268_s30 = sshll.u32 %s11299_s29, 1 }
  0x1c   : > { %v6335_v0 = vld [vmem:[%s7918_s22 + $0x70] sm:$0xf]  ;;  %v7257_v1 = vld [vmem:[%s7918_s22 + $0x74] sm:$0xf0]  ;;  %v6327_v11 = vld [vmem:[%s7918_s22 + $0x60] sm:$0xf]  ;;  %s8213_s13 = scalar_lea.vmem %s10917_s3, %s6268_s30 }
  0x1d   : > { %v6399_v2 = vld [vmem:[%s7918_s22 + $0xf0] sm:$0xf]  ;;  %v6336_v3 = vor.u32 %v7257_v1, %v6335_v0  ;;  %v7273_v4 = vld [vmem:[%s7918_s22 + $0xf4] sm:$0xf0]  ;;  %v7255_v13 = vld [vmem:[%s7918_s22 + $0x64] sm:$0xf0] }
  0x1e   : > { %v6463_v5 = vld [vmem:[%s7918_s22 + $0x170] sm:$0xf]  ;;  %v7289_v6 = vld [vmem:[%s7918_s22 + $0x174] sm:$0xf0]  ;;  %v6400_v7 = vor.u32 %v7273_v4, %v6399_v2  ;;  %v6391_v14 = vld [vmem:[%s7918_s22 + $0xe0] sm:$0xf]  ;;  %v6328_v16 = vor.u32 %v7255_v13, %v6327_v11 }
  0x1f   : > { %v6464_v8 = vor.u32 %v7289_v6, %v6463_v5  ;;  %v6527_v9 = vld [vmem:[%s7918_s22 + $0x1f0] sm:$0xf]  ;;  %v7305_v10 = vld [vmem:[%s7918_s22 + $0x1f4] sm:$0xf0]  ;;  %1705 = vmatpush.bf16.msra.mxu0 %v6336_v3  ;;  %v7271_v15 = vld [vmem:[%s7918_s22 + $0xe4] sm:$0xf0] }
  0x20   : > { %v6528_v12 = vor.u32 %v7305_v10, %v6527_v9  ;;  %1794 = vmatpush.bf16.msra.mxu1 %v6400_v7  ;;  %v6392_v17 = vor.u32 %v7271_v15, %v6391_v14  ;;  %v6455_v18 = vld [vmem:[%s7918_s22 + $0x160] sm:$0xf]  ;;  %v7287_v19 = vld [vmem:[%s7918_s22 + $0x164] sm:$0xf0]  ;;  %v6319_v23 = vld [vmem:[%s7918_s22 + $0x50] sm:$0xf] }
  0x21   : > { %1883 = vmatpush.bf16.msra.mxu2 %v6464_v8  ;;  %v6519_v20 = vld [vmem:[%s7918_s22 + $0x1e0] sm:$0xf]  ;;  %v6456_v21 = vor.u32 %v7287_v19, %v6455_v18  ;;  %v7303_v22 = vld [vmem:[%s7918_s22 + $0x1e4] sm:$0xf0]  ;;  %v7253_v24 = vld [vmem:[%s7918_s22 + $0x54] sm:$0xf0] }
  0x22   : > { %1972 = vmatpush.bf16.msra.mxu3 %v6528_v12  ;;  %v6520_v25 = vor.u32 %v7303_v22, %v6519_v20  ;;  %v6383_v26 = vld [vmem:[%s7918_s22 + $0xd0] sm:$0xf]  ;;  %v7269_v27 = vld [vmem:[%s7918_s22 + $0xd4] sm:$0xf0]  ;;  %v6320_v29 = vor.u32 %v7253_v24, %v6319_v23  ;;  %v6311_v35 = vld [vmem:[%s7918_s22 + $0x40] sm:$0xf] }
  0x23   : > { %v6447_v28 = vld [vmem:[%s7918_s22 + $0x150] sm:$0xf]  ;;  %1706 = vmatpush.bf16.msra.mxu0 %v6328_v16  ;;  %v7285_v30 = vld [vmem:[%s7918_s22 + $0x154] sm:$0xf0]  ;;  %v6384_v33 = vor.u32 %v7269_v27, %v6383_v26  ;;  %v7251_v36 = vld [vmem:[%s7918_s22 + $0x44] sm:$0xf0] }
  0x24   : > { %v6511_v31 = vld [vmem:[%s7918_s22 + $0x1d0] sm:$0xf]  ;;  %v7301_v32 = vld [vmem:[%s7918_s22 + $0x1d4] sm:$0xf0]  ;;  %1795 = vmatpush.bf16.msra.mxu1 %v6392_v17  ;;  %v6448_v34 = vor.u32 %v7285_v30, %v6447_v28  ;;  %v6375_v37 = vld [vmem:[%s7918_s22 + $0xc0] sm:$0xf]  ;;  %v6312_v44 = vor.u32 %v7251_v36, %v6311_v35 }
  0x25   : > { %1884 = vmatpush.bf16.msra.mxu2 %v6456_v21  ;;  %v6512_v38 = vor.u32 %v7301_v32, %v6511_v31  ;;  %v7267_v39 = vld [vmem:[%s7918_s22 + $0xc4] sm:$0xf0]  ;;  %v6439_v40 = vld [vmem:[%s7918_s22 + $0x140] sm:$0xf]  ;;  %v6303_v47 = vld [vmem:[%s7918_s22 + $0x30] sm:$0xf] }
  0x26   : > { %1973 = vmatpush.bf16.msra.mxu3 %v6520_v25  ;;  %v7283_v41 = vld [vmem:[%s7918_s22 + $0x144] sm:$0xf0]  ;;  %v6503_v42 = vld [vmem:[%s7918_s22 + $0x1c0] sm:$0xf]  ;;  %v6376_v45 = vor.u32 %v7267_v39, %v6375_v37  ;;  %v7249_v48 = vld [vmem:[%s7918_s22 + $0x34] sm:$0xf0] }
  0x27   : > { %v7299_v43 = vld [vmem:[%s7918_s22 + $0x1c4] sm:$0xf0]  ;;  %1707 = vmatpush.bf16.msra.mxu0 %v6320_v29  ;;  %v6440_v46 = vor.u32 %v7283_v41, %v6439_v40  ;;  %v6367_v49 = vld [vmem:[%s7918_s22 + $0xb0] sm:$0xf]  ;;  %v7265_v51 = vld [vmem:[%s7918_s22 + $0xb4] sm:$0xf0]  ;;  %v6304_v56 = vor.u32 %v7249_v48, %v6303_v47 }
  0x28   : > { %1796 = vmatpush.bf16.msra.mxu1 %v6384_v33  ;;  %v6504_v50 = vor.u32 %v7299_v43, %v6503_v42  ;;  %v6431_v52 = vld [vmem:[%s7918_s22 + $0x130] sm:$0xf]  ;;  %v7281_v53 = vld [vmem:[%s7918_s22 + $0x134] sm:$0xf0]  ;;  %v6368_v57 = vor.u32 %v7265_v51, %v6367_v49  ;;  %v6295_v59 = vld [vmem:[%s7918_s22 + $0x20] sm:$0xf] }
  0x29   : > { %1885 = vmatpush.bf16.msra.mxu2 %v6448_v34  ;;  %v6495_v54 = vld [vmem:[%s7918_s22 + $0x1b0] sm:$0xf]  ;;  %v7297_v55 = vld [vmem:[%s7918_s22 + $0x1b4] sm:$0xf0]  ;;  %v6432_v58 = vor.u32 %v7281_v53, %v6431_v52  ;;  %v7247_v60 = vld [vmem:[%s7918_s22 + $0x24] sm:$0xf0] }
  0x2a   : > { %1974 = vmatpush.bf16.msra.mxu3 %v6512_v38  ;;  %v6359_v61 = vld [vmem:[%s7918_s22 + $0xa0] sm:$0xf]  ;;  %v6496_v62 = vor.u32 %v7297_v55, %v6495_v54  ;;  %v7263_v63 = vld [vmem:[%s7918_s22 + $0xa4] sm:$0xf0]  ;;  %v6296_v4 = vor.u32 %v7247_v60, %v6295_v59  ;;  %v6287_v7 = vld [vmem:[%s7918_s22 + $0x10] sm:$0xf] }
  0x2b   : > { %1708 = vmatpush.bf16.msra.mxu0 %v6312_v44  ;;  %v6423_v0 = vld [vmem:[%s7918_s22 + $0x120] sm:$0xf]  ;;  %v7279_v1 = vld [vmem:[%s7918_s22 + $0x124] sm:$0xf0]  ;;  %v6360_v5 = vor.u32 %v7263_v63, %v6359_v61  ;;  %v7245_v8 = vld [vmem:[%s7918_s22 + $0x14] sm:$0xf0] }
  0x2c   : > { %1797 = vmatpush.bf16.msra.mxu1 %v6376_v45  ;;  %v6487_v2 = vld [vmem:[%s7918_s22 + $0x1a0] sm:$0xf]  ;;  %v7295_v3 = vld [vmem:[%s7918_s22 + $0x1a4] sm:$0xf0]  ;;  %v6424_v6 = vor.u32 %v7279_v1, %v6423_v0  ;;  %v6351_v9 = vld [vmem:[%s7918_s22 + $0x90] sm:$0xf]  ;;  %v6288_v17 = vor.u32 %v7245_v8, %v6287_v7 }
  0x2d   : > { %1886 = vmatpush.bf16.msra.mxu2 %v6440_v46  ;;  %v6488_v10 = vor.u32 %v7295_v3, %v6487_v2  ;;  %v7261_v11 = vld [vmem:[%s7918_s22 + $0x94] sm:$0xf0]  ;;  %v6415_v12 = vld [vmem:[%s7918_s22 + $0x110] sm:$0xf]  ;;  %v6279_v16 = vld [vmem:[%s7918_s22] sm:$0xf] }
  0x2e   : > { %1975 = vmatpush.bf16.msra.mxu3 %v6504_v50  ;;  %v7277_v13 = vld [vmem:[%s7918_s22 + $0x114] sm:$0xf0]  ;;  %v6479_v14 = vld [vmem:[%s7918_s22 + $0x190] sm:$0xf]  ;;  %v7243_v18 = vld [vmem:[%s7918_s22 + $0x4] sm:$0xf0]  ;;  %v6352_v21 = vor.u32 %v7261_v11, %v6351_v9 }
  0x2f   : > { %1709 = vmatpush.bf16.msra.mxu0 %v6304_v56  ;;  %v7293_v15 = vld [vmem:[%s7918_s22 + $0x194] sm:$0xf0]  ;;  %v6343_v19 = vld [vmem:[%s7918_s22 + $0x80] sm:$0xf]  ;;  %v7259_v20 = vld [vmem:[%s7918_s22 + $0x84] sm:$0xf0]  ;;  %v6416_v22 = vor.u32 %v7277_v13, %v6415_v12  ;;  %v6280_v33 = vor.u32 %v7243_v18, %v6279_v16 }
  0x30   : > { %1798 = vmatpush.bf16.msra.mxu1 %v6368_v57  ;;  %v6407_v23 = vld [vmem:[%s7918_s22 + $0x100] sm:$0xf]  ;;  %v7275_v24 = vld [vmem:[%s7918_s22 + $0x104] sm:$0xf0]  ;;  %v6480_v26 = vor.u32 %v7293_v15, %v6479_v14  ;;  %v6719_v31 = vld [vmem:[%s7918_s22 + $0x370] sm:$0xf]  ;;  %v6344_v37 = vor.u32 %v7259_v20, %v6343_v19 }
  0x31   : > { %1887 = vmatpush.bf16.msra.mxu2 %v6432_v58  ;;  %v6471_v25 = vld [vmem:[%s7918_s22 + $0x180] sm:$0xf]  ;;  %v7291_v27 = vld [vmem:[%s7918_s22 + $0x184] sm:$0xf0]  ;;  %v7353_v32 = vld [vmem:[%s7918_s22 + $0x374] sm:$0xf0]  ;;  %v6408_v38 = vor.u32 %v7275_v24, %v6407_v23 }
  0x32   : > { %1976 = vmatpush.bf16.msra.mxu3 %v6496_v62  ;;  %v547_v28 = vld [vmem:[%s7994_s28] sm:$0xff]  ;;  %v548_v30 = vld [vmem:[%s7994_s28 + $0x8] sm:$0xff]  ;;  %v6783_v35 = vld [vmem:[%s7918_s22 + $0x3f0] sm:$0xf]  ;;  %v6472_v42 = vor.u32 %v7291_v27, %v6471_v25  ;;  %v6720_v44 = vor.u32 %v7353_v32, %v6719_v31  ;;  %s11301_s14 = smov (!%p504_p6, %s503_s14), 6  ;;  %p517_p7 = scmp.lt.s32.totalorder %s9494_s20, 6 }
  0x33   : > { %1710 = vmatpush.bf16.msra.mxu0 %v6296_v4  ;;  %v555_v29 = vld [vmem:[%s7994_s28 + $0x40] sm:$0xff]  ;;  %v556_v34 = vld [vmem:[%s7994_s28 + $0x48] sm:$0xff]  ;;  %v7369_v36 = vld [vmem:[%s7918_s22 + $0x3f4] sm:$0xf0]  ;;  %s7241_s15 = sshll.u32 %s11301_s14, 8  ;;  %p511_p8 = scmp.lt.s32.totalorder %s510_s26, 6 }
  0x34   : > { %1799 = vmatpush.bf16.msra.mxu1 %v6360_v5  ;;  %v549_v39 = vld [vmem:[%s7994_s28 + $0x10] sm:$0xff]  ;;  %v550_v41 = vld [vmem:[%s7994_s28 + $0x18] sm:$0xff]  ;;  %v8017_v47 = vpack.c.bf16 %v555_v29, %v547_v28  ;;  %v6784_v48 = vor.u32 %v7369_v36, %v6783_v35  ;;  %v8021_v51 = vpack.c.bf16 %v556_v34, %v548_v30  ;;  %v6711_v56 = vld [vmem:[%s7918_s22 + $0x360] sm:$0xf]  ;;  %s9255_s19 = scalar_lea.vmem %s10918_s4, %s7241_s15  ;;  %s11303_s20 = smov (!%p517_p7, %s9494_s20), 6 }
  0x35   : > { %1888 = vmatpush.bf16.msra.mxu2 %v6424_v6  ;;  %v557_v40 = vld [vmem:[%s7994_s28 + $0x50] sm:$0xff]  ;;  %v558_v43 = vld [vmem:[%s7994_s28 + $0x58] sm:$0xff]  ;;  %v7351_v57 = vld [vmem:[%s7918_s22 + $0x364] sm:$0xf0]  ;;  %s7426_s21 = smul.u32 192, %s11303_s20  ;;  %s11305_s26 = smov (!%p511_p8, %s510_s26), 6 }
  0x36   : > { %1977 = vmatpush.bf16.msra.mxu3 %v6488_v10  ;;  %v6591_v45 = vld [vmem:[%s7918_s22 + $0x270] sm:$0xf]  ;;  %v7321_v46 = vld [vmem:[%s7918_s22 + $0x274] sm:$0xf0]  ;;  %v8023_v52 = vpack.c.bf16 %v557_v40, %v549_v39  ;;  %v8025_v53 = vpack.c.bf16 %v558_v43, %v550_v41  ;;  %v6775_v58 = vld [vmem:[%s7918_s22 + $0x3e0] sm:$0xf]  ;;  %v6712_v59 = vor.u32 %v7351_v57, %v6711_v56 }
  0x37   : > { %1711 = vmatpush.bf16.msra.mxu0 %v6288_v17  ;;  %v6655_v49 = vld [vmem:[%s7918_s22 + $0x2f0] sm:$0xf]  ;;  %v7337_v50 = vld [vmem:[%s7918_s22 + $0x2f4] sm:$0xf0]  ;;  %v6592_v54 = vor.u32 %v7321_v46, %v6591_v45  ;;  %v7367_v60 = vld [vmem:[%s7918_s22 + $0x3e4] sm:$0xf0]  ;;  %s9526_s25 = scalar_lea.vmem %s10920_s6, %s7426_s21 }
  0x38   : > { %1800 = vmatpush.bf16.msra.mxu1 %v6352_v21  ;;  %v6656_v55 = vor.u32 %v7337_v50, %v6655_v49  ;;  %v6583_v61 = vld [vmem:[%s7918_s22 + $0x260] sm:$0xf]  ;;  %v7319_v62 = vld [vmem:[%s7918_s22 + $0x264] sm:$0xf0]  ;;  %v6776_v63 = vor.u32 %v7367_v60, %v6775_v58  ;;  %v565_v8 = vld [vmem:[%s7994_s28 + $0x90] sm:$0xff]  ;;  %s6271_s27 = sshll.u32 %s11305_s26, 1 }
  0x39   : > { %1889 = vmatpush.bf16.msra.mxu2 %v6416_v22  ;;  %v6584_v0 = vor.u32 %v7319_v62, %v6583_v61  ;;  %v6647_v1 = vld [vmem:[%s7918_s22 + $0x2e0] sm:$0xf]  ;;  %v7335_v2 = vld [vmem:[%s7918_s22 + $0x2e4] sm:$0xf0]  ;;  %v573_v9 = vld [vmem:[%s7994_s28 + $0xd0] sm:$0xff]  ;;  %s514_s30 = scalar_lea.vmem %s10919_s5, %s6271_s27  ;;  %p524_p9 = scmp.lt.s32.totalorder %s10177_s11, 6 }
  0x3a   : > { %1978 = vmatpush.bf16.msra.mxu3 %v6480_v26  ;;  %v6648_v3 = vor.u32 %v7335_v2, %v6647_v1  ;;  %v563_v4 = vld [vmem:[%s7994_s28 + $0x80] sm:$0xff]  ;;  %v564_v6 = vld [vmem:[%s7994_s28 + $0x88] sm:$0xff]  ;;  %v566_v10 = vld [vmem:[%s7994_s28 + $0x98] sm:$0xff]  ;;  %v8051_v14 = vpack.c.bf16 %v573_v9, %v565_v8  ;;  %p530_p10 = scmp.lt.s32.totalorder %s10237_s16, 6  ;;  %s6276_s26 = sshll.u32 %s11297_s23, 3 }
  0x3b   : > { %1712 = vmatpush.bf16.msra.mxu0 %v6280_v33  ;;  %v571_v5 = vld [vmem:[%s7994_s28 + $0xc0] sm:$0xff]  ;;  %v572_v7 = vld [vmem:[%s7994_s28 + $0xc8] sm:$0xff]  ;;  %v574_v11 = vld [vmem:[%s7994_s28 + $0xd8] sm:$0xff]  ;;  %s11307_s11 = smov (!%p524_p9, %s10177_s11), 6  ;;  %s10610_s29 = scalar_lea.vmem %s10924_s10, %s6276_s26 }
  0x3c   : > { %1801 = vmatpush.bf16.msra.mxu1 %v6344_v37  ;;  %v8047_v12 = vpack.c.bf16 %v571_v5, %v563_v4  ;;  %v8049_v13 = vpack.c.bf16 %v572_v7, %v564_v6  ;;  %v8053_v15 = vpack.c.bf16 %v574_v11, %v566_v10  ;;  %v579_v16 = vld [vmem:[%s7994_s28 + $0x100] sm:$0xff]  ;;  %v580_v18 = vld [vmem:[%s7994_s28 + $0x108] sm:$0xff]  ;;  %v581_v20 = vld [vmem:[%s7994_s28 + $0x110] sm:$0xff]  ;;  %s6273_s12 = sshll.u32 %s11307_s11, 1  ;;  %s11309_s16 = smov (!%p530_p10, %s10237_s16), 6 }
  0x3d   : > { %1890 = vmatpush.bf16.msra.mxu2 %v6408_v38  ;;  %v587_v17 = vld [vmem:[%s7994_s28 + $0x140] sm:$0xff]  ;;  %v588_v19 = vld [vmem:[%s7994_s28 + $0x148] sm:$0xff]  ;;  %v589_v21 = vld [vmem:[%s7994_s28 + $0x150] sm:$0xff]  ;;  %s527_s15 = scalar_lea.vmem %s10921_s7, %s6273_s12  ;;  %s6274_s0 = sshll.u32 %s11309_s16, 1 }
  0x3e   : > { %1979 = vmatpush.bf16.msra.mxu3 %v6472_v42  ;;  %1713 = vmatmul.bf16.vlgmr.msra.gmra.mxu0 %v8017_v47  ;;  %v582_v22 = vld [vmem:[%s7994_s28 + $0x118] sm:$0xff]  ;;  %v8067_v24 = vpack.c.bf16 %v587_v17, %v579_v16  ;;  %v8069_v25 = vpack.c.bf16 %v588_v19, %v580_v18  ;;  %v8071_v26 = vpack.c.bf16 %v589_v21, %v581_v20  ;;  %v6703_v28 = vld [vmem:[%s7918_s22 + $0x350] sm:$0xf]  ;;  %v595_v40 = vld [vmem:[%s7994_s28 + $0x180] sm:$0xff]  ;;  %s533_s21 = scalar_lea.vmem %s10922_s8, %s6274_s0 }
  0x3f   : > { %1802 = vmatmul.bf16.vlgmr.msra.gmra.mxu1 %v8021_v51  ;;  %2061 = vmatpush.bf16.msrb.mxu0 %v6592_v54  ;;  %v590_v23 = vld [vmem:[%s7994_s28 + $0x158] sm:$0xff]  ;;  %v6767_v30 = vld [vmem:[%s7918_s22 + $0x3d0] sm:$0xf]  ;;  %v603_v41 = vld [vmem:[%s7994_s28 + $0x1c0] sm:$0xff] }
  0x40   : > { %1891 = vmatmul.bf16.vlgmr.msra.gmra.mxu2 %v8023_v52  ;;  %2150 = vmatpush.bf16.msrb.mxu1 %v6656_v55  ;;  %v8073_v27 = vpack.c.bf16 %v590_v23, %v582_v22  ;;  %v7349_v29 = vld [vmem:[%s7918_s22 + $0x354] sm:$0xf0]  ;;  %v6575_v33 = vld [vmem:[%s7918_s22 + $0x250] sm:$0xf]  ;;  %v596_v42 = vld [vmem:[%s7994_s28 + $0x188] sm:$0xff]  ;;  %v8095_v49 = vpack.c.bf16 %v603_v41, %v595_v40 }
  0x41   : > { %2239 = vmatpush.bf16.msrb.mxu2 %v6720_v44  ;;  %1980 = vmatmul.bf16.vlgmr.msra.gmra.mxu3 %v8025_v53  ;;  %v6704_v31 = vor.u32 %v7349_v29, %v6703_v28  ;;  %v7365_v32 = vld [vmem:[%s7918_s22 + $0x3d4] sm:$0xf0]  ;;  %v6639_v37 = vld [vmem:[%s7918_s22 + $0x2d0] sm:$0xf]  ;;  %v604_v43 = vld [vmem:[%s7994_s28 + $0x1c8] sm:$0xff] }
  0x42   : > { %2328 = vmatpush.bf16.msrb.mxu3 %v6784_v48  ;;  %v7317_v34 = vld [vmem:[%s7918_s22 + $0x254] sm:$0xf0]  ;;  %v6768_v35 = vor.u32 %v7365_v32, %v6767_v30  ;;  %v597_v44 = vld [vmem:[%s7994_s28 + $0x190] sm:$0xff]  ;;  %v8097_v50 = vpack.c.bf16 %v604_v43, %v596_v42  ;;  %v611_v56 = vld [vmem:[%s7994_s28 + $0x200] sm:$0xff] }
  0x43   : > { %2062 = vmatpush.bf16.msrb.mxu0 %v6584_v0  ;;  %v6576_v36 = vor.u32 %v7317_v34, %v6575_v33  ;;  %v7333_v38 = vld [vmem:[%s7918_s22 + $0x2d4] sm:$0xf0]  ;;  %v605_v45 = vld [vmem:[%s7994_s28 + $0x1d0] sm:$0xff]  ;;  %v619_v57 = vld [vmem:[%s7994_s28 + $0x240] sm:$0xff] }
  0x44   : > { %2151 = vmatpush.bf16.msrb.mxu1 %v6648_v3  ;;  %v6640_v39 = vor.u32 %v7333_v38, %v6639_v37  ;;  %v598_v46 = vld [vmem:[%s7994_s28 + $0x198] sm:$0xff]  ;;  %v8099_v54 = vpack.c.bf16 %v605_v45, %v597_v44  ;;  %v612_v58 = vld [vmem:[%s7994_s28 + $0x208] sm:$0xff]  ;;  %v613_v60 = vld [vmem:[%s7994_s28 + $0x210] sm:$0xff]  ;;  %v8115_v0 = vpack.c.bf16 %v619_v57, %v611_v56 }
  0x45   : > { %2240 = vmatpush.bf16.msrb.mxu2 %v6712_v59  ;;  %v606_v48 = vld [vmem:[%s7994_s28 + $0x1d8] sm:$0xff]  ;;  %v620_v59 = vld [vmem:[%s7994_s28 + $0x248] sm:$0xff]  ;;  %v621_v61 = vld [vmem:[%s7994_s28 + $0x250] sm:$0xff] }
  0x46   : > { %2329 = vmatpush.bf16.msrb.mxu3 %v6776_v63  ;;  %v8101_v55 = vpack.c.bf16 %v606_v48, %v598_v46  ;;  %v614_v62 = vld [vmem:[%s7994_s28 + $0x218] sm:$0xff]  ;;  %11041 = vst [vmem:[#allocation6_spill] sm:$0xff] %v8115_v0  ;;  %v8117_v1 = vpack.c.bf16 %v620_v59, %v612_v58  ;;  %v8119_v2 = vpack.c.bf16 %v621_v61, %v613_v60  ;;  %v6695_v4 = vld [vmem:[%s7918_s22 + $0x340] sm:$0xf]  ;;  %v7347_v5 = vld [vmem:[%s7918_s22 + $0x344] sm:$0xf0] }
  0x47   : > { %2063 = vmatpush.bf16.msrb.mxu0 %v6576_v36  ;;  %v622_v63 = vld [vmem:[%s7994_s28 + $0x258] sm:$0xff]  ;;  %v6759_v6 = vld [vmem:[%s7918_s22 + $0x3c0] sm:$0xf]  ;;  %v6696_v7 = vor.u32 %v7347_v5, %v6695_v4  ;;  %v7363_v8 = vld [vmem:[%s7918_s22 + $0x3c4] sm:$0xf0] }
  0x48   : > { %2152 = vmatpush.bf16.msrb.mxu1 %v6640_v39  ;;  %11040 = vst [vmem:[#allocation5_spill] sm:$0xff] %v8101_v55  ;;  %v8121_v3 = vpack.c.bf16 %v622_v63, %v614_v62  ;;  %v6567_v9 = vld [vmem:[%s7918_s22 + $0x240] sm:$0xf]  ;;  %v7315_v10 = vld [vmem:[%s7918_s22 + $0x244] sm:$0xf0]  ;;  %v6760_v11 = vor.u32 %v7363_v8, %v6759_v6  ;;  %v629_v28 = vld [vmem:[%s7994_s28 + $0x290] sm:$0xff] }
  0x49   : > { %2241 = vmatpush.bf16.msrb.mxu2 %v6704_v31  ;;  %11042 = vst [vmem:[#allocation7_spill] sm:$0xff] %v8117_v1  ;;  %v6568_v16 = vor.u32 %v7315_v10, %v6567_v9  ;;  %v6631_v17 = vld [vmem:[%s7918_s22 + $0x2c0] sm:$0xf]  ;;  %v7331_v18 = vld [vmem:[%s7918_s22 + $0x2c4] sm:$0xf0]  ;;  %v637_v29 = vld [vmem:[%s7994_s28 + $0x2d0] sm:$0xff] }
  0x4a   : > { %2330 = vmatpush.bf16.msrb.mxu3 %v6768_v35  ;;  %11043 = vst [vmem:[#allocation8_spill] sm:$0xff] %v8119_v2  ;;  %v6632_v19 = vor.u32 %v7331_v18, %v6631_v17  ;;  %v627_v20 = vld [vmem:[%s7994_s28 + $0x280] sm:$0xff]  ;;  %v628_v22 = vld [vmem:[%s7994_s28 + $0x288] sm:$0xff]  ;;  %v630_v30 = vld [vmem:[%s7994_s28 + $0x298] sm:$0xff]  ;;  %v8147_v34 = vpack.c.bf16 %v637_v29, %v629_v28 }
  0x4b   : > { %11044 = vst [vmem:[#allocation9_spill] sm:$0xff] %v8121_v3  ;;  %2064 = vmatpush.bf16.msrb.mxu0 %v6568_v16  ;;  %v635_v21 = vld [vmem:[%s7994_s28 + $0x2c0] sm:$0xff]  ;;  %v636_v23 = vld [vmem:[%s7994_s28 + $0x2c8] sm:$0xff]  ;;  %v638_v31 = vld [vmem:[%s7994_s28 + $0x2d8] sm:$0xff] }
  0x4c   : > { %2153 = vmatpush.bf16.msrb.mxu1 %v6632_v19  ;;  %v8143_v32 = vpack.c.bf16 %v635_v21, %v627_v20  ;;  %v8145_v33 = vpack.c.bf16 %v636_v23, %v628_v22  ;;  %11047 = vst [vmem:[#allocation12_spill] sm:$0xff] %v8147_v34  ;;  %v8149_v35 = vpack.c.bf16 %v638_v31, %v630_v30  ;;  %v643_v36 = vld [vmem:[%s7994_s28 + $0x300] sm:$0xff]  ;;  %v644_v38 = vld [vmem:[%s7994_s28 + $0x308] sm:$0xff]  ;;  %v645_v40 = vld [vmem:[%s7994_s28 + $0x310] sm:$0xff] }
  0x4d   : > { %2242 = vmatpush.bf16.msrb.mxu2 %v6696_v7  ;;  %v651_v37 = vld [vmem:[%s7994_s28 + $0x340] sm:$0xff]  ;;  %v652_v39 = vld [vmem:[%s7994_s28 + $0x348] sm:$0xff]  ;;  %v653_v41 = vld [vmem:[%s7994_s28 + $0x350] sm:$0xff] }
  0x4e   : > { %1718 = vmatmul.bf16.gmra.mxu0 %v8047_v12  ;;  %2331 = vmatpush.bf16.msrb.mxu3 %v6760_v11  ;;  %11045 = vst [vmem:[#allocation10_spill] sm:$0xff] %v8143_v32  ;;  %v646_v42 = vld [vmem:[%s7994_s28 + $0x318] sm:$0xff]  ;;  %v8163_v44 = vpack.c.bf16 %v651_v37, %v643_v36  ;;  %v8165_v45 = vpack.c.bf16 %v652_v39, %v644_v38  ;;  %v6687_v56 = vld [vmem:[%s7918_s22 + $0x330] sm:$0xf]  ;;  %v659_v62 = vld [vmem:[%s7994_s28 + $0x380] sm:$0xff] }
  0x4f   : > { %1807 = vmatmul.bf16.gmra.mxu1 %v8049_v13  ;;  %11046 = vst [vmem:[#allocation11_spill] sm:$0xff] %v8145_v33  ;;  %v654_v43 = vld [vmem:[%s7994_s28 + $0x358] sm:$0xff]  ;;  %v8167_v46 = vpack.c.bf16 %v653_v41, %v645_v40  ;;  %v6751_v58 = vld [vmem:[%s7918_s22 + $0x3b0] sm:$0xf]  ;;  %v667_v6 = vld [vmem:[%s7994_s28 + $0x3c0] sm:$0xff] }
  0x50   : > { %1896 = vmatmul.bf16.gmra.mxu2 %v8051_v14  ;;  %11048 = vst [vmem:[#allocation13_spill] sm:$0xff] %v8149_v35  ;;  %v8169_v48 = vpack.c.bf16 %v654_v43, %v646_v42  ;;  %v7345_v57 = vld [vmem:[%s7918_s22 + $0x334] sm:$0xf0]  ;;  %v6559_v63 = vld [vmem:[%s7918_s22 + $0x230] sm:$0xf]  ;;  %v660_v7 = vld [vmem:[%s7994_s28 + $0x388] sm:$0xff]  ;;  %v8195_v20 = vpack.c.bf16 %v667_v6, %v659_v62 }
  0x51   : > { %1985 = vmatmul.bf16.gmra.mxu3 %v8053_v15  ;;  %11049 = vst [vmem:[#allocation14_spill] sm:$0xff] %v8163_v44  ;;  %v6688_v59 = vor.u32 %v7345_v57, %v6687_v56  ;;  %v7361_v60 = vld [vmem:[%s7918_s22 + $0x3b4] sm:$0xf0]  ;;  %v6623_v5 = vld [vmem:[%s7918_s22 + $0x2b0] sm:$0xf]  ;;  %v668_v10 = vld [vmem:[%s7994_s28 + $0x3c8] sm:$0xff] }
  0x52   : > { %11050 = vst [vmem:[#allocation15_spill] sm:$0xff] %v8165_v45  ;;  %v6752_v61 = vor.u32 %v7361_v60, %v6751_v58  ;;  %v7313_v4 = vld [vmem:[%s7918_s22 + $0x234] sm:$0xf0]  ;;  %v661_v11 = vld [vmem:[%s7994_s28 + $0x390] sm:$0xff]  ;;  %v8197_v21 = vpack.c.bf16 %v668_v10, %v660_v7  ;;  %v1059_v28 = vld [vmem:[%s8213_s13] sm:$0x3] }
  0x53   : > { %11051 = vst [vmem:[#allocation16_spill] sm:$0xff] %v8167_v46  ;;  %2243 = vmatpush.bf16.msrb.mxu2 %v6688_v59  ;;  %v6560_v8 = vor.u32 %v7313_v4, %v6559_v63  ;;  %v7329_v9 = vld [vmem:[%s7918_s22 + $0x2b4] sm:$0xf0]  ;;  %v669_v16 = vld [vmem:[%s7994_s28 + $0x3d0] sm:$0xff]  ;;  %v675_v29 = vld [vmem:[%s7994_s28 + $0x400] sm:$0xff]  ;;  %v8219_v36 = vperm.slane %v1059_v28, 0 }
  0x54   : > { %11052 = vst [vmem:[#allocation17_spill] sm:$0xff] %v8169_v48  ;;  %2332 = vmatpush.bf16.msrb.mxu3 %v6752_v61  ;;  %v6624_v17 = vor.u32 %v7329_v9, %v6623_v5  ;;  %v662_v18 = vld [vmem:[%s7994_s28 + $0x398] sm:$0xff]  ;;  %v8199_v22 = vpack.c.bf16 %v669_v16, %v661_v11  ;;  %v683_v30 = vld [vmem:[%s7994_s28 + $0x440] sm:$0xff]  ;;  %v676_v31 = vld [vmem:[%s7994_s28 + $0x408] sm:$0xff] }
  0x55   : > { %v670_v19 = vld [vmem:[%s7994_s28 + $0x3d8] sm:$0xff]  ;;  %2065 = vmatpush.bf16.msrb.mxu0 %v6560_v8  ;;  %11053 = vst [vmem:[#allocation18_spill] sm:$0xff] %v8195_v20  ;;  %v684_v37 = vld [vmem:[%s7994_s28 + $0x448] sm:$0xff]  ;;  %v677_v38 = vld [vmem:[%s7994_s28 + $0x410] sm:$0xff]  ;;  %v8226_v42 = vpack.c.bf16 %v683_v30, %v675_v29 }
  0x56   : > { %2154 = vmatpush.bf16.msrb.mxu1 %v6624_v17  ;;  %11054 = vst [vmem:[#allocation19_spill] sm:$0xff] %v8197_v21  ;;  %v8204_v23 = vpack.c.bf16 %v670_v19, %v662_v18  ;;  %v685_v39 = vld [vmem:[%s7994_s28 + $0x450] sm:$0xff]  ;;  %v678_v40 = vld [vmem:[%s7994_s28 + $0x418] sm:$0xff]  ;;  %v8228_v56 = vpack.c.bf16 %v684_v37, %v676_v31  ;;  %v6679_v62 = vld [vmem:[%s7918_s22 + $0x320] sm:$0xf] }
  0x57   : > { %11055 = vst [vmem:[#allocation20_spill] sm:$0xff] %v8199_v22  ;;  %v686_v41 = vld [vmem:[%s7994_s28 + $0x458] sm:$0xff]  ;;  %v8230_v57 = vpack.c.bf16 %v685_v39, %v677_v38  ;;  %v7343_v63 = vld [vmem:[%s7918_s22 + $0x324] sm:$0xf0]  ;;  %v6743_v4 = vld [vmem:[%s7918_s22 + $0x3a0] sm:$0xf] }
  0x58   : > { %11056 = vst [vmem:[#allocation21_spill] sm:$0xff] %v8204_v23  ;;  %v8233_v60 = vpack.c.bf16 %v686_v41, %v678_v40  ;;  %v6680_v5 = vor.u32 %v7343_v63, %v6679_v62  ;;  %v7359_v6 = vld [vmem:[%s7918_s22 + $0x3a4] sm:$0xf0]  ;;  %v691_v19 = vld [vmem:[%s7994_s28 + $0x480] sm:$0xff]  ;;  %v702_v62 = vld [vmem:[%s7994_s28 + $0x4d8] sm:$0xff] }
  0x59   : > { %11057 = vst [vmem:[#allocation22_spill] sm:$0xff] %v8226_v42  ;;  %v6744_v8 = vor.u32 %v7359_v6, %v6743_v4  ;;  %v6551_v29 = vld [vmem:[%s7918_s22 + $0x220] sm:$0xf]  ;;  %v7311_v30 = vld [vmem:[%s7918_s22 + $0x224] sm:$0xf0] }
  0x5a   : > { %11058 = vst [vmem:[#allocation23_spill] sm:$0xff] %v8228_v56  ;;  %2244 = vmatpush.bf16.msrb.mxu2 %v6680_v5  ;;  %v6615_v31 = vld [vmem:[%s7918_s22 + $0x2a0] sm:$0xf]  ;;  %v692_v38 = vld [vmem:[%s7994_s28 + $0x488] sm:$0xff]  ;;  %v6552_v39 = vor.u32 %v7311_v30, %v6551_v29 }
  0x5b   : > { %11059 = vst [vmem:[#allocation24_spill] sm:$0xff] %v8230_v57  ;;  %2333 = vmatpush.bf16.msrb.mxu3 %v6744_v8  ;;  %v699_v37 = vld [vmem:[%s7994_s28 + $0x4c0] sm:$0xff]  ;;  %v7327_v40 = vld [vmem:[%s7918_s22 + $0x2a4] sm:$0xf0] }
  0x5c   : > { %11060 = vst [vmem:[#allocation25_spill] sm:$0xff] %v8233_v60  ;;  %v700_v41 = vld [vmem:[%s7994_s28 + $0x4c8] sm:$0xff]  ;;  %2066 = vmatpush.bf16.msrb.mxu0 %v6552_v39  ;;  %v8258_v4 = vpack.c.bf16 %v699_v37, %v691_v19 }
  0x5d   : > { %v8260_v8 = vpack.c.bf16 %v700_v41, %v692_v38  ;;  %v707_v41 = vld [vmem:[%s7994_s28 + $0x500] sm:$0xff] }
  0x5e   : > { %1723 = vmatmul.bf16.gmra.mxu0 %v8067_v24  ;;  %11061 = vst [vmem:[#allocation26_spill] sm:$0xff] %v8258_v4 }
  0x5f   : > { %1812 = vmatmul.bf16.gmra.mxu1 %v8069_v25  ;;  %11062 = vst [vmem:[#allocation27_spill] sm:$0xff] %v8260_v8 }
  0x60   : > { %1901 = vmatmul.bf16.gmra.mxu2 %v8071_v26 }
  0x61   : > { %1990 = vmatmul.bf16.gmra.mxu3 %v8073_v27 }
  0x6e   : > { %1728 = vmatmul.bf16.gmra.mxu0 %v8095_v49 }
  0x6f   : > { %1817 = vmatmul.bf16.gmra.mxu1 %v8097_v50 }
  0x70   : > { %1906 = vmatmul.bf16.gmra.mxu2 %v8099_v54 }
  0x71   : > { %1995 = vmatmul.bf16.gmra.mxu3 %v8101_v55 }
  0x7e   : > { %1733 = vmatmul.bf16.gmra.mxu0 %v8115_v0 }
  0x7f   : > { %1822 = vmatmul.bf16.gmra.mxu1 %v8117_v1 }
  0x80   : > { %1911 = vmatmul.bf16.gmra.mxu2 %v8119_v2  ;;  %v642_v2 = vld [vmem:[%s7994_s28 + $0x2f8] sm:$0xff] }
  0x81   : > { %2000 = vmatmul.bf16.gmra.mxu3 %v8121_v3 }
  0x8e   : > { %1738 = vmatmul.bf16.gmra.mxu0 %v8143_v32 }
  0x8f   : > { %1827 = vmatmul.bf16.gmra.mxu1 %v8145_v33 }
  0x90   : > { %1916 = vmatmul.bf16.gmra.mxu2 %v8147_v34  ;;  %v610_v34 = vld [vmem:[%s7994_s28 + $0x1f8] sm:$0xff] }
  0x91   : > { %2005 = vmatmul.bf16.gmra.mxu3 %v8149_v35 }
  0x9e   : > { %1743 = vmatmul.bf16.gmra.mxu0 %v8163_v44 }
  0x9f   : > { %1832 = vmatmul.bf16.gmra.mxu1 %v8165_v45 }
  0xa0   : > { %1921 = vmatmul.bf16.gmra.mxu2 %v8167_v46  ;;  %v578_v46 = vld [vmem:[%s7994_s28 + $0xf8] sm:$0xff] }
  0xa1   : > { %2010 = vmatmul.bf16.gmra.mxu3 %v8169_v48 }
  0xae   : > { %1748 = vmatmul.bf16.gmra.mxu0 %v8195_v20 }
  0xaf   : > { %1837 = vmatmul.bf16.gmra.mxu1 %v8197_v21 }
  0xb0   : > { %1926 = vmatmul.bf16.gmra.mxu2 %v8199_v22  ;;  %v798_v22 = vld [vmem:[%s7994_s28 + $0x7d8] sm:$0xff] }
  0xb1   : > { %2015 = vmatmul.bf16.gmra.mxu3 %v8204_v23 }
  0xbb   : > { %v1714_v43 = vpop.f32.mrf.mxu0 }
  0xbc   : > { %v1715_v58 = vadd.f32 %v1714_v43, %v8219_v36  ;;  %v1803_v59 = vpop.f32.mrf.mxu1  ;;  %v693_v43 = vld [vmem:[%s7994_s28 + $0x490] sm:$0xff] }
  0xbe   : > { %v1804_v61 = vadd.f32 %v1803_v59, %v1715_v58  ;;  %1753 = vmatmul.bf16.gmra.mxu0 %v8226_v42  ;;  %v701_v58 = vld [vmem:[%s7994_s28 + $0x4d0] sm:$0xff]  ;;  %v6616_v59 = vor.u32 %v7327_v40, %v6615_v31 }
  0xbf   : > { %1842 = vmatmul.bf16.gmra.mxu1 %v8228_v56 }
  0xc0   : > { %1931 = vmatmul.bf16.gmra.mxu2 %v8230_v57  ;;  %2155 = vmatpush.bf16.msrb.mxu1 %v6616_v59  ;;  %v716_v59 = vld [vmem:[%s7994_s28 + $0x548] sm:$0xff]  ;;  %v766_v57 = vld [vmem:[%s7994_s28 + $0x6d8] sm:$0xff] }
  0xc1   : > { %2020 = vmatmul.bf16.gmra.mxu3 %v8233_v60 }
  0xc3   : > { %v1892_v7 = vpop.f32.mrf.mxu2  ;;  %v1716_v11 = vpop.f32.mrf.mxu0 }
  0xc4   : > { %v1893_v9 = vadd.f32 %v1892_v7, %v1804_v61  ;;  %v1981_v10 = vpop.f32.mrf.mxu3  ;;  %v1717_v16 = vadd.f32 %v1716_v11, %v8219_v36  ;;  %v1805_v17 = vpop.f32.mrf.mxu1  ;;  %v694_v61 = vld [vmem:[%s7994_s28 + $0x498] sm:$0xff] }
  0xc6   : > { %v8244_v18 = vadd.f32 %v1981_v10, %v1893_v9  ;;  %v1806_v28 = vadd.f32 %v1805_v17, %v1717_v16  ;;  %v8262_v9 = vpack.c.bf16 %v701_v58, %v693_v43  ;;  %v8265_v16 = vpack.c.bf16 %v702_v62, %v694_v61  ;;  %v715_v43 = vld [vmem:[%s7994_s28 + $0x540] sm:$0xff]  ;;  %v708_v58 = vld [vmem:[%s7994_s28 + $0x508] sm:$0xff]  ;;  %v709_v61 = vld [vmem:[%s7994_s28 + $0x510] sm:$0xff] }
  0xc7   : > { %v717_v62 = vld [vmem:[%s7994_s28 + $0x550] sm:$0xff] }
  0xc8   : > { %11063 = vst [vmem:[#allocation28_spill] sm:$0xff] %v8262_v9 }
  0xc9   : > { %11064 = vst [vmem:[#allocation29_spill] sm:$0xff] %v8265_v16 }
  0xcb   : > { %v1894_v63 = vpop.f32.mrf.mxu2  ;;  %v1719_v7 = vpop.f32.mrf.mxu0 }
  0xcc   : > { %v1895_v5 = vadd.f32 %v1894_v63, %v1806_v28  ;;  %v1983_v6 = vpop.f32.mrf.mxu3  ;;  %v1720_v10 = vadd.f32 %v1719_v7, %v8219_v36  ;;  %v1808_v11 = vpop.f32.mrf.mxu1  ;;  %v710_v63 = vld [vmem:[%s7994_s28 + $0x518] sm:$0xff]  ;;  %v8284_v7 = vpack.c.bf16 %v715_v43, %v707_v41  ;;  %v6735_v43 = vld [vmem:[%s7918_s22 + $0x390] sm:$0xf] }
  0xcd   : > { %v7341_v41 = vld [vmem:[%s7918_s22 + $0x314] sm:$0xf0] }
  0xce   : > { %v8267_v17 = vadd.f32 %v1983_v6, %v1895_v5  ;;  %v1809_v19 = vadd.f32 %v1808_v11, %v1720_v10  ;;  %1758 = vmatmul.bf16.gmra.mxu0 %v8258_v4  ;;  %v718_v5 = vld [vmem:[%s7994_s28 + $0x558] sm:$0xff]  ;;  %11065 = vst [vmem:[#allocation30_spill] sm:$0xff] %v8284_v7 }
  0xcf   : > { %1847 = vmatmul.bf16.gmra.mxu1 %v8260_v8 }
  0xd0   : > { %1936 = vmatmul.bf16.gmra.mxu2 %v8262_v9  ;;  %v734_v9 = vld [vmem:[%s7994_s28 + $0x5d8] sm:$0xff] }
  0xd1   : > { %2025 = vmatmul.bf16.gmra.mxu3 %v8265_v16 }
  0xd3   : > { %v1897_v28 = vpop.f32.mrf.mxu2  ;;  %v1721_v31 = vpop.f32.mrf.mxu0 }
  0xd4   : > { %v1898_v29 = vadd.f32 %v1897_v28, %v1809_v19  ;;  %v1986_v30 = vpop.f32.mrf.mxu3  ;;  %v1722_v37 = vadd.f32 %v1721_v31, %v8219_v36  ;;  %v1810_v38 = vpop.f32.mrf.mxu1  ;;  %v8286_v28 = vpack.c.bf16 %v716_v59, %v708_v58  ;;  %v7357_v59 = vld [vmem:[%s7918_s22 + $0x394] sm:$0xf0] }
  0xd6   : > { %v8274_v39 = vadd.f32 %v1986_v30, %v1898_v29  ;;  %v1811_v40 = vadd.f32 %v1810_v38, %v1722_v37  ;;  %11066 = vst [vmem:[#allocation31_spill] sm:$0xff] %v8286_v28  ;;  %v8288_v29 = vpack.c.bf16 %v717_v62, %v709_v61  ;;  %v8291_v37 = vpack.c.bf16 %v718_v5, %v710_v63 }
  0xd7   : > { %v6736_v62 = vor.u32 %v7357_v59, %v6735_v43  ;;  %v731_v43 = vld [vmem:[%s7994_s28 + $0x5c0] sm:$0xff]  ;;  %v724_v59 = vld [vmem:[%s7994_s28 + $0x588] sm:$0xff] }
  0xd8   : > { %11067 = vst [vmem:[#allocation32_spill] sm:$0xff] %v8288_v29 }
  0xd9   : > { %11068 = vst [vmem:[#allocation33_spill] sm:$0xff] %v8291_v37  ;;  %2334 = vmatpush.bf16.msrb.mxu3 %v6736_v62 }
  0xdb   : > { %v1899_v6 = vpop.f32.mrf.mxu2  ;;  %v1724_v19 = vpop.f32.mrf.mxu0 }
  0xdc   : > { %v1900_v10 = vadd.f32 %v1899_v6, %v1811_v40  ;;  %v1988_v11 = vpop.f32.mrf.mxu3  ;;  %v1725_v30 = vadd.f32 %v1724_v19, %v8219_v36  ;;  %v1813_v31 = vpop.f32.mrf.mxu1  ;;  %v6671_v40 = vld [vmem:[%s7918_s22 + $0x310] sm:$0xf] }
  0xdd   : > { %v6672_v58 = vor.u32 %v7341_v41, %v6671_v40  ;;  %v6543_v40 = vld [vmem:[%s7918_s22 + $0x210] sm:$0xf]  ;;  %v7309_v41 = vld [vmem:[%s7918_s22 + $0x214] sm:$0xf0] }
  0xde   : > { %v8293_v38 = vadd.f32 %v1988_v11, %v1900_v10  ;;  %v1814_v16 = vadd.f32 %v1813_v31, %v1725_v30  ;;  %1763 = vmatmul.bf16.gmra.mxu0 %v8284_v7  ;;  %v723_v30 = vld [vmem:[%s7994_s28 + $0x580] sm:$0xff] }
  0xdf   : > { %1852 = vmatmul.bf16.gmra.mxu1 %v8286_v28  ;;  %2245 = vmatpush.bf16.msrb.mxu2 %v6672_v58  ;;  %v725_v58 = vld [vmem:[%s7994_s28 + $0x590] sm:$0xff]  ;;  %v8318_v8 = vpack.c.bf16 %v731_v43, %v723_v30 }
  0xe0   : > { %1941 = vmatmul.bf16.gmra.mxu2 %v8288_v29  ;;  %v732_v29 = vld [vmem:[%s7994_s28 + $0x5c8] sm:$0xff]  ;;  %v733_v28 = vld [vmem:[%s7994_s28 + $0x5d0] sm:$0xff] }
  0xe1   : > { %2030 = vmatmul.bf16.gmra.mxu3 %v8291_v37  ;;  %v7325_v37 = vld [vmem:[%s7918_s22 + $0x294] sm:$0xf0]  ;;  %11069 = vst [vmem:[#allocation34_spill] sm:$0xff] %v8318_v8  ;;  %v8322_v4 = vpack.c.bf16 %v733_v28, %v725_v58  ;;  %v747_v58 = vld [vmem:[%s7994_s28 + $0x640] sm:$0xff] }
  0xe3   : > { %v1902_v61 = vpop.f32.mrf.mxu2  ;;  %v1726_v6 = vpop.f32.mrf.mxu0  ;;  %11071 = vst [vmem:[#allocation36_spill] sm:$0xff] %v8322_v4 }
  0xe4   : > { %v1903_v63 = vadd.f32 %v1902_v61, %v1814_v16  ;;  %v1991_v5 = vpop.f32.mrf.mxu3  ;;  %v1727_v10 = vadd.f32 %v1726_v6, %v8219_v36  ;;  %v1815_v11 = vpop.f32.mrf.mxu1  ;;  %v6607_v16 = vld [vmem:[%s7918_s22 + $0x290] sm:$0xf]  ;;  %v6544_v61 = vor.u32 %v7309_v41, %v6543_v40  ;;  %v726_v6 = vld [vmem:[%s7994_s28 + $0x598] sm:$0xff] }
  0xe5   : > { %v6608_v7 = vor.u32 %v7325_v37, %v6607_v16  ;;  %v8325_v60 = vpack.c.bf16 %v734_v9, %v726_v6  ;;  %v740_v6 = vld [vmem:[%s7994_s28 + $0x608] sm:$0xff] }
  0xe6   : > { %v8304_v19 = vadd.f32 %v1991_v5, %v1903_v63  ;;  %v1816_v31 = vadd.f32 %v1815_v11, %v1727_v10  ;;  %2067 = vmatpush.bf16.msrb.mxu0 %v6544_v61  ;;  %v8320_v11 = vpack.c.bf16 %v732_v29, %v724_v59  ;;  %v739_v61 = vld [vmem:[%s7994_s28 + $0x600] sm:$0xff] }
  0xe7   : > { %2156 = vmatpush.bf16.msrb.mxu1 %v6608_v7  ;;  %11072 = vst [vmem:[#allocation37_spill] sm:$0xff] %v8325_v60 }
  0xe8   : > { %11070 = vst [vmem:[#allocation35_spill] sm:$0xff] %v8320_v11 }
  0xeb   : > { %v1904_v62 = vpop.f32.mrf.mxu2  ;;  %v1729_v10 = vpop.f32.mrf.mxu0 }
  0xec   : > { %v1905_v63 = vadd.f32 %v1904_v62, %v1816_v31  ;;  %v1993_v5 = vpop.f32.mrf.mxu3  ;;  %v1730_v40 = vadd.f32 %v1729_v10, %v8219_v36  ;;  %v1818_v41 = vpop.f32.mrf.mxu1  ;;  %v748_v62 = vld [vmem:[%s7994_s28 + $0x648] sm:$0xff]  ;;  %v742_v10 = vld [vmem:[%s7994_s28 + $0x618] sm:$0xff] }
  0xee   : > { %v8327_v37 = vadd.f32 %v1993_v5, %v1905_v63  ;;  %v1819_v30 = vadd.f32 %v1818_v41, %v1730_v40  ;;  %1768 = vmatmul.bf16.gmra.mxu0 %v8318_v8  ;;  %v741_v63 = vld [vmem:[%s7994_s28 + $0x610] sm:$0xff]  ;;  %v750_v40 = vld [vmem:[%s7994_s28 + $0x658] sm:$0xff] }
  0xef   : > { %1857 = vmatmul.bf16.gmra.mxu1 %v8320_v11  ;;  %v749_v5 = vld [vmem:[%s7994_s28 + $0x650] sm:$0xff] }
  0xf0   : > { %1946 = vmatmul.bf16.gmra.mxu2 %v8322_v4  ;;  %v8351_v4 = vpack.c.bf16 %v750_v40, %v742_v10 }
  0xf1   : > { %2035 = vmatmul.bf16.gmra.mxu3 %v8325_v60  ;;  %v8344_v60 = vpack.c.bf16 %v747_v58, %v739_v61  ;;  %v7339_v61 = vld [vmem:[%s7918_s22 + $0x304] sm:$0xf0]  ;;  %v6727_v58 = vld [vmem:[%s7918_s22 + $0x380] sm:$0xf] }
  0xf2   : > { %11076 = vst [vmem:[#allocation41_spill] sm:$0xff] %v8351_v4 }
  0xf3   : > { %v1907_v9 = vpop.f32.mrf.mxu2  ;;  %v1731_v29 = vpop.f32.mrf.mxu0  ;;  %11073 = vst [vmem:[#allocation38_spill] sm:$0xff] %v8344_v60 }
  0xf4   : > { %v1908_v7 = vadd.f32 %v1907_v9, %v1819_v30  ;;  %v1996_v28 = vpop.f32.mrf.mxu3  ;;  %v1732_v31 = vadd.f32 %v1731_v29, %v8219_v36  ;;  %v1820_v16 = vpop.f32.mrf.mxu1 }
  0xf6   : > { %v8334_v43 = vadd.f32 %v1996_v28, %v1908_v7  ;;  %v1821_v59 = vadd.f32 %v1820_v16, %v1732_v31  ;;  %v8346_v7 = vpack.c.bf16 %v748_v62, %v740_v6  ;;  %v8348_v28 = vpack.c.bf16 %v749_v5, %v741_v63  ;;  %v7355_v62 = vld [vmem:[%s7918_s22 + $0x384] sm:$0xf0] }
  0xf7   : > { %v6728_v5 = vor.u32 %v7355_v62, %v6727_v58  ;;  %v763_v58 = vld [vmem:[%s7994_s28 + $0x6c0] sm:$0xff]  ;;  %v756_v62 = vld [vmem:[%s7994_s28 + $0x688] sm:$0xff] }
  0xf8   : > { %11074 = vst [vmem:[#allocation39_spill] sm:$0xff] %v8346_v7 }
  0xf9   : > { %11075 = vst [vmem:[#allocation40_spill] sm:$0xff] %v8348_v28  ;;  %2335 = vmatpush.bf16.msrb.mxu3 %v6728_v5 }
  0xfb   : > { %v1909_v41 = vpop.f32.mrf.mxu2  ;;  %v1734_v29 = vpop.f32.mrf.mxu0 }
  0xfc   : > { %v1910_v30 = vadd.f32 %v1909_v41, %v1821_v59  ;;  %v1998_v9 = vpop.f32.mrf.mxu3  ;;  %v1735_v31 = vadd.f32 %v1734_v29, %v8219_v36  ;;  %v1823_v16 = vpop.f32.mrf.mxu1  ;;  %v6663_v59 = vld [vmem:[%s7918_s22 + $0x300] sm:$0xf] }
  0xfd   : > { %v6664_v6 = vor.u32 %v7339_v61, %v6663_v59  ;;  %v6535_v59 = vld [vmem:[%s7918_s22 + $0x200] sm:$0xf]  ;;  %v7307_v61 = vld [vmem:[%s7918_s22 + $0x204] sm:$0xf0] }
  0xfe   : > { %v8353_v11 = vadd.f32 %v1998_v9, %v1910_v30  ;;  %v1824_v8 = vadd.f32 %v1823_v16, %v1735_v31  ;;  %1773 = vmatmul.bf16.gmra.mxu0 %v8344_v60  ;;  %v755_v31 = vld [vmem:[%s7994_s28 + $0x680] sm:$0xff] }
  0xff   : > { %1862 = vmatmul.bf16.gmra.mxu1 %v8346_v7  ;;  %2246 = vmatpush.bf16.msrb.mxu2 %v6664_v6  ;;  %v757_v6 = vld [vmem:[%s7994_s28 + $0x690] sm:$0xff]  ;;  %v8378_v56 = vpack.c.bf16 %v763_v58, %v755_v31 }
 0x100   : > { %1951 = vmatmul.bf16.gmra.mxu2 %v8348_v28  ;;  %v764_v28 = vld [vmem:[%s7994_s28 + $0x6c8] sm:$0xff]  ;;  %v765_v7 = vld [vmem:[%s7994_s28 + $0x6d0] sm:$0xff] }
 0x101   : > { %2040 = vmatmul.bf16.gmra.mxu3 %v8351_v4  ;;  %v7323_v4 = vld [vmem:[%s7918_s22 + $0x284] sm:$0xf0]  ;;  %11077 = vst [vmem:[#allocation42_spill] sm:$0xff] %v8378_v56  ;;  %v8382_v42 = vpack.c.bf16 %v765_v7, %v757_v6  ;;  %v779_v6 = vld [vmem:[%s7994_s28 + $0x740] sm:$0xff] }
 0x103   : > { %v1912_v63 = vpop.f32.mrf.mxu2  ;;  %v1736_v41 = vpop.f32.mrf.mxu0  ;;  %11079 = vst [vmem:[#allocation44_spill] sm:$0xff] %v8382_v42 }
 0x104   : > { %v1913_v10 = vadd.f32 %v1912_v63, %v1824_v8  ;;  %v2001_v40 = vpop.f32.mrf.mxu3  ;;  %v1737_v30 = vadd.f32 %v1736_v41, %v8219_v36  ;;  %v1825_v9 = vpop.f32.mrf.mxu1  ;;  %v6599_v8 = vld [vmem:[%s7918_s22 + $0x280] sm:$0xf]  ;;  %v6536_v63 = vor.u32 %v7307_v61, %v6535_v59  ;;  %v758_v41 = vld [vmem:[%s7994_s28 + $0x698] sm:$0xff] }
 0x105   : > { %v6600_v60 = vor.u32 %v7323_v4, %v6599_v8  ;;  %v8385_v23 = vpack.c.bf16 %v766_v57, %v758_v41  ;;  %v772_v41 = vld [vmem:[%s7994_s28 + $0x708] sm:$0xff] }
 0x106   : > { %v8364_v29 = vadd.f32 %v2001_v40, %v1913_v10  ;;  %v1826_v16 = vadd.f32 %v1825_v9, %v1737_v30  ;;  %2068 = vmatpush.bf16.msrb.mxu0 %v6536_v63  ;;  %v8380_v9 = vpack.c.bf16 %v764_v28, %v756_v62  ;;  %v771_v63 = vld [vmem:[%s7994_s28 + $0x700] sm:$0xff] }
 0x107   : > { %2157 = vmatpush.bf16.msrb.mxu1 %v6600_v60  ;;  %11080 = vst [vmem:[#allocation45_spill] sm:$0xff] %v8385_v23 }
 0x108   : > { %11078 = vst [vmem:[#allocation43_spill] sm:$0xff] %v8380_v9 }
 0x10b   : > { %v1914_v5 = vpop.f32.mrf.mxu2  ;;  %v1739_v30 = vpop.f32.mrf.mxu0 }
 0x10c   : > { %v1915_v10 = vadd.f32 %v1914_v5, %v1826_v16  ;;  %v2003_v40 = vpop.f32.mrf.mxu3  ;;  %v1740_v59 = vadd.f32 %v1739_v30, %v8219_v36  ;;  %v1828_v61 = vpop.f32.mrf.mxu1  ;;  %v780_v5 = vld [vmem:[%s7994_s28 + $0x748] sm:$0xff]  ;;  %v774_v30 = vld [vmem:[%s7994_s28 + $0x718] sm:$0xff] }
 0x10e   : > { %v8387_v4 = vadd.f32 %v2003_v40, %v1915_v10  ;;  %v1829_v31 = vadd.f32 %v1828_v61, %v1740_v59  ;;  %1778 = vmatmul.bf16.gmra.mxu0 %v8378_v56  ;;  %v773_v10 = vld [vmem:[%s7994_s28 + $0x710] sm:$0xff]  ;;  %v782_v59 = vld [vmem:[%s7994_s28 + $0x758] sm:$0xff] }
 0x10f   : > { %1867 = vmatmul.bf16.gmra.mxu1 %v8380_v9  ;;  %v781_v40 = vld [vmem:[%s7994_s28 + $0x750] sm:$0xff] }
 0x110   : > { %1956 = vmatmul.bf16.gmra.mxu2 %v8382_v42  ;;  %v8411_v42 = vpack.c.bf16 %v782_v59, %v774_v30 }
 0x111   : > { %2045 = vmatmul.bf16.gmra.mxu3 %v8385_v23  ;;  %v8404_v23 = vpack.c.bf16 %v779_v6, %v771_v63  ;;  %v6465_v63 = vld [vmem:[%s7918_s22 + $0x178] sm:$0xf0]  ;;  %v7304_v6 = vld [vmem:[%s7918_s22 + $0x1f4] sm:$0xf] }
 0x112   : > { %11084 = vst [vmem:[#allocation49_spill] sm:$0xff] %v8411_v42 }
 0x113   : > { %v1917_v57 = vpop.f32.mrf.mxu2  ;;  %v1741_v28 = vpop.f32.mrf.mxu0  ;;  %11081 = vst [vmem:[#allocation46_spill] sm:$0xff] %v8404_v23 }
 0x114   : > { %v1918_v60 = vadd.f32 %v1917_v57, %v1829_v31  ;;  %v2006_v7 = vpop.f32.mrf.mxu3  ;;  %v1742_v16 = vadd.f32 %v1741_v28, %v8219_v36  ;;  %v1830_v8 = vpop.f32.mrf.mxu1 }
 0x116   : > { %v8394_v58 = vadd.f32 %v2006_v7, %v1918_v60  ;;  %v1831_v62 = vadd.f32 %v1830_v8, %v1742_v16  ;;  %v8406_v60 = vpack.c.bf16 %v780_v5, %v772_v41  ;;  %v8408_v7 = vpack.c.bf16 %v781_v40, %v773_v10  ;;  %v6529_v5 = vld [vmem:[%s7918_s22 + $0x1f8] sm:$0xf0] }
 0x117   : > { %v6532_v40 = vor.u32 %v7304_v6, %v6529_v5  ;;  %v795_v6 = vld [vmem:[%s7994_s28 + $0x7c0] sm:$0xff]  ;;  %v788_v5 = vld [vmem:[%s7994_s28 + $0x788] sm:$0xff] }
 0x118   : > { %11082 = vst [vmem:[#allocation47_spill] sm:$0xff] %v8406_v60 }
 0x119   : > { %11083 = vst [vmem:[#allocation48_spill] sm:$0xff] %v8408_v7  ;;  %2684 = vmatpush.bf16.msra.mxu3 %v6532_v40 }
 0x11b   : > { %v1919_v61 = vpop.f32.mrf.mxu2  ;;  %v1744_v28 = vpop.f32.mrf.mxu0 }
 0x11c   : > { %v1920_v31 = vadd.f32 %v1919_v61, %v1831_v62  ;;  %v2008_v57 = vpop.f32.mrf.mxu3  ;;  %v1745_v16 = vadd.f32 %v1744_v28, %v8219_v36  ;;  %v1833_v8 = vpop.f32.mrf.mxu1  ;;  %v7288_v62 = vld [vmem:[%s7918_s22 + $0x174] sm:$0xf] }
 0x11d   : > { %v6468_v41 = vor.u32 %v7288_v62, %v6465_v63  ;;  %v7256_v62 = vld [vmem:[%s7918_s22 + $0x74] sm:$0xf]  ;;  %v6337_v63 = vld [vmem:[%s7918_s22 + $0x78] sm:$0xf0] }
 0x11e   : > { %v8413_v9 = vadd.f32 %v2008_v57, %v1920_v31  ;;  %v1834_v56 = vadd.f32 %v1833_v8, %v1745_v16  ;;  %1783 = vmatmul.bf16.gmra.mxu0 %v8404_v23  ;;  %v787_v16 = vld [vmem:[%s7994_s28 + $0x780] sm:$0xff] }
 0x11f   : > { %1872 = vmatmul.bf16.gmra.mxu1 %v8406_v60  ;;  %2595 = vmatpush.bf16.msra.mxu2 %v6468_v41  ;;  %v789_v41 = vld [vmem:[%s7994_s28 + $0x790] sm:$0xff]  ;;  %v8438_v21 = vpack.c.bf16 %v795_v6, %v787_v16 }
 0x120   : > { %1961 = vmatmul.bf16.gmra.mxu2 %v8408_v7  ;;  %v796_v7 = vld [vmem:[%s7994_s28 + $0x7c8] sm:$0xff]  ;;  %v797_v60 = vld [vmem:[%s7994_s28 + $0x7d0] sm:$0xff] }
 0x121   : > { %2050 = vmatmul.bf16.gmra.mxu3 %v8411_v42  ;;  %v6401_v42 = vld [vmem:[%s7918_s22 + $0xf8] sm:$0xf0]  ;;  %11085 = vst [vmem:[#allocation50_spill] sm:$0xff] %v8438_v21  ;;  %v8442_v20 = vpack.c.bf16 %v797_v60, %v789_v41  ;;  %v559_v41 = vld [vmem:[%s7994_s28 + $0x60] sm:$0xff] }
 0x123   : > { %v1922_v10 = vpop.f32.mrf.mxu2  ;;  %v1746_v61 = vpop.f32.mrf.mxu0  ;;  %11087 = vst [vmem:[#allocation52_spill] sm:$0xff] %v8442_v20 }
 0x124   : > { %v1923_v30 = vadd.f32 %v1922_v10, %v1834_v56  ;;  %v2011_v59 = vpop.f32.mrf.mxu3  ;;  %v1747_v31 = vadd.f32 %v1746_v61, %v8219_v36  ;;  %v1835_v57 = vpop.f32.mrf.mxu1  ;;  %v7272_v56 = vld [vmem:[%s7918_s22 + $0xf4] sm:$0xf]  ;;  %v6340_v10 = vor.u32 %v7256_v62, %v6337_v63  ;;  %v790_v61 = vld [vmem:[%s7994_s28 + $0x798] sm:$0xff] }
 0x125   : > { %v6404_v23 = vor.u32 %v7272_v56, %v6401_v42  ;;  %v8445_v48 = vpack.c.bf16 %v798_v22, %v790_v61  ;;  %v552_v61 = vld [vmem:[%s7994_s28 + $0x28] sm:$0xff] }
 0x126   : > { %v8424_v28 = vadd.f32 %v2011_v59, %v1923_v30  ;;  %v1836_v8 = vadd.f32 %v1835_v57, %v1747_v31  ;;  %2417 = vmatpush.bf16.msra.mxu0 %v6340_v10  ;;  %v8440_v57 = vpack.c.bf16 %v796_v7, %v788_v5  ;;  %v551_v10 = vld [vmem:[%s7994_s28 + $0x20] sm:$0xff] }
 0x127   : > { %2506 = vmatpush.bf16.msra.mxu1 %v6404_v23  ;;  %11088 = vst [vmem:[#allocation53_spill] sm:$0xff] %v8445_v48 }
 0x128   : > { %11086 = vst [vmem:[#allocation51_spill] sm:$0xff] %v8440_v57 }
 0x12b   : > { %v1924_v40 = vpop.f32.mrf.mxu2  ;;  %v1749_v31 = vpop.f32.mrf.mxu0 }
 0x12c   : > { %v1925_v30 = vadd.f32 %v1924_v40, %v1836_v8  ;;  %v2013_v59 = vpop.f32.mrf.mxu3  ;;  %v1750_v62 = vadd.f32 %v1749_v31, %v8219_v36  ;;  %v1838_v63 = vpop.f32.mrf.mxu1  ;;  %v560_v40 = vld [vmem:[%s7994_s28 + $0x68] sm:$0xff]  ;;  %v554_v31 = vld [vmem:[%s7994_s28 + $0x38] sm:$0xff] }
 0x12e   : > { %v8447_v42 = vadd.f32 %v2013_v59, %v1925_v30  ;;  %v1839_v16 = vadd.f32 %v1838_v63, %v1750_v62  ;;  %1788 = vmatmul.bf16.gmra.mxu0 %v8438_v21  ;;  %v553_v30 = vld [vmem:[%s7994_s28 + $0x30] sm:$0xff]  ;;  %v562_v62 = vld [vmem:[%s7994_s28 + $0x78] sm:$0xff] }
 0x12f   : > { %1877 = vmatmul.bf16.gmra.mxu1 %v8440_v57  ;;  %v561_v59 = vld [vmem:[%s7994_s28 + $0x70] sm:$0xff] }
 0x130   : > { %1966 = vmatmul.bf16.gmra.mxu2 %v8442_v20  ;;  %v8471_v20 = vpack.c.bf16 %v562_v62, %v554_v31 }
 0x131   : > { %2055 = vmatmul.bf16.gmra.mxu3 %v8445_v48  ;;  %v8464_v48 = vpack.c.bf16 %v559_v41, %v551_v10  ;;  %v6457_v10 = vld [vmem:[%s7918_s22 + $0x168] sm:$0xf0]  ;;  %v7302_v41 = vld [vmem:[%s7918_s22 + $0x1e4] sm:$0xf] }
 0x132   : > { %11092 = vst [vmem:[#allocation57_spill] sm:$0xff] %v8471_v20 }
 0x133   : > { %v1927_v22 = vpop.f32.mrf.mxu2  ;;  %v1751_v7 = vpop.f32.mrf.mxu0  ;;  %11089 = vst [vmem:[#allocation54_spill] sm:$0xff] %v8464_v48 }
 0x134   : > { %v1928_v23 = vadd.f32 %v1927_v22, %v1839_v16  ;;  %v2016_v60 = vpop.f32.mrf.mxu3  ;;  %v1752_v8 = vadd.f32 %v1751_v7, %v8219_v36  ;;  %v1840_v56 = vpop.f32.mrf.mxu1 }
 0x136   : > { %v8454_v6 = vadd.f32 %v2016_v60, %v1928_v23  ;;  %v1841_v5 = vadd.f32 %v1840_v56, %v1752_v8  ;;  %v8466_v23 = vpack.c.bf16 %v560_v40, %v552_v61  ;;  %v8468_v60 = vpack.c.bf16 %v561_v59, %v553_v30  ;;  %v6521_v40 = vld [vmem:[%s7918_s22 + $0x1e8] sm:$0xf0] }
 0x137   : > { %v6524_v59 = vor.u32 %v7302_v41, %v6521_v40  ;;  %v575_v41 = vld [vmem:[%s7994_s28 + $0xe0] sm:$0xff]  ;;  %v568_v40 = vld [vmem:[%s7994_s28 + $0xa8] sm:$0xff] }
 0x138   : > { %11090 = vst [vmem:[#allocation55_spill] sm:$0xff] %v8466_v23 }
 0x139   : > { %11091 = vst [vmem:[#allocation56_spill] sm:$0xff] %v8468_v60  ;;  %2685 = vmatpush.bf16.msra.mxu3 %v6524_v59 }
 0x13b   : > { %v1929_v63 = vpop.f32.mrf.mxu2  ;;  %v1754_v7 = vpop.f32.mrf.mxu0 }
 0x13c   : > { %v1930_v16 = vadd.f32 %v1929_v63, %v1841_v5  ;;  %v2018_v22 = vpop.f32.mrf.mxu3  ;;  %v1755_v8 = vadd.f32 %v1754_v7, %v8219_v36  ;;  %v1843_v56 = vpop.f32.mrf.mxu1  ;;  %v7286_v5 = vld [vmem:[%s7918_s22 + $0x164] sm:$0xf] }
 0x13d   : > { %v6460_v61 = vor.u32 %v7286_v5, %v6457_v10  ;;  %v7254_v5 = vld [vmem:[%s7918_s22 + $0x64] sm:$0xf]  ;;  %v6329_v10 = vld [vmem:[%s7918_s22 + $0x68] sm:$0xf0] }
 0x13e   : > { %v8473_v57 = vadd.f32 %v2018_v22, %v1930_v16  ;;  %v1844_v21 = vadd.f32 %v1843_v56, %v1755_v8  ;;  %2069 = vmatmul.bf16.vlgmr.msrb.gmra.mxu0 %v8464_v48  ;;  %v567_v8 = vld [vmem:[%s7994_s28 + $0xa0] sm:$0xff] }
 0x13f   : > { %2158 = vmatmul.bf16.vlgmr.msrb.gmra.mxu1 %v8466_v23  ;;  %2596 = vmatpush.bf16.msra.mxu2 %v6460_v61  ;;  %v569_v61 = vld [vmem:[%s7994_s28 + $0xb0] sm:$0xff]  ;;  %v8498_v45 = vpack.c.bf16 %v575_v41, %v567_v8 }
 0x140   : > { %2247 = vmatmul.bf16.vlgmr.msrb.gmra.mxu2 %v8468_v60  ;;  %v576_v60 = vld [vmem:[%s7994_s28 + $0xe8] sm:$0xff]  ;;  %v577_v23 = vld [vmem:[%s7994_s28 + $0xf0] sm:$0xff] }
 0x141   : > { %2336 = vmatmul.bf16.vlgmr.msrb.gmra.mxu3 %v8471_v20  ;;  %v6393_v20 = vld [vmem:[%s7918_s22 + $0xe8] sm:$0xf0]  ;;  %11093 = vst [vmem:[#allocation58_spill] sm:$0xff] %v8498_v45  ;;  %v8502_v44 = vpack.c.bf16 %v577_v23, %v569_v61  ;;  %v591_v61 = vld [vmem:[%s7994_s28 + $0x160] sm:$0xff] }
 0x143   : > { %v1932_v30 = vpop.f32.mrf.mxu2  ;;  %v1756_v63 = vpop.f32.mrf.mxu0  ;;  %11095 = vst [vmem:[#allocation60_spill] sm:$0xff] %v8502_v44 }
 0x144   : > { %v1933_v31 = vadd.f32 %v1932_v30, %v1844_v21  ;;  %v2021_v62 = vpop.f32.mrf.mxu3  ;;  %v1757_v16 = vadd.f32 %v1756_v63, %v8219_v36  ;;  %v1845_v22 = vpop.f32.mrf.mxu1  ;;  %v7270_v21 = vld [vmem:[%s7918_s22 + $0xe4] sm:$0xf]  ;;  %v6332_v30 = vor.u32 %v7254_v5, %v6329_v10  ;;  %v570_v63 = vld [vmem:[%s7994_s28 + $0xb8] sm:$0xff] }
 0x145   : > { %v6396_v48 = vor.u32 %v7270_v21, %v6393_v20  ;;  %v8505_v35 = vpack.c.bf16 %v578_v46, %v570_v63  ;;  %v584_v63 = vld [vmem:[%s7994_s28 + $0x128] sm:$0xff] }
 0x146   : > { %v8484_v7 = vadd.f32 %v2021_v62, %v1933_v31  ;;  %v1846_v56 = vadd.f32 %v1845_v22, %v1757_v16  ;;  %2418 = vmatpush.bf16.msra.mxu0 %v6332_v30  ;;  %v8500_v22 = vpack.c.bf16 %v576_v60, %v568_v40  ;;  %v583_v30 = vld [vmem:[%s7994_s28 + $0x120] sm:$0xff] }
 0x147   : > { %2507 = vmatpush.bf16.msra.mxu1 %v6396_v48  ;;  %11096 = vst [vmem:[#allocation61_spill] sm:$0xff] %v8505_v35 }
 0x148   : > { %11094 = vst [vmem:[#allocation59_spill] sm:$0xff] %v8500_v22 }
 0x14b   : > { %v1934_v59 = vpop.f32.mrf.mxu2  ;;  %v1759_v16 = vpop.f32.mrf.mxu0 }
 0x14c   : > { %v1935_v31 = vadd.f32 %v1934_v59, %v1846_v56  ;;  %v2023_v62 = vpop.f32.mrf.mxu3  ;;  %v1760_v5 = vadd.f32 %v1759_v16, %v8219_v36  ;;  %v1848_v10 = vpop.f32.mrf.mxu1  ;;  %v592_v59 = vld [vmem:[%s7994_s28 + $0x168] sm:$0xff]  ;;  %v586_v16 = vld [vmem:[%s7994_s28 + $0x138] sm:$0xff] }
 0x14e   : > { %v8507_v20 = vadd.f32 %v2023_v62, %v1935_v31  ;;  %v1849_v8 = vadd.f32 %v1848_v10, %v1760_v5  ;;  %2074 = vmatmul.bf16.gmra.mxu0 %v8498_v45  ;;  %v585_v31 = vld [vmem:[%s7994_s28 + $0x130] sm:$0xff]  ;;  %v594_v5 = vld [vmem:[%s7994_s28 + $0x178] sm:$0xff] }
 0x14f   : > { %2163 = vmatmul.bf16.gmra.mxu1 %v8500_v22  ;;  %v593_v62 = vld [vmem:[%s7994_s28 + $0x170] sm:$0xff] }
 0x150   : > { %2252 = vmatmul.bf16.gmra.mxu2 %v8502_v44  ;;  %v8531_v44 = vpack.c.bf16 %v594_v5, %v586_v16 }
 0x151   : > { %2341 = vmatmul.bf16.gmra.mxu3 %v8505_v35  ;;  %v8524_v35 = vpack.c.bf16 %v591_v61, %v583_v30  ;;  %v6449_v30 = vld [vmem:[%s7918_s22 + $0x158] sm:$0xf0]  ;;  %v7300_v61 = vld [vmem:[%s7918_s22 + $0x1d4] sm:$0xf] }
 0x152   : > { %11100 = vst [vmem:[#allocation65_spill] sm:$0xff] %v8531_v44 }
 0x153   : > { %v1937_v46 = vpop.f32.mrf.mxu2  ;;  %v1761_v60 = vpop.f32.mrf.mxu0  ;;  %11097 = vst [vmem:[#allocation62_spill] sm:$0xff] %v8524_v35 }
 0x154   : > { %v1938_v48 = vadd.f32 %v1937_v46, %v1849_v8  ;;  %v2026_v23 = vpop.f32.mrf.mxu3  ;;  %v1762_v56 = vadd.f32 %v1761_v60, %v8219_v36  ;;  %v1850_v21 = vpop.f32.mrf.mxu1 }
 0x156   : > { %v8514_v41 = vadd.f32 %v2026_v23, %v1938_v48  ;;  %v1851_v40 = vadd.f32 %v1850_v21, %v1762_v56  ;;  %v8526_v48 = vpack.c.bf16 %v592_v59, %v584_v63  ;;  %v8528_v23 = vpack.c.bf16 %v593_v62, %v585_v31  ;;  %v6513_v59 = vld [vmem:[%s7918_s22 + $0x1d8] sm:$0xf0] }
 0x157   : > { %v6516_v62 = vor.u32 %v7300_v61, %v6513_v59  ;;  %v607_v61 = vld [vmem:[%s7994_s28 + $0x1e0] sm:$0xff]  ;;  %v600_v59 = vld [vmem:[%s7994_s28 + $0x1a8] sm:$0xff] }
 0x158   : > { %11098 = vst [vmem:[#allocation63_spill] sm:$0xff] %v8526_v48 }
 0x159   : > { %11099 = vst [vmem:[#allocation64_spill] sm:$0xff] %v8528_v23  ;;  %2686 = vmatpush.bf16.msra.mxu3 %v6516_v62 }
 0x15b   : > { %v1939_v10 = vpop.f32.mrf.mxu2  ;;  %v1764_v60 = vpop.f32.mrf.mxu0 }
 0x15c   : > { %v1940_v8 = vadd.f32 %v1939_v10, %v1851_v40  ;;  %v2028_v46 = vpop.f32.mrf.mxu3  ;;  %v1765_v56 = vadd.f32 %v1764_v60, %v8219_v36  ;;  %v1853_v21 = vpop.f32.mrf.mxu1  ;;  %v7284_v40 = vld [vmem:[%s7918_s22 + $0x154] sm:$0xf] }
 0x15d   : > { %v6452_v63 = vor.u32 %v7284_v40, %v6449_v30  ;;  %v7252_v40 = vld [vmem:[%s7918_s22 + $0x54] sm:$0xf]  ;;  %v6321_v30 = vld [vmem:[%s7918_s22 + $0x58] sm:$0xf0] }
 0x15e   : > { %v8533_v22 = vadd.f32 %v2028_v46, %v1940_v8  ;;  %v1854_v45 = vadd.f32 %v1853_v21, %v1765_v56  ;;  %2079 = vmatmul.bf16.gmra.mxu0 %v8524_v35  ;;  %v599_v56 = vld [vmem:[%s7994_s28 + $0x1a0] sm:$0xff] }
 0x15f   : > { %2168 = vmatmul.bf16.gmra.mxu1 %v8526_v48  ;;  %2597 = vmatpush.bf16.msra.mxu2 %v6452_v63  ;;  %v601_v63 = vld [vmem:[%s7994_s28 + $0x1b0] sm:$0xff]  ;;  %v8558_v33 = vpack.c.bf16 %v607_v61, %v599_v56 }
 0x160   : > { %2257 = vmatmul.bf16.gmra.mxu2 %v8528_v23  ;;  %v608_v23 = vld [vmem:[%s7994_s28 + $0x1e8] sm:$0xff]  ;;  %v609_v48 = vld [vmem:[%s7994_s28 + $0x1f0] sm:$0xff] }
 0x161   : > { %2346 = vmatmul.bf16.gmra.mxu3 %v8531_v44  ;;  %v6385_v44 = vld [vmem:[%s7918_s22 + $0xd8] sm:$0xf0]  ;;  %11101 = vst [vmem:[#allocation66_spill] sm:$0xff] %v8558_v33  ;;  %v8562_v32 = vpack.c.bf16 %v609_v48, %v601_v63  ;;  %v623_v63 = vld [vmem:[%s7994_s28 + $0x260] sm:$0xff] }
 0x163   : > { %v1942_v31 = vpop.f32.mrf.mxu2  ;;  %v1766_v10 = vpop.f32.mrf.mxu0  ;;  %11103 = vst [vmem:[#allocation68_spill] sm:$0xff] %v8562_v32 }
 0x164   : > { %v1943_v16 = vadd.f32 %v1942_v31, %v1854_v45  ;;  %v2031_v5 = vpop.f32.mrf.mxu3  ;;  %v1767_v8 = vadd.f32 %v1766_v10, %v8219_v36  ;;  %v1855_v46 = vpop.f32.mrf.mxu1  ;;  %v7268_v45 = vld [vmem:[%s7918_s22 + $0xd4] sm:$0xf]  ;;  %v6324_v31 = vor.u32 %v7252_v40, %v6321_v30  ;;  %v602_v10 = vld [vmem:[%s7994_s28 + $0x1b8] sm:$0xff] }
 0x165   : > { %v6388_v35 = vor.u32 %v7268_v45, %v6385_v44  ;;  %v8565_v3 = vpack.c.bf16 %v610_v34, %v602_v10  ;;  %v616_v10 = vld [vmem:[%s7994_s28 + $0x228] sm:$0xff] }
 0x166   : > { %v8544_v60 = vadd.f32 %v2031_v5, %v1943_v16  ;;  %v1856_v21 = vadd.f32 %v1855_v46, %v1767_v8  ;;  %2419 = vmatpush.bf16.msra.mxu0 %v6324_v31  ;;  %v8560_v46 = vpack.c.bf16 %v608_v23, %v600_v59  ;;  %v615_v31 = vld [vmem:[%s7994_s28 + $0x220] sm:$0xff] }
 0x167   : > { %2508 = vmatpush.bf16.msra.mxu1 %v6388_v35  ;;  %11104 = vst [vmem:[#allocation69_spill] sm:$0xff] %v8565_v3 }
 0x168   : > { %11102 = vst [vmem:[#allocation67_spill] sm:$0xff] %v8560_v46 }
 0x16b   : > { %v1944_v62 = vpop.f32.mrf.mxu2  ;;  %v1769_v8 = vpop.f32.mrf.mxu0 }
 0x16c   : > { %v1945_v16 = vadd.f32 %v1944_v62, %v1856_v21  ;;  %v2033_v5 = vpop.f32.mrf.mxu3  ;;  %v1770_v40 = vadd.f32 %v1769_v8, %v8219_v36  ;;  %v1858_v30 = vpop.f32.mrf.mxu1  ;;  %v624_v62 = vld [vmem:[%s7994_s28 + $0x268] sm:$0xff]  ;;  %v618_v8 = vld [vmem:[%s7994_s28 + $0x238] sm:$0xff] }
 0x16e   : > { %v8567_v44 = vadd.f32 %v2033_v5, %v1945_v16  ;;  %v1859_v56 = vadd.f32 %v1858_v30, %v1770_v40  ;;  %2084 = vmatmul.bf16.gmra.mxu0 %v8558_v33  ;;  %v617_v16 = vld [vmem:[%s7994_s28 + $0x230] sm:$0xff]  ;;  %v626_v40 = vld [vmem:[%s7994_s28 + $0x278] sm:$0xff] }
 0x16f   : > { %2173 = vmatmul.bf16.gmra.mxu1 %v8560_v46  ;;  %v625_v5 = vld [vmem:[%s7994_s28 + $0x270] sm:$0xff] }
 0x170   : > { %2262 = vmatmul.bf16.gmra.mxu2 %v8562_v32  ;;  %v8591_v32 = vpack.c.bf16 %v626_v40, %v618_v8 }
 0x171   : > { %2351 = vmatmul.bf16.gmra.mxu3 %v8565_v3  ;;  %v8584_v3 = vpack.c.bf16 %v623_v63, %v615_v31  ;;  %v6441_v31 = vld [vmem:[%s7918_s22 + $0x148] sm:$0xf0]  ;;  %v7298_v63 = vld [vmem:[%s7918_s22 + $0x1c4] sm:$0xf] }
 0x172   : > { %11108 = vst [vmem:[#allocation73_spill] sm:$0xff] %v8591_v32 }
 0x173   : > { %v1947_v34 = vpop.f32.mrf.mxu2  ;;  %v1771_v23 = vpop.f32.mrf.mxu0  ;;  %11105 = vst [vmem:[#allocation70_spill] sm:$0xff] %v8584_v3 }
 0x174   : > { %v1948_v35 = vadd.f32 %v1947_v34, %v1859_v56  ;;  %v2036_v48 = vpop.f32.mrf.mxu3  ;;  %v1772_v21 = vadd.f32 %v1771_v23, %v8219_v36  ;;  %v1860_v45 = vpop.f32.mrf.mxu1 }
 0x176   : > { %v8574_v61 = vadd.f32 %v2036_v48, %v1948_v35  ;;  %v1861_v59 = vadd.f32 %v1860_v45, %v1772_v21  ;;  %v8586_v35 = vpack.c.bf16 %v624_v62, %v616_v10  ;;  %v8588_v48 = vpack.c.bf16 %v625_v5, %v617_v16  ;;  %v6505_v62 = vld [vmem:[%s7918_s22 + $0x1c8] sm:$0xf0] }
 0x177   : > { %v6508_v5 = vor.u32 %v7298_v63, %v6505_v62  ;;  %v639_v63 = vld [vmem:[%s7994_s28 + $0x2e0] sm:$0xff]  ;;  %v632_v62 = vld [vmem:[%s7994_s28 + $0x2a8] sm:$0xff] }
 0x178   : > { %11106 = vst [vmem:[#allocation71_spill] sm:$0xff] %v8586_v35 }
 0x179   : > { %11107 = vst [vmem:[#allocation72_spill] sm:$0xff] %v8588_v48  ;;  %2687 = vmatpush.bf16.msra.mxu3 %v6508_v5 }
 0x17b   : > { %v1949_v30 = vpop.f32.mrf.mxu2  ;;  %v1774_v23 = vpop.f32.mrf.mxu0 }
 0x17c   : > { %v1950_v56 = vadd.f32 %v1949_v30, %v1861_v59  ;;  %v2038_v34 = vpop.f32.mrf.mxu3  ;;  %v1775_v21 = vadd.f32 %v1774_v23, %v8219_v36  ;;  %v1863_v45 = vpop.f32.mrf.mxu1  ;;  %v7282_v59 = vld [vmem:[%s7918_s22 + $0x144] sm:$0xf] }
 0x17d   : > { %v6444_v10 = vor.u32 %v7282_v59, %v6441_v31  ;;  %v7250_v59 = vld [vmem:[%s7918_s22 + $0x44] sm:$0xf]  ;;  %v6313_v31 = vld [vmem:[%s7918_s22 + $0x48] sm:$0xf0] }
 0x17e   : > { %v8593_v46 = vadd.f32 %v2038_v34, %v1950_v56  ;;  %v1864_v33 = vadd.f32 %v1863_v45, %v1775_v21  ;;  %2089 = vmatmul.bf16.gmra.mxu0 %v8584_v3  ;;  %v631_v21 = vld [vmem:[%s7994_s28 + $0x2a0] sm:$0xff] }
 0x17f   : > { %2178 = vmatmul.bf16.gmra.mxu1 %v8586_v35  ;;  %2598 = vmatpush.bf16.msra.mxu2 %v6444_v10  ;;  %v633_v10 = vld [vmem:[%s7994_s28 + $0x2b0] sm:$0xff]  ;;  %v8618_v1 = vpack.c.bf16 %v639_v63, %v631_v21 }
 0x180   : > { %11109 = vst [vmem:[#allocation74_spill] sm:$0xff] %v8593_v46  ;;  %2267 = vmatmul.bf16.gmra.mxu2 %v8588_v48  ;;  %v640_v48 = vld [vmem:[%s7994_s28 + $0x2e8] sm:$0xff]  ;;  %v641_v35 = vld [vmem:[%s7994_s28 + $0x2f0] sm:$0xff] }
 0x181   : > { %2356 = vmatmul.bf16.gmra.mxu3 %v8591_v32  ;;  %v6377_v32 = vld [vmem:[%s7918_s22 + $0xc8] sm:$0xf0]  ;;  %11111 = vst [vmem:[#allocation76_spill] sm:$0xff] %v8618_v1  ;;  %v8622_v0 = vpack.c.bf16 %v641_v35, %v633_v10  ;;  %v655_v10 = vld [vmem:[%s7994_s28 + $0x360] sm:$0xff] }
 0x183   : > { %v1952_v16 = vpop.f32.mrf.mxu2  ;;  %v1776_v30 = vpop.f32.mrf.mxu0  ;;  %11113 = vst [vmem:[#allocation78_spill] sm:$0xff] %v8622_v0 }
 0x184   : > { %v1953_v8 = vadd.f32 %v1952_v16, %v1864_v33  ;;  %v2041_v40 = vpop.f32.mrf.mxu3  ;;  %v1777_v56 = vadd.f32 %v1776_v30, %v8219_v36  ;;  %v1865_v34 = vpop.f32.mrf.mxu1  ;;  %v7266_v33 = vld [vmem:[%s7918_s22 + $0xc4] sm:$0xf]  ;;  %v6316_v16 = vor.u32 %v7250_v59, %v6313_v31  ;;  %v634_v30 = vld [vmem:[%s7994_s28 + $0x2b8] sm:$0xff] }
 0x185   : > { %v6380_v3 = vor.u32 %v7266_v33, %v6377_v32 }
 0x186   : > { %v8604_v23 = vadd.f32 %v2041_v40, %v1953_v8  ;;  %v1866_v45 = vadd.f32 %v1865_v34, %v1777_v56  ;;  %2420 = vmatpush.bf16.msra.mxu0 %v6316_v16  ;;  %v8620_v34 = vpack.c.bf16 %v640_v48, %v632_v62  ;;  %v647_v16 = vld [vmem:[%s7994_s28 + $0x320] sm:$0xff] }
 0x187   : > { %2509 = vmatpush.bf16.msra.mxu1 %v6380_v3 }
 0x188   : > { %11110 = vst [vmem:[#allocation75_spill] sm:$0xff] %v8604_v23  ;;  %v8625_v23 = vpack.c.bf16 %v642_v2, %v634_v30  ;;  %v648_v30 = vld [vmem:[%s7994_s28 + $0x328] sm:$0xff] }
 0x189   : > { %11112 = vst [vmem:[#allocation77_spill] sm:$0xff] %v8620_v34 }
 0x18a   : > { %11114 = vst [vmem:[#allocation79_spill] sm:$0xff] %v8625_v23 }
 0x18b   : > { %v1954_v5 = vpop.f32.mrf.mxu2  ;;  %v1779_v56 = vpop.f32.mrf.mxu0 }
 0x18c   : > { %v1955_v8 = vadd.f32 %v1954_v5, %v1866_v45  ;;  %v2043_v40 = vpop.f32.mrf.mxu3  ;;  %v1780_v59 = vadd.f32 %v1779_v56, %v8219_v36  ;;  %v1868_v31 = vpop.f32.mrf.mxu1  ;;  %v656_v5 = vld [vmem:[%s7994_s28 + $0x368] sm:$0xff]  ;;  %v650_v56 = vld [vmem:[%s7994_s28 + $0x338] sm:$0xff] }
 0x18e   : > { %v8627_v32 = vadd.f32 %v2043_v40, %v1955_v8  ;;  %v1869_v21 = vadd.f32 %v1868_v31, %v1780_v59  ;;  %2094 = vmatmul.bf16.gmra.mxu0 %v8618_v1  ;;  %v649_v8 = vld [vmem:[%s7994_s28 + $0x330] sm:$0xff]  ;;  %v658_v59 = vld [vmem:[%s7994_s28 + $0x378] sm:$0xff] }
 0x18f   : > { %2183 = vmatmul.bf16.gmra.mxu1 %v8620_v34  ;;  %v657_v40 = vld [vmem:[%s7994_s28 + $0x370] sm:$0xff] }
 0x190   : > { %11115 = vst [vmem:[#allocation80_spill] sm:$0xff] %v8627_v32  ;;  %2272 = vmatmul.bf16.gmra.mxu2 %v8622_v0  ;;  %v8651_v0 = vpack.c.bf16 %v658_v59, %v650_v56 }
 0x191   : > { %2361 = vmatmul.bf16.gmra.mxu3 %v8625_v23  ;;  %v8644_v23 = vpack.c.bf16 %v655_v10, %v647_v16  ;;  %v6433_v16 = vld [vmem:[%s7918_s22 + $0x138] sm:$0xf0]  ;;  %v7296_v10 = vld [vmem:[%s7918_s22 + $0x1b4] sm:$0xf] }
 0x192   : > { %11120 = vst [vmem:[#allocation85_spill] sm:$0xff] %v8651_v0 }
 0x193   : > { %v1957_v2 = vpop.f32.mrf.mxu2  ;;  %v1781_v48 = vpop.f32.mrf.mxu0  ;;  %11117 = vst [vmem:[#allocation82_spill] sm:$0xff] %v8644_v23 }
 0x194   : > { %v1958_v3 = vadd.f32 %v1957_v2, %v1869_v21  ;;  %v2046_v35 = vpop.f32.mrf.mxu3  ;;  %v1782_v45 = vadd.f32 %v1781_v48, %v8219_v36  ;;  %v1870_v33 = vpop.f32.mrf.mxu1 }
 0x196   : > { %v8634_v63 = vadd.f32 %v2046_v35, %v1958_v3  ;;  %v1871_v62 = vadd.f32 %v1870_v33, %v1782_v45  ;;  %v8646_v3 = vpack.c.bf16 %v656_v5, %v648_v30  ;;  %v8648_v35 = vpack.c.bf16 %v657_v40, %v649_v8  ;;  %v6497_v5 = vld [vmem:[%s7918_s22 + $0x1b8] sm:$0xf0] }
 0x197   : > { %v6500_v40 = vor.u32 %v7296_v10, %v6497_v5  ;;  %v666_v10 = vld [vmem:[%s7994_s28 + $0x3b8] sm:$0xff] }
 0x198   : > { %11116 = vst [vmem:[#allocation81_spill] sm:$0xff] %v8634_v63  ;;  %v674_v5 = vld [vmem:[%s7994_s28 + $0x3f8] sm:$0xff] }
 0x199   : > { %11118 = vst [vmem:[#allocation83_spill] sm:$0xff] %v8646_v3  ;;  %2688 = vmatpush.bf16.msra.mxu3 %v6500_v40 }
 0x19a   : > { %11119 = vst [vmem:[#allocation84_spill] sm:$0xff] %v8648_v35 }
 0x19b   : > { %v1959_v31 = vpop.f32.mrf.mxu2  ;;  %v1784_v48 = vpop.f32.mrf.mxu0 }
 0x19c   : > { %v1960_v21 = vadd.f32 %v1959_v31, %v1871_v62  ;;  %v2048_v2 = vpop.f32.mrf.mxu3  ;;  %v1785_v45 = vadd.f32 %v1784_v48, %v8219_v36  ;;  %v1873_v33 = vpop.f32.mrf.mxu1  ;;  %v7280_v62 = vld [vmem:[%s7918_s22 + $0x134] sm:$0xf] }
 0x19d   : > { %v6436_v30 = vor.u32 %v7280_v62, %v6433_v16  ;;  %v671_v62 = vld [vmem:[%s7994_s28 + $0x3e0] sm:$0xff]  ;;  %v664_v16 = vld [vmem:[%s7994_s28 + $0x3a8] sm:$0xff] }
 0x19e   : > { %v8653_v34 = vadd.f32 %v2048_v2, %v1960_v21  ;;  %v1874_v1 = vadd.f32 %v1873_v33, %v1785_v45  ;;  %2099 = vmatmul.bf16.gmra.mxu0 %v8644_v23  ;;  %v663_v33 = vld [vmem:[%s7994_s28 + $0x3a0] sm:$0xff] }
 0x19f   : > { %2188 = vmatmul.bf16.gmra.mxu1 %v8646_v3  ;;  %2599 = vmatpush.bf16.msra.mxu2 %v6436_v30  ;;  %v673_v3 = vld [vmem:[%s7994_s28 + $0x3f0] sm:$0xff] }
 0x1a0   : > { %11121 = vst [vmem:[#allocation86_spill] sm:$0xff] %v8653_v34  ;;  %2277 = vmatmul.bf16.gmra.mxu2 %v8648_v35  ;;  %v665_v35 = vld [vmem:[%s7994_s28 + $0x3b0] sm:$0xff] }
 0x1a1   : > { %2366 = vmatmul.bf16.gmra.mxu3 %v8651_v0  ;;  %v672_v0 = vld [vmem:[%s7994_s28 + $0x3e8] sm:$0xff]  ;;  %v8678_v40 = vpack.c.bf16 %v673_v3, %v665_v35 }
 0x1a3   : > { %v1962_v8 = vpop.f32.mrf.mxu2  ;;  %v1786_v31 = vpop.f32.mrf.mxu0  ;;  %11125 = vst [vmem:[#allocation90_spill] sm:$0xff] %v8678_v40 }
 0x1a4   : > { %v1963_v56 = vadd.f32 %v1962_v8, %v1874_v1  ;;  %v2051_v59 = vpop.f32.mrf.mxu3  ;;  %v1787_v21 = vadd.f32 %v1786_v31, %v8219_v36  ;;  %v1875_v2 = vpop.f32.mrf.mxu1  ;;  %v8674_v8 = vpack.c.bf16 %v671_v62, %v663_v33  ;;  %v8676_v31 = vpack.c.bf16 %v672_v0, %v664_v16  ;;  %v679_v16 = vld [vmem:[%s7994_s28 + $0x420] sm:$0xff] }
 0x1a6   : > { %v8664_v48 = vadd.f32 %v2051_v59, %v1963_v56  ;;  %v1876_v45 = vadd.f32 %v1875_v2, %v1787_v21  ;;  %11123 = vst [vmem:[#allocation88_spill] sm:$0xff] %v8674_v8  ;;  %v8681_v21 = vpack.c.bf16 %v674_v5, %v666_v10  ;;  %v687_v10 = vld [vmem:[%s7994_s28 + $0x460] sm:$0xff]  ;;  %v680_v5 = vld [vmem:[%s7994_s28 + $0x428] sm:$0xff] }
 0x1a7   : > { %11124 = vst [vmem:[#allocation89_spill] sm:$0xff] %v8676_v31 }
 0x1a8   : > { %11122 = vst [vmem:[#allocation87_spill] sm:$0xff] %v8664_v48 }
 0x1a9   : > { %11126 = vst [vmem:[#allocation91_spill] sm:$0xff] %v8681_v21 }
 0x1ab   : > { %v1964_v1 = vpop.f32.mrf.mxu2  ;;  %v1789_v34 = vpop.f32.mrf.mxu0 }
 0x1ac   : > { %v1965_v23 = vadd.f32 %v1964_v1, %v1876_v45  ;;  %v2053_v30 = vpop.f32.mrf.mxu3  ;;  %v1790_v56 = vadd.f32 %v1789_v34, %v8219_v36  ;;  %v1878_v59 = vpop.f32.mrf.mxu1  ;;  %v688_v1 = vld [vmem:[%s7994_s28 + $0x468] sm:$0xff] }
 0x1ae   : > { %v8683_v2 = vadd.f32 %v2053_v30, %v1965_v23  ;;  %v1879_v48 = vadd.f32 %v1878_v59, %v1790_v56  ;;  %2104 = vmatmul.bf16.gmra.mxu0 %v8674_v8  ;;  %v681_v30 = vld [vmem:[%s7994_s28 + $0x430] sm:$0xff]  ;;  %v6369_v8 = vld [vmem:[%s7918_s22 + $0xb8] sm:$0xf0] }
 0x1af   : > { %2193 = vmatmul.bf16.gmra.mxu1 %v8676_v31  ;;  %v689_v56 = vld [vmem:[%s7994_s28 + $0x470] sm:$0xff] }
 0x1b0   : > { %11127 = vst [vmem:[#allocation92_spill] sm:$0xff] %v8683_v2  ;;  %2282 = vmatmul.bf16.gmra.mxu2 %v8678_v40  ;;  %v7248_v59 = vld [vmem:[%s7918_s22 + $0x34] sm:$0xf]  ;;  %v690_v40 = vld [vmem:[%s7994_s28 + $0x478] sm:$0xff] }
 0x1b1   : > { %2371 = vmatmul.bf16.gmra.mxu3 %v8681_v21  ;;  %v6305_v21 = vld [vmem:[%s7918_s22 + $0x38] sm:$0xf0] }
 0x1b2   : > { %v6308_v31 = vor.u32 %v7248_v59, %v6305_v21  ;;  %v697_v59 = vld [vmem:[%s7994_s28 + $0x4b0] sm:$0xff] }
 0x1b3   : > { %v1967_v0 = vpop.f32.mrf.mxu2  ;;  %v1791_v3 = vpop.f32.mrf.mxu0 }
 0x1b4   : > { %v1968_v34 = vadd.f32 %v1967_v0, %v1879_v48  ;;  %v2056_v23 = vpop.f32.mrf.mxu3  ;;  %v1792_v35 = vadd.f32 %v1791_v3, %v8219_v36  ;;  %v1880_v45 = vpop.f32.mrf.mxu1  ;;  %v7264_v48 = vld [vmem:[%s7918_s22 + $0xb4] sm:$0xf]  ;;  %v682_v0 = vld [vmem:[%s7994_s28 + $0x438] sm:$0xff]  ;;  %v8704_v36 = vpack.c.bf16 %v687_v10, %v679_v16  ;;  %2421 = vmatpush.bf16.msra.mxu0 %v6308_v31 }
 0x1b5   : > { %v6372_v3 = vor.u32 %v7264_v48, %v6369_v8  ;;  %v8711_v46 = vpack.c.bf16 %v690_v40, %v682_v0  ;;  %v705_v48 = vld [vmem:[%s7994_s28 + $0x4f0] sm:$0xff] }
 0x1b6   : > { %v8690_v33 = vadd.f32 %v2056_v23, %v1968_v34  ;;  %v1881_v62 = vadd.f32 %v1880_v45, %v1792_v35  ;;  %11129 = vst [vmem:[#allocation94_spill] sm:$0xff] %v8704_v36  ;;  %v8706_v45 = vpack.c.bf16 %v688_v1, %v680_v5  ;;  %v695_v5 = vld [vmem:[%s7994_s28 + $0x4a0] sm:$0xff] }
 0x1b7   : > { %11132 = vst [vmem:[#allocation97_spill] sm:$0xff] %v8711_v46  ;;  %2510 = vmatpush.bf16.msra.mxu1 %v6372_v3  ;;  %v703_v1 = vld [vmem:[%s7994_s28 + $0x4e0] sm:$0xff]  ;;  %v698_v3 = vld [vmem:[%s7994_s28 + $0x4b8] sm:$0xff] }
 0x1b8   : > { %11128 = vst [vmem:[#allocation93_spill] sm:$0xff] %v8690_v33  ;;  %v8708_v33 = vpack.c.bf16 %v689_v56, %v681_v30  ;;  %v696_v30 = vld [vmem:[%s7994_s28 + $0x4a8] sm:$0xff] }
 0x1b9   : > { %11130 = vst [vmem:[#allocation95_spill] sm:$0xff] %v8706_v45  ;;  %v704_v56 = vld [vmem:[%s7994_s28 + $0x4e8] sm:$0xff] }
 0x1ba   : > { %11131 = vst [vmem:[#allocation96_spill] sm:$0xff] %v8708_v33 }
 0x1bb   : > { %v1969_v2 = vpop.f32.mrf.mxu2  ;;  %v2070_v35 = vpop.f32.mrf.mxu0 }
 0x1bc   : > { %v1970_v34 = vadd.f32 %v1969_v2, %v1881_v62  ;;  %v2058_v23 = vpop.f32.mrf.mxu3  ;;  %v2071_v63 = vadd.f32 %v2070_v35, %v8244_v18  ;;  %v2159_v32 = vpop.f32.mrf.mxu1 }
 0x1be   : > { %v8713_v21 = vadd.f32 %v2058_v23, %v1970_v34  ;;  %v2160_v16 = vadd.f32 %v2159_v32, %v2071_v63  ;;  %2109 = vmatmul.bf16.gmra.mxu0 %v8704_v36  ;;  %v706_v34 = vld [vmem:[%s7994_s28 + $0x4f8] sm:$0xff] }
 0x1bf   : > { %2198 = vmatmul.bf16.gmra.mxu1 %v8706_v45  ;;  %v7294_v45 = vld [vmem:[%s7918_s22 + $0x1a4] sm:$0xf] }
 0x1c0   : > { %11133 = vst [vmem:[#allocation98_spill] sm:$0xff] %v8713_v21  ;;  %2287 = vmatmul.bf16.gmra.mxu2 %v8708_v33  ;;  %v6425_v33 = vld [vmem:[%s7918_s22 + $0x128] sm:$0xf0] }
 0x1c1   : > { %2376 = vmatmul.bf16.gmra.mxu3 %v8711_v46  ;;  %v8738_v46 = vpack.c.bf16 %v706_v34, %v698_v3 }
 0x1c3   : > { %v2248_v18 = vpop.f32.mrf.mxu2  ;;  %v2072_v40 = vpop.f32.mrf.mxu0  ;;  %11137 = vst [vmem:[#allocation102_spill] sm:$0xff] %v8738_v46 }
 0x1c4   : > { %v2249_v8 = vadd.f32 %v2248_v18, %v2160_v16  ;;  %v2337_v31 = vpop.f32.mrf.mxu3  ;;  %v2073_v32 = vadd.f32 %v2072_v40, %v8267_v17  ;;  %v2161_v63 = vpop.f32.mrf.mxu1  ;;  %v8731_v17 = vpack.c.bf16 %v703_v1, %v695_v5  ;;  %v8735_v40 = vpack.c.bf16 %v705_v48, %v697_v59  ;;  %v6489_v1 = vld [vmem:[%s7918_s22 + $0x1a8] sm:$0xf0] }
 0x1c6   : > { %v8720_v2 = vadd.f32 %v2337_v31, %v2249_v8  ;;  %v2162_v62 = vadd.f32 %v2161_v63, %v2073_v32  ;;  %11134 = vst [vmem:[#allocation99_spill] sm:$0xff] %v8731_v17  ;;  %v8733_v31 = vpack.c.bf16 %v704_v56, %v696_v30 }
 0x1c7   : > { %11136 = vst [vmem:[#allocation101_spill] sm:$0xff] %v8735_v40 }
 0x1c8   : > { %v3193_v10 = vmin.f32 %v8720_v2, 0.0  ;;  %11135 = vst [vmem:[#allocation100_spill] sm:$0xff] %v8733_v31  ;;  %vm3129_vm0 = vcmp.gt.f32.partialorder %v8720_v2, 0.0 }
 0x1ca   : > { %v3257_v0 = vmul.f32 10.0, %v3193_v10  ;;  %v7278_v10 = vld [vmem:[%s7918_s22 + $0x124] sm:$0xf] }
 0x1cb   : > { %v2250_v23 = vpop.f32.mrf.mxu2  ;;  %v2075_v8 = vpop.f32.mrf.mxu0  ;;  %v6428_v5 = vor.u32 %v7278_v10, %v6425_v33 }
 0x1cc   : > { %v3321_v35 = vmul.f32 1.442695, %v3257_v0  ;;  %v2251_v16 = vadd.f32 %v2250_v23, %v2162_v62  ;;  %v2339_v18 = vpop.f32.mrf.mxu3  ;;  %v2076_v32 = vadd.f32 %v2075_v8, %v8274_v39  ;;  %v2164_v63 = vpop.f32.mrf.mxu1  ;;  %v6492_v62 = vor.u32 %v7294_v45, %v6489_v1  ;;  %v719_v8 = vld [vmem:[%s7994_s28 + $0x560] sm:$0xff] }
 0x1cd   : > { %2600 = vmatpush.bf16.msra.mxu2 %v6428_v5  ;;  %v712_v5 = vld [vmem:[%s7994_s28 + $0x528] sm:$0xff] }
 0x1ce   : > { %v8743_v36 = vadd.f32 %v2339_v18, %v2251_v16  ;;  %v2165_v0 = vadd.f32 %v2164_v63, %v2076_v32  ;;  %2114 = vmatmul.bf16.gmra.mxu0 %v8731_v17  ;;  %7437 = vpow2.f32 %v3321_v35  ;;  %2689 = vmatpush.bf16.msra.mxu3 %v6492_v62  ;;  %v711_v16 = vld [vmem:[%s7994_s28 + $0x520] sm:$0xff]  ;;  %v6297_v63 = vld [vmem:[%s7918_s22 + $0x28] sm:$0xf0] }
 0x1cf   : > { %2203 = vmatmul.bf16.gmra.mxu1 %v8733_v31  ;;  %v7246_v32 = vld [vmem:[%s7918_s22 + $0x24] sm:$0xf] }
 0x1d0   : > { %v3195_v30 = vmin.f32 %v8743_v36, 0.0  ;;  %2292 = vmatmul.bf16.gmra.mxu2 %v8735_v40  ;;  %v6300_v1 = vor.u32 %v7246_v32, %v6297_v63  ;;  %vm3131_vm1 = vcmp.gt.f32.partialorder %v8743_v36, 0.0 }
 0x1d1   : > { %2381 = vmatmul.bf16.gmra.mxu3 %v8738_v46 }
 0x1d2   : > { %v3259_v39 = vmul.f32 10.0, %v3195_v30  ;;  %v720_v30 = vld [vmem:[%s7994_s28 + $0x568] sm:$0xff]  ;;  %2422 = vmatpush.bf16.msra.mxu0 %v6300_v1 }
 0x1d3   : > { %v2253_v33 = vpop.f32.mrf.mxu2  ;;  %v2077_v48 = vpop.f32.mrf.mxu0  ;;  %v8769_v63 = vpack.c.bf16 %v720_v30, %v712_v5 }
 0x1d4   : > { %v3325_v56 = vmul.f32 1.442695, %v3259_v39  ;;  %v2254_v45 = vadd.f32 %v2253_v33, %v2165_v0  ;;  %v2342_v59 = vpop.f32.mrf.mxu3  ;;  %v2078_v3 = vadd.f32 %v2077_v48, %v8293_v38  ;;  %v2166_v34 = vpop.f32.mrf.mxu1  ;;  %v7262_v38 = vld [vmem:[%s7918_s22 + $0xa4] sm:$0xf]  ;;  %v6361_v0 = vld [vmem:[%s7918_s22 + $0xa8] sm:$0xf0] }
 0x1d5   : > { %v7438_v23 = vpop.eup %7437  ;;  %v713_v39 = vld [vmem:[%s7994_s28 + $0x530] sm:$0xff]  ;;  %v722_v48 = vld [vmem:[%s7994_s28 + $0x578] sm:$0xff] }
 0x1d6   : > { %7439 = vpow2.f32 %v3325_v56  ;;  %v8752_v35 = vadd.f32 %v2342_v59, %v2254_v45  ;;  %v2167_v18 = vadd.f32 %v2166_v34, %v2078_v3  ;;  %v6789_v62 = vadd.f32 -1.0, %v7438_v23  ;;  %v721_v33 = vld [vmem:[%s7994_s28 + $0x570] sm:$0xff]  ;;  %v714_v59 = vld [vmem:[%s7994_s28 + $0x538] sm:$0xff] }
 0x1d7   : > { %v6364_v56 = vor.u32 %v7262_v38, %v6361_v0  ;;  %v8767_v34 = vpack.c.bf16 %v719_v8, %v711_v16  ;;  %v8771_v23 = vpack.c.bf16 %v721_v33, %v713_v39  ;;  %v8774_v0 = vpack.c.bf16 %v722_v48, %v714_v59  ;;  %v735_v48 = vld [vmem:[%s7994_s28 + $0x5e0] sm:$0xff] }
 0x1d8   : > { %v3197_v10 = vmin.f32 %v8752_v35, 0.0  ;;  %v3513_v21 = vmul.f32 0.1, %v6789_v62  ;;  %vm3133_vm2 = vcmp.gt.f32.partialorder %v8752_v35, 0.0 }
 0x1d9   : > { %2511 = vmatpush.bf16.msra.mxu1 %v6364_v56  ;;  %11138 = vst [vmem:[#allocation103_spill] sm:$0xff] %v8771_v23  ;;  %v727_v56 = vld [vmem:[%s7994_s28 + $0x5a0] sm:$0xff] }
 0x1da   : > { %v3261_v45 = vmul.f32 10.0, %v3197_v10  ;;  %11139 = vst [vmem:[#allocation104_spill] sm:$0xff] %v8774_v0 }
 0x1db   : > { %v2255_v3 = vpop.f32.mrf.mxu2  ;;  %v2080_v32 = vpop.f32.mrf.mxu0 }
 0x1dc   : > { %v7440_v46 = vpop.eup %7439  ;;  %v3329_v40 = vmul.f32 1.442695, %v3261_v45  ;;  %v2256_v31 = vadd.f32 %v2255_v3, %v2167_v18  ;;  %v2344_v17 = vpop.f32.mrf.mxu3  ;;  %v2081_v10 = vadd.f32 %v2080_v32, %v8304_v19  ;;  %v3577_v19 = vsel %vm3129_vm0, %v8720_v2, %v3513_v21  ;;  %v728_v3 = vld [vmem:[%s7994_s28 + $0x5a8] sm:$0xff] }
 0x1dd   : > { %v6791_v55 = vadd.f32 -1.0, %v7440_v46  ;;  %v2169_v38 = vpop.f32.mrf.mxu1  ;;  %v736_v32 = vld [vmem:[%s7994_s28 + $0x5e8] sm:$0xff] }
 0x1de   : > { %v8776_v1 = vadd.f32 %v2344_v17, %v2256_v31  ;;  %7441 = vpow2.f32 %v3329_v40  ;;  %v2170_v8 = vadd.f32 %v2169_v38, %v2081_v10  ;;  %2119 = vmatmul.bf16.gmra.mxu0 %v8767_v34  ;;  %v729_v10 = vld [vmem:[%s7994_s28 + $0x5b0] sm:$0xff] }
 0x1df   : > { %v3515_v16 = vmul.f32 0.1, %v6791_v55  ;;  %2208 = vmatmul.bf16.gmra.mxu1 %v8769_v63  ;;  %v737_v38 = vld [vmem:[%s7994_s28 + $0x5f0] sm:$0xff] }
 0x1e0   : > { %v3199_v18 = vmin.f32 %v8776_v1, 0.0  ;;  %2297 = vmatmul.bf16.gmra.mxu2 %v8771_v23  ;;  %v6481_v23 = vld [vmem:[%s7918_s22 + $0x198] sm:$0xf0]  ;;  %vm3135_vm3 = vcmp.gt.f32.partialorder %v8776_v1, 0.0 }
 0x1e1   : > { %v3579_v46 = vsel %vm3131_vm1, %v8743_v36, %v3515_v16  ;;  %2386 = vmatmul.bf16.gmra.mxu3 %v8774_v0  ;;  %v7292_v0 = vld [vmem:[%s7918_s22 + $0x194] sm:$0xf] }
 0x1e2   : > { %v8787_v55 = vpack.c.bf16 %v3579_v46, %v3577_v19  ;;  %v3263_v17 = vmul.f32 10.0, %v3199_v18  ;;  %v738_v18 = vld [vmem:[%s7994_s28 + $0x5f8] sm:$0xff]  ;;  %v8801_v19 = vpack.c.bf16 %v735_v48, %v727_v56  ;;  %v8803_v46 = vpack.c.bf16 %v736_v32, %v728_v3  ;;  %v7276_v56 = vld [vmem:[%s7918_s22 + $0x114] sm:$0xf] }
 0x1e3   : > { %v2258_v31 = vpop.f32.mrf.mxu2  ;;  %v2082_v30 = vpop.f32.mrf.mxu0  ;;  %v6417_v48 = vld [vmem:[%s7918_s22 + $0x118] sm:$0xf0] }
 0x1e4   : > { %11140 = vst [vmem:[#allocation105_spill] sm:$0xff] %v8787_v55  ;;  %v3333_v40 = vmul.f32 1.442695, %v3263_v17  ;;  %v2259_v5 = vadd.f32 %v2258_v31, %v2170_v8  ;;  %v2347_v62 = vpop.f32.mrf.mxu3  ;;  %v7442_v21 = vpop.eup %7441  ;;  %v2083_v36 = vadd.f32 %v2082_v30, %v8327_v37  ;;  %v730_v8 = vld [vmem:[%s7994_s28 + $0x5b8] sm:$0xff]  ;;  %v6420_v32 = vor.u32 %v7276_v56, %v6417_v48  ;;  %v744_v48 = vld [vmem:[%s7994_s28 + $0x628] sm:$0xff] }
 0x1e5   : > { %v2171_v2 = vpop.f32.mrf.mxu1  ;;  %v6793_v45 = vadd.f32 -1.0, %v7442_v21  ;;  %v8805_v21 = vpack.c.bf16 %v737_v38, %v729_v10  ;;  %v8808_v55 = vpack.c.bf16 %v738_v18, %v730_v8 }
 0x1e6   : > { %7443 = vpow2.f32 %v3333_v40  ;;  %v8790_v39 = vadd.f32 %v2347_v62, %v2259_v5  ;;  %v2172_v33 = vadd.f32 %v2171_v2, %v2083_v36  ;;  %2601 = vmatpush.bf16.msra.mxu2 %v6420_v32 }
 0x1e7   : > { %v3517_v31 = vmul.f32 0.1, %v6793_v45  ;;  %11141 = vst [vmem:[#allocation106_spill] sm:$0xff] %v8805_v21 }
 0x1e8   : > { %v3201_v59 = vmin.f32 %v8790_v39, 0.0  ;;  %11142 = vst [vmem:[#allocation107_spill] sm:$0xff] %v8808_v55  ;;  %vm3137_vm4 = vcmp.gt.f32.partialorder %v8790_v39, 0.0 }
 0x1e9   : > { %v3581_v10 = vsel %vm3133_vm2, %v8752_v35, %v3517_v31 }
 0x1ea   : > { %v3265_v16 = vmul.f32 10.0, %v3201_v59 }
 0x1eb   : > { %v2260_v37 = vpop.f32.mrf.mxu2  ;;  %v2085_v30 = vpop.f32.mrf.mxu0 }
 0x1ec   : > { %v7444_v17 = vpop.eup %7443  ;;  %v3337_v40 = vmul.f32 1.442695, %v3265_v16  ;;  %v2261_v5 = vadd.f32 %v2260_v37, %v2172_v33  ;;  %v2349_v62 = vpop.f32.mrf.mxu3  ;;  %v2086_v2 = vadd.f32 %v2085_v30, %v8334_v43  ;;  %v6484_v33 = vor.u32 %v7292_v0, %v6481_v23 }
 0x1ed   : > { %v6795_v36 = vadd.f32 -1.0, %v7444_v17  ;;  %v2174_v59 = vpop.f32.mrf.mxu1 }
 0x1ee   : > { %v8812_v3 = vadd.f32 %v2349_v62, %v2261_v5  ;;  %v2175_v45 = vadd.f32 %v2174_v59, %v2086_v2  ;;  %2124 = vmatmul.bf16.gmra.mxu0 %v8801_v19  ;;  %7445 = vpow2.f32 %v3337_v40  ;;  %2690 = vmatpush.bf16.msra.mxu3 %v6484_v33  ;;  %v743_v62 = vld [vmem:[%s7994_s28 + $0x620] sm:$0xff]  ;;  %v7244_v2 = vld [vmem:[%s7918_s22 + $0x14] sm:$0xf]  ;;  %v6289_v59 = vld [vmem:[%s7918_s22 + $0x18] sm:$0xf0] }
 0x1ef   : > { %v3519_v16 = vmul.f32 0.1, %v6795_v36  ;;  %2213 = vmatmul.bf16.gmra.mxu1 %v8803_v46  ;;  %v751_v36 = vld [vmem:[%s7994_s28 + $0x660] sm:$0xff]  ;;  %v6292_v32 = vor.u32 %v7244_v2, %v6289_v59 }
 0x1f0   : > { %v3203_v43 = vmin.f32 %v8812_v3, 0.0  ;;  %2302 = vmatmul.bf16.gmra.mxu2 %v8805_v21  ;;  %vm3139_vm5 = vcmp.gt.f32.partialorder %v8812_v3, 0.0 }
 0x1f1   : > { %2391 = vmatmul.bf16.gmra.mxu3 %v8808_v55  ;;  %v3583_v23 = vsel %vm3135_vm3, %v8776_v1, %v3519_v16  ;;  %v752_v16 = vld [vmem:[%s7994_s28 + $0x668] sm:$0xff]  ;;  %2423 = vmatpush.bf16.msra.mxu0 %v6292_v32 }
 0x1f2   : > { %v3267_v0 = vmul.f32 10.0, %v3203_v43  ;;  %v8825_v38 = vpack.c.bf16 %v3583_v23, %v3581_v10  ;;  %v745_v43 = vld [vmem:[%s7994_s28 + $0x630] sm:$0xff]  ;;  %v8845_v59 = vpack.c.bf16 %v752_v16, %v744_v48 }
 0x1f3   : > { %v2263_v8 = vpop.f32.mrf.mxu2  ;;  %v2087_v40 = vpop.f32.mrf.mxu0  ;;  %v753_v10 = vld [vmem:[%s7994_s28 + $0x670] sm:$0xff] }
 0x1f4   : > { %11143 = vst [vmem:[#allocation108_spill] sm:$0xff] %v8825_v38  ;;  %v3341_v18 = vmul.f32 1.442695, %v3267_v0  ;;  %v2264_v37 = vadd.f32 %v2263_v8, %v2175_v45  ;;  %v2352_v17 = vpop.f32.mrf.mxu3  ;;  %v2088_v5 = vadd.f32 %v2087_v40, %v8353_v11  ;;  %v7446_v1 = vpop.eup %7445  ;;  %v7260_v11 = vld [vmem:[%s7918_s22 + $0x94] sm:$0xf]  ;;  %v746_v8 = vld [vmem:[%s7994_s28 + $0x638] sm:$0xff] }
 0x1f5   : > { %v2176_v35 = vpop.f32.mrf.mxu1  ;;  %v6353_v45 = vld [vmem:[%s7918_s22 + $0x98] sm:$0xf0]  ;;  %v6797_v33 = vadd.f32 -1.0, %v7446_v1  ;;  %v8847_v1 = vpack.c.bf16 %v753_v10, %v745_v43 }
 0x1f6   : > { %7447 = vpow2.f32 %v3341_v18  ;;  %v8828_v31 = vadd.f32 %v2352_v17, %v2264_v37  ;;  %v2177_v30 = vadd.f32 %v2176_v35, %v2088_v5  ;;  %v6356_v23 = vor.u32 %v7260_v11, %v6353_v45  ;;  %v754_v18 = vld [vmem:[%s7994_s28 + $0x678] sm:$0xff] }
 0x1f7   : > { %v8843_v17 = vpack.c.bf16 %v751_v36, %v743_v62  ;;  %11144 = vst [vmem:[#allocation109_spill] sm:$0xff] %v8847_v1  ;;  %v3521_v55 = vmul.f32 0.1, %v6797_v33  ;;  %v8850_v45 = vpack.c.bf16 %v754_v18, %v746_v8  ;;  %v759_v18 = vld [vmem:[%s7994_s28 + $0x6a0] sm:$0xff] }
 0x1f8   : > { %v3205_v56 = vmin.f32 %v8828_v31, 0.0  ;;  %2512 = vmatpush.bf16.msra.mxu1 %v6356_v23  ;;  %vm3141_vm6 = vcmp.gt.f32.partialorder %v8828_v31, 0.0 }
 0x1f9   : > { %11145 = vst [vmem:[#allocation110_spill] sm:$0xff] %v8850_v45 }
 0x1fa   : > { %v3269_v0 = vmul.f32 10.0, %v3205_v56 }
 0x1fb   : > { %v2265_v37 = vpop.f32.mrf.mxu2  ;;  %v2090_v2 = vpop.f32.mrf.mxu0 }
 0x1fc   : > { %v7448_v40 = vpop.eup %7447  ;;  %v3345_v5 = vmul.f32 1.442695, %v3269_v0  ;;  %v2266_v35 = vadd.f32 %v2265_v37, %v2177_v30  ;;  %v2354_v38 = vpop.f32.mrf.mxu3  ;;  %v2091_v56 = vadd.f32 %v2090_v2, %v8364_v29  ;;  %v3585_v29 = vsel %vm3137_vm4, %v8790_v39, %v3521_v55  ;;  %v768_v2 = vld [vmem:[%s7994_s28 + $0x6e8] sm:$0xff] }
 0x1fd   : > { %v6799_v21 = vadd.f32 -1.0, %v7448_v40  ;;  %v2179_v11 = vpop.f32.mrf.mxu1 }
 0x1fe   : > { %v8852_v32 = vadd.f32 %v2354_v38, %v2266_v35  ;;  %7449 = vpow2.f32 %v3345_v5  ;;  %v2180_v62 = vadd.f32 %v2179_v11, %v2091_v56  ;;  %2129 = vmatmul.bf16.gmra.mxu0 %v8843_v17  ;;  %v767_v5 = vld [vmem:[%s7994_s28 + $0x6e0] sm:$0xff]  ;;  %v760_v35 = vld [vmem:[%s7994_s28 + $0x6a8] sm:$0xff]  ;;  %v761_v56 = vld [vmem:[%s7994_s28 + $0x6b0] sm:$0xff] }
 0x1ff   : > { %v3523_v30 = vmul.f32 0.1, %v6799_v21  ;;  %2218 = vmatmul.bf16.gmra.mxu1 %v8845_v59  ;;  %v769_v11 = vld [vmem:[%s7994_s28 + $0x6f0] sm:$0xff] }
 0x200   : > { %v3207_v36 = vmin.f32 %v8852_v32, 0.0  ;;  %2307 = vmatmul.bf16.gmra.mxu2 %v8847_v1  ;;  %v6473_v1 = vld [vmem:[%s7918_s22 + $0x188] sm:$0xf0]  ;;  %vm3143_vm7 = vcmp.gt.f32.partialorder %v8852_v32, 0.0 }
 0x201   : > { %2396 = vmatmul.bf16.gmra.mxu3 %v8850_v45  ;;  %v3587_v38 = vsel %vm3139_vm5, %v8812_v3, %v3523_v30  ;;  %v762_v30 = vld [vmem:[%s7994_s28 + $0x6b8] sm:$0xff]  ;;  %v7290_v45 = vld [vmem:[%s7918_s22 + $0x184] sm:$0xf] }
 0x202   : > { %v3271_v48 = vmul.f32 10.0, %v3207_v36  ;;  %v8863_v21 = vpack.c.bf16 %v3587_v38, %v3585_v29  ;;  %v770_v36 = vld [vmem:[%s7994_s28 + $0x6f8] sm:$0xff]  ;;  %v8877_v29 = vpack.c.bf16 %v767_v5, %v759_v18  ;;  %v8879_v38 = vpack.c.bf16 %v768_v2, %v760_v35  ;;  %v7274_v18 = vld [vmem:[%s7918_s22 + $0x104] sm:$0xf]  ;;  %v6409_v5 = vld [vmem:[%s7918_s22 + $0x108] sm:$0xf0] }
 0x203   : > { %v2268_v33 = vpop.f32.mrf.mxu2  ;;  %v2092_v23 = vpop.f32.mrf.mxu0  ;;  %v6412_v2 = vor.u32 %v7274_v18, %v6409_v5  ;;  %v776_v5 = vld [vmem:[%s7994_s28 + $0x728] sm:$0xff] }
 0x204   : > { %11146 = vst [vmem:[#allocation111_spill] sm:$0xff] %v8863_v21  ;;  %v3349_v16 = vmul.f32 1.442695, %v3271_v48  ;;  %v2269_v43 = vadd.f32 %v2268_v33, %v2180_v62  ;;  %v2357_v10 = vpop.f32.mrf.mxu3  ;;  %v7450_v0 = vpop.eup %7449  ;;  %v2093_v55 = vadd.f32 %v2092_v23, %v8387_v4  ;;  %v8884_v21 = vpack.c.bf16 %v770_v36, %v762_v30 }
 0x205   : > { %v2181_v39 = vpop.f32.mrf.mxu1  ;;  %v6801_v37 = vadd.f32 -1.0, %v7450_v0  ;;  %v8881_v0 = vpack.c.bf16 %v769_v11, %v761_v56  ;;  %2602 = vmatpush.bf16.msra.mxu2 %v6412_v2 }
 0x206   : > { %7451 = vpow2.f32 %v3349_v16  ;;  %v8866_v3 = vadd.f32 %v2357_v10, %v2269_v43  ;;  %v2182_v8 = vadd.f32 %v2181_v39, %v2093_v55  ;;  %11148 = vst [vmem:[#allocation113_spill] sm:$0xff] %v8884_v21 }
 0x207   : > { %v3525_v33 = vmul.f32 0.1, %v6801_v37  ;;  %11147 = vst [vmem:[#allocation112_spill] sm:$0xff] %v8881_v0 }
 0x208   : > { %v3209_v40 = vmin.f32 %v8866_v3, 0.0  ;;  %vm3145_vm8 = vcmp.gt.f32.partialorder %v8866_v3, 0.0 }
 0x209   : > { %v3589_v56 = vsel %vm3141_vm6, %v8828_v31, %v3525_v33 }
 0x20a   : > { %v3273_v62 = vmul.f32 10.0, %v3209_v40 }
 0x20b   : > { %v2270_v4 = vpop.f32.mrf.mxu2  ;;  %v2095_v23 = vpop.f32.mrf.mxu0 }
 0x20c   : > { %v7452_v48 = vpop.eup %7451  ;;  %v3353_v16 = vmul.f32 1.442695, %v3273_v62  ;;  %v2271_v43 = vadd.f32 %v2270_v4, %v2182_v8  ;;  %v2359_v10 = vpop.f32.mrf.mxu3  ;;  %v2096_v39 = vadd.f32 %v2095_v23, %v8394_v58  ;;  %v6476_v8 = vor.u32 %v7290_v45, %v6473_v1 }
 0x20d   : > { %v6803_v55 = vadd.f32 -1.0, %v7452_v48  ;;  %v2184_v40 = vpop.f32.mrf.mxu1 }
 0x20e   : > { %v8888_v35 = vadd.f32 %v2359_v10, %v2271_v43  ;;  %v2185_v37 = vadd.f32 %v2184_v40, %v2096_v39  ;;  %2134 = vmatmul.bf16.gmra.mxu0 %v8877_v29  ;;  %7453 = vpow2.f32 %v3353_v16  ;;  %2691 = vmatpush.bf16.msra.mxu3 %v6476_v8  ;;  %v775_v10 = vld [vmem:[%s7994_s28 + $0x720] sm:$0xff]  ;;  %v6281_v40 = vld [vmem:[%s7918_s22 + $0x8] sm:$0xf0] }
 0x20f   : > { %v3527_v62 = vmul.f32 0.1, %v6803_v55  ;;  %2223 = vmatmul.bf16.gmra.mxu1 %v8879_v38  ;;  %v783_v55 = vld [vmem:[%s7994_s28 + $0x760] sm:$0xff] }
 0x210   : > { %v3211_v58 = vmin.f32 %v8888_v35, 0.0  ;;  %2312 = vmatmul.bf16.gmra.mxu2 %v8881_v0  ;;  %v7242_v39 = vld [vmem:[%s7918_s22 + $0x4] sm:$0xf]  ;;  %vm3147_vm9 = vcmp.gt.f32.partialorder %v8888_v35, 0.0 }
 0x211   : > { %2401 = vmatmul.bf16.gmra.mxu3 %v8884_v21  ;;  %v3591_v1 = vsel %vm3143_vm7, %v8852_v32, %v3527_v62  ;;  %v6284_v2 = vor.u32 %v7242_v39, %v6281_v40  ;;  %v784_v62 = vld [vmem:[%s7994_s28 + $0x768] sm:$0xff] }
 0x212   : > { %v3275_v45 = vmul.f32 10.0, %v3211_v58  ;;  %v8901_v11 = vpack.c.bf16 %v3591_v1, %v3589_v56  ;;  %v777_v58 = vld [vmem:[%s7994_s28 + $0x730] sm:$0xff]  ;;  %v8921_v40 = vpack.c.bf16 %v784_v62, %v776_v5 }
 0x213   : > { %v2273_v30 = vpop.f32.mrf.mxu2  ;;  %v2097_v16 = vpop.f32.mrf.mxu0  ;;  %v785_v56 = vld [vmem:[%s7994_s28 + $0x770] sm:$0xff]  ;;  %2424 = vmatpush.bf16.msra.mxu0 %v6284_v2 }
 0x214   : > { %11149 = vst [vmem:[#allocation114_spill] sm:$0xff] %v8901_v11  ;;  %v3357_v36 = vmul.f32 1.442695, %v3275_v45  ;;  %v2274_v4 = vadd.f32 %v2273_v30, %v2185_v37  ;;  %v2362_v48 = vpop.f32.mrf.mxu3  ;;  %v2098_v43 = vadd.f32 %v2097_v16, %v8413_v9  ;;  %v7454_v32 = vpop.eup %7453  ;;  %v7258_v9 = vld [vmem:[%s7918_s22 + $0x84] sm:$0xf]  ;;  %v778_v30 = vld [vmem:[%s7994_s28 + $0x738] sm:$0xff] }
 0x215   : > { %v2186_v31 = vpop.f32.mrf.mxu1  ;;  %v6345_v37 = vld [vmem:[%s7918_s22 + $0x88] sm:$0xf0]  ;;  %v6805_v8 = vadd.f32 -1.0, %v7454_v32  ;;  %v8923_v32 = vpack.c.bf16 %v785_v56, %v777_v58 }
 0x216   : > { %7455 = vpow2.f32 %v3357_v36  ;;  %v8904_v33 = vadd.f32 %v2362_v48, %v2274_v4  ;;  %v2187_v23 = vadd.f32 %v2186_v31, %v2098_v43  ;;  %v6348_v1 = vor.u32 %v7258_v9, %v6345_v37  ;;  %v786_v36 = vld [vmem:[%s7994_s28 + $0x778] sm:$0xff] }
 0x217   : > { %v8919_v48 = vpack.c.bf16 %v783_v55, %v775_v10  ;;  %11150 = vst [vmem:[#allocation115_spill] sm:$0xff] %v8923_v32  ;;  %v3529_v21 = vmul.f32 0.1, %v6805_v8  ;;  %v8926_v37 = vpack.c.bf16 %v786_v36, %v778_v30  ;;  %v791_v36 = vld [vmem:[%s7994_s28 + $0x7a0] sm:$0xff] }
 0x218   : > { %v3213_v18 = vmin.f32 %v8904_v33, 0.0  ;;  %2513 = vmatpush.bf16.msra.mxu1 %v6348_v1  ;;  %vm3149_vm10 = vcmp.gt.f32.partialorder %v8904_v33, 0.0 }
 0x219   : > { %11151 = vst [vmem:[#allocation116_spill] sm:$0xff] %v8926_v37 }
 0x21a   : > { %v3277_v45 = vmul.f32 10.0, %v3213_v18 }
 0x21b   : > { %v2275_v4 = vpop.f32.mrf.mxu2  ;;  %v2100_v39 = vpop.f32.mrf.mxu0 }
 0x21c   : > { %v7456_v16 = vpop.eup %7455  ;;  %v3361_v43 = vmul.f32 1.442695, %v3277_v45  ;;  %v2276_v31 = vadd.f32 %v2275_v4, %v2187_v23  ;;  %v2364_v11 = vpop.f32.mrf.mxu3  ;;  %v2101_v18 = vadd.f32 %v2100_v39, %v8424_v28  ;;  %v3593_v28 = vsel %vm3145_vm8, %v8866_v3, %v3529_v21  ;;  %v800_v39 = vld [vmem:[%s7994_s28 + $0x7e8] sm:$0xff] }
 0x21d   : > { %v6807_v0 = vadd.f32 -1.0, %v7456_v16  ;;  %v2189_v9 = vpop.f32.mrf.mxu1 }
 0x21e   : > { %v8928_v2 = vadd.f32 %v2364_v11, %v2276_v31  ;;  %7457 = vpow2.f32 %v3361_v43  ;;  %v2190_v10 = vadd.f32 %v2189_v9, %v2101_v18  ;;  %2139 = vmatmul.bf16.gmra.mxu0 %v8919_v48  ;;  %v799_v43 = vld [vmem:[%s7994_s28 + $0x7e0] sm:$0xff]  ;;  %v792_v31 = vld [vmem:[%s7994_s28 + $0x7a8] sm:$0xff]  ;;  %v793_v18 = vld [vmem:[%s7994_s28 + $0x7b0] sm:$0xff] }
 0x21f   : > { %v3531_v23 = vmul.f32 0.1, %v6807_v0  ;;  %2228 = vmatmul.bf16.gmra.mxu1 %v8921_v40  ;;  %v801_v9 = vld [vmem:[%s7994_s28 + $0x7f0] sm:$0xff] }
 0x220   : > { %v3215_v55 = vmin.f32 %v8928_v2, 0.0  ;;  %2317 = vmatmul.bf16.gmra.mxu2 %v8923_v32  ;;  %v6785_v32 = vld [vmem:[%s7918_s22 + $0x3f8] sm:$0xf0]  ;;  %vm3151_vm11 = vcmp.gt.f32.partialorder %v8928_v2, 0.0 }
 0x221   : > { %2406 = vmatmul.bf16.gmra.mxu3 %v8926_v37  ;;  %v3595_v11 = vsel %vm3147_vm9, %v8888_v35, %v3531_v23  ;;  %v794_v23 = vld [vmem:[%s7994_s28 + $0x7b8] sm:$0xff]  ;;  %v7368_v37 = vld [vmem:[%s7918_s22 + $0x3f4] sm:$0xf] }
 0x222   : > { %v3279_v5 = vmul.f32 10.0, %v3215_v55  ;;  %v8939_v0 = vpack.c.bf16 %v3595_v11, %v3593_v28  ;;  %v802_v55 = vld [vmem:[%s7994_s28 + $0x7f8] sm:$0xff]  ;;  %v8953_v28 = vpack.c.bf16 %v799_v43, %v791_v36  ;;  %v8955_v11 = vpack.c.bf16 %v800_v39, %v792_v31  ;;  %v7352_v36 = vld [vmem:[%s7918_s22 + $0x374] sm:$0xf] }
 0x223   : > { %v2278_v8 = vpop.f32.mrf.mxu2  ;;  %v2102_v1 = vpop.f32.mrf.mxu0  ;;  %v6721_v43 = vld [vmem:[%s7918_s22 + $0x378] sm:$0xf0] }
 0x224   : > { %11152 = vst [vmem:[#allocation117_spill] sm:$0xff] %v8939_v0  ;;  %v3365_v62 = vmul.f32 1.442695, %v3279_v5  ;;  %v2279_v58 = vadd.f32 %v2278_v8, %v2190_v10  ;;  %v2367_v56 = vpop.f32.mrf.mxu3  ;;  %v7458_v45 = vpop.eup %7457  ;;  %v2103_v21 = vadd.f32 %v2102_v1, %v8447_v42  ;;  %v8960_v0 = vpack.c.bf16 %v802_v55, %v794_v23 }
 0x225   : > { %v2191_v3 = vpop.f32.mrf.mxu1  ;;  %v6809_v4 = vadd.f32 -1.0, %v7458_v45  ;;  %v8957_v45 = vpack.c.bf16 %v801_v9, %v793_v18  ;;  %v6724_v39 = vor.u32 %v7352_v36, %v6721_v43  ;;  %v7336_v36 = vld [vmem:[%s7918_s22 + $0x2f4] sm:$0xf]  ;;  %v6657_v43 = vld [vmem:[%s7918_s22 + $0x2f8] sm:$0xf0] }
 0x226   : > { %7459 = vpow2.f32 %v3365_v62  ;;  %v8942_v35 = vadd.f32 %v2367_v56, %v2279_v58  ;;  %v2192_v30 = vadd.f32 %v2191_v3, %v2103_v21 }
 0x227   : > { %v3533_v8 = vmul.f32 0.1, %v6809_v4  ;;  %2951 = vmatpush.bf16.msrb.mxu2 %v6724_v39 }
 0x228   : > { %v3217_v16 = vmin.f32 %v8942_v35, 0.0  ;;  %vm3153_vm12 = vcmp.gt.f32.partialorder %v8942_v35, 0.0 }
 0x229   : > { %v3597_v18 = vsel %vm3149_vm10, %v8904_v33, %v3533_v8  ;;  %v7320_v8 = vld [vmem:[%s7918_s22 + $0x274] sm:$0xf] }
 0x22a   : > { %v3281_v10 = vmul.f32 10.0, %v3217_v16 }
 0x22b   : > { %v2280_v42 = vpop.f32.mrf.mxu2  ;;  %v2105_v1 = vpop.f32.mrf.mxu0 }
 0x22c   : > { %v7460_v5 = vpop.eup %7459  ;;  %v3369_v62 = vmul.f32 1.442695, %v3281_v10  ;;  %v2281_v58 = vadd.f32 %v2280_v42, %v2192_v30  ;;  %v2369_v56 = vpop.f32.mrf.mxu3  ;;  %v2106_v3 = vadd.f32 %v2105_v1, %v8454_v6  ;;  %v6788_v30 = vor.u32 %v7368_v37, %v6785_v32 }
 0x22d   : > { %v6811_v21 = vadd.f32 -1.0, %v7460_v5  ;;  %v2194_v16 = vpop.f32.mrf.mxu1 }
 0x22e   : > { %v8964_v31 = vadd.f32 %v2369_v56, %v2281_v58  ;;  %v2195_v4 = vadd.f32 %v2194_v16, %v2106_v3  ;;  %2144 = vmatmul.bf16.gmra.mxu0 %v8953_v28  ;;  %7461 = vpow2.f32 %v3369_v62  ;;  %3040 = vmatpush.bf16.msrb.mxu3 %v6788_v30  ;;  %v6660_v30 = vor.u32 %v7336_v36, %v6657_v43 }
 0x22f   : > { %v3535_v10 = vmul.f32 0.1, %v6811_v21  ;;  %2233 = vmatmul.bf16.gmra.mxu1 %v8955_v11  ;;  %v6593_v21 = vld [vmem:[%s7918_s22 + $0x278] sm:$0xf0] }
 0x230   : > { %v3219_v6 = vmin.f32 %v8964_v31, 0.0  ;;  %2322 = vmatmul.bf16.gmra.mxu2 %v8957_v45  ;;  %v6596_v16 = vor.u32 %v7320_v8, %v6593_v21  ;;  %2862 = vmatpush.bf16.msrb.mxu1 %v6660_v30  ;;  %vm3155_vm13 = vcmp.gt.f32.partialorder %v8964_v31, 0.0 }
 0x231   : > { %2411 = vmatmul.bf16.gmra.mxu3 %v8960_v0  ;;  %v3599_v32 = vsel %vm3151_vm11, %v8928_v2, %v3535_v10 }
 0x232   : > { %v3283_v37 = vmul.f32 10.0, %v3219_v6  ;;  %v8977_v9 = vpack.c.bf16 %v3599_v32, %v3597_v18  ;;  %2773 = vmatpush.bf16.msrb.mxu0 %v6596_v16 }
 0x233   : > { %v2283_v23 = vpop.f32.mrf.mxu2  ;;  %v2107_v62 = vpop.f32.mrf.mxu0 }
 0x234   : > { %v3373_v55 = vmul.f32 1.442695, %v3283_v37  ;;  %v2284_v42 = vadd.f32 %v2283_v23, %v2195_v4  ;;  %v2372_v5 = vpop.f32.mrf.mxu3  ;;  %v2108_v58 = vadd.f32 %v2107_v62, %v8473_v57  ;;  %v7462_v1 = vpop.eup %7461 }
 0x235   : > { %v2196_v56 = vpop.f32.mrf.mxu1  ;;  %v6813_v39 = vadd.f32 -1.0, %v7462_v1 }
 0x236   : > { %7463 = vpow2.f32 %v3373_v55  ;;  %v8980_v33 = vadd.f32 %v2372_v5, %v2284_v42  ;;  %v2197_v2 = vadd.f32 %v2196_v56, %v2108_v58 }
 0x237   : > { %v3537_v23 = vmul.f32 0.1, %v6813_v39 }
 0x238   : > { %v3221_v3 = vmin.f32 %v8980_v33, 0.0  ;;  %vm3157_vm14 = vcmp.gt.f32.partialorder %v8980_v33, 0.0 }
 0x23a   : > { %v3285_v4 = vmul.f32 10.0, %v3221_v3 }
 0x23b   : > { %v2285_v10 = vpop.f32.mrf.mxu2  ;;  %v2110_v37 = vpop.f32.mrf.mxu0 }
 0x23c   : > { %v7464_v57 = vpop.eup %7463  ;;  %v3377_v6 = vmul.f32 1.442695, %v3285_v4  ;;  %v2286_v18 = vadd.f32 %v2285_v10, %v2197_v2  ;;  %v2374_v32 = vpop.f32.mrf.mxu3  ;;  %v2111_v42 = vadd.f32 %v2110_v37, %v8484_v7  ;;  %v3601_v7 = vsel %vm3153_vm12, %v8942_v35, %v3537_v23 }
 0x23d   : > { %v6815_v55 = vadd.f32 -1.0, %v7464_v57  ;;  %v2199_v5 = vpop.f32.mrf.mxu1 }
 0x23e   : > { %v2375_v62 = vadd.f32 %v2374_v32, %v2286_v18  ;;  %7465 = vpow2.f32 %v3377_v6  ;;  %v2200_v58 = vadd.f32 %v2199_v5, %v2111_v42  ;;  %2425 = vmatmul.bf16.vlgmr.msra.gmra.mxu0 %v8017_v47  ;;  %v7350_v5 = vld [vmem:[%s7918_s22 + $0x364] sm:$0xf] }
 0x23f   : > { %v3539_v56 = vmul.f32 0.1, %v6815_v55  ;;  %2514 = vmatmul.bf16.vlgmr.msra.gmra.mxu1 %v8021_v51 }
 0x240   : > { %v3223_v1 = vmin.f32 %v2375_v62, 0.0  ;;  %2603 = vmatmul.bf16.vlgmr.msra.gmra.mxu2 %v8023_v52  ;;  %vm3159_vm15 = vcmp.gt.f32.partialorder %v2375_v62, 0.0 }
 0x241   : > { %2692 = vmatmul.bf16.vlgmr.msra.gmra.mxu3 %v8025_v53  ;;  %v3603_v2 = vsel %vm3155_vm13, %v8964_v31, %v3539_v56 }
 0x242   : > { %v3287_v8 = vmul.f32 10.0, %v3223_v1  ;;  %v8996_v21 = vpack.c.bf16 %v3603_v2, %v3601_v7  ;;  %v7366_v7 = vld [vmem:[%s7918_s22 + $0x3e4] sm:$0xf]  ;;  %v6777_v2 = vld [vmem:[%s7918_s22 + $0x3e8] sm:$0xf0] }
 0x243   : > { %v2288_v47 = vpop.f32.mrf.mxu2  ;;  %v2112_v43 = vpop.f32.mrf.mxu0 }
 0x244   : > { %11153 = vst [vmem:[#allocation118_spill] sm:$0xff] %v8996_v21  ;;  %v3381_v3 = vmul.f32 1.442695, %v3287_v8  ;;  %v2289_v16 = vadd.f32 %v2288_v47, %v2200_v58  ;;  %v2377_v36 = vpop.f32.mrf.mxu3  ;;  %v7466_v39 = vpop.eup %7465  ;;  %v2113_v30 = vadd.f32 %v2112_v43, %v8507_v20  ;;  %v6713_v58 = vld [vmem:[%s7918_s22 + $0x368] sm:$0xf0]  ;;  %v6780_v47 = vor.u32 %v7366_v7, %v6777_v2 }
 0x245   : > { %v2201_v51 = vpop.f32.mrf.mxu1  ;;  %v6817_v35 = vadd.f32 -1.0, %v7466_v39  ;;  %v6716_v1 = vor.u32 %v7350_v5, %v6713_v58 }
 0x246   : > { %7467 = vpow2.f32 %v3381_v3  ;;  %v8999_v52 = vadd.f32 %v2377_v36, %v2289_v16  ;;  %v2202_v53 = vadd.f32 %v2201_v51, %v2113_v30  ;;  %3041 = vmatpush.bf16.msrb.mxu3 %v6780_v47 }
 0x247   : > { %v3541_v6 = vmul.f32 0.1, %v6817_v35  ;;  %2952 = vmatpush.bf16.msrb.mxu2 %v6716_v1 }
 0x248   : > { %v3225_v31 = vmin.f32 %v8999_v52, 0.0  ;;  %vm3161_vm0 = vcmp.gt.f32.partialorder %v8999_v52, 0.0 }
 0x24a   : > { %v3289_v4 = vmul.f32 10.0, %v3225_v31  ;;  %v7318_v31 = vld [vmem:[%s7918_s22 + $0x264] sm:$0xf] }
 0x24b   : > { %v2290_v10 = vpop.f32.mrf.mxu2  ;;  %v2115_v20 = vpop.f32.mrf.mxu0 }
 0x24c   : > { %v7468_v57 = vpop.eup %7467  ;;  %v3385_v18 = vmul.f32 1.442695, %v3289_v4  ;;  %v2291_v32 = vadd.f32 %v2290_v10, %v2202_v53  ;;  %v2379_v37 = vpop.f32.mrf.mxu3  ;;  %v2116_v55 = vadd.f32 %v2115_v20, %v8514_v41  ;;  %v3605_v41 = vsel %vm3157_vm14, %v8980_v33, %v3541_v6  ;;  %v6585_v4 = vld [vmem:[%s7918_s22 + $0x268] sm:$0xf0]  ;;  %v7334_v6 = vld [vmem:[%s7918_s22 + $0x2e4] sm:$0xf] }
 0x24d   : > { %v6819_v23 = vadd.f32 -1.0, %v7468_v57  ;;  %v2204_v42 = vpop.f32.mrf.mxu1  ;;  %v6588_v57 = vor.u32 %v7318_v31, %v6585_v4 }
 0x24e   : > { %v9005_v56 = vadd.f32 %v2379_v37, %v2291_v32  ;;  %v2205_v8 = vadd.f32 %v2204_v42, %v2116_v55  ;;  %2430 = vmatmul.bf16.gmra.mxu0 %v8047_v12  ;;  %7469 = vpow2.f32 %v3385_v18  ;;  %v6649_v18 = vld [vmem:[%s7918_s22 + $0x2e8] sm:$0xf0] }
 0x24f   : > { %v3543_v3 = vmul.f32 0.1, %v6819_v23  ;;  %2519 = vmatmul.bf16.gmra.mxu1 %v8049_v13  ;;  %v6652_v37 = vor.u32 %v7334_v6, %v6649_v18  ;;  %2774 = vmatpush.bf16.msrb.mxu0 %v6588_v57 }
 0x250   : > { %v3227_v16 = vmin.f32 %v9005_v56, 0.0  ;;  %2608 = vmatmul.bf16.gmra.mxu2 %v8051_v14  ;;  %vm3163_vm1 = vcmp.gt.f32.partialorder %v9005_v56, 0.0 }
 0x251   : > { %2697 = vmatmul.bf16.gmra.mxu3 %v8053_v15  ;;  %v3607_v36 = vsel %vm3159_vm15, %v2375_v62, %v3543_v3  ;;  %2863 = vmatpush.bf16.msrb.mxu1 %v6652_v37 }
 0x252   : > { %v3291_v12 = vmul.f32 10.0, %v3227_v16  ;;  %v9016_v43 = vpack.c.bf16 %v3607_v36, %v3605_v41 }
 0x253   : > { %v2293_v39 = vpop.f32.mrf.mxu2  ;;  %v2117_v53 = vpop.f32.mrf.mxu0 }
 0x254   : > { %11154 = vst [vmem:[#allocation119_spill] sm:$0xff] %v9016_v43  ;;  %v3389_v30 = vmul.f32 1.442695, %v3291_v12  ;;  %v2294_v51 = vadd.f32 %v2293_v39, %v2205_v8  ;;  %v2382_v13 = vpop.f32.mrf.mxu3  ;;  %v2118_v14 = vadd.f32 %v2117_v53, %v8533_v22  ;;  %v7470_v35 = vpop.eup %7469 }
 0x255   : > { %v2206_v15 = vpop.f32.mrf.mxu1  ;;  %v6821_v32 = vadd.f32 -1.0, %v7470_v35 }
 0x256   : > { %7471 = vpow2.f32 %v3389_v30  ;;  %v9019_v33 = vadd.f32 %v2382_v13, %v2294_v51  ;;  %v2207_v62 = vadd.f32 %v2206_v15, %v2118_v14 }
 0x257   : > { %v3545_v1 = vmul.f32 0.1, %v6821_v32 }
 0x258   : > { %v3229_v10 = vmin.f32 %v9019_v33, 0.0  ;;  %vm3165_vm2 = vcmp.gt.f32.partialorder %v9019_v33, 0.0 }
 0x25a   : > { %v3293_v20 = vmul.f32 10.0, %v3229_v10 }
 0x25b   : > { %v2295_v23 = vpop.f32.mrf.mxu2  ;;  %v2120_v58 = vpop.f32.mrf.mxu0 }
 0x25c   : > { %v7472_v22 = vpop.eup %7471  ;;  %v3393_v55 = vmul.f32 1.442695, %v3293_v20  ;;  %v2296_v42 = vadd.f32 %v2295_v23, %v2207_v62  ;;  %v2384_v5 = vpop.f32.mrf.mxu3  ;;  %v2121_v2 = vadd.f32 %v2120_v58, %v8544_v60  ;;  %v3609_v60 = vsel %vm3161_vm0, %v8999_v52, %v3545_v1  ;;  %v7348_v20 = vld [vmem:[%s7918_s22 + $0x354] sm:$0xf]  ;;  %v6705_v23 = vld [vmem:[%s7918_s22 + $0x358] sm:$0xf0] }
 0x25d   : > { %v6823_v7 = vadd.f32 -1.0, %v7472_v22  ;;  %v2209_v8 = vpop.f32.mrf.mxu1 }
 0x25e   : > { %v2385_v47 = vadd.f32 %v2384_v5, %v2296_v42  ;;  %7473 = vpow2.f32 %v3393_v55  ;;  %v2210_v3 = vadd.f32 %v2209_v8, %v2121_v2  ;;  %2435 = vmatmul.bf16.gmra.mxu0 %v8067_v24  ;;  %v6708_v55 = vor.u32 %v7348_v20, %v6705_v23  ;;  %v7364_v42 = vld [vmem:[%s7918_s22 + $0x3d4] sm:$0xf]  ;;  %v6769_v5 = vld [vmem:[%s7918_s22 + $0x3d8] sm:$0xf0] }
 0x25f   : > { %v3547_v16 = vmul.f32 0.1, %v6823_v7  ;;  %2524 = vmatmul.bf16.gmra.mxu1 %v8069_v25  ;;  %v6772_v1 = vor.u32 %v7364_v42, %v6769_v5  ;;  %v11160_v42 = vld [vmem:[#allocation6_spill] sm:$0xff] }
 0x260   : > { %v3231_v41 = vmin.f32 %v2385_v47, 0.0  ;;  %2613 = vmatmul.bf16.gmra.mxu2 %v8071_v26  ;;  %vm3167_vm3 = vcmp.gt.f32.partialorder %v2385_v47, 0.0 }
 0x261   : > { %2702 = vmatmul.bf16.gmra.mxu3 %v8073_v27  ;;  %v3611_v36 = vsel %vm3163_vm1, %v9005_v56, %v3547_v16  ;;  %2953 = vmatpush.bf16.msrb.mxu2 %v6708_v55 }
 0x262   : > { %v3295_v12 = vmul.f32 10.0, %v3231_v41  ;;  %v9035_v39 = vpack.c.bf16 %v3611_v36, %v3609_v60  ;;  %3042 = vmatpush.bf16.msrb.mxu3 %v6772_v1  ;;  %v11161_v1 = vld [vmem:[#allocation7_spill] sm:$0xff] }
 0x263   : > { %v2298_v24 = vpop.f32.mrf.mxu2  ;;  %v2122_v53 = vpop.f32.mrf.mxu0 }
 0x264   : > { %11155 = vst [vmem:[#allocation120_spill] sm:$0xff] %v9035_v39  ;;  %v3397_v30 = vmul.f32 1.442695, %v3295_v12  ;;  %v2299_v51 = vadd.f32 %v2298_v24, %v2210_v3  ;;  %v2387_v13 = vpop.f32.mrf.mxu3  ;;  %v7474_v14 = vpop.eup %7473  ;;  %v2123_v15 = vadd.f32 %v2122_v53, %v8567_v44  ;;  %v6577_v53 = vld [vmem:[%s7918_s22 + $0x258] sm:$0xf0] }
 0x265   : > { %v2211_v25 = vpop.f32.mrf.mxu1  ;;  %v6825_v52 = vadd.f32 -1.0, %v7474_v14 }
 0x266   : > { %7475 = vpow2.f32 %v3397_v30  ;;  %v9038_v26 = vadd.f32 %v2387_v13, %v2299_v51  ;;  %v2212_v27 = vadd.f32 %v2211_v25, %v2123_v15  ;;  %v7316_v13 = vld [vmem:[%s7918_s22 + $0x254] sm:$0xf] }
 0x267   : > { %v3549_v4 = vmul.f32 0.1, %v6825_v52  ;;  %v6580_v15 = vor.u32 %v7316_v13, %v6577_v53  ;;  %v7332_v25 = vld [vmem:[%s7918_s22 + $0x2d4] sm:$0xf] }
 0x268   : > { %v3233_v56 = vmin.f32 %v9038_v26, 0.0  ;;  %vm3169_vm4 = vcmp.gt.f32.partialorder %v9038_v26, 0.0 }
 0x269   : > { %v3613_v8 = vsel %vm3165_vm2, %v9019_v33, %v3549_v4  ;;  %2775 = vmatpush.bf16.msrb.mxu0 %v6580_v15 }
 0x26a   : > { %v3297_v35 = vmul.f32 10.0, %v3233_v56 }
 0x26b   : > { %v2300_v62 = vpop.f32.mrf.mxu2  ;;  %v2125_v44 = vpop.f32.mrf.mxu0 }
 0x26c   : > { %v7476_v31 = vpop.eup %7475  ;;  %v3401_v10 = vmul.f32 1.442695, %v3297_v35  ;;  %v2301_v57 = vadd.f32 %v2300_v62, %v2212_v27  ;;  %v2389_v6 = vpop.f32.mrf.mxu3  ;;  %v2126_v32 = vadd.f32 %v2125_v44, %v8574_v61  ;;  %v11156_v61 = vld [vmem:[#allocation5_spill] sm:$0xff]  ;;  %v6641_v27 = vld [vmem:[%s7918_s22 + $0x2d8] sm:$0xf0] }
 0x26d   : > { %v6827_v18 = vadd.f32 -1.0, %v7476_v31  ;;  %v2214_v37 = vpop.f32.mrf.mxu1  ;;  %v6644_v56 = vor.u32 %v7332_v25, %v6641_v27 }
 0x26e   : > { %v9044_v22 = vadd.f32 %v2389_v6, %v2301_v57  ;;  %v2215_v58 = vadd.f32 %v2214_v37, %v2126_v32  ;;  %2440 = vmatmul.bf16.gmra.mxu0 %v8095_v49  ;;  %7477 = vpow2.f32 %v3401_v10  ;;  %v11159_v32 = vld [vmem:[#allocation75_spill] sm:$0xff] }
 0x26f   : > { %v3551_v7 = vmul.f32 0.1, %v6827_v18  ;;  %2529 = vmatmul.bf16.gmra.mxu1 %v8097_v50 }
 0x270   : > { %v3235_v2 = vmin.f32 %v9044_v22, 0.0  ;;  %2618 = vmatmul.bf16.gmra.mxu2 %v8099_v54  ;;  %v11158_v54 = vld [vmem:[#allocation74_spill] sm:$0xff]  ;;  %2864 = vmatpush.bf16.msrb.mxu1 %v6644_v56  ;;  %vm3171_vm5 = vcmp.gt.f32.partialorder %v9044_v22, 0.0 }
 0x271   : > { %2707 = vmatmul.bf16.gmra.mxu3 %v11156_v61  ;;  %v3615_v3 = vsel %vm3167_vm3, %v2385_v47, %v3551_v7  ;;  %v11162_v7 = vld [vmem:[#allocation8_spill] sm:$0xff] }
 0x272   : > { %v3299_v49 = vmul.f32 10.0, %v3235_v2  ;;  %v9055_v16 = vpack.c.bf16 %v3615_v3, %v3613_v8  ;;  %v11163_v2 = vld [vmem:[#allocation9_spill] sm:$0xff] }
 0x273   : > { %v2303_v41 = vpop.f32.mrf.mxu2  ;;  %v2127_v12 = vpop.f32.mrf.mxu0 }
 0x274   : > { %11157 = vst [vmem:[#allocation5_spill] sm:$0xff] %v9055_v16  ;;  %v3405_v60 = vmul.f32 1.442695, %v3299_v49  ;;  %v2304_v36 = vadd.f32 %v2303_v41, %v2215_v58  ;;  %v2392_v50 = vpop.f32.mrf.mxu3  ;;  %v2128_v24 = vadd.f32 %v2127_v12, %v11158_v54  ;;  %v7478_v51 = vpop.eup %7477 }
 0x275   : > { %v2216_v30 = vpop.f32.mrf.mxu1  ;;  %v6829_v52 = vadd.f32 -1.0, %v7478_v51 }
 0x276   : > { %7479 = vpow2.f32 %v3405_v60  ;;  %v9058_v33 = vadd.f32 %v2392_v50, %v2304_v36  ;;  %v2217_v47 = vadd.f32 %v2216_v30, %v2128_v24  ;;  %v11165_v24 = vld [vmem:[#allocation80_spill] sm:$0xff] }
 0x277   : > { %v3553_v44 = vmul.f32 0.1, %v6829_v52 }
 0x278   : > { %v3237_v14 = vmin.f32 %v9058_v33, 0.0  ;;  %vm3173_vm6 = vcmp.gt.f32.partialorder %v9058_v33, 0.0 }
 0x279   : > { %v3617_v61 = vsel %vm3169_vm4, %v9038_v26, %v3553_v44 }
 0x27a   : > { %v3301_v35 = vmul.f32 10.0, %v3237_v14 }
 0x27b   : > { %v2305_v62 = vpop.f32.mrf.mxu2  ;;  %v2130_v6 = vpop.f32.mrf.mxu0 }
 0x27c   : > { %v7480_v31 = vpop.eup %7479  ;;  %v3409_v4 = vmul.f32 1.442695, %v3301_v35  ;;  %v2306_v10 = vadd.f32 %v2305_v62, %v2217_v47  ;;  %v2394_v57 = vpop.f32.mrf.mxu3  ;;  %v2131_v37 = vadd.f32 %v2130_v6, %v11159_v32  ;;  %v6697_v6 = vld [vmem:[%s7918_s22 + $0x348] sm:$0xf0]  ;;  %v7362_v32 = vld [vmem:[%s7918_s22 + $0x3c4] sm:$0xf] }
 0x27d   : > { %v6831_v18 = vadd.f32 -1.0, %v7480_v31  ;;  %v2219_v20 = vpop.f32.mrf.mxu1  ;;  %v11166_v31 = vld [vmem:[#allocation81_spill] sm:$0xff] }
 0x27e   : > { %v2395_v23 = vadd.f32 %v2394_v57, %v2306_v10  ;;  %7481 = vpow2.f32 %v3409_v4  ;;  %v2220_v55 = vadd.f32 %v2219_v20, %v2131_v37  ;;  %2445 = vmatmul.bf16.gmra.mxu0 %v11160_v42  ;;  %v7346_v57 = vld [vmem:[%s7918_s22 + $0x344] sm:$0xf]  ;;  %v6761_v37 = vld [vmem:[%s7918_s22 + $0x3c8] sm:$0xf0] }
 0x27f   : > { %v3555_v5 = vmul.f32 0.1, %v6831_v18  ;;  %2534 = vmatmul.bf16.gmra.mxu1 %v11161_v1  ;;  %v6700_v18 = vor.u32 %v7346_v57, %v6697_v6  ;;  %v6764_v42 = vor.u32 %v7362_v32, %v6761_v37  ;;  %v11168_v1 = vld [vmem:[#allocation11_spill] sm:$0xff] }
 0x280   : > { %v3239_v58 = vmin.f32 %v2395_v23, 0.0  ;;  %2623 = vmatmul.bf16.gmra.mxu2 %v11162_v7  ;;  %vm3175_vm7 = vcmp.gt.f32.partialorder %v2395_v23, 0.0  ;;  %v11169_v7 = vld [vmem:[#allocation12_spill] sm:$0xff]  ;;  %v11173_v32 = vld [vmem:[#allocation87_spill] sm:$0xff] }
 0x281   : > { %2712 = vmatmul.bf16.gmra.mxu3 %v11163_v2  ;;  %v3619_v8 = vsel %vm3171_vm5, %v9044_v22, %v3555_v5  ;;  %v11170_v2 = vld [vmem:[#allocation13_spill] sm:$0xff]  ;;  %2954 = vmatpush.bf16.msrb.mxu2 %v6700_v18 }
 0x282   : > { %v3303_v3 = vmul.f32 10.0, %v3239_v58  ;;  %v9074_v49 = vpack.c.bf16 %v3619_v8, %v3617_v61  ;;  %3043 = vmatpush.bf16.msrb.mxu3 %v6764_v42 }
 0x283   : > { %v2308_v41 = vpop.f32.mrf.mxu2  ;;  %v2132_v12 = vpop.f32.mrf.mxu0 }
 0x284   : > { %11164 = vst [vmem:[#allocation74_spill] sm:$0xff] %v9074_v49  ;;  %v3413_v60 = vmul.f32 1.442695, %v3303_v3  ;;  %v2309_v36 = vadd.f32 %v2308_v41, %v2220_v55  ;;  %v2397_v50 = vpop.f32.mrf.mxu3  ;;  %v7482_v54 = vpop.eup %7481  ;;  %v2133_v30 = vadd.f32 %v2132_v12, %v11165_v24  ;;  %v11167_v55 = vld [vmem:[#allocation10_spill] sm:$0xff] }
 0x285   : > { %v2221_v51 = vpop.f32.mrf.mxu1  ;;  %v6833_v13 = vadd.f32 -1.0, %v7482_v54  ;;  %v11172_v24 = vld [vmem:[#allocation86_spill] sm:$0xff] }
 0x286   : > { %7483 = vpow2.f32 %v3413_v60  ;;  %v9077_v47 = vadd.f32 %v2397_v50, %v2309_v36  ;;  %v2222_v26 = vadd.f32 %v2221_v51, %v2133_v30 }
 0x287   : > { %v3557_v25 = vmul.f32 0.1, %v6833_v13  ;;  %v7314_v13 = vld [vmem:[%s7918_s22 + $0x244] sm:$0xf] }
 0x288   : > { %v3241_v22 = vmin.f32 %v9077_v47, 0.0  ;;  %vm3177_vm8 = vcmp.gt.f32.partialorder %v9077_v47, 0.0 }
 0x289   : > { %v3621_v61 = vsel %vm3173_vm6, %v9058_v33, %v3557_v25  ;;  %v6633_v25 = vld [vmem:[%s7918_s22 + $0x2c8] sm:$0xf0] }
 0x28a   : > { %v3305_v53 = vmul.f32 10.0, %v3241_v22  ;;  %v6569_v22 = vld [vmem:[%s7918_s22 + $0x248] sm:$0xf0] }
 0x28b   : > { %v2310_v14 = vpop.f32.mrf.mxu2  ;;  %v2135_v35 = vpop.f32.mrf.mxu0 }
 0x28c   : > { %v7484_v15 = vpop.eup %7483  ;;  %v3417_v27 = vmul.f32 1.442695, %v3305_v53  ;;  %v2311_v52 = vadd.f32 %v2310_v14, %v2222_v26  ;;  %v2399_v56 = vpop.f32.mrf.mxu3  ;;  %v2136_v4 = vadd.f32 %v2135_v35, %v11166_v31  ;;  %v6572_v14 = vor.u32 %v7314_v13, %v6569_v22 }
 0x28d   : > { %v6835_v62 = vadd.f32 -1.0, %v7484_v15  ;;  %v2224_v10 = vpop.f32.mrf.mxu1  ;;  %v7330_v15 = vld [vmem:[%s7918_s22 + $0x2c4] sm:$0xf] }
 0x28e   : > { %v9083_v44 = vadd.f32 %v2399_v56, %v2311_v52  ;;  %v2225_v20 = vadd.f32 %v2224_v10, %v2136_v4  ;;  %2450 = vmatmul.bf16.gmra.mxu0 %v11167_v55  ;;  %7485 = vpow2.f32 %v3417_v27  ;;  %v6636_v52 = vor.u32 %v7330_v15, %v6633_v25 }
 0x28f   : > { %v3559_v5 = vmul.f32 0.1, %v6835_v62  ;;  %2539 = vmatmul.bf16.gmra.mxu1 %v11168_v1  ;;  %2776 = vmatpush.bf16.msrb.mxu0 %v6572_v14 }
 0x290   : > { %v3243_v58 = vmin.f32 %v9083_v44, 0.0  ;;  %2628 = vmatmul.bf16.gmra.mxu2 %v11169_v7  ;;  %2865 = vmatpush.bf16.msrb.mxu1 %v6636_v52  ;;  %vm3179_vm9 = vcmp.gt.f32.partialorder %v9083_v44, 0.0  ;;  %v11175_v7 = vld [vmem:[#allocation15_spill] sm:$0xff] }
 0x291   : > { %2717 = vmatmul.bf16.gmra.mxu3 %v11170_v2  ;;  %v3623_v8 = vsel %vm3175_vm7, %v2395_v23, %v3559_v5  ;;  %v11174_v5 = vld [vmem:[#allocation14_spill] sm:$0xff]  ;;  %v11176_v2 = vld [vmem:[#allocation16_spill] sm:$0xff] }
 0x292   : > { %v3307_v3 = vmul.f32 10.0, %v3243_v58  ;;  %v9094_v41 = vpack.c.bf16 %v3623_v8, %v3621_v61  ;;  %v11177_v61 = vld [vmem:[#allocation17_spill] sm:$0xff] }
 0x293   : > { %v2313_v60 = vpop.f32.mrf.mxu2  ;;  %v2137_v54 = vpop.f32.mrf.mxu0 }
 0x294   : > { %11171 = vst [vmem:[#allocation75_spill] sm:$0xff] %v9094_v41  ;;  %v3421_v36 = vmul.f32 1.442695, %v3307_v3  ;;  %v2314_v50 = vadd.f32 %v2313_v60, %v2225_v20  ;;  %v2402_v12 = vpop.f32.mrf.mxu3  ;;  %v2138_v30 = vadd.f32 %v2137_v54, %v11172_v24  ;;  %v7486_v26 = vpop.eup %7485 }
 0x295   : > { %v2226_v51 = vpop.f32.mrf.mxu1  ;;  %v6837_v27 = vadd.f32 -1.0, %v7486_v26  ;;  %v11179_v26 = vld [vmem:[#allocation92_spill] sm:$0xff] }
 0x296   : > { %7487 = vpow2.f32 %v3421_v36  ;;  %v9097_v33 = vadd.f32 %v2402_v12, %v2314_v50  ;;  %v2227_v23 = vadd.f32 %v2226_v51, %v2138_v30 }
 0x297   : > { %v3561_v6 = vmul.f32 0.1, %v6837_v27 }
 0x298   : > { %v3245_v53 = vmin.f32 %v9097_v33, 0.0  ;;  %vm3181_vm10 = vcmp.gt.f32.partialorder %v9097_v33, 0.0 }
 0x299   : > { %v3625_v8 = vsel %vm3177_vm8, %v9077_v47, %v3561_v6  ;;  %v7344_v6 = vld [vmem:[%s7918_s22 + $0x334] sm:$0xf] }
 0x29a   : > { %v3309_v56 = vmul.f32 10.0, %v3245_v53 }
 0x29b   : > { %v2315_v35 = vpop.f32.mrf.mxu2  ;;  %v2140_v57 = vpop.f32.mrf.mxu0 }
 0x29c   : > { %v7488_v62 = vpop.eup %7487  ;;  %v3425_v31 = vmul.f32 1.442695, %v3309_v56  ;;  %v2316_v4 = vadd.f32 %v2315_v35, %v2227_v23  ;;  %v2404_v10 = vpop.f32.mrf.mxu3  ;;  %v2141_v37 = vadd.f32 %v2140_v57, %v11173_v32 }
 0x29d   : > { %v6839_v18 = vadd.f32 -1.0, %v7488_v62  ;;  %v2229_v20 = vpop.f32.mrf.mxu1 }
 0x29e   : > { %v9105_v55 = vadd.f32 %v2404_v10, %v2316_v4  ;;  %7489 = vpow2.f32 %v3425_v31  ;;  %v2230_v42 = vadd.f32 %v2229_v20, %v2141_v37  ;;  %2455 = vmatmul.bf16.gmra.mxu0 %v11174_v5  ;;  %v11180_v4 = vld [vmem:[#allocation93_spill] sm:$0xff]  ;;  %v7360_v20 = vld [vmem:[%s7918_s22 + $0x3b4] sm:$0xf] }
 0x29f   : > { %v3563_v58 = vmul.f32 0.1, %v6839_v18  ;;  %2544 = vmatmul.bf16.gmra.mxu1 %v11175_v7  ;;  %v6689_v18 = vld [vmem:[%s7918_s22 + $0x338] sm:$0xf0]  ;;  %v7312_v5 = vld [vmem:[%s7918_s22 + $0x234] sm:$0xf] }
 0x2a0   : > { %v3247_v1 = vmin.f32 %v9105_v55, 0.0  ;;  %2633 = vmatmul.bf16.gmra.mxu2 %v11176_v2  ;;  %v6692_v37 = vor.u32 %v7344_v6, %v6689_v18  ;;  %v6561_v2 = vld [vmem:[%s7918_s22 + $0x238] sm:$0xf0]  ;;  %vm3183_vm11 = vcmp.gt.f32.partialorder %v9105_v55, 0.0 }
 0x2a1   : > { %2722 = vmatmul.bf16.gmra.mxu3 %v11177_v61  ;;  %v3627_v3 = vsel %vm3179_vm9, %v9083_v44, %v3563_v58  ;;  %v7328_v61 = vld [vmem:[%s7918_s22 + $0x2b4] sm:$0xf] }
 0x2a2   : > { %v3311_v60 = vmul.f32 10.0, %v3247_v1  ;;  %v9116_v36 = vpack.c.bf16 %v3627_v3, %v3625_v8  ;;  %v11181_v1 = vld [vmem:[#allocation18_spill] sm:$0xff]  ;;  %v6625_v8 = vld [vmem:[%s7918_s22 + $0x2b8] sm:$0xf0]  ;;  %2955 = vmatpush.bf16.msrb.mxu2 %v6692_v37 }
 0x2a3   : > { %v2318_v50 = vpop.f32.mrf.mxu2  ;;  %v2142_v30 = vpop.f32.mrf.mxu0 }
 0x2a4   : > { %11178 = vst [vmem:[#allocation6_spill] sm:$0xff] %v9116_v36  ;;  %v3429_v12 = vmul.f32 1.442695, %v3311_v60  ;;  %v2319_v54 = vadd.f32 %v2318_v50, %v2230_v42  ;;  %v2407_v24 = vpop.f32.mrf.mxu3  ;;  %v7490_v51 = vpop.eup %7489  ;;  %v2143_v23 = vadd.f32 %v2142_v30, %v11179_v26  ;;  %v6753_v42 = vld [vmem:[%s7918_s22 + $0x3b8] sm:$0xf0]  ;;  %v11182_v60 = vld [vmem:[#allocation19_spill] sm:$0xff] }
 0x2a5   : > { %v2231_v13 = vpop.f32.mrf.mxu1  ;;  %v6841_v53 = vadd.f32 -1.0, %v7490_v51  ;;  %v6756_v7 = vor.u32 %v7360_v20, %v6753_v42  ;;  %v11183_v50 = vld [vmem:[#allocation20_spill] sm:$0xff]  ;;  %v6951_v36 = vld [vmem:[%s9255_s19 + $0xc0] sm:$0xf] }
 0x2a6   : > { %7491 = vpow2.f32 %v3429_v12  ;;  %v9119_v22 = vadd.f32 %v2407_v24, %v2319_v54  ;;  %v2232_v47 = vadd.f32 %v2231_v13, %v2143_v23  ;;  %v6564_v12 = vor.u32 %v7312_v5, %v6561_v2  ;;  %v11184_v24 = vld [vmem:[#allocation21_spill] sm:$0xff] }
 0x2a7   : > { %v3565_v27 = vmul.f32 0.1, %v6841_v53  ;;  %v6628_v54 = vor.u32 %v7328_v61, %v6625_v8  ;;  %3044 = vmatpush.bf16.msrb.mxu3 %v6756_v7  ;;  %v11187_v8 = vld [vmem:[#allocation22_spill] sm:$0xff] }
 0x2a8   : > { %v3249_v44 = vmin.f32 %v9119_v22, 0.0  ;;  %2777 = vmatpush.bf16.msrb.mxu0 %v6564_v12  ;;  %vm3185_vm12 = vcmp.gt.f32.partialorder %v9119_v22, 0.0  ;;  %v11189_v12 = vld [vmem:[#allocation24_spill] sm:$0xff] }
 0x2a9   : > { %2866 = vmatpush.bf16.msrb.mxu1 %v6628_v54  ;;  %v3629_v23 = vsel %vm3181_vm10, %v9097_v33, %v3565_v27  ;;  %v7821_v33 = vld [vmem:[%s8213_s13] sm:$0x3] }
 0x2aa   : > { %v3313_v14 = vmul.f32 10.0, %v3249_v44  ;;  %v9149_v27 = vperm.slane %v7821_v33, 1  ;;  %v11190_v54 = vld [vmem:[#allocation25_spill] sm:$0xff] }
 0x2ab   : > { %v2320_v15 = vpop.f32.mrf.mxu2  ;;  %v2145_v62 = vpop.f32.mrf.mxu0 }
 0x2ac   : > { %v7492_v25 = vpop.eup %7491  ;;  %v3433_v52 = vmul.f32 1.442695, %v3313_v14  ;;  %v2321_v56 = vadd.f32 %v2320_v15, %v2232_v47  ;;  %v2409_v35 = vpop.f32.mrf.mxu3  ;;  %v2146_v10 = vadd.f32 %v2145_v62, %v11180_v4 }
 0x2ad   : > { %v6843_v31 = vadd.f32 -1.0, %v7492_v25  ;;  %v2234_v57 = vpop.f32.mrf.mxu1  ;;  %v11186_v25 = vld [vmem:[#allocation98_spill] sm:$0xff] }
 0x2ae   : > { %v9125_v32 = vadd.f32 %v2409_v35, %v2321_v56  ;;  %v2235_v58 = vadd.f32 %v2234_v57, %v2146_v10  ;;  %2460 = vmatmul.bf16.gmra.mxu0 %v11181_v1  ;;  %7493 = vpow2.f32 %v3433_v52 }
 0x2af   : > { %2549 = vmatmul.bf16.gmra.mxu1 %v11182_v60  ;;  %v3567_v30 = vmul.f32 0.1, %v6843_v31 }
 0x2b0   : > { %v3251_v3 = vmin.f32 %v9125_v32, 0.0  ;;  %2638 = vmatmul.bf16.gmra.mxu2 %v11183_v50  ;;  %vm3187_vm13 = vcmp.gt.f32.partialorder %v9125_v32, 0.0  ;;  %v11188_v50 = vld [vmem:[#allocation23_spill] sm:$0xff] }
 0x2b1   : > { %2727 = vmatmul.bf16.gmra.mxu3 %v11184_v24  ;;  %v3631_v13 = vsel %vm3183_vm11, %v9105_v55, %v3567_v30  ;;  %v7342_v24 = vld [vmem:[%s7918_s22 + $0x324] sm:$0xf]  ;;  %v6681_v30 = vld [vmem:[%s7918_s22 + $0x328] sm:$0xf0] }
 0x2b2   : > { %v3315_v51 = vmul.f32 10.0, %v3251_v3  ;;  %v9142_v15 = vpack.c.bf16 %v3631_v13, %v3629_v23 }
 0x2b3   : > { %v2323_v26 = vpop.f32.mrf.mxu2  ;;  %v2147_v14 = vpop.f32.mrf.mxu0 }
 0x2b4   : > { %v3437_v47 = vmul.f32 1.442695, %v3315_v51  ;;  %v2324_v53 = vadd.f32 %v2323_v26, %v2235_v58  ;;  %v2412_v44 = vpop.f32.mrf.mxu3  ;;  %11185 = vst [vmem:[#allocation7_spill] sm:$0xff] %v9142_v15  ;;  %v2148_v52 = vadd.f32 %v2147_v14, %v11186_v25  ;;  %v7494_v35 = vpop.eup %7493  ;;  %v7358_v51 = vld [vmem:[%s7918_s22 + $0x3a4] sm:$0xf] }
 0x2b5   : > { %v2236_v56 = vpop.f32.mrf.mxu1  ;;  %v6845_v10 = vadd.f32 -1.0, %v7494_v35  ;;  %v7379_v15 = vld [vmem:[%s9255_s19 + $0x44] sm:$0xf0] }
 0x2b6   : > { %7495 = vpow2.f32 %v3437_v47  ;;  %v9145_v62 = vadd.f32 %v2412_v44, %v2324_v53  ;;  %v2237_v31 = vadd.f32 %v2236_v56, %v2148_v52  ;;  %v6684_v47 = vor.u32 %v7342_v24, %v6681_v30  ;;  %v6745_v53 = vld [vmem:[%s7918_s22 + $0x3a8] sm:$0xf0] }
 0x2b7   : > { %v3569_v5 = vmul.f32 0.1, %v6845_v10  ;;  %v6748_v25 = vor.u32 %v7358_v51, %v6745_v53  ;;  %v11192_v24 = vld [vmem:[#allocation26_spill] sm:$0xff]  ;;  %v11193_v51 = vld [vmem:[#allocation27_spill] sm:$0xff] }
 0x2b8   : > { %v3253_v4 = vmin.f32 %v9145_v62, 0.0  ;;  %2956 = vmatpush.bf16.msrb.mxu2 %v6684_v47  ;;  %vm3189_vm14 = vcmp.gt.f32.partialorder %v9145_v62, 0.0 }
 0x2b9   : > { %v3633_v26 = vsel %vm3185_vm12, %v9119_v22, %v3569_v5  ;;  %3045 = vmatpush.bf16.msrb.mxu3 %v6748_v25 }
 0x2ba   : > { %v3317_v55 = vmul.f32 10.0, %v3253_v4 }
 0x2bb   : > { %v2325_v57 = vpop.f32.mrf.mxu2  ;;  %v2426_v42 = vpop.f32.mrf.mxu0 }
 0x2bc   : > { %v7496_v6 = vpop.eup %7495  ;;  %v3441_v18 = vmul.f32 1.442695, %v3317_v55  ;;  %v2326_v37 = vadd.f32 %v2325_v57, %v2237_v31  ;;  %v2414_v20 = vpop.f32.mrf.mxu3  ;;  %v2427_v1 = vadd.f32 %v2426_v42, %v9149_v27  ;;  %v7310_v55 = vld [vmem:[%s7918_s22 + $0x224] sm:$0xf]  ;;  %v6553_v57 = vld [vmem:[%s7918_s22 + $0x228] sm:$0xf0] }
 0x2bd   : > { %v6847_v58 = vadd.f32 -1.0, %v7496_v6  ;;  %v2515_v7 = vpop.f32.mrf.mxu1  ;;  %v6556_v6 = vor.u32 %v7310_v55, %v6553_v57 }
 0x2be   : > { %v9152_v2 = vadd.f32 %v2414_v20, %v2326_v37  ;;  %v2516_v61 = vadd.f32 %v2515_v7, %v2427_v1  ;;  %2465 = vmatmul.bf16.gmra.mxu0 %v11187_v8  ;;  %7497 = vpow2.f32 %v3441_v18  ;;  %v7326_v18 = vld [vmem:[%s7918_s22 + $0x2a4] sm:$0xf]  ;;  %v6617_v37 = vld [vmem:[%s7918_s22 + $0x2a8] sm:$0xf0] }
 0x2bf   : > { %v3571_v3 = vmul.f32 0.1, %v6847_v58  ;;  %2554 = vmatmul.bf16.gmra.mxu1 %v11188_v50  ;;  %v6620_v42 = vor.u32 %v7326_v18, %v6617_v37  ;;  %2778 = vmatpush.bf16.msrb.mxu0 %v6556_v6  ;;  %v11197_v37 = vld [vmem:[#allocation30_spill] sm:$0xff] }
 0x2c0   : > { %v3255_v60 = vmin.f32 %v9152_v2, 0.0  ;;  %2643 = vmatmul.bf16.gmra.mxu2 %v11189_v12  ;;  %vm3191_vm15 = vcmp.gt.f32.partialorder %v9152_v2, 0.0 }
 0x2c1   : > { %2732 = vmatmul.bf16.gmra.mxu3 %v11190_v54  ;;  %v3635_v23 = vsel %vm3187_vm13, %v9125_v32, %v3571_v3  ;;  %2867 = vmatpush.bf16.msrb.mxu1 %v6620_v42  ;;  %v11199_v42 = vld [vmem:[#allocation32_spill] sm:$0xff] }
 0x2c2   : > { %v3319_v13 = vmul.f32 10.0, %v3255_v60  ;;  %v9167_v44 = vpack.c.bf16 %v3635_v23, %v3633_v26  ;;  %v11194_v26 = vld [vmem:[#allocation28_spill] sm:$0xff]  ;;  %v11195_v23 = vld [vmem:[#allocation29_spill] sm:$0xff] }
 0x2c3   : > { %v2604_v14 = vpop.f32.mrf.mxu2  ;;  %v2428_v31 = vpop.f32.mrf.mxu0 }
 0x2c4   : > { %11191 = vst [vmem:[#allocation8_spill] sm:$0xff] %v9167_v44  ;;  %v3445_v52 = vmul.f32 1.442695, %v3319_v13  ;;  %v2605_v56 = vadd.f32 %v2604_v14, %v2516_v61  ;;  %v2693_v35 = vpop.f32.mrf.mxu3  ;;  %v2429_v22 = vadd.f32 %v2428_v31, %v9149_v27  ;;  %v7498_v32 = vpop.eup %7497 }
 0x2c5   : > { %v2517_v4 = vpop.f32.mrf.mxu1  ;;  %v6849_v20 = vadd.f32 -1.0, %v7498_v32 }
 0x2c6   : > { %7499 = vpow2.f32 %v3445_v52  ;;  %v9170_v10 = vadd.f32 %v2693_v35, %v2605_v56  ;;  %v2518_v33 = vadd.f32 %v2517_v4, %v2429_v22 }
 0x2c7   : > { %v3573_v8 = vmul.f32 0.1, %v6849_v20  ;;  %v11198_v20 = vld [vmem:[#allocation31_spill] sm:$0xff] }
 0x2c9   : > { %v3637_v13 = vsel %vm3189_vm14, %v9145_v62, %v3573_v8  ;;  %v6737_v8 = vld [vmem:[%s7918_s22 + $0x398] sm:$0xf0] }
 0x2cb   : > { %v2606_v5 = vpop.f32.mrf.mxu2  ;;  %v2431_v61 = vpop.f32.mrf.mxu0 }
 0x2cc   : > { %v7500_v58 = vpop.eup %7499  ;;  %v2607_v1 = vadd.f32 %v2606_v5, %v2518_v33  ;;  %v2695_v7 = vpop.f32.mrf.mxu3  ;;  %v2432_v60 = vadd.f32 %v2431_v61, %v9149_v27  ;;  %v11200_v5 = vld [vmem:[#allocation33_spill] sm:$0xff] }
 0x2cd   : > { %v6851_v3 = vadd.f32 -1.0, %v7500_v58  ;;  %v2520_v50 = vpop.f32.mrf.mxu1  ;;  %v7340_v58 = vld [vmem:[%s7918_s22 + $0x314] sm:$0xf] }
 0x2ce   : > { %v9177_v12 = vadd.f32 %v2695_v7, %v2607_v1  ;;  %v2521_v54 = vadd.f32 %v2520_v50, %v2432_v60  ;;  %2470 = vmatmul.bf16.gmra.mxu0 %v11192_v24  ;;  %v6673_v1 = vld [vmem:[%s7918_s22 + $0x318] sm:$0xf0]  ;;  %v7356_v7 = vld [vmem:[%s7918_s22 + $0x394] sm:$0xf] }
 0x2cf   : > { %v3575_v30 = vmul.f32 0.1, %v6851_v3  ;;  %2559 = vmatmul.bf16.gmra.mxu1 %v11193_v51  ;;  %v6676_v61 = vor.u32 %v7340_v58, %v6673_v1  ;;  %v6740_v60 = vor.u32 %v7356_v7, %v6737_v8 }
 0x2d0   : > { %2648 = vmatmul.bf16.gmra.mxu2 %v11194_v26 }
 0x2d1   : > { %2737 = vmatmul.bf16.gmra.mxu3 %v11195_v23  ;;  %v3639_v47 = vsel %vm3191_vm15, %v9152_v2, %v3575_v30  ;;  %2957 = vmatpush.bf16.msrb.mxu2 %v6676_v61 }
 0x2d2   : > { %v9187_v53 = vpack.c.bf16 %v3639_v47, %v3637_v13  ;;  %3046 = vmatpush.bf16.msrb.mxu3 %v6740_v60  ;;  %v7308_v13 = vld [vmem:[%s7918_s22 + $0x214] sm:$0xf]  ;;  %v6545_v47 = vld [vmem:[%s7918_s22 + $0x218] sm:$0xf0] }
 0x2d3   : > { %v2609_v14 = vpop.f32.mrf.mxu2  ;;  %v2433_v56 = vpop.f32.mrf.mxu0 }
 0x2d4   : > { %11196 = vst [vmem:[#allocation9_spill] sm:$0xff] %v9187_v53  ;;  %v2610_v25 = vadd.f32 %v2609_v14, %v2521_v54  ;;  %v2698_v52 = vpop.f32.mrf.mxu3  ;;  %v2434_v35 = vadd.f32 %v2433_v56, %v9149_v27  ;;  %v7324_v14 = vld [vmem:[%s7918_s22 + $0x294] sm:$0xf] }
 0x2d5   : > { %v2522_v31 = vpop.f32.mrf.mxu1 }
 0x2d6   : > { %v9190_v22 = vadd.f32 %v2698_v52, %v2610_v25  ;;  %v2523_v4 = vadd.f32 %v2522_v31, %v2434_v35  ;;  %v6548_v25 = vor.u32 %v7308_v13, %v6545_v47  ;;  %v6609_v52 = vld [vmem:[%s7918_s22 + $0x298] sm:$0xf0]  ;;  %v11205_v47 = vld [vmem:[#allocation38_spill] sm:$0xff] }
 0x2d7   : > { %v6612_v56 = vor.u32 %v7324_v14, %v6609_v52  ;;  %v11206_v14 = vld [vmem:[#allocation39_spill] sm:$0xff]  ;;  %v11208_v52 = vld [vmem:[#allocation41_spill] sm:$0xff] }
 0x2d8   : > { %2779 = vmatpush.bf16.msrb.mxu0 %v6548_v25  ;;  %v11207_v25 = vld [vmem:[#allocation40_spill] sm:$0xff] }
 0x2d9   : > { %2868 = vmatpush.bf16.msrb.mxu1 %v6612_v56  ;;  %v7338_v56 = vld [vmem:[%s7918_s22 + $0x304] sm:$0xf] }
 0x2db   : > { %v2611_v32 = vpop.f32.mrf.mxu2  ;;  %v2436_v2 = vpop.f32.mrf.mxu0 }
 0x2dc   : > { %v2612_v62 = vadd.f32 %v2611_v32, %v2523_v4  ;;  %v2700_v33 = vpop.f32.mrf.mxu3  ;;  %v2437_v55 = vadd.f32 %v2436_v2, %v9149_v27 }
 0x2dd   : > { %v2525_v57 = vpop.f32.mrf.mxu1 }
 0x2de   : > { %v9193_v6 = vadd.f32 %v2700_v33, %v2612_v62  ;;  %v2526_v18 = vadd.f32 %v2525_v57, %v2437_v55  ;;  %2475 = vmatmul.bf16.gmra.mxu0 %v11197_v37  ;;  %v11201_v57 = vld [vmem:[#allocation34_spill] sm:$0xff]  ;;  %v11203_v37 = vld [vmem:[#allocation36_spill] sm:$0xff] }
 0x2df   : > { %2564 = vmatmul.bf16.gmra.mxu1 %v11198_v20  ;;  %v11204_v20 = vld [vmem:[#allocation37_spill] sm:$0xff] }
 0x2e0   : > { %2653 = vmatmul.bf16.gmra.mxu2 %v11199_v42 }
 0x2e1   : > { %2742 = vmatmul.bf16.gmra.mxu3 %v11200_v5 }
 0x2e3   : > { %v2614_v3 = vpop.f32.mrf.mxu2  ;;  %v2438_v24 = vpop.f32.mrf.mxu0 }
 0x2e4   : > { %v2615_v50 = vadd.f32 %v2614_v3, %v2526_v18  ;;  %v2703_v54 = vpop.f32.mrf.mxu3  ;;  %v2439_v30 = vadd.f32 %v2438_v24, %v9149_v27  ;;  %v11202_v18 = vld [vmem:[#allocation35_spill] sm:$0xff] }
 0x2e5   : > { %v2527_v51 = vpop.f32.mrf.mxu1 }
 0x2e6   : > { %v9204_v26 = vadd.f32 %v2703_v54, %v2615_v50  ;;  %v2528_v23 = vadd.f32 %v2527_v51, %v2439_v30 }
 0x2eb   : > { %v2616_v35 = vpop.f32.mrf.mxu2  ;;  %v2441_v32 = vpop.f32.mrf.mxu0 }
 0x2ec   : > { %v2617_v31 = vadd.f32 %v2616_v35, %v2528_v23  ;;  %v2705_v4 = vpop.f32.mrf.mxu3  ;;  %v2442_v62 = vadd.f32 %v2441_v32, %v9149_v27  ;;  %v6665_v35 = vld [vmem:[%s7918_s22 + $0x308] sm:$0xf0] }
 0x2ed   : > { %v2530_v33 = vpop.f32.mrf.mxu1  ;;  %v6729_v32 = vld [vmem:[%s7918_s22 + $0x388] sm:$0xf0] }
 0x2ee   : > { %v9211_v2 = vadd.f32 %v2705_v4, %v2617_v31  ;;  %v2531_v55 = vadd.f32 %v2530_v33, %v2442_v62  ;;  %2480 = vmatmul.bf16.gmra.mxu0 %v11201_v57  ;;  %v7354_v31 = vld [vmem:[%s7918_s22 + $0x384] sm:$0xf]  ;;  %v6668_v4 = vor.u32 %v7338_v56, %v6665_v35  ;;  %v11211_v56 = vld [vmem:[#allocation44_spill] sm:$0xff] }
 0x2ef   : > { %2569 = vmatmul.bf16.gmra.mxu1 %v11202_v18  ;;  %v6732_v33 = vor.u32 %v7354_v31, %v6729_v32  ;;  %v11212_v35 = vld [vmem:[#allocation45_spill] sm:$0xff] }
 0x2f0   : > { %2658 = vmatmul.bf16.gmra.mxu2 %v11203_v37 }
 0x2f1   : > { %2747 = vmatmul.bf16.gmra.mxu3 %v11204_v20  ;;  %2958 = vmatpush.bf16.msrb.mxu2 %v6668_v4 }
 0x2f2   : > { %3047 = vmatpush.bf16.msrb.mxu3 %v6732_v33 }
 0x2f3   : > { %v2619_v42 = vpop.f32.mrf.mxu2  ;;  %v2443_v1 = vpop.f32.mrf.mxu0 }
 0x2f4   : > { %v2620_v5 = vadd.f32 %v2619_v42, %v2531_v55  ;;  %v2708_v58 = vpop.f32.mrf.mxu3  ;;  %v2444_v7 = vadd.f32 %v2443_v1, %v9149_v27  ;;  %v6537_v1 = vld [vmem:[%s7918_s22 + $0x208] sm:$0xf0] }
 0x2f5   : > { %v2532_v61 = vpop.f32.mrf.mxu1 }
 0x2f6   : > { %v9218_v8 = vadd.f32 %v2708_v58, %v2620_v5  ;;  %v2533_v3 = vadd.f32 %v2532_v61, %v2444_v7  ;;  %v7306_v58 = vld [vmem:[%s7918_s22 + $0x204] sm:$0xf] }
 0x2f7   : > { %v7322_v7 = vld [vmem:[%s7918_s22 + $0x284] sm:$0xf]  ;;  %v6540_v61 = vor.u32 %v7306_v58, %v6537_v1 }
 0x2f9   : > { %2780 = vmatpush.bf16.msrb.mxu0 %v6540_v61 }
 0x2fb   : > { %v2621_v60 = vpop.f32.mrf.mxu2  ;;  %v2446_v24 = vpop.f32.mrf.mxu0 }
 0x2fc   : > { %v2622_v50 = vadd.f32 %v2621_v60, %v2533_v3  ;;  %v2710_v54 = vpop.f32.mrf.mxu3  ;;  %v2447_v30 = vadd.f32 %v2446_v24, %v9149_v27  ;;  %v6601_v3 = vld [vmem:[%s7918_s22 + $0x288] sm:$0xf0]  ;;  %s10290_s22 = sld [smem:[#allocation3 + %s7910_s18]] }
 0x2fd   : > { %v2535_v51 = vpop.f32.mrf.mxu1  ;;  %v6604_v60 = vor.u32 %v7322_v7, %v6601_v3 }
 0x2fe   : > { %v9221_v23 = vadd.f32 %v2710_v54, %v2622_v50  ;;  %v2536_v13 = vadd.f32 %v2535_v51, %v2447_v30  ;;  %2485 = vmatmul.bf16.gmra.mxu0 %v11205_v47 }
 0x2ff   : > { %2574 = vmatmul.bf16.gmra.mxu1 %v11206_v14 }
 0x300   : > { %2663 = vmatmul.bf16.gmra.mxu2 %v11207_v25  ;;  %2869 = vmatpush.bf16.msrb.mxu1 %v6604_v60  ;;  %v11209_v25 = vld [vmem:[#allocation42_spill] sm:$0xff] }
 0x301   : > { %2752 = vmatmul.bf16.gmra.mxu3 %v11208_v52  ;;  %v11210_v52 = vld [vmem:[#allocation43_spill] sm:$0xff]  ;;  %v11213_v60 = vld [vmem:[#allocation46_spill] sm:$0xff] }
 0x302   : > { %p536_p11 = scmp.lt.s32.totalorder %s10290_s22, 6 }
 0x303   : > { %v2624_v62 = vpop.f32.mrf.mxu2  ;;  %v2448_v18 = vpop.f32.mrf.mxu0 }
 0x304   : > { %v2625_v55 = vadd.f32 %v2624_v62, %v2536_v13  ;;  %v2713_v57 = vpop.f32.mrf.mxu3  ;;  %v2449_v37 = vadd.f32 %v2448_v18, %v9149_v27  ;;  %s11311_s22 = smov (!%p536_p11, %s10290_s22), 6 }
 0x305   : > { %v2537_v20 = vpop.f32.mrf.mxu1 }
 0x306   : > { %v9232_v42 = vadd.f32 %v2713_v57, %v2625_v55  ;;  %v2538_v5 = vadd.f32 %v2537_v20, %v2449_v37 }
 0x30b   : > { %v2626_v50 = vpop.f32.mrf.mxu2  ;;  %v2451_v30 = vpop.f32.mrf.mxu0 }
 0x30c   : > { %v2627_v54 = vadd.f32 %v2626_v50, %v2538_v5  ;;  %v2715_v24 = vpop.f32.mrf.mxu3  ;;  %v2452_v51 = vadd.f32 %v2451_v30, %v9149_v27  ;;  %v11214_v50 = vld [vmem:[#allocation47_spill] sm:$0xff] }
 0x30d   : > { %v2540_v13 = vpop.f32.mrf.mxu1  ;;  %v7384_v30 = vld [vmem:[%s9255_s19 + $0x74] sm:$0xf] }
 0x30e   : > { %v9240_v47 = vadd.f32 %v2715_v24, %v2627_v54  ;;  %v2541_v14 = vadd.f32 %v2540_v13, %v2452_v51  ;;  %2490 = vmatmul.bf16.gmra.mxu0 %v11209_v25  ;;  %v11215_v54 = vld [vmem:[#allocation48_spill] sm:$0xff]  ;;  %v11216_v24 = vld [vmem:[#allocation49_spill] sm:$0xff]  ;;  %v7400_v13 = vld [vmem:[%s9255_s19 + $0xf4] sm:$0xf] }
 0x30f   : > { %2579 = vmatmul.bf16.gmra.mxu1 %v11210_v52  ;;  %v6913_v51 = vld [vmem:[%s9255_s19 + $0x78] sm:$0xf0] }
 0x310   : > { %2668 = vmatmul.bf16.gmra.mxu2 %v11211_v56  ;;  %v6977_v25 = vld [vmem:[%s9255_s19 + $0xf8] sm:$0xf0] }
 0x311   : > { %2757 = vmatmul.bf16.gmra.mxu3 %v11212_v35  ;;  %v6980_v56 = vor.u32 %v7400_v13, %v6977_v25  ;;  %v11217_v13 = vld [vmem:[#allocation50_spill] sm:$0xff]  ;;  %v11219_v25 = vld [vmem:[#allocation52_spill] sm:$0xff] }
 0x313   : > { %v2629_v31 = vpop.f32.mrf.mxu2  ;;  %v2453_v62 = vpop.f32.mrf.mxu0  ;;  %4138 = vmatpush.bf16.msra.mxu3 %v6980_v56 }
 0x314   : > { %v2630_v4 = vadd.f32 %v2629_v31, %v2541_v14  ;;  %v2718_v32 = vpop.f32.mrf.mxu3  ;;  %v2454_v33 = vadd.f32 %v2453_v62, %v9149_v27  ;;  %v6916_v14 = vor.u32 %v7384_v30, %v6913_v51 }
 0x315   : > { %v2542_v55 = vpop.f32.mrf.mxu1 }
 0x316   : > { %v9247_v57 = vadd.f32 %v2718_v32, %v2630_v4  ;;  %v2543_v18 = vadd.f32 %v2542_v55, %v2454_v33  ;;  %4049 = vmatpush.bf16.msra.mxu2 %v6916_v14  ;;  %v11218_v14 = vld [vmem:[#allocation51_spill] sm:$0xff] }
 0x31b   : > { %v2631_v37 = vpop.f32.mrf.mxu2  ;;  %v2456_v58 = vpop.f32.mrf.mxu0 }
 0x31c   : > { %v2632_v20 = vadd.f32 %v2631_v37, %v2543_v18  ;;  %v2720_v5 = vpop.f32.mrf.mxu3  ;;  %v2457_v1 = vadd.f32 %v2456_v58, %v9149_v27  ;;  %v6911_v18 = vld [vmem:[%s9255_s19 + $0x70] sm:$0xf]  ;;  %v7385_v37 = vld [vmem:[%s9255_s19 + $0x74] sm:$0xf0] }
 0x31d   : > { %v2545_v7 = vpop.f32.mrf.mxu1  ;;  %v7401_v58 = vld [vmem:[%s9255_s19 + $0xf4] sm:$0xf0] }
 0x31e   : > { %v9250_v61 = vadd.f32 %v2720_v5, %v2632_v20  ;;  %v2546_v3 = vadd.f32 %v2545_v7, %v2457_v1  ;;  %2495 = vmatmul.bf16.gmra.mxu0 %v11213_v60  ;;  %v6975_v20 = vld [vmem:[%s9255_s19 + $0xf0] sm:$0xf]  ;;  %v6912_v5 = vor.u32 %v7385_v37, %v6911_v18 }
 0x31f   : > { %2584 = vmatmul.bf16.gmra.mxu1 %v11214_v50  ;;  %v6976_v1 = vor.u32 %v7401_v58, %v6975_v20 }
 0x320   : > { %2673 = vmatmul.bf16.gmra.mxu2 %v11215_v54  ;;  %3871 = vmatpush.bf16.msra.mxu0 %v6912_v5 }
 0x321   : > { %2762 = vmatmul.bf16.gmra.mxu3 %v11216_v24  ;;  %3960 = vmatpush.bf16.msra.mxu1 %v6976_v1 }
 0x323   : > { %v2634_v52 = vpop.f32.mrf.mxu2  ;;  %v2458_v4 = vpop.f32.mrf.mxu0 }
 0x324   : > { %v2635_v35 = vadd.f32 %v2634_v52, %v2546_v3  ;;  %v2723_v31 = vpop.f32.mrf.mxu3  ;;  %v2459_v32 = vadd.f32 %v2458_v4, %v9149_v27  ;;  %v11220_v52 = vld [vmem:[#allocation53_spill] sm:$0xff] }
 0x325   : > { %v2547_v62 = vpop.f32.mrf.mxu1 }
 0x326   : > { %v9266_v33 = vadd.f32 %v2723_v31, %v2635_v35  ;;  %v2548_v55 = vadd.f32 %v2547_v62, %v2459_v32 }
 0x32b   : > { %v2636_v7 = vpop.f32.mrf.mxu2  ;;  %v2461_v50 = vpop.f32.mrf.mxu0 }
 0x32c   : > { %v2637_v3 = vadd.f32 %v2636_v7, %v2548_v55  ;;  %v2725_v60 = vpop.f32.mrf.mxu3  ;;  %v2462_v54 = vadd.f32 %v2461_v50, %v9149_v27  ;;  %v11221_v50 = vld [vmem:[#allocation54_spill] sm:$0xff] }
 0x32d   : > { %v2550_v24 = vpop.f32.mrf.mxu1 }
 0x32e   : > { %v9273_v30 = vadd.f32 %v2725_v60, %v2637_v3  ;;  %v2551_v51 = vadd.f32 %v2550_v24, %v2462_v54  ;;  %2500 = vmatmul.bf16.gmra.mxu0 %v11217_v13  ;;  %v11222_v54 = vld [vmem:[#allocation55_spill] sm:$0xff]  ;;  %v11223_v24 = vld [vmem:[#allocation56_spill] sm:$0xff]  ;;  %v7382_v13 = vld [vmem:[%s9255_s19 + $0x64] sm:$0xf] }
 0x32f   : > { %2589 = vmatmul.bf16.gmra.mxu1 %v11218_v14  ;;  %v6905_v14 = vld [vmem:[%s9255_s19 + $0x68] sm:$0xf0] }
 0x330   : > { %2678 = vmatmul.bf16.gmra.mxu2 %v11219_v25  ;;  %v7398_v25 = vld [vmem:[%s9255_s19 + $0xe4] sm:$0xf] }
 0x331   : > { %2767 = vmatmul.bf16.gmra.mxu3 %v11220_v52  ;;  %v6908_v52 = vor.u32 %v7382_v13, %v6905_v14 }
 0x333   : > { %v2639_v56 = vpop.f32.mrf.mxu2  ;;  %v2463_v4 = vpop.f32.mrf.mxu0  ;;  %4050 = vmatpush.bf16.msra.mxu2 %v6908_v52 }
 0x334   : > { %v2640_v35 = vadd.f32 %v2639_v56, %v2551_v51  ;;  %v2728_v31 = vpop.f32.mrf.mxu3  ;;  %v2464_v32 = vadd.f32 %v2463_v4, %v9149_v27  ;;  %v11224_v51 = vld [vmem:[#allocation57_spill] sm:$0xff]  ;;  %v6969_v56 = vld [vmem:[%s9255_s19 + $0xe8] sm:$0xf0] }
 0x335   : > { %v2552_v62 = vpop.f32.mrf.mxu1 }
 0x336   : > { %v9280_v55 = vadd.f32 %v2728_v31, %v2640_v35  ;;  %v2553_v18 = vadd.f32 %v2552_v62, %v2464_v32  ;;  %v6972_v31 = vor.u32 %v7398_v25, %v6969_v56 }
 0x338   : > { %4139 = vmatpush.bf16.msra.mxu3 %v6972_v31  ;;  %v11225_v31 = vld [vmem:[#allocation58_spill] sm:$0xff] }
 0x33b   : > { %v2641_v37 = vpop.f32.mrf.mxu2  ;;  %v2466_v58 = vpop.f32.mrf.mxu0 }
 0x33c   : > { %v2642_v20 = vadd.f32 %v2641_v37, %v2553_v18  ;;  %v2730_v5 = vpop.f32.mrf.mxu3  ;;  %v2467_v1 = vadd.f32 %v2466_v58, %v9149_v27  ;;  %v6903_v58 = vld [vmem:[%s9255_s19 + $0x60] sm:$0xf] }
 0x33d   : > { %v2555_v7 = vpop.f32.mrf.mxu1 }
 0x33e   : > { %v9283_v3 = vadd.f32 %v2730_v5, %v2642_v20  ;;  %v2556_v60 = vadd.f32 %v2555_v7, %v2467_v1  ;;  %2781 = vmatmul.bf16.vlgmr.msrb.gmra.mxu0 %v11221_v50  ;;  %v7383_v1 = vld [vmem:[%s9255_s19 + $0x64] sm:$0xf0]  ;;  %v6967_v7 = vld [vmem:[%s9255_s19 + $0xe0] sm:$0xf] }
 0x33f   : > { %2870 = vmatmul.bf16.vlgmr.msrb.gmra.mxu1 %v11222_v54  ;;  %v6904_v50 = vor.u32 %v7383_v1, %v6903_v58  ;;  %v7399_v54 = vld [vmem:[%s9255_s19 + $0xe4] sm:$0xf0] }
 0x340   : > { %2959 = vmatmul.bf16.vlgmr.msrb.gmra.mxu2 %v11223_v24  ;;  %v6968_v24 = vor.u32 %v7399_v54, %v6967_v7 }
 0x341   : > { %3048 = vmatmul.bf16.vlgmr.msrb.gmra.mxu3 %v11224_v51  ;;  %3872 = vmatpush.bf16.msra.mxu0 %v6904_v50 }
 0x342   : > { %3961 = vmatpush.bf16.msra.mxu1 %v6968_v24 }
 0x343   : > { %v2644_v35 = vpop.f32.mrf.mxu2  ;;  %v2468_v62 = vpop.f32.mrf.mxu0 }
 0x344   : > { %v2645_v4 = vadd.f32 %v2644_v35, %v2556_v60  ;;  %v2733_v32 = vpop.f32.mrf.mxu3  ;;  %v2469_v18 = vadd.f32 %v2468_v62, %v9149_v27  ;;  %v11228_v62 = vld [vmem:[#allocation61_spill] sm:$0xff] }
 0x345   : > { %v2557_v37 = vpop.f32.mrf.mxu1 }
 0x346   : > { %v9294_v20 = vadd.f32 %v2733_v32, %v2645_v4  ;;  %v2558_v5 = vadd.f32 %v2557_v37, %v2469_v18  ;;  %v11226_v4 = vld [vmem:[#allocation59_spill] sm:$0xff]  ;;  %v11227_v32 = vld [vmem:[#allocation60_spill] sm:$0xff] }
 0x34b   : > { %v2646_v51 = vpop.f32.mrf.mxu2  ;;  %v2471_v14 = vpop.f32.mrf.mxu0 }
 0x34c   : > { %v2647_v60 = vadd.f32 %v2646_v51, %v2558_v5  ;;  %v2735_v13 = vpop.f32.mrf.mxu3  ;;  %v2472_v25 = vadd.f32 %v2471_v14, %v9149_v27 }
 0x34d   : > { %v2560_v52 = vpop.f32.mrf.mxu1 }
 0x34e   : > { %v9301_v56 = vadd.f32 %v2735_v13, %v2647_v60  ;;  %v2561_v35 = vadd.f32 %v2560_v52, %v2472_v25  ;;  %2786 = vmatmul.bf16.gmra.mxu0 %v11225_v31  ;;  %v11229_v31 = vld [vmem:[#allocation62_spill] sm:$0xff] }
 0x34f   : > { %2875 = vmatmul.bf16.gmra.mxu1 %v11226_v4  ;;  %v11230_v4 = vld [vmem:[#allocation63_spill] sm:$0xff] }
 0x350   : > { %2964 = vmatmul.bf16.gmra.mxu2 %v11227_v32  ;;  %v11231_v32 = vld [vmem:[#allocation64_spill] sm:$0xff] }
 0x351   : > { %3053 = vmatmul.bf16.gmra.mxu3 %v11228_v62  ;;  %v11232_v62 = vld [vmem:[#allocation65_spill] sm:$0xff] }
 0x353   : > { %v2649_v18 = vpop.f32.mrf.mxu2  ;;  %v2473_v5 = vpop.f32.mrf.mxu0 }
 0x354   : > { %v2650_v37 = vadd.f32 %v2649_v18, %v2561_v35  ;;  %v2738_v58 = vpop.f32.mrf.mxu3  ;;  %v2474_v1 = vadd.f32 %v2473_v5, %v9149_v27  ;;  %v7380_v18 = vld [vmem:[%s9255_s19 + $0x54] sm:$0xf] }
 0x355   : > { %v2562_v7 = vpop.f32.mrf.mxu1 }
 0x356   : > { %v9308_v50 = vadd.f32 %v2738_v58, %v2650_v37  ;;  %v2563_v54 = vadd.f32 %v2562_v7, %v2474_v1  ;;  %v6897_v37 = vld [vmem:[%s9255_s19 + $0x58] sm:$0xf0]  ;;  %v7396_v58 = vld [vmem:[%s9255_s19 + $0xd4] sm:$0xf] }
 0x357   : > { %v6900_v5 = vor.u32 %v7380_v18, %v6897_v37  ;;  %v6961_v1 = vld [vmem:[%s9255_s19 + $0xd8] sm:$0xf0]  ;;  %v7397_v18 = vld [vmem:[%s9255_s19 + $0xd4] sm:$0xf0] }
 0x359   : > { %4051 = vmatpush.bf16.msra.mxu2 %v6900_v5 }
 0x35b   : > { %v2651_v24 = vpop.f32.mrf.mxu2  ;;  %v2476_v13 = vpop.f32.mrf.mxu0 }
 0x35c   : > { %v2652_v51 = vadd.f32 %v2651_v24, %v2563_v54  ;;  %v2740_v60 = vpop.f32.mrf.mxu3  ;;  %v2477_v14 = vadd.f32 %v2476_v13, %v9149_v27  ;;  %v6964_v54 = vor.u32 %v7396_v58, %v6961_v1 }
 0x35d   : > { %v2565_v25 = vpop.f32.mrf.mxu1 }
 0x35e   : > { %v9311_v52 = vadd.f32 %v2740_v60, %v2652_v51  ;;  %v2566_v35 = vadd.f32 %v2565_v25, %v2477_v14  ;;  %2791 = vmatmul.bf16.gmra.mxu0 %v11229_v31  ;;  %4140 = vmatpush.bf16.msra.mxu3 %v6964_v54 }
 0x35f   : > { %2880 = vmatmul.bf16.gmra.mxu1 %v11230_v4  ;;  %v6895_v4 = vld [vmem:[%s9255_s19 + $0x50] sm:$0xf] }
 0x360   : > { %2969 = vmatmul.bf16.gmra.mxu2 %v11231_v32  ;;  %v7381_v32 = vld [vmem:[%s9255_s19 + $0x54] sm:$0xf0] }
 0x361   : > { %3058 = vmatmul.bf16.gmra.mxu3 %v11232_v62  ;;  %v6959_v62 = vld [vmem:[%s9255_s19 + $0xd0] sm:$0xf]  ;;  %v6896_v53 = vor.u32 %v7381_v32, %v6895_v4 }
 0x362   : > { %v6960_v37 = vor.u32 %v7397_v18, %v6959_v62 }
 0x363   : > { %v2654_v7 = vpop.f32.mrf.mxu2  ;;  %v2478_v60 = vpop.f32.mrf.mxu0  ;;  %3873 = vmatpush.bf16.msra.mxu0 %v6896_v53 }
 0x364   : > { %v2655_v24 = vadd.f32 %v2654_v7, %v2566_v35  ;;  %v2743_v51 = vpop.f32.mrf.mxu3  ;;  %v2479_v13 = vadd.f32 %v2478_v60, %v9149_v27  ;;  %3962 = vmatpush.bf16.msra.mxu1 %v6960_v37 }
 0x365   : > { %v2567_v14 = vpop.f32.mrf.mxu1 }
 0x366   : > { %v9322_v25 = vadd.f32 %v2743_v51, %v2655_v24  ;;  %v2568_v31 = vadd.f32 %v2567_v14, %v2479_v13  ;;  %v11233_v24 = vld [vmem:[#allocation66_spill] sm:$0xff]  ;;  %v11234_v51 = vld [vmem:[#allocation67_spill] sm:$0xff]  ;;  %v11235_v13 = vld [vmem:[#allocation68_spill] sm:$0xff] }
 0x367   : > { %v11236_v14 = vld [vmem:[#allocation69_spill] sm:$0xff] }
 0x36b   : > { %v2656_v44 = vpop.f32.mrf.mxu2  ;;  %v2481_v1 = vpop.f32.mrf.mxu0 }
 0x36c   : > { %v2657_v35 = vadd.f32 %v2656_v44, %v2568_v31  ;;  %v2745_v58 = vpop.f32.mrf.mxu3  ;;  %v2482_v5 = vadd.f32 %v2481_v1, %v9149_v27 }
 0x36d   : > { %v2570_v7 = vpop.f32.mrf.mxu1 }
 0x36e   : > { %v9329_v60 = vadd.f32 %v2745_v58, %v2657_v35  ;;  %v2571_v54 = vadd.f32 %v2570_v7, %v2482_v5  ;;  %2796 = vmatmul.bf16.gmra.mxu0 %v11233_v24 }
 0x36f   : > { %2885 = vmatmul.bf16.gmra.mxu1 %v11234_v51 }
 0x370   : > { %2974 = vmatmul.bf16.gmra.mxu2 %v11235_v13  ;;  %v11237_v13 = vld [vmem:[#allocation70_spill] sm:$0xff] }
 0x371   : > { %3063 = vmatmul.bf16.gmra.mxu3 %v11236_v14  ;;  %v11238_v14 = vld [vmem:[#allocation71_spill] sm:$0xff] }
 0x373   : > { %v2659_v53 = vpop.f32.mrf.mxu2  ;;  %v2483_v44 = vpop.f32.mrf.mxu0 }
 0x374   : > { %v2660_v4 = vadd.f32 %v2659_v53, %v2571_v54  ;;  %v2748_v32 = vpop.f32.mrf.mxu3  ;;  %v2484_v31 = vadd.f32 %v2483_v44, %v9149_v27  ;;  %v11239_v53 = vld [vmem:[#allocation72_spill] sm:$0xff]  ;;  %v6889_v44 = vld [vmem:[%s9255_s19 + $0x48] sm:$0xf0] }
 0x375   : > { %v2572_v62 = vpop.f32.mrf.mxu1 }
 0x376   : > { %v9336_v18 = vadd.f32 %v2748_v32, %v2660_v4  ;;  %v2573_v37 = vadd.f32 %v2572_v62, %v2484_v31  ;;  %v11240_v4 = vld [vmem:[#allocation73_spill] sm:$0xff] }
 0x377   : > { %v7378_v32 = vld [vmem:[%s9255_s19 + $0x44] sm:$0xf] }
 0x378   : > { %v7394_v31 = vld [vmem:[%s9255_s19 + $0xc4] sm:$0xf]  ;;  %v6892_v62 = vor.u32 %v7378_v32, %v6889_v44  ;;  %v7395_v32 = vld [vmem:[%s9255_s19 + $0xc4] sm:$0xf0] }
 0x379   : > { %v6952_v44 = vor.u32 %v7395_v32, %v6951_v36 }
 0x37a   : > { %4052 = vmatpush.bf16.msra.mxu2 %v6892_v62 }
 0x37b   : > { %v2661_v35 = vpop.f32.mrf.mxu2  ;;  %v2486_v5 = vpop.f32.mrf.mxu0  ;;  %3963 = vmatpush.bf16.msra.mxu1 %v6952_v44 }
 0x37c   : > { %v2662_v58 = vadd.f32 %v2661_v35, %v2573_v37  ;;  %v2750_v1 = vpop.f32.mrf.mxu3  ;;  %v2487_v7 = vadd.f32 %v2486_v5, %v9149_v27  ;;  %v6953_v37 = vld [vmem:[%s9255_s19 + $0xc8] sm:$0xf0] }
 0x37d   : > { %v2575_v24 = vpop.f32.mrf.mxu1 }
 0x37e   : > { %v9339_v54 = vadd.f32 %v2750_v1, %v2662_v58  ;;  %v2576_v51 = vadd.f32 %v2575_v24, %v2487_v7  ;;  %2801 = vmatmul.bf16.gmra.mxu0 %v11237_v13  ;;  %v6956_v58 = vor.u32 %v7394_v31, %v6953_v37 }
 0x37f   : > { %2890 = vmatmul.bf16.gmra.mxu1 %v11238_v14 }
 0x380   : > { %2979 = vmatmul.bf16.gmra.mxu2 %v11239_v53  ;;  %4141 = vmatpush.bf16.msra.mxu3 %v6956_v58 }
 0x381   : > { %3068 = vmatmul.bf16.gmra.mxu3 %v11240_v4  ;;  %v6887_v4 = vld [vmem:[%s9255_s19 + $0x40] sm:$0xf] }
 0x382   : > { %v6888_v41 = vor.u32 %v7379_v15, %v6887_v4  ;;  %v11244_v15 = vld [vmem:[#allocation79_spill] sm:$0xff] }
 0x383   : > { %v2664_v35 = vpop.f32.mrf.mxu2  ;;  %v2488_v7 = vpop.f32.mrf.mxu0 }
 0x384   : > { %v2665_v1 = vadd.f32 %v2664_v35, %v2576_v51  ;;  %v2753_v5 = vpop.f32.mrf.mxu3  ;;  %v2489_v24 = vadd.f32 %v2488_v7, %v9149_v27  ;;  %3874 = vmatpush.bf16.msra.mxu0 %v6888_v41 }
 0x385   : > { %v2577_v13 = vpop.f32.mrf.mxu1 }
 0x386   : > { %v9350_v14 = vadd.f32 %v2753_v5, %v2665_v1  ;;  %v2578_v53 = vadd.f32 %v2577_v13, %v2489_v24  ;;  %v11241_v1 = vld [vmem:[#allocation76_spill] sm:$0xff]  ;;  %v11242_v5 = vld [vmem:[#allocation77_spill] sm:$0xff]  ;;  %v11243_v24 = vld [vmem:[#allocation78_spill] sm:$0xff] }
 0x38b   : > { %v2666_v49 = vpop.f32.mrf.mxu2  ;;  %v2491_v37 = vpop.f32.mrf.mxu0 }
 0x38c   : > { %v2667_v51 = vadd.f32 %v2666_v49, %v2578_v53  ;;  %v2755_v31 = vpop.f32.mrf.mxu3  ;;  %v2492_v62 = vadd.f32 %v2491_v37, %v9149_v27 }
 0x38d   : > { %v2580_v35 = vpop.f32.mrf.mxu1 }
 0x38e   : > { %v9357_v7 = vadd.f32 %v2755_v31, %v2667_v51  ;;  %v2581_v58 = vadd.f32 %v2580_v35, %v2492_v62  ;;  %2806 = vmatmul.bf16.gmra.mxu0 %v11241_v1 }
 0x38f   : > { %2895 = vmatmul.bf16.gmra.mxu1 %v11242_v5 }
 0x390   : > { %2984 = vmatmul.bf16.gmra.mxu2 %v11243_v24  ;;  %v11245_v24 = vld [vmem:[#allocation82_spill] sm:$0xff] }
 0x391   : > { %3073 = vmatmul.bf16.gmra.mxu3 %v11244_v15  ;;  %v11246_v15 = vld [vmem:[#allocation83_spill] sm:$0xff] }
 0x393   : > { %v2669_v41 = vpop.f32.mrf.mxu2  ;;  %v2493_v49 = vpop.f32.mrf.mxu0 }
 0x394   : > { %v2670_v36 = vadd.f32 %v2669_v41, %v2581_v58  ;;  %v2758_v13 = vpop.f32.mrf.mxu3  ;;  %v2494_v53 = vadd.f32 %v2493_v49, %v9149_v27  ;;  %v11247_v41 = vld [vmem:[#allocation84_spill] sm:$0xff] }
 0x395   : > { %v2582_v4 = vpop.f32.mrf.mxu1  ;;  %v6881_v49 = vld [vmem:[%s9255_s19 + $0x38] sm:$0xf0] }
 0x396   : > { %v9364_v32 = vadd.f32 %v2758_v13, %v2670_v36  ;;  %v2583_v44 = vadd.f32 %v2582_v4, %v2494_v53  ;;  %v11248_v36 = vld [vmem:[#allocation85_spill] sm:$0xff]  ;;  %v7376_v13 = vld [vmem:[%s9255_s19 + $0x34] sm:$0xf] }
 0x397   : > { %v7392_v53 = vld [vmem:[%s9255_s19 + $0xb4] sm:$0xf]  ;;  %v6884_v4 = vor.u32 %v7376_v13, %v6881_v49 }
 0x399   : > { %4053 = vmatpush.bf16.msra.mxu2 %v6884_v4  ;;  %v11251_v4 = vld [vmem:[#allocation88_spill] sm:$0xff] }
 0x39b   : > { %v2671_v51 = vpop.f32.mrf.mxu2  ;;  %v2496_v62 = vpop.f32.mrf.mxu0 }
 0x39c   : > { %v2672_v31 = vadd.f32 %v2671_v51, %v2583_v44  ;;  %v2760_v37 = vpop.f32.mrf.mxu3  ;;  %v2497_v35 = vadd.f32 %v2496_v62, %v9149_v27  ;;  %v6945_v44 = vld [vmem:[%s9255_s19 + $0xb8] sm:$0xf0] }
 0x39d   : > { %v2585_v1 = vpop.f32.mrf.mxu1  ;;  %v6948_v16 = vor.u32 %v7392_v53, %v6945_v44  ;;  %v11252_v44 = vld [vmem:[#allocation89_spill] sm:$0xff] }
 0x39e   : > { %v9367_v58 = vadd.f32 %v2760_v37, %v2672_v31  ;;  %v2586_v5 = vadd.f32 %v2585_v1, %v2497_v35  ;;  %2811 = vmatmul.bf16.gmra.mxu0 %v11245_v24 }
 0x39f   : > { %2900 = vmatmul.bf16.gmra.mxu1 %v11246_v15  ;;  %4142 = vmatpush.bf16.msra.mxu3 %v6948_v16  ;;  %v11254_v16 = vld [vmem:[#allocation91_spill] sm:$0xff] }
 0x3a0   : > { %2989 = vmatmul.bf16.gmra.mxu2 %v11247_v41 }
 0x3a1   : > { %3078 = vmatmul.bf16.gmra.mxu3 %v11248_v36 }
 0x3a3   : > { %v2674_v51 = vpop.f32.mrf.mxu2  ;;  %v2498_v31 = vpop.f32.mrf.mxu0 }
 0x3a4   : > { %v2675_v62 = vadd.f32 %v2674_v51, %v2586_v5  ;;  %v2763_v39 = vpop.f32.mrf.mxu3  ;;  %v2499_v37 = vadd.f32 %v2498_v31, %v9149_v27 }
 0x3a5   : > { %v2587_v35 = vpop.f32.mrf.mxu1 }
 0x3a6   : > { %v9378_v1 = vadd.f32 %v2763_v39, %v2675_v62  ;;  %v2588_v24 = vadd.f32 %v2587_v35, %v2499_v37  ;;  %v11253_v39 = vld [vmem:[#allocation90_spill] sm:$0xff] }
 0x3a8   : > { %11249 = vst [vmem:[#allocation80_spill] sm:$0xff] %v9378_v1 }
 0x3ab   : > { %v2676_v15 = vpop.f32.mrf.mxu2  ;;  %v2501_v43 = vpop.f32.mrf.mxu0 }
 0x3ac   : > { %v2677_v41 = vadd.f32 %v2676_v15, %v2588_v24  ;;  %v2765_v36 = vpop.f32.mrf.mxu3  ;;  %v2502_v13 = vadd.f32 %v2501_v43, %v9149_v27 }
 0x3ad   : > { %v2590_v49 = vpop.f32.mrf.mxu1 }
 0x3ae   : > { %v9381_v5 = vadd.f32 %v2765_v36, %v2677_v41  ;;  %v2591_v53 = vadd.f32 %v2590_v49, %v2502_v13  ;;  %2816 = vmatmul.bf16.gmra.mxu0 %v11251_v4  ;;  %v6879_v41 = vld [vmem:[%s9255_s19 + $0x30] sm:$0xf]  ;;  %v7377_v36 = vld [vmem:[%s9255_s19 + $0x34] sm:$0xf0] }
 0x3af   : > { %2905 = vmatmul.bf16.gmra.mxu1 %v11252_v44  ;;  %v6943_v13 = vld [vmem:[%s9255_s19 + $0xb0] sm:$0xf]  ;;  %v6880_v49 = vor.u32 %v7377_v36, %v6879_v41  ;;  %v7393_v4 = vld [vmem:[%s9255_s19 + $0xb4] sm:$0xf0] }
 0x3b0   : > { %11250 = vst [vmem:[#allocation81_spill] sm:$0xff] %v9381_v5  ;;  %2994 = vmatmul.bf16.gmra.mxu2 %v11253_v39  ;;  %v6944_v5 = vor.u32 %v7393_v4, %v6943_v13 }
 0x3b1   : > { %3083 = vmatmul.bf16.gmra.mxu3 %v11254_v16  ;;  %3875 = vmatpush.bf16.msra.mxu0 %v6880_v49 }
 0x3b2   : > { %3964 = vmatpush.bf16.msra.mxu1 %v6944_v5 }
 0x3b3   : > { %v2679_v51 = vpop.f32.mrf.mxu2  ;;  %v2503_v43 = vpop.f32.mrf.mxu0 }
 0x3b4   : > { %v2680_v62 = vadd.f32 %v2679_v51, %v2591_v53  ;;  %v2768_v31 = vpop.f32.mrf.mxu3  ;;  %v2504_v37 = vadd.f32 %v2503_v43, %v9149_v27  ;;  %v11258_v43 = vld [vmem:[#allocation95_spill] sm:$0xff] }
 0x3b5   : > { %v2592_v35 = vpop.f32.mrf.mxu1 }
 0x3b6   : > { %v9388_v24 = vadd.f32 %v2768_v31, %v2680_v62  ;;  %v2593_v15 = vadd.f32 %v2592_v35, %v2504_v37  ;;  %v11257_v31 = vld [vmem:[#allocation94_spill] sm:$0xff]  ;;  %v11259_v37 = vld [vmem:[#allocation96_spill] sm:$0xff]  ;;  %v11260_v35 = vld [vmem:[#allocation97_spill] sm:$0xff] }
 0x3b8   : > { %11255 = vst [vmem:[#allocation10_spill] sm:$0xff] %v9388_v24 }
 0x3bb   : > { %v2681_v44 = vpop.f32.mrf.mxu2  ;;  %v2782_v16 = vpop.f32.mrf.mxu0 }
 0x3bc   : > { %v2682_v39 = vadd.f32 %v2681_v44, %v2593_v15  ;;  %v2770_v21 = vpop.f32.mrf.mxu3  ;;  %v2783_v53 = vadd.f32 %v2782_v16, %v9170_v10 }
 0x3bd   : > { %v2871_v51 = vpop.f32.mrf.mxu1 }
 0x3be   : > { %v9395_v27 = vadd.f32 %v2770_v21, %v2682_v39  ;;  %v2872_v62 = vadd.f32 %v2871_v51, %v2783_v53  ;;  %2821 = vmatmul.bf16.gmra.mxu0 %v11257_v31 }
 0x3bf   : > { %2910 = vmatmul.bf16.gmra.mxu1 %v11258_v43 }
 0x3c0   : > { %11256 = vst [vmem:[#allocation11_spill] sm:$0xff] %v9395_v27  ;;  %2999 = vmatmul.bf16.gmra.mxu2 %v11259_v37  ;;  %v7374_v37 = vld [vmem:[%s9255_s19 + $0x24] sm:$0xf]  ;;  %v11261_v27 = vld [vmem:[#allocation99_spill] sm:$0xff] }
 0x3c1   : > { %3088 = vmatmul.bf16.gmra.mxu3 %v11260_v35  ;;  %v6873_v35 = vld [vmem:[%s9255_s19 + $0x28] sm:$0xf0] }
 0x3c3   : > { %v2960_v41 = vpop.f32.mrf.mxu2  ;;  %v2784_v13 = vpop.f32.mrf.mxu0 }
 0x3c4   : > { %v2961_v15 = vadd.f32 %v2960_v41, %v2872_v62  ;;  %v3049_v36 = vpop.f32.mrf.mxu3  ;;  %v2785_v10 = vadd.f32 %v2784_v13, %v9177_v12  ;;  %v7390_v41 = vld [vmem:[%s9255_s19 + $0xa4] sm:$0xf]  ;;  %v6876_v13 = vor.u32 %v7374_v37, %v6873_v35 }
 0x3c5   : > { %v2873_v21 = vpop.f32.mrf.mxu1 }
 0x3c6   : > { %v9402_v5 = vadd.f32 %v3049_v36, %v2961_v15  ;;  %v2874_v49 = vadd.f32 %v2873_v21, %v2785_v10  ;;  %v6937_v15 = vld [vmem:[%s9255_s19 + $0xa8] sm:$0xf0]  ;;  %4054 = vmatpush.bf16.msra.mxu2 %v6876_v13 }
 0x3c7   : > { %v6940_v10 = vor.u32 %v7390_v41, %v6937_v15  ;;  %v6871_v41 = vld [vmem:[%s9255_s19 + $0x20] sm:$0xf]  ;;  %v7375_v15 = vld [vmem:[%s9255_s19 + $0x24] sm:$0xf0] }
 0x3c8   : > { %v3194_v4 = vmin.f32 %v9402_v5, 0.0  ;;  %vm3130_vm0 = vcmp.gt.f32.partialorder %v9402_v5, 0.0 }
 0x3c9   : > { %4143 = vmatpush.bf16.msra.mxu3 %v6940_v10  ;;  %v6872_v10 = vor.u32 %v7375_v15, %v6871_v41 }
 0x3ca   : > { %v3258_v44 = vmul.f32 10.0, %v3194_v4  ;;  %v11262_v4 = vld [vmem:[#allocation100_spill] sm:$0xff] }
 0x3cb   : > { %v2962_v39 = vpop.f32.mrf.mxu2  ;;  %v2787_v62 = vpop.f32.mrf.mxu0  ;;  %3876 = vmatpush.bf16.msra.mxu0 %v6872_v10 }
 0x3cc   : > { %v3323_v16 = vmul.f32 1.442695, %v3258_v44  ;;  %v2963_v53 = vadd.f32 %v2962_v39, %v2874_v49  ;;  %v3051_v51 = vpop.f32.mrf.mxu3  ;;  %v2788_v31 = vadd.f32 %v2787_v62, %v9190_v22  ;;  %v11263_v49 = vld [vmem:[#allocation101_spill] sm:$0xff]  ;;  %v11264_v44 = vld [vmem:[#allocation102_spill] sm:$0xff] }
 0x3cd   : > { %v2876_v43 = vpop.f32.mrf.mxu1 }
 0x3ce   : > { %v3052_v12 = vadd.f32 %v3051_v51, %v2963_v53  ;;  %v2877_v36 = vadd.f32 %v2876_v43, %v2788_v31  ;;  %2826 = vmatmul.bf16.gmra.mxu0 %v11261_v27  ;;  %7501 = vpow2.f32 %v3323_v16 }
 0x3cf   : > { %2915 = vmatmul.bf16.gmra.mxu1 %v11262_v4  ;;  %v7391_v4 = vld [vmem:[%s9255_s19 + $0xa4] sm:$0xf0] }
 0x3d0   : > { %v3196_v21 = vmin.f32 %v3052_v12, 0.0  ;;  %3004 = vmatmul.bf16.gmra.mxu2 %v11263_v49  ;;  %vm3132_vm1 = vcmp.gt.f32.partialorder %v3052_v12, 0.0 }
 0x3d1   : > { %3093 = vmatmul.bf16.gmra.mxu3 %v11264_v44 }
 0x3d2   : > { %v3260_v22 = vmul.f32 10.0, %v3196_v21  ;;  %v6935_v21 = vld [vmem:[%s9255_s19 + $0xa0] sm:$0xf] }
 0x3d3   : > { %v2965_v39 = vpop.f32.mrf.mxu2  ;;  %v2789_v62 = vpop.f32.mrf.mxu0  ;;  %v6936_v44 = vor.u32 %v7391_v4, %v6935_v21  ;;  %v11266_v21 = vld [vmem:[#allocation104_spill] sm:$0xff] }
 0x3d4   : > { %v3327_v53 = vmul.f32 1.442695, %v3260_v22  ;;  %v2966_v51 = vadd.f32 %v2965_v39, %v2877_v36  ;;  %v3054_v27 = vpop.f32.mrf.mxu3  ;;  %v2790_v16 = vadd.f32 %v2789_v62, %v9193_v6  ;;  %v7502_v43 = vpop.eup %7501 }
 0x3d5   : > { %v2878_v31 = vpop.f32.mrf.mxu1  ;;  %v6790_v49 = vadd.f32 -1.0, %v7502_v43  ;;  %3965 = vmatpush.bf16.msra.mxu1 %v6936_v44 }
 0x3d6   : > { %7503 = vpow2.f32 %v3327_v53  ;;  %v9415_v37 = vadd.f32 %v3054_v27, %v2966_v51  ;;  %v2879_v35 = vadd.f32 %v2878_v31, %v2790_v16 }
 0x3d7   : > { %v3514_v27 = vmul.f32 0.1, %v6790_v49 }
 0x3d8   : > { %v3198_v13 = vmin.f32 %v9415_v37, 0.0  ;;  %vm3134_vm2 = vcmp.gt.f32.partialorder %v9415_v37, 0.0 }
 0x3da   : > { %v3262_v36 = vmul.f32 10.0, %v3198_v13  ;;  %v3578_v13 = vsel %vm3130_vm0, %v9402_v5, %v3514_v27 }
 0x3db   : > { %v2967_v22 = vpop.f32.mrf.mxu2  ;;  %v2792_v51 = vpop.f32.mrf.mxu0 }
 0x3dc   : > { %v7504_v6 = vpop.eup %7503  ;;  %v3331_v39 = vmul.f32 1.442695, %v3262_v36  ;;  %v2968_v62 = vadd.f32 %v2967_v22, %v2879_v35  ;;  %v3056_v53 = vpop.f32.mrf.mxu3  ;;  %v2793_v31 = vadd.f32 %v2792_v51, %v9204_v26  ;;  %v11265_v35 = vld [vmem:[#allocation103_spill] sm:$0xff] }
 0x3dd   : > { %v6792_v16 = vadd.f32 -1.0, %v7504_v6  ;;  %v2881_v24 = vpop.f32.mrf.mxu1 }
 0x3de   : > { %v3057_v1 = vadd.f32 %v3056_v53, %v2968_v62  ;;  %7505 = vpow2.f32 %v3331_v39  ;;  %v2882_v15 = vadd.f32 %v2881_v24, %v2793_v31  ;;  %2831 = vmatmul.bf16.gmra.mxu0 %v8767_v34 }
 0x3df   : > { %v3516_v41 = vmul.f32 0.1, %v6792_v16  ;;  %2920 = vmatmul.bf16.gmra.mxu1 %v8769_v63 }
 0x3e0   : > { %v3200_v43 = vmin.f32 %v3057_v1, 0.0  ;;  %3009 = vmatmul.bf16.gmra.mxu2 %v11265_v35  ;;  %vm3136_vm3 = vcmp.gt.f32.partialorder %v3057_v1, 0.0 }
 0x3e1   : > { %v3580_v10 = vsel %vm3132_vm1, %v3052_v12, %v3516_v41  ;;  %3098 = vmatmul.bf16.gmra.mxu3 %v11266_v21  ;;  %v6865_v21 = vld [vmem:[%s9255_s19 + $0x18] sm:$0xf0] }
 0x3e2   : > { %v9429_v26 = vpack.c.bf16 %v3580_v10, %v3578_v13  ;;  %v3264_v4 = vmul.f32 10.0, %v3200_v43  ;;  %v7372_v10 = vld [vmem:[%s9255_s19 + $0x14] sm:$0xf] }
 0x3e3   : > { %v2970_v49 = vpop.f32.mrf.mxu2  ;;  %v2794_v36 = vpop.f32.mrf.mxu0 }
 0x3e4   : > { %v3335_v24 = vmul.f32 1.442695, %v3264_v4  ;;  %v2971_v44 = vadd.f32 %v2970_v49, %v2882_v15  ;;  %v3059_v34 = vpop.f32.mrf.mxu3  ;;  %v7506_v22 = vpop.eup %7505  ;;  %v2795_v6 = vadd.f32 %v2794_v36, %v9211_v2  ;;  %v6868_v49 = vor.u32 %v7372_v10, %v6865_v21  ;;  %v6927_v10 = vld [vmem:[%s9255_s19 + $0x90] sm:$0xf]  ;;  %v7389_v21 = vld [vmem:[%s9255_s19 + $0x94] sm:$0xf0] }
 0x3e5   : > { %v2883_v39 = vpop.f32.mrf.mxu1  ;;  %v6794_v12 = vadd.f32 -1.0, %v7506_v22 }
 0x3e6   : > { %7507 = vpow2.f32 %v3335_v24  ;;  %v9432_v63 = vadd.f32 %v3059_v34, %v2971_v44  ;;  %v2884_v5 = vadd.f32 %v2883_v39, %v2795_v6  ;;  %v7388_v24 = vld [vmem:[%s9255_s19 + $0x94] sm:$0xf]  ;;  %v6929_v44 = vld [vmem:[%s9255_s19 + $0x98] sm:$0xf0]  ;;  %4055 = vmatpush.bf16.msra.mxu2 %v6868_v49 }
 0x3e7   : > { %v3518_v16 = vmul.f32 0.1, %v6794_v12  ;;  %v6932_v36 = vor.u32 %v7388_v24, %v6929_v44  ;;  %v11268_v39 = vld [vmem:[#allocation107_spill] sm:$0xff]  ;;  %v6928_v24 = vor.u32 %v7389_v21, %v6927_v10 }
 0x3e8   : > { %v3202_v62 = vmin.f32 %v9432_v63, 0.0  ;;  %vm3138_vm4 = vcmp.gt.f32.partialorder %v9432_v63, 0.0 }
 0x3e9   : > { %4144 = vmatpush.bf16.msra.mxu3 %v6932_v36  ;;  %3966 = vmatpush.bf16.msra.mxu1 %v6928_v24 }
 0x3ea   : > { %v3266_v53 = vmul.f32 10.0, %v3202_v62 }
 0x3eb   : > { %v2972_v51 = vpop.f32.mrf.mxu2  ;;  %v2797_v2 = vpop.f32.mrf.mxu0 }
 0x3ec   : > { %v7508_v27 = vpop.eup %7507  ;;  %v3339_v31 = vmul.f32 1.442695, %v3266_v53  ;;  %v2973_v41 = vadd.f32 %v2972_v51, %v2884_v5  ;;  %v3061_v15 = vpop.f32.mrf.mxu3  ;;  %v2798_v35 = vadd.f32 %v2797_v2, %v9218_v8  ;;  %v11267_v8 = vld [vmem:[#allocation106_spill] sm:$0xff]  ;;  %v3582_v5 = vsel %vm3134_vm2, %v9415_v37, %v3518_v16  ;;  %v6863_v16 = vld [vmem:[%s9255_s19 + $0x10] sm:$0xf] }
 0x3ed   : > { %v6796_v43 = vadd.f32 -1.0, %v7508_v27  ;;  %v2886_v13 = vpop.f32.mrf.mxu1 }
 0x3ee   : > { %v9438_v4 = vadd.f32 %v3061_v15, %v2973_v41  ;;  %v2887_v34 = vadd.f32 %v2886_v13, %v2798_v35  ;;  %2836 = vmatmul.bf16.gmra.mxu0 %v8801_v19  ;;  %7509 = vpow2.f32 %v3339_v31 }
 0x3ef   : > { %v3520_v22 = vmul.f32 0.1, %v6796_v43  ;;  %2925 = vmatmul.bf16.gmra.mxu1 %v8803_v46  ;;  %v7373_v43 = vld [vmem:[%s9255_s19 + $0x14] sm:$0xf0] }
 0x3f0   : > { %v3204_v6 = vmin.f32 %v9438_v4, 0.0  ;;  %3014 = vmatmul.bf16.gmra.mxu2 %v11267_v8  ;;  %v6864_v13 = vor.u32 %v7373_v43, %v6863_v16  ;;  %vm3140_vm5 = vcmp.gt.f32.partialorder %v9438_v4, 0.0 }
 0x3f1   : > { %3103 = vmatmul.bf16.gmra.mxu3 %v11268_v39  ;;  %v3584_v12 = vsel %vm3136_vm3, %v3057_v1, %v3520_v22 }
 0x3f2   : > { %v3268_v19 = vmul.f32 10.0, %v3204_v6  ;;  %v9449_v62 = vpack.c.bf16 %v3584_v12, %v3582_v5  ;;  %3877 = vmatpush.bf16.msra.mxu0 %v6864_v13 }
 0x3f3   : > { %v2975_v53 = vpop.f32.mrf.mxu2  ;;  %v2799_v31 = vpop.f32.mrf.mxu0 }
 0x3f4   : > { %v3343_v51 = vmul.f32 1.442695, %v3268_v19  ;;  %v2976_v27 = vadd.f32 %v2975_v53, %v2887_v34  ;;  %v3064_v46 = vpop.f32.mrf.mxu3  ;;  %v2800_v41 = vadd.f32 %v2799_v31, %v9221_v23  ;;  %v7510_v2 = vpop.eup %7509  ;;  %v11269_v31 = vld [vmem:[#allocation109_spill] sm:$0xff] }
 0x3f5   : > { %v2888_v15 = vpop.f32.mrf.mxu1  ;;  %v6798_v49 = vadd.f32 -1.0, %v7510_v2 }
 0x3f6   : > { %7511 = vpow2.f32 %v3343_v51  ;;  %v9452_v37 = vadd.f32 %v3064_v46, %v2976_v27  ;;  %v2889_v1 = vadd.f32 %v2888_v15, %v2800_v41  ;;  %v11270_v41 = vld [vmem:[#allocation110_spill] sm:$0xff] }
 0x3f7   : > { %v3522_v39 = vmul.f32 0.1, %v6798_v49 }
 0x3f8   : > { %v3206_v35 = vmin.f32 %v9452_v37, 0.0  ;;  %vm3142_vm6 = vcmp.gt.f32.partialorder %v9452_v37, 0.0 }
 0x3fa   : > { %v3270_v44 = vmul.f32 10.0, %v3206_v35 }
 0x3fb   : > { %v2977_v34 = vpop.f32.mrf.mxu2  ;;  %v2802_v8 = vpop.f32.mrf.mxu0 }
 0x3fc   : > { %v7512_v23 = vpop.eup %7511  ;;  %v3347_v36 = vmul.f32 1.442695, %v3270_v44  ;;  %v2978_v22 = vadd.f32 %v2977_v34, %v2889_v1  ;;  %v3066_v6 = vpop.f32.mrf.mxu3  ;;  %v2803_v12 = vadd.f32 %v2802_v8, %v9232_v42  ;;  %v3586_v42 = vsel %vm3138_vm4, %v9432_v63, %v3522_v39 }
 0x3fd   : > { %v6800_v5 = vadd.f32 -1.0, %v7512_v23  ;;  %v2891_v19 = vpop.f32.mrf.mxu1 }
 0x3fe   : > { %v3067_v53 = vadd.f32 %v3066_v6, %v2978_v22  ;;  %7513 = vpow2.f32 %v3347_v36  ;;  %v2892_v51 = vadd.f32 %v2891_v19, %v2803_v12  ;;  %2841 = vmatmul.bf16.gmra.mxu0 %v8843_v17  ;;  %v7370_v19 = vld [vmem:[%s9255_s19 + $0x4] sm:$0xf] }
 0x3ff   : > { %v3524_v27 = vmul.f32 0.1, %v6800_v5  ;;  %2930 = vmatmul.bf16.gmra.mxu1 %v8845_v59 }
 0x400   : > { %v3208_v46 = vmin.f32 %v3067_v53, 0.0  ;;  %3019 = vmatmul.bf16.gmra.mxu2 %v11269_v31  ;;  %v7386_v31 = vld [vmem:[%s9255_s19 + $0x84] sm:$0xf]  ;;  %vm3144_vm7 = vcmp.gt.f32.partialorder %v3067_v53, 0.0 }
 0x401   : > { %3108 = vmatmul.bf16.gmra.mxu3 %v11270_v41  ;;  %v3588_v15 = vsel %vm3140_vm5, %v9438_v4, %v3524_v27  ;;  %v6921_v41 = vld [vmem:[%s9255_s19 + $0x88] sm:$0xf0] }
 0x402   : > { %v3272_v2 = vmul.f32 10.0, %v3208_v46  ;;  %v9468_v1 = vpack.c.bf16 %v3588_v15, %v3586_v42  ;;  %v6924_v15 = vor.u32 %v7386_v31, %v6921_v41 }
 0x403   : > { %v2980_v17 = vpop.f32.mrf.mxu2  ;;  %v2804_v13 = vpop.f32.mrf.mxu0 }
 0x404   : > { %v3351_v16 = vmul.f32 1.442695, %v3272_v2  ;;  %v2981_v43 = vadd.f32 %v2980_v17, %v2892_v51  ;;  %v3069_v35 = vpop.f32.mrf.mxu3  ;;  %v7514_v10 = vpop.eup %7513  ;;  %v2805_v21 = vadd.f32 %v2804_v13, %v9240_v47  ;;  %v6857_v51 = vld [vmem:[%s9255_s19 + $0x8] sm:$0xf0]  ;;  %4145 = vmatpush.bf16.msra.mxu3 %v6924_v15 }
 0x405   : > { %v2893_v59 = vpop.f32.mrf.mxu1  ;;  %v6802_v24 = vadd.f32 -1.0, %v7514_v10  ;;  %v6860_v46 = vor.u32 %v7370_v19, %v6857_v51 }
 0x406   : > { %7515 = vpow2.f32 %v3351_v16  ;;  %v9471_v49 = vadd.f32 %v3069_v35, %v2981_v43  ;;  %v2894_v63 = vadd.f32 %v2893_v59, %v2805_v21  ;;  %v11272_v16 = vld [vmem:[#allocation113_spill] sm:$0xff] }
 0x407   : > { %v3526_v36 = vmul.f32 0.1, %v6802_v24  ;;  %4056 = vmatpush.bf16.msra.mxu2 %v6860_v46 }
 0x408   : > { %v3210_v4 = vmin.f32 %v9471_v49, 0.0  ;;  %vm3146_vm8 = vcmp.gt.f32.partialorder %v9471_v49, 0.0 }
 0x409   : > { %v3590_v43 = vsel %vm3142_vm6, %v9452_v37, %v3526_v36 }
 0x40a   : > { %v3274_v44 = vmul.f32 10.0, %v3210_v4 }
 0x40b   : > { %v2982_v34 = vpop.f32.mrf.mxu2  ;;  %v2807_v47 = vpop.f32.mrf.mxu0 }
 0x40c   : > { %v7516_v23 = vpop.eup %7515  ;;  %v3355_v22 = vmul.f32 1.442695, %v3274_v44  ;;  %v2983_v6 = vadd.f32 %v2982_v34, %v2894_v63  ;;  %v3071_v8 = vpop.f32.mrf.mxu3  ;;  %v2808_v5 = vadd.f32 %v2807_v47, %v9247_v57  ;;  %v11271_v57 = vld [vmem:[#allocation112_spill] sm:$0xff]  ;;  %v6855_v34 = vld [vmem:[%s9255_s19] sm:$0xf] }
 0x40d   : > { %v6804_v39 = vadd.f32 -1.0, %v7516_v23  ;;  %v2896_v12 = vpop.f32.mrf.mxu1  ;;  %v7371_v23 = vld [vmem:[%s9255_s19 + $0x4] sm:$0xf0] }
 0x40e   : > { %v9477_v27 = vadd.f32 %v3071_v8, %v2983_v6  ;;  %v2897_v42 = vadd.f32 %v2896_v12, %v2808_v5  ;;  %2846 = vmatmul.bf16.gmra.mxu0 %v8877_v29  ;;  %7517 = vpow2.f32 %v3355_v22  ;;  %v6856_v22 = vor.u32 %v7371_v23, %v6855_v34  ;;  %v6919_v6 = vld [vmem:[%s9255_s19 + $0x80] sm:$0xf]  ;;  %v7387_v8 = vld [vmem:[%s9255_s19 + $0x84] sm:$0xf0] }
 0x40f   : > { %v3528_v2 = vmul.f32 0.1, %v6804_v39  ;;  %2935 = vmatmul.bf16.gmra.mxu1 %v8879_v38  ;;  %v6920_v39 = vor.u32 %v7387_v8, %v6919_v6 }
 0x410   : > { %v3212_v17 = vmin.f32 %v9477_v27, 0.0  ;;  %3024 = vmatmul.bf16.gmra.mxu2 %v11271_v57  ;;  %3878 = vmatpush.bf16.msra.mxu0 %v6856_v22  ;;  %vm3148_vm9 = vcmp.gt.f32.partialorder %v9477_v27, 0.0 }
 0x411   : > { %3113 = vmatmul.bf16.gmra.mxu3 %v11272_v16  ;;  %v3592_v35 = vsel %vm3144_vm7, %v3067_v53, %v3528_v2  ;;  %3967 = vmatpush.bf16.msra.mxu1 %v6920_v39 }
 0x412   : > { %v3276_v29 = vmul.f32 10.0, %v3212_v17  ;;  %v9488_v13 = vpack.c.bf16 %v3592_v35, %v3590_v43  ;;  %v11274_v35 = vld [vmem:[#allocation116_spill] sm:$0xff] }
 0x413   : > { %v2985_v10 = vpop.f32.mrf.mxu2  ;;  %v2809_v63 = vpop.f32.mrf.mxu0 }
 0x414   : > { %v3359_v21 = vmul.f32 1.442695, %v3276_v29  ;;  %v2986_v38 = vadd.f32 %v2985_v10, %v2897_v42  ;;  %v3074_v59 = vpop.f32.mrf.mxu3  ;;  %v2810_v24 = vadd.f32 %v2809_v63, %v9250_v61  ;;  %v7518_v44 = vpop.eup %7517 }
 0x415   : > { %v2898_v4 = vpop.f32.mrf.mxu1  ;;  %v6806_v47 = vadd.f32 -1.0, %v7518_v44 }
 0x416   : > { %7519 = vpow2.f32 %v3359_v21  ;;  %v9491_v37 = vadd.f32 %v3074_v59, %v2986_v38  ;;  %v2899_v53 = vadd.f32 %v2898_v4, %v2810_v24 }
 0x417   : > { %v3530_v41 = vmul.f32 0.1, %v6806_v47 }
 0x418   : > { %v3214_v36 = vmin.f32 %v9491_v37, 0.0  ;;  %vm3150_vm10 = vcmp.gt.f32.partialorder %v9491_v37, 0.0 }
 0x419   : > { %v3594_v29 = vsel %vm3146_vm8, %v9471_v49, %v3530_v41 }
 0x41a   : > { %v3278_v5 = vmul.f32 10.0, %v3214_v36 }
 0x41b   : > { %v2987_v61 = vpop.f32.mrf.mxu2  ;;  %v2812_v31 = vpop.f32.mrf.mxu0 }
 0x41c   : > { %v7520_v12 = vpop.eup %7519  ;;  %v3363_v19 = vmul.f32 1.442695, %v3278_v5  ;;  %v2988_v51 = vadd.f32 %v2987_v61, %v2899_v53  ;;  %v3076_v46 = vpop.f32.mrf.mxu3  ;;  %v2813_v15 = vadd.f32 %v2812_v31, %v9266_v33  ;;  %v11273_v33 = vld [vmem:[#allocation115_spill] sm:$0xff] }
 0x41d   : > { %v6808_v42 = vadd.f32 -1.0, %v7520_v12  ;;  %v2901_v2 = vpop.f32.mrf.mxu1 }
 0x41e   : > { %v9502_v17 = vadd.f32 %v3076_v46, %v2988_v51  ;;  %7521 = vpow2.f32 %v3363_v19  ;;  %v2902_v57 = vadd.f32 %v2901_v2, %v2813_v15  ;;  %2851 = vmatmul.bf16.gmra.mxu0 %v8919_v48  ;;  %v7416_v51 = vld [vmem:[%s9526_s25 + $0x74] sm:$0xf]  ;;  %v7105_v46 = vld [vmem:[%s9526_s25 + $0x78] sm:$0xf0] }
 0x41f   : > { %v3532_v16 = vmul.f32 0.1, %v6808_v42  ;;  %2940 = vmatmul.bf16.gmra.mxu1 %v8921_v40  ;;  %v7108_v41 = vor.u32 %v7416_v51, %v7105_v46  ;;  %v7424_v42 = vld [vmem:[%s9526_s25 + $0xb4] sm:$0xf]  ;;  %v7137_v15 = vld [vmem:[%s9526_s25 + $0xb8] sm:$0xf0] }
 0x420   : > { %v3216_v43 = vmin.f32 %v9502_v17, 0.0  ;;  %3029 = vmatmul.bf16.gmra.mxu2 %v11273_v33  ;;  %vm3152_vm11 = vcmp.gt.f32.partialorder %v9502_v17, 0.0  ;;  %v11275_v51 = vld [vmem:[#allocation105_spill] sm:$0xff] }
 0x421   : > { %3118 = vmatmul.bf16.gmra.mxu3 %v11274_v35  ;;  %v3596_v10 = vsel %vm3148_vm9, %v9477_v27, %v3532_v16  ;;  %5148 = vmatpush.bf16.msrb.mxu2 %v7108_v41 }
 0x422   : > { %v3280_v21 = vmul.f32 10.0, %v3216_v43  ;;  %v9517_v48 = vpack.c.bf16 %v3596_v10, %v3594_v29 }
 0x423   : > { %v2990_v38 = vpop.f32.mrf.mxu2  ;;  %v2814_v4 = vpop.f32.mrf.mxu0 }
 0x424   : > { %v3367_v59 = vmul.f32 1.442695, %v3280_v21  ;;  %v2991_v63 = vadd.f32 %v2990_v38, %v2902_v57  ;;  %v3079_v24 = vpop.f32.mrf.mxu3  ;;  %v7522_v44 = vpop.eup %7521  ;;  %v2815_v40 = vadd.f32 %v2814_v4, %v9273_v30  ;;  %v7140_v57 = vor.u32 %v7424_v42, %v7137_v15 }
 0x425   : > { %v2903_v53 = vpop.f32.mrf.mxu1  ;;  %v6810_v27 = vadd.f32 -1.0, %v7522_v44 }
 0x426   : > { %7523 = vpow2.f32 %v3367_v59  ;;  %v9520_v34 = vadd.f32 %v3079_v24, %v2991_v63  ;;  %v2904_v49 = vadd.f32 %v2903_v53, %v2815_v40  ;;  %5241 = vmatpush.bf16.msrb.mxu3 %v7140_v57  ;;  %v7103_v63 = vld [vmem:[%s9526_s25 + $0x70] sm:$0xf]  ;;  %v7417_v24 = vld [vmem:[%s9526_s25 + $0x74] sm:$0xf0] }
 0x427   : > { %v3534_v6 = vmul.f32 0.1, %v6810_v27  ;;  %v7104_v44 = vor.u32 %v7417_v24, %v7103_v63  ;;  %v7135_v40 = vld [vmem:[%s9526_s25 + $0xb0] sm:$0xf]  ;;  %v7425_v53 = vld [vmem:[%s9526_s25 + $0xb4] sm:$0xf0] }
 0x428   : > { %v3218_v23 = vmin.f32 %v9520_v34, 0.0  ;;  %v7136_v27 = vor.u32 %v7425_v53, %v7135_v40  ;;  %vm3154_vm12 = vcmp.gt.f32.partialorder %v9520_v34, 0.0  ;;  %v7414_v40 = vld [vmem:[%s9526_s25 + $0x64] sm:$0xf]  ;;  %v7097_v53 = vld [vmem:[%s9526_s25 + $0x68] sm:$0xf0] }
 0x429   : > { %v3598_v43 = vsel %vm3150_vm10, %v9491_v37, %v3534_v6  ;;  %4970 = vmatpush.bf16.msrb.mxu0 %v7104_v44 }
 0x42a   : > { %v3282_v36 = vmul.f32 10.0, %v3218_v23  ;;  %5063 = vmatpush.bf16.msrb.mxu1 %v7136_v27  ;;  %v7100_v27 = vor.u32 %v7414_v40, %v7097_v53 }
 0x42b   : > { %v2992_v30 = vpop.f32.mrf.mxu2  ;;  %v2817_v5 = vpop.f32.mrf.mxu0 }
 0x42c   : > { %v7524_v22 = vpop.eup %7523  ;;  %v3371_v8 = vmul.f32 1.442695, %v3282_v36  ;;  %v2993_v47 = vadd.f32 %v2992_v30, %v2904_v49  ;;  %v3081_v39 = vpop.f32.mrf.mxu3  ;;  %v2818_v12 = vadd.f32 %v2817_v5, %v9280_v55  ;;  %5149 = vmatpush.bf16.msrb.mxu2 %v7100_v27 }
 0x42d   : > { %v6812_v61 = vadd.f32 -1.0, %v7524_v22  ;;  %v2906_v19 = vpop.f32.mrf.mxu1 }
 0x42e   : > { %v9531_v31 = vadd.f32 %v3081_v39, %v2993_v47  ;;  %v2907_v2 = vadd.f32 %v2906_v19, %v2818_v12  ;;  %2856 = vmatmul.bf16.gmra.mxu0 %v8953_v28  ;;  %7525 = vpow2.f32 %v3371_v8 }
 0x42f   : > { %v3536_v16 = vmul.f32 0.1, %v6812_v61  ;;  %2945 = vmatmul.bf16.gmra.mxu1 %v8955_v11 }
 0x430   : > { %v3220_v55 = vmin.f32 %v9531_v31, 0.0  ;;  %3034 = vmatmul.bf16.gmra.mxu2 %v8957_v45  ;;  %vm3156_vm13 = vcmp.gt.f32.partialorder %v9531_v31, 0.0 }
 0x431   : > { %3123 = vmatmul.bf16.gmra.mxu3 %v8960_v0  ;;  %v3600_v28 = vsel %vm3152_vm11, %v9502_v17, %v3536_v16 }
 0x432   : > { %v3284_v33 = vmul.f32 10.0, %v3220_v55  ;;  %v9544_v35 = vpack.c.bf16 %v3600_v28, %v3598_v43 }
 0x433   : > { %v2995_v29 = vpop.f32.mrf.mxu2  ;;  %v2819_v45 = vpop.f32.mrf.mxu0 }
 0x434   : > { %v3375_v10 = vmul.f32 1.442695, %v3284_v33  ;;  %v2996_v11 = vadd.f32 %v2995_v29, %v2907_v2  ;;  %v3084_v21 = vpop.f32.mrf.mxu3  ;;  %v2820_v0 = vadd.f32 %v2819_v45, %v9283_v3  ;;  %v7526_v59 = vpop.eup %7525 }
 0x435   : > { %v2908_v38 = vpop.f32.mrf.mxu1  ;;  %v6814_v49 = vadd.f32 -1.0, %v7526_v59 }
 0x436   : > { %7527 = vpow2.f32 %v3375_v10  ;;  %v9547_v37 = vadd.f32 %v3084_v21, %v2996_v11  ;;  %v2909_v17 = vadd.f32 %v2908_v38, %v2820_v0 }
 0x437   : > { %v3538_v47 = vmul.f32 0.1, %v6814_v49 }
 0x438   : > { %v3222_v4 = vmin.f32 %v9547_v37, 0.0  ;;  %vm3158_vm14 = vcmp.gt.f32.partialorder %v9547_v37, 0.0 }
 0x43a   : > { %v3286_v23 = vmul.f32 10.0, %v3222_v4 }
 0x43b   : > { %v2997_v36 = vpop.f32.mrf.mxu2  ;;  %v2822_v8 = vpop.f32.mrf.mxu0 }
 0x43c   : > { %v7528_v3 = vpop.eup %7527  ;;  %v3379_v30 = vmul.f32 1.442695, %v3286_v23  ;;  %v2998_v22 = vadd.f32 %v2997_v36, %v2909_v17  ;;  %v3086_v6 = vpop.f32.mrf.mxu3  ;;  %v2823_v5 = vadd.f32 %v2822_v8, %v9294_v20  ;;  %v3602_v20 = vsel %vm3154_vm12, %v9520_v34, %v3538_v47  ;;  %v11276_v36 = vld [vmem:[#allocation108_spill] sm:$0xff] }
 0x43d   : > { %v6816_v39 = vadd.f32 -1.0, %v7528_v3  ;;  %v2911_v61 = vpop.f32.mrf.mxu1 }
 0x43e   : > { %v3087_v12 = vadd.f32 %v3086_v6, %v2998_v22  ;;  %7529 = vpow2.f32 %v3379_v30  ;;  %v2912_v19 = vadd.f32 %v2911_v61, %v2823_v5  ;;  %3879 = vmatmul.bf16.vlgmr.msra.gmra.mxu0 %v11275_v51 }
 0x43f   : > { %v3540_v46 = vmul.f32 0.1, %v6816_v39  ;;  %3968 = vmatmul.bf16.vlgmr.msra.gmra.mxu1 %v9429_v26 }
 0x440   : > { %v3224_v41 = vmin.f32 %v3087_v12, 0.0  ;;  %4057 = vmatmul.bf16.vlgmr.msra.gmra.mxu2 %v11275_v51  ;;  %vm3160_vm15 = vcmp.gt.f32.partialorder %v3087_v12, 0.0 }
 0x441   : > { %4146 = vmatmul.bf16.vlgmr.msra.gmra.mxu3 %v9429_v26  ;;  %v3604_v42 = vsel %vm3156_vm13, %v9531_v31, %v3540_v46 }
 0x442   : > { %v3288_v15 = vmul.f32 10.0, %v3224_v41  ;;  %v9563_v2 = vpack.c.bf16 %v3604_v42, %v3602_v20  ;;  %v7095_v42 = vld [vmem:[%s9526_s25 + $0x60] sm:$0xf] }
 0x443   : > { %v3000_v57 = vpop.f32.mrf.mxu2  ;;  %v2824_v28 = vpop.f32.mrf.mxu0 }
 0x444   : > { %v3383_v16 = vmul.f32 1.442695, %v3288_v15  ;;  %v3001_v55 = vadd.f32 %v3000_v57, %v2912_v19  ;;  %v3089_v43 = vpop.f32.mrf.mxu3  ;;  %v7530_v33 = vpop.eup %7529  ;;  %v2825_v29 = vadd.f32 %v2824_v28, %v9301_v56 }
 0x445   : > { %v2913_v10 = vpop.f32.mrf.mxu1  ;;  %v6818_v34 = vadd.f32 -1.0, %v7530_v33 }
 0x446   : > { %7531 = vpow2.f32 %v3383_v16  ;;  %v9566_v11 = vadd.f32 %v3089_v43, %v3001_v55  ;;  %v2914_v26 = vadd.f32 %v2913_v10, %v2825_v29 }
 0x447   : > { %v3542_v38 = vmul.f32 0.1, %v6818_v34 }
 0x448   : > { %v3226_v31 = vmin.f32 %v9566_v11, 0.0  ;;  %vm3162_vm0 = vcmp.gt.f32.partialorder %v9566_v11, 0.0 }
 0x44a   : > { %v3290_v21 = vmul.f32 10.0, %v3226_v31 }
 0x44b   : > { %v3002_v45 = vpop.f32.mrf.mxu2  ;;  %v2827_v24 = vpop.f32.mrf.mxu0 }
 0x44c   : > { %v7532_v0 = vpop.eup %7531  ;;  %v3387_v59 = vmul.f32 1.442695, %v3290_v21  ;;  %v3003_v17 = vadd.f32 %v3002_v45, %v2914_v26  ;;  %v3091_v63 = vpop.f32.mrf.mxu3  ;;  %v2828_v56 = vadd.f32 %v2827_v24, %v9308_v50  ;;  %v3606_v50 = vsel %vm3158_vm14, %v9547_v37, %v3542_v38  ;;  %v7415_v37 = vld [vmem:[%s9526_s25 + $0x64] sm:$0xf0] }
 0x44d   : > { %v6820_v4 = vadd.f32 -1.0, %v7532_v0  ;;  %v2916_v44 = vpop.f32.mrf.mxu1  ;;  %v7096_v15 = vor.u32 %v7415_v37, %v7095_v42  ;;  %v11277_v0 = vld [vmem:[#allocation111_spill] sm:$0xff]  ;;  %v7422_v37 = vld [vmem:[%s9526_s25 + $0xa4] sm:$0xf] }
 0x44e   : > { %v3092_v49 = vadd.f32 %v3091_v63, %v3003_v17  ;;  %v2917_v23 = vadd.f32 %v2916_v44, %v2828_v56  ;;  %3884 = vmatmul.bf16.gmra.mxu0 %v11276_v36  ;;  %7533 = vpow2.f32 %v3387_v59 }
 0x44f   : > { %v3544_v3 = vmul.f32 0.1, %v6820_v4  ;;  %3973 = vmatmul.bf16.gmra.mxu1 %v9449_v62  ;;  %4971 = vmatpush.bf16.msrb.mxu0 %v7096_v15 }
 0x450   : > { %v3228_v30 = vmin.f32 %v3092_v49, 0.0  ;;  %4062 = vmatmul.bf16.gmra.mxu2 %v11276_v36  ;;  %vm3164_vm1 = vcmp.gt.f32.partialorder %v3092_v49, 0.0 }
 0x451   : > { %4151 = vmatmul.bf16.gmra.mxu3 %v9449_v62  ;;  %v3608_v22 = vsel %vm3160_vm15, %v3087_v12, %v3544_v3 }
 0x452   : > { %v3292_v6 = vmul.f32 10.0, %v3228_v30  ;;  %v9578_v8 = vpack.c.bf16 %v3608_v22, %v3606_v50 }
 0x453   : > { %v3005_v47 = vpop.f32.mrf.mxu2  ;;  %v2829_v19 = vpop.f32.mrf.mxu0 }
 0x454   : > { %v3391_v39 = vmul.f32 1.442695, %v3292_v6  ;;  %v3006_v5 = vadd.f32 %v3005_v47, %v2917_v23  ;;  %v3094_v61 = vpop.f32.mrf.mxu3  ;;  %v2830_v51 = vadd.f32 %v2829_v19, %v9311_v52  ;;  %v7534_v41 = vpop.eup %7533 }
 0x455   : > { %v2918_v46 = vpop.f32.mrf.mxu1  ;;  %v6822_v57 = vadd.f32 -1.0, %v7534_v41  ;;  %v7089_v41 = vld [vmem:[%s9526_s25 + $0x58] sm:$0xf0] }
 0x456   : > { %7535 = vpow2.f32 %v3391_v39  ;;  %v9581_v62 = vadd.f32 %v3094_v61, %v3006_v5  ;;  %v2919_v20 = vadd.f32 %v2918_v46, %v2830_v51  ;;  %v7412_v46 = vld [vmem:[%s9526_s25 + $0x54] sm:$0xf] }
 0x457   : > { %v3546_v10 = vmul.f32 0.1, %v6822_v57  ;;  %v7092_v42 = vor.u32 %v7412_v46, %v7089_v41  ;;  %v11278_v57 = vld [vmem:[#allocation114_spill] sm:$0xff] }
 0x458   : > { %v3230_v12 = vmin.f32 %v9581_v62, 0.0  ;;  %vm3166_vm2 = vcmp.gt.f32.partialorder %v9581_v62, 0.0 }
 0x459   : > { %v3610_v17 = vsel %vm3162_vm0, %v9566_v11, %v3546_v10  ;;  %5150 = vmatpush.bf16.msrb.mxu2 %v7092_v42 }
 0x45a   : > { %v3294_v16 = vmul.f32 10.0, %v3230_v12  ;;  %v7129_v12 = vld [vmem:[%s9526_s25 + $0xa8] sm:$0xf0] }
 0x45b   : > { %v3007_v55 = vpop.f32.mrf.mxu2  ;;  %v2832_v52 = vpop.f32.mrf.mxu0 }
 0x45c   : > { %v7536_v43 = vpop.eup %7535  ;;  %v3395_v28 = vmul.f32 1.442695, %v3294_v16  ;;  %v3008_v33 = vadd.f32 %v3007_v55, %v2919_v20  ;;  %v3096_v29 = vpop.f32.mrf.mxu3  ;;  %v2833_v34 = vadd.f32 %v2832_v52, %v9322_v25  ;;  %v7132_v16 = vor.u32 %v7422_v37, %v7129_v12 }
 0x45d   : > { %v6824_v26 = vadd.f32 -1.0, %v7536_v43  ;;  %v2921_v31 = vpop.f32.mrf.mxu1 }
 0x45e   : > { %v3097_v21 = vadd.f32 %v3096_v29, %v3008_v33  ;;  %7537 = vpow2.f32 %v3395_v28  ;;  %v2922_v45 = vadd.f32 %v2921_v31, %v2833_v34  ;;  %3889 = vmatmul.bf16.gmra.mxu0 %v11277_v0  ;;  %5242 = vmatpush.bf16.msrb.mxu3 %v7132_v16 }
 0x45f   : > { %v3548_v38 = vmul.f32 0.1, %v6824_v26  ;;  %3978 = vmatmul.bf16.gmra.mxu1 %v9468_v1 }
 0x460   : > { %v3232_v59 = vmin.f32 %v3097_v21, 0.0  ;;  %4067 = vmatmul.bf16.gmra.mxu2 %v11277_v0  ;;  %vm3168_vm3 = vcmp.gt.f32.partialorder %v3097_v21, 0.0 }
 0x461   : > { %4156 = vmatmul.bf16.gmra.mxu3 %v9468_v1  ;;  %v3612_v25 = vsel %vm3164_vm1, %v3092_v49, %v3548_v38  ;;  %v7087_v38 = vld [vmem:[%s9526_s25 + $0x50] sm:$0xf] }
 0x462   : > { %v3296_v63 = vmul.f32 10.0, %v3232_v59  ;;  %v9593_v24 = vpack.c.bf16 %v3612_v25, %v3610_v17  ;;  %v7413_v59 = vld [vmem:[%s9526_s25 + $0x54] sm:$0xf0] }
 0x463   : > { %v3010_v4 = vpop.f32.mrf.mxu2  ;;  %v2834_v53 = vpop.f32.mrf.mxu0  ;;  %v7088_v25 = vor.u32 %v7413_v59, %v7087_v38 }
 0x464   : > { %v3399_v56 = vmul.f32 1.442695, %v3296_v63  ;;  %v3011_v44 = vadd.f32 %v3010_v4, %v2922_v45  ;;  %v3099_v40 = vpop.f32.mrf.mxu3  ;;  %v7538_v27 = vpop.eup %7537  ;;  %v2835_v23 = vadd.f32 %v2834_v53, %v9329_v60  ;;  %v7127_v63 = vld [vmem:[%s9526_s25 + $0xa0] sm:$0xf]  ;;  %v7423_v4 = vld [vmem:[%s9526_s25 + $0xa4] sm:$0xf0] }
 0x465   : > { %v2923_v36 = vpop.f32.mrf.mxu1  ;;  %v6826_v11 = vadd.f32 -1.0, %v7538_v27  ;;  %4972 = vmatpush.bf16.msrb.mxu0 %v7088_v25 }
 0x466   : > { %7539 = vpow2.f32 %v3399_v56  ;;  %v9596_v3 = vadd.f32 %v3099_v40, %v3011_v44  ;;  %v2924_v1 = vadd.f32 %v2923_v36, %v2835_v23  ;;  %v7128_v44 = vor.u32 %v7423_v4, %v7127_v63 }
 0x467   : > { %v3550_v6 = vmul.f32 0.1, %v6826_v11 }
 0x468   : > { %v3234_v49 = vmin.f32 %v9596_v3, 0.0  ;;  %5064 = vmatpush.bf16.msrb.mxu1 %v7128_v44  ;;  %vm3170_vm4 = vcmp.gt.f32.partialorder %v9596_v3, 0.0 }
 0x46a   : > { %v3298_v30 = vmul.f32 10.0, %v3234_v49 }
 0x46b   : > { %v3012_v50 = vpop.f32.mrf.mxu2  ;;  %v2837_v60 = vpop.f32.mrf.mxu0 }
 0x46c   : > { %v7540_v22 = vpop.eup %7539  ;;  %v3403_v47 = vmul.f32 1.442695, %v3298_v30  ;;  %v3013_v39 = vadd.f32 %v3012_v50, %v2924_v1  ;;  %v3101_v5 = vpop.f32.mrf.mxu3  ;;  %v2838_v19 = vadd.f32 %v2837_v60, %v9336_v18  ;;  %v3614_v18 = vsel %vm3166_vm2, %v9581_v62, %v3550_v6 }
 0x46d   : > { %v6828_v61 = vadd.f32 -1.0, %v7540_v22  ;;  %v2926_v51 = vpop.f32.mrf.mxu1 }
 0x46e   : > { %v9602_v20 = vadd.f32 %v3101_v5, %v3013_v39  ;;  %v2927_v15 = vadd.f32 %v2926_v51, %v2838_v19  ;;  %3894 = vmatmul.bf16.gmra.mxu0 %v11278_v57  ;;  %7541 = vpow2.f32 %v3403_v47  ;;  %v11279_v47 = vld [vmem:[#allocation117_spill] sm:$0xff] }
 0x46f   : > { %v3552_v55 = vmul.f32 0.1, %v6828_v61  ;;  %3983 = vmatmul.bf16.gmra.mxu1 %v9488_v13 }
 0x470   : > { %v3236_v43 = vmin.f32 %v9602_v20, 0.0  ;;  %4072 = vmatmul.bf16.gmra.mxu2 %v11278_v57  ;;  %vm3172_vm5 = vcmp.gt.f32.partialorder %v9602_v20, 0.0 }
 0x471   : > { %4161 = vmatmul.bf16.gmra.mxu3 %v9488_v13  ;;  %v3616_v28 = vsel %vm3168_vm3, %v3097_v21, %v3552_v55 }
 0x472   : > { %v3300_v33 = vmul.f32 10.0, %v3236_v43  ;;  %v9613_v29 = vpack.c.bf16 %v3616_v28, %v3614_v18 }
 0x473   : > { %v3015_v52 = vpop.f32.mrf.mxu2  ;;  %v2839_v31 = vpop.f32.mrf.mxu0 }
 0x474   : > { %v3407_v10 = vmul.f32 1.442695, %v3300_v33  ;;  %v3016_v26 = vadd.f32 %v3015_v52, %v2927_v15  ;;  %v3104_v34 = vpop.f32.mrf.mxu3  ;;  %v2840_v45 = vadd.f32 %v2839_v31, %v9339_v54  ;;  %v7542_v0 = vpop.eup %7541 }
 0x475   : > { %v2928_v13 = vpop.f32.mrf.mxu1  ;;  %v6830_v56 = vadd.f32 -1.0, %v7542_v0 }
 0x476   : > { %7543 = vpow2.f32 %v3407_v10  ;;  %v9616_v62 = vadd.f32 %v3104_v34, %v3016_v26  ;;  %v2929_v21 = vadd.f32 %v2928_v13, %v2840_v45  ;;  %v7410_v45 = vld [vmem:[%s9526_s25 + $0x44] sm:$0xf]  ;;  %v7081_v13 = vld [vmem:[%s9526_s25 + $0x48] sm:$0xf0] }
 0x477   : > { %v3554_v11 = vmul.f32 0.1, %v6830_v56 }
 0x478   : > { %v3238_v17 = vmin.f32 %v9616_v62, 0.0  ;;  %vm3174_vm6 = vcmp.gt.f32.partialorder %v9616_v62, 0.0 }
 0x47a   : > { %v3302_v40 = vmul.f32 10.0, %v3238_v17 }
 0x47b   : > { %v3017_v53 = vpop.f32.mrf.mxu2  ;;  %v2842_v1 = vpop.f32.mrf.mxu0 }
 0x47c   : > { %v7544_v54 = vpop.eup %7543  ;;  %v3411_v27 = vmul.f32 1.442695, %v3302_v40  ;;  %v3018_v23 = vadd.f32 %v3017_v53, %v2929_v21  ;;  %v3106_v36 = vpop.f32.mrf.mxu3  ;;  %v2843_v30 = vadd.f32 %v2842_v1, %v9350_v14  ;;  %v3618_v14 = vsel %vm3170_vm4, %v9596_v3, %v3554_v11  ;;  %v7079_v1 = vld [vmem:[%s9526_s25 + $0x40] sm:$0xf] }
 0x47d   : > { %v6832_v49 = vadd.f32 -1.0, %v7544_v54  ;;  %v2931_v50 = vpop.f32.mrf.mxu1  ;;  %v7084_v21 = vor.u32 %v7410_v45, %v7081_v13 }
 0x47e   : > { %v3107_v22 = vadd.f32 %v3106_v36, %v3018_v23  ;;  %7545 = vpow2.f32 %v3411_v27  ;;  %v2932_v6 = vadd.f32 %v2931_v50, %v2843_v30  ;;  %3899 = vmatmul.bf16.gmra.mxu0 %v11279_v47 }
 0x47f   : > { %v3556_v39 = vmul.f32 0.1, %v6832_v49  ;;  %3988 = vmatmul.bf16.gmra.mxu1 %v9517_v48  ;;  %5151 = vmatpush.bf16.msrb.mxu2 %v7084_v21 }
 0x480   : > { %v3240_v5 = vmin.f32 %v3107_v22, 0.0  ;;  %4077 = vmatmul.bf16.gmra.mxu2 %v11279_v47  ;;  %vm3176_vm7 = vcmp.gt.f32.partialorder %v3107_v22, 0.0 }
 0x481   : > { %4166 = vmatmul.bf16.gmra.mxu3 %v9517_v48  ;;  %v3620_v60 = vsel %vm3172_vm5, %v9602_v20, %v3556_v39 }
 0x482   : > { %v3304_v61 = vmul.f32 10.0, %v3240_v5  ;;  %v9632_v19 = vpack.c.bf16 %v3620_v60, %v3618_v14 }
 0x483   : > { %v3020_v51 = vpop.f32.mrf.mxu2  ;;  %v2844_v37 = vpop.f32.mrf.mxu0 }
 0x484   : > { %v3415_v46 = vmul.f32 1.442695, %v3304_v61  ;;  %v3021_v41 = vadd.f32 %v3020_v51, %v2932_v6  ;;  %v3109_v42 = vpop.f32.mrf.mxu3  ;;  %v7546_v12 = vpop.eup %7545  ;;  %v2845_v15 = vadd.f32 %v2844_v37, %v9357_v7  ;;  %v11280_v61 = vld [vmem:[#allocation80_spill] sm:$0xff]  ;;  %v11281_v37 = vld [vmem:[#allocation118_spill] sm:$0xff] }
 0x485   : > { %v2933_v57 = vpop.f32.mrf.mxu1  ;;  %v6834_v3 = vadd.f32 -1.0, %v7546_v12 }
 0x486   : > { %7547 = vpow2.f32 %v3415_v46  ;;  %v9635_v16 = vadd.f32 %v3109_v42, %v3021_v41  ;;  %v2934_v48 = vadd.f32 %v2933_v57, %v2845_v15 }
 0x487   : > { %v3558_v28 = vmul.f32 0.1, %v6834_v3 }
 0x488   : > { %v3242_v20 = vmin.f32 %v9635_v16, 0.0  ;;  %vm3178_vm8 = vcmp.gt.f32.partialorder %v9635_v16, 0.0 }
 0x48a   : > { %v3306_v55 = vmul.f32 10.0, %v3242_v20 }
 0x48b   : > { %v3022_v43 = vpop.f32.mrf.mxu2  ;;  %v2847_v26 = vpop.f32.mrf.mxu0 }
 0x48c   : > { %v7548_v18 = vpop.eup %7547  ;;  %v3419_v33 = vmul.f32 1.442695, %v3306_v55  ;;  %v3023_v52 = vadd.f32 %v3022_v43, %v2934_v48  ;;  %v3111_v10 = vpop.f32.mrf.mxu3  ;;  %v2848_v7 = vadd.f32 %v2847_v26, %v9364_v32  ;;  %v3622_v32 = vsel %vm3174_vm6, %v9616_v62, %v3558_v28  ;;  %v7411_v62 = vld [vmem:[%s9526_s25 + $0x44] sm:$0xf0] }
 0x48d   : > { %v6836_v34 = vadd.f32 -1.0, %v7548_v18  ;;  %v2936_v31 = vpop.f32.mrf.mxu1  ;;  %v7080_v49 = vor.u32 %v7411_v62, %v7079_v1  ;;  %v7408_v62 = vld [vmem:[%s9526_s25 + $0x34] sm:$0xf] }
 0x48e   : > { %v3112_v0 = vadd.f32 %v3111_v10, %v3023_v52  ;;  %v2937_v38 = vadd.f32 %v2936_v31, %v2848_v7  ;;  %3904 = vmatmul.bf16.gmra.mxu0 %v8977_v9  ;;  %7549 = vpow2.f32 %v3419_v33  ;;  %v11282_v52 = vld [vmem:[#allocation81_spill] sm:$0xff] }
 0x48f   : > { %v3560_v59 = vmul.f32 0.1, %v6836_v34  ;;  %3993 = vmatmul.bf16.gmra.mxu1 %v9544_v35  ;;  %4973 = vmatpush.bf16.msrb.mxu0 %v7080_v49 }
 0x490   : > { %v3244_v17 = vmin.f32 %v3112_v0, 0.0  ;;  %4082 = vmatmul.bf16.gmra.mxu2 %v8977_v9  ;;  %vm3180_vm9 = vcmp.gt.f32.partialorder %v3112_v0, 0.0 }
 0x491   : > { %4171 = vmatmul.bf16.gmra.mxu3 %v9544_v35  ;;  %v3624_v25 = vsel %vm3176_vm7, %v3107_v22, %v3560_v59 }
 0x492   : > { %v3308_v63 = vmul.f32 10.0, %v3244_v17  ;;  %v9647_v4 = vpack.c.bf16 %v3624_v25, %v3622_v32 }
 0x493   : > { %v3025_v56 = vpop.f32.mrf.mxu2  ;;  %v2849_v54 = vpop.f32.mrf.mxu0 }
 0x494   : > { %v3423_v44 = vmul.f32 1.442695, %v3308_v63  ;;  %v3026_v40 = vadd.f32 %v3025_v56, %v2937_v38  ;;  %v3114_v53 = vpop.f32.mrf.mxu3  ;;  %v2850_v27 = vadd.f32 %v2849_v54, %v9367_v58  ;;  %v7550_v9 = vpop.eup %7549  ;;  %v11283_v63 = vld [vmem:[#allocation10_spill] sm:$0xff]  ;;  %v11284_v54 = vld [vmem:[#allocation119_spill] sm:$0xff] }
 0x495   : > { %v2938_v23 = vpop.f32.mrf.mxu1  ;;  %v6838_v30 = vadd.f32 -1.0, %v7550_v9 }
 0x496   : > { %7551 = vpow2.f32 %v3423_v44  ;;  %v9650_v35 = vadd.f32 %v3114_v53, %v3026_v40  ;;  %v2939_v36 = vadd.f32 %v2938_v23, %v2850_v27 }
 0x497   : > { %v3562_v14 = vmul.f32 0.1, %v6838_v30 }
 0x498   : > { %v3246_v11 = vmin.f32 %v9650_v35, 0.0  ;;  %vm3182_vm10 = vcmp.gt.f32.partialorder %v9650_v35, 0.0 }
 0x499   : > { %v3626_v57 = vsel %vm3178_vm8, %v9635_v16, %v3562_v14 }
 0x49a   : > { %v3310_v50 = vmul.f32 10.0, %v3246_v11  ;;  %v7073_v11 = vld [vmem:[%s9526_s25 + $0x38] sm:$0xf0] }
 0x49b   : > { %v3027_v22 = vpop.f32.mrf.mxu2  ;;  %v2852_v58 = vpop.f32.mrf.mxu0 }
 0x49c   : > { %v7552_v6 = vpop.eup %7551  ;;  %v3427_v47 = vmul.f32 1.442695, %v3310_v50  ;;  %v3028_v39 = vadd.f32 %v3027_v22, %v2939_v36  ;;  %v3116_v5 = vpop.f32.mrf.mxu3  ;;  %v2853_v51 = vadd.f32 %v2852_v58, %v11280_v61  ;;  %v7076_v50 = vor.u32 %v7408_v62, %v7073_v11  ;;  %v7420_v22 = vld [vmem:[%s9526_s25 + $0x94] sm:$0xf] }
 0x49d   : > { %v6840_v60 = vadd.f32 -1.0, %v7552_v6  ;;  %v2941_v46 = vpop.f32.mrf.mxu1  ;;  %v7121_v6 = vld [vmem:[%s9526_s25 + $0x98] sm:$0xf0]  ;;  %v11285_v58 = vld [vmem:[#allocation11_spill] sm:$0xff] }
 0x49e   : > { %v3117_v41 = vadd.f32 %v3116_v5, %v3028_v39  ;;  %v2942_v42 = vadd.f32 %v2941_v46, %v2853_v51  ;;  %3909 = vmatmul.bf16.gmra.mxu0 %v11281_v37  ;;  %7553 = vpow2.f32 %v3427_v47  ;;  %5152 = vmatpush.bf16.msrb.mxu2 %v7076_v50  ;;  %v3705_v46 = vld [vmem:[%s514_s30] sm:$0x3] }
 0x49f   : > { %v3564_v12 = vmul.f32 0.1, %v6840_v60  ;;  %3998 = vmatmul.bf16.gmra.mxu1 %v9563_v2 }
 0x4a0   : > { %v3248_v15 = vmin.f32 %v3117_v41, 0.0  ;;  %4087 = vmatmul.bf16.gmra.mxu2 %v11281_v37  ;;  %vm3184_vm11 = vcmp.gt.f32.partialorder %v3117_v41, 0.0 }
 0x4a1   : > { %4176 = vmatmul.bf16.gmra.mxu3 %v9563_v2  ;;  %v3628_v48 = vsel %vm3180_vm9, %v3112_v0, %v3564_v12  ;;  %v9692_v12 = vperm.slane %v3705_v46, 0 }
 0x4a2   : > { %v3312_v3 = vmul.f32 10.0, %v3248_v15  ;;  %v9663_v20 = vpack.c.bf16 %v3628_v48, %v3626_v57  ;;  %v7071_v48 = vld [vmem:[%s9526_s25 + $0x30] sm:$0xf] }
 0x4a3   : > { %v3030_v55 = vpop.f32.mrf.mxu2  ;;  %v2854_v33 = vpop.f32.mrf.mxu0 }
 0x4a4   : > { %v3431_v43 = vmul.f32 1.442695, %v3312_v3  ;;  %v3031_v18 = vadd.f32 %v3030_v55, %v2942_v42  ;;  %v3119_v28 = vpop.f32.mrf.mxu3  ;;  %v2855_v10 = vadd.f32 %v2854_v33, %v11282_v52  ;;  %v7554_v34 = vpop.eup %7553  ;;  %v7409_v3 = vld [vmem:[%s9526_s25 + $0x34] sm:$0xf0]  ;;  %v7119_v55 = vld [vmem:[%s9526_s25 + $0x90] sm:$0xf] }
 0x4a5   : > { %v2943_v26 = vpop.f32.mrf.mxu1  ;;  %v6842_v16 = vadd.f32 -1.0, %v7554_v34 }
 0x4a6   : > { %7555 = vpow2.f32 %v3431_v43  ;;  %v9666_v7 = vadd.f32 %v3119_v28, %v3031_v18  ;;  %v2944_v31 = vadd.f32 %v2943_v26, %v2855_v10  ;;  %v7072_v10 = vor.u32 %v7409_v3, %v7071_v48  ;;  %v7421_v26 = vld [vmem:[%s9526_s25 + $0x94] sm:$0xf0]  ;;  %v11287_v48 = vld [vmem:[#allocation5_spill] sm:$0xff] }
 0x4a7   : > { %v3566_v32 = vmul.f32 0.1, %v6842_v16 }
 0x4a8   : > { %v3250_v2 = vmin.f32 %v9666_v7, 0.0  ;;  %4974 = vmatpush.bf16.msrb.mxu0 %v7072_v10  ;;  %vm3186_vm12 = vcmp.gt.f32.partialorder %v9666_v7, 0.0  ;;  %v7406_v10 = vld [vmem:[%s9526_s25 + $0x24] sm:$0xf] }
 0x4a9   : > { %v3630_v9 = vsel %vm3182_vm10, %v9650_v35, %v3566_v32  ;;  %v7124_v35 = vor.u32 %v7420_v22, %v7121_v6 }
 0x4aa   : > { %v3314_v45 = vmul.f32 10.0, %v3250_v2 }
 0x4ab   : > { %v3032_v13 = vpop.f32.mrf.mxu2  ;;  %v2857_v17 = vpop.f32.mrf.mxu0  ;;  %5243 = vmatpush.bf16.msrb.mxu3 %v7124_v35 }
 0x4ac   : > { %v7556_v0 = vpop.eup %7555  ;;  %v3435_v21 = vmul.f32 1.442695, %v3314_v45  ;;  %v3033_v38 = vadd.f32 %v3032_v13, %v2944_v31  ;;  %v3121_v59 = vpop.f32.mrf.mxu3  ;;  %v2858_v56 = vadd.f32 %v2857_v17, %v11283_v63  ;;  %v7120_v45 = vor.u32 %v7421_v26, %v7119_v55  ;;  %v7065_v26 = vld [vmem:[%s9526_s25 + $0x28] sm:$0xf0] }
 0x4ad   : > { %v6844_v25 = vadd.f32 -1.0, %v7556_v0  ;;  %v2946_v44 = vpop.f32.mrf.mxu1 }
 0x4ae   : > { %v9670_v40 = vadd.f32 %v3121_v59, %v3033_v38  ;;  %v2947_v53 = vadd.f32 %v2946_v44, %v2858_v56  ;;  %3914 = vmatmul.bf16.gmra.mxu0 %v11284_v54  ;;  %7557 = vpow2.f32 %v3435_v21  ;;  %v11286_v21 = vld [vmem:[#allocation120_spill] sm:$0xff]  ;;  %v9704_v38 = vperm.slane %v3705_v46, 1  ;;  %5065 = vmatpush.bf16.msrb.mxu1 %v7120_v45 }
 0x4af   : > { %v3568_v27 = vmul.f32 0.1, %v6844_v25  ;;  %4003 = vmatmul.bf16.gmra.mxu1 %v9578_v8 }
 0x4b0   : > { %v3252_v23 = vmin.f32 %v9670_v40, 0.0  ;;  %4092 = vmatmul.bf16.gmra.mxu2 %v11284_v54  ;;  %vm3188_vm13 = vcmp.gt.f32.partialorder %v9670_v40, 0.0 }
 0x4b1   : > { %4181 = vmatmul.bf16.gmra.mxu3 %v9578_v8  ;;  %v3632_v36 = vsel %vm3184_vm11, %v3117_v41, %v3568_v27 }
 0x4b2   : > { %v3316_v1 = vmul.f32 10.0, %v3252_v23  ;;  %v9681_v49 = vpack.c.bf16 %v3632_v36, %v3630_v9 }
 0x4b3   : > { %v3035_v30 = vpop.f32.mrf.mxu2  ;;  %v2859_v8 = vpop.f32.mrf.mxu0 }
 0x4b4   : > { %v3439_v47 = vmul.f32 1.442695, %v3316_v1  ;;  %v3036_v39 = vadd.f32 %v3035_v30, %v2947_v53  ;;  %v3124_v5 = vpop.f32.mrf.mxu3  ;;  %v2860_v14 = vadd.f32 %v2859_v8, %v11285_v58  ;;  %v7558_v61 = vpop.eup %7557 }
 0x4b5   : > { %v2948_v60 = vpop.f32.mrf.mxu1  ;;  %v6846_v37 = vadd.f32 -1.0, %v7558_v61 }
 0x4b6   : > { %7559 = vpow2.f32 %v3439_v47  ;;  %v9689_v51 = vadd.f32 %v3124_v5, %v3036_v39  ;;  %v2949_v41 = vadd.f32 %v2948_v60, %v2860_v14 }
 0x4b7   : > { %v3570_v34 = vmul.f32 0.1, %v6846_v37 }
 0x4b8   : > { %v3254_v42 = vmin.f32 %v9689_v51, 0.0  ;;  %vm3190_vm14 = vcmp.gt.f32.partialorder %v9689_v51, 0.0 }
 0x4b9   : > { %v3634_v25 = vsel %vm3186_vm12, %v9666_v7, %v3570_v34 }
 0x4ba   : > { %v3318_v15 = vmul.f32 10.0, %v3254_v42 }
 0x4bb   : > { %v3037_v57 = vpop.f32.mrf.mxu2  ;;  %v3880_v52 = vpop.f32.mrf.mxu0 }
 0x4bc   : > { %v7560_v43 = vpop.eup %7559  ;;  %v3443_v18 = vmul.f32 1.442695, %v3318_v15  ;;  %v3038_v28 = vadd.f32 %v3037_v57, %v2949_v41  ;;  %v3126_v33 = vpop.f32.mrf.mxu3  ;;  %v3881_v2 = vadd.f32 %v3880_v52, %v9692_v12 }
 0x4bd   : > { %v6848_v31 = vadd.f32 -1.0, %v7560_v43  ;;  %v3969_v16 = vpop.f32.mrf.mxu1 }
 0x4be   : > { %v9699_v13 = vadd.f32 %v3126_v33, %v3038_v28  ;;  %v9701_v0 = vadd.f32 %v3969_v16, %v3881_v2  ;;  %3919 = vmatmul.bf16.gmra.mxu0 %v11286_v21  ;;  %7561 = vpow2.f32 %v3443_v18  ;;  %v7068_v16 = vor.u32 %v7406_v10, %v7065_v26 }
 0x4bf   : > { %v3572_v59 = vmul.f32 0.1, %v6848_v31  ;;  %4008 = vmatmul.bf16.gmra.mxu1 %v9593_v24 }
 0x4c0   : > { %v3256_v17 = vmin.f32 %v9699_v13, 0.0  ;;  %4097 = vmatmul.bf16.gmra.mxu2 %v11286_v21  ;;  %v4291_v32 = vmin.f32 %v9701_v0, 0.0  ;;  %vm3192_vm15 = vcmp.gt.f32.partialorder %v9699_v13, 0.0  ;;  %vm4227_vm0 = vcmp.gt.f32.partialorder %v9701_v0, 0.0 }
 0x4c1   : > { %4186 = vmatmul.bf16.gmra.mxu3 %v9593_v24  ;;  %v3636_v63 = vsel %vm3188_vm13, %v9670_v40, %v3572_v59  ;;  %5153 = vmatpush.bf16.msrb.mxu2 %v7068_v16 }
 0x4c2   : > { %v3320_v56 = vmul.f32 10.0, %v3256_v17  ;;  %v9715_v44 = vpack.c.bf16 %v3636_v63, %v3634_v25  ;;  %v4355_v53 = vmul.f32 10.0, %v4291_v32 }
 0x4c3   : > { %v4058_v54 = vpop.f32.mrf.mxu2  ;;  %v3882_v36 = vpop.f32.mrf.mxu0 }
 0x4c4   : > { %v3447_v27 = vmul.f32 1.442695, %v3320_v56  ;;  %v4059_v23 = vadd.f32 %v4058_v54, %v9704_v38  ;;  %v4147_v9 = vpop.f32.mrf.mxu3  ;;  %v4419_v1 = vmul.f32 1.442695, %v4355_v53  ;;  %v3883_v62 = vadd.f32 %v3882_v36, %v9692_v12  ;;  %v7562_v30 = vpop.eup %7561 }
 0x4c5   : > { %v3971_v11 = vpop.f32.mrf.mxu1  ;;  %v6850_v50 = vadd.f32 -1.0, %v7562_v30 }
 0x4c6   : > { %7563 = vpow2.f32 %v3447_v27  ;;  %v9719_v24 = vadd.f32 %v4147_v9, %v4059_v23  ;;  %v9721_v7 = vadd.f32 %v3971_v11, %v3883_v62  ;;  %v7407_v62 = vld [vmem:[%s9526_s25 + $0x24] sm:$0xf0] }
 0x4c7   : > { %7565 = vpow2.f32 %v4419_v1  ;;  %v3574_v60 = vmul.f32 0.1, %v6850_v50  ;;  %v7063_v1 = vld [vmem:[%s9526_s25 + $0x20] sm:$0xf] }
 0x4c8   : > { %v4292_v40 = vmin.f32 %v9719_v24, 0.0  ;;  %v4293_v22 = vmin.f32 %v9721_v7, 0.0  ;;  %vm4229_vm1 = vcmp.gt.f32.partialorder %v9721_v7, 0.0  ;;  %v7064_v50 = vor.u32 %v7407_v62, %v7063_v1 }
 0x4c9   : > { %v3638_v18 = vsel %vm3190_vm14, %v9689_v51, %v3574_v60  ;;  %vm4228_vm2 = vcmp.gt.f32.partialorder %v9719_v24, 0.0 }
 0x4ca   : > { %v4356_v6 = vmul.f32 10.0, %v4292_v40  ;;  %v4357_v47 = vmul.f32 10.0, %v4293_v22  ;;  %4975 = vmatpush.bf16.msrb.mxu0 %v7064_v50 }
 0x4cb   : > { %v4060_v39 = vpop.f32.mrf.mxu2  ;;  %v3885_v14 = vpop.f32.mrf.mxu0 }
 0x4cc   : > { %v7564_v5 = vpop.eup %7563  ;;  %v4421_v8 = vmul.f32 1.442695, %v4356_v6  ;;  %v4061_v35 = vadd.f32 %v4060_v39, %v9704_v38  ;;  %v4149_v58 = vpop.f32.mrf.mxu3  ;;  %v4423_v46 = vmul.f32 1.442695, %v4357_v47  ;;  %v3886_v41 = vadd.f32 %v3885_v14, %v9692_v12 }
 0x4cd   : > { %v6852_v61 = vadd.f32 -1.0, %v7564_v5  ;;  %v3974_v42 = vpop.f32.mrf.mxu1  ;;  %v7566_v15 = vpop.eup %7565 }
 0x4ce   : > { %v9727_v37 = vadd.f32 %v4149_v58, %v4061_v35  ;;  %7567 = vpow2.f32 %v4423_v46  ;;  %v9729_v57 = vadd.f32 %v3974_v42, %v3886_v41  ;;  %3924 = vmatmul.bf16.gmra.mxu0 %v11287_v48  ;;  %v6981_v33 = vadd.f32 -1.0, %v7566_v15 }
 0x4cf   : > { %v3576_v3 = vmul.f32 0.1, %v6852_v61  ;;  %7569 = vpow2.f32 %v4421_v8  ;;  %4013 = vmatmul.bf16.gmra.mxu1 %v9613_v29 }
 0x4d0   : > { %v4294_v55 = vmin.f32 %v9727_v37, 0.0  ;;  %4102 = vmatmul.bf16.gmra.mxu2 %v11287_v48  ;;  %v4295_v43 = vmin.f32 %v9729_v57, 0.0  ;;  %v4611_v63 = vmul.f32 0.1, %v6981_v33  ;;  %v11288_v48 = vld [vmem:[#allocation74_spill] sm:$0xff]  ;;  %vm4230_vm3 = vcmp.gt.f32.partialorder %v9727_v37, 0.0 }
 0x4d1   : > { %4191 = vmatmul.bf16.gmra.mxu3 %v9613_v29  ;;  %v3640_v28 = vsel %vm3192_vm15, %v9699_v13, %v3576_v3  ;;  %vm4231_vm4 = vcmp.gt.f32.partialorder %v9729_v57, 0.0 }
 0x4d2   : > { %v4358_v52 = vmul.f32 10.0, %v4294_v55  ;;  %v9743_v34 = vpack.c.bf16 %v3640_v28, %v3638_v18  ;;  %v4359_v31 = vmul.f32 10.0, %v4295_v43  ;;  %v4675_v11 = vsel %vm4227_vm0, %v9701_v0, %v4611_v63 }
 0x4d3   : > { %v4063_v2 = vpop.f32.mrf.mxu2  ;;  %v3887_v17 = vpop.f32.mrf.mxu0 }
 0x4d4   : > { %v4425_v45 = vmul.f32 1.442695, %v4358_v52  ;;  %v4064_v21 = vadd.f32 %v4063_v2, %v9704_v38  ;;  %v4152_v59 = vpop.f32.mrf.mxu3  ;;  %v7568_v32 = vpop.eup %7567  ;;  %v4427_v29 = vmul.f32 1.442695, %v4359_v31  ;;  %v3888_v51 = vadd.f32 %v3887_v17, %v9692_v12 }
 0x4d5   : > { %v3976_v13 = vpop.f32.mrf.mxu1  ;;  %v7570_v25 = vpop.eup %7569  ;;  %v6983_v56 = vadd.f32 -1.0, %v7568_v32 }
 0x4d6   : > { %7571 = vpow2.f32 %v4425_v45  ;;  %v9747_v53 = vadd.f32 %v4152_v59, %v4064_v21  ;;  %v9749_v54 = vadd.f32 %v3976_v13, %v3888_v51  ;;  %v6982_v9 = vadd.f32 -1.0, %v7570_v25 }
 0x4d7   : > { %v4613_v27 = vmul.f32 0.1, %v6983_v56  ;;  %7573 = vpow2.f32 %v4427_v29 }
 0x4d8   : > { %v4296_v23 = vmin.f32 %v9747_v53, 0.0  ;;  %v4297_v36 = vmin.f32 %v9749_v54, 0.0  ;;  %v4612_v14 = vmul.f32 0.1, %v6982_v9  ;;  %vm4233_vm5 = vcmp.gt.f32.partialorder %v9749_v54, 0.0 }
 0x4d9   : > { %v4677_v30 = vsel %vm4229_vm1, %v9721_v7, %v4613_v27  ;;  %vm4232_vm6 = vcmp.gt.f32.partialorder %v9747_v53, 0.0 }
 0x4da   : > { %v4360_v40 = vmul.f32 10.0, %v4296_v23  ;;  %v9759_v22 = vpack.c.bf16 %v4677_v30, %v4675_v11  ;;  %v4361_v6 = vmul.f32 10.0, %v4297_v36  ;;  %v4676_v55 = vsel %vm4228_vm2, %v9719_v24, %v4612_v14 }
 0x4db   : > { %v4065_v47 = vpop.f32.mrf.mxu2  ;;  %v3890_v58 = vpop.f32.mrf.mxu0 }
 0x4dc   : > { %v7572_v39 = vpop.eup %7571  ;;  %v4429_v5 = vmul.f32 1.442695, %v4360_v40  ;;  %v4066_v8 = vadd.f32 %v4065_v47, %v9704_v38  ;;  %v4154_v35 = vpop.f32.mrf.mxu3  ;;  %v4431_v61 = vmul.f32 1.442695, %v4361_v6  ;;  %v3891_v0 = vadd.f32 %v3890_v58, %v9692_v12 }
 0x4dd   : > { %v6984_v60 = vadd.f32 -1.0, %v7572_v39  ;;  %v3979_v46 = vpop.f32.mrf.mxu1  ;;  %v7574_v41 = vpop.eup %7573 }
 0x4de   : > { %v9763_v7 = vadd.f32 %v4154_v35, %v4066_v8  ;;  %7575 = vpow2.f32 %v4431_v61  ;;  %v9765_v15 = vadd.f32 %v3979_v46, %v3891_v0  ;;  %3929 = vmatmul.bf16.gmra.mxu0 %v11288_v48  ;;  %v6985_v33 = vadd.f32 -1.0, %v7574_v41 }
 0x4df   : > { %v4614_v42 = vmul.f32 0.1, %v6984_v60  ;;  %7577 = vpow2.f32 %v4429_v5  ;;  %4018 = vmatmul.bf16.gmra.mxu1 %v9632_v19  ;;  %v11289_v60 = vld [vmem:[#allocation75_spill] sm:$0xff] }
 0x4e0   : > { %v4298_v3 = vmin.f32 %v9763_v7, 0.0  ;;  %4107 = vmatmul.bf16.gmra.mxu2 %v11288_v48  ;;  %v4299_v18 = vmin.f32 %v9765_v15, 0.0  ;;  %v4615_v32 = vmul.f32 0.1, %v6985_v33  ;;  %vm4234_vm7 = vcmp.gt.f32.partialorder %v9763_v7, 0.0 }
 0x4e1   : > { %v4678_v43 = vsel %vm4230_vm3, %v9727_v37, %v4614_v42  ;;  %4196 = vmatmul.bf16.gmra.mxu3 %v9632_v19  ;;  %vm4235_vm8 = vcmp.gt.f32.partialorder %v9765_v15, 0.0 }
 0x4e2   : > { %v9777_v28 = vpack.c.bf16 %v4678_v43, %v4676_v55  ;;  %v4362_v52 = vmul.f32 10.0, %v4298_v3  ;;  %v4363_v10 = vmul.f32 10.0, %v4299_v18  ;;  %v4679_v23 = vsel %vm4231_vm4, %v9729_v57, %v4615_v32  ;;  %v7404_v55 = vld [vmem:[%s9526_s25 + $0x14] sm:$0xf]  ;;  %v7057_v43 = vld [vmem:[%s9526_s25 + $0x18] sm:$0xf0] }
 0x4e3   : > { %v4068_v26 = vpop.f32.mrf.mxu2  ;;  %v3892_v45 = vpop.f32.mrf.mxu0 }
 0x4e4   : > { %v4433_v31 = vmul.f32 1.442695, %v4362_v52  ;;  %v4069_v2 = vadd.f32 %v4068_v26, %v9704_v38  ;;  %v4157_v16 = vpop.f32.mrf.mxu3  ;;  %v7576_v21 = vpop.eup %7575  ;;  %v4435_v59 = vmul.f32 1.442695, %v4363_v10  ;;  %v3893_v24 = vadd.f32 %v3892_v45, %v9692_v12  ;;  %v7418_v10 = vld [vmem:[%s9526_s25 + $0x84] sm:$0xf] }
 0x4e5   : > { %v3981_v37 = vpop.f32.mrf.mxu1  ;;  %v7578_v17 = vpop.eup %7577  ;;  %v6987_v29 = vadd.f32 -1.0, %v7576_v21  ;;  %v7060_v52 = vor.u32 %v7404_v55, %v7057_v43  ;;  %v7113_v26 = vld [vmem:[%s9526_s25 + $0x88] sm:$0xf0] }
 0x4e6   : > { %7579 = vpow2.f32 %v4433_v31  ;;  %v9781_v19 = vadd.f32 %v4157_v16, %v4069_v2  ;;  %v9783_v51 = vadd.f32 %v3981_v37, %v3893_v24  ;;  %v6986_v63 = vadd.f32 -1.0, %v7578_v17  ;;  %v11290_v55 = vld [vmem:[#allocation6_spill] sm:$0xff] }
 0x4e7   : > { %v4617_v25 = vmul.f32 0.1, %v6987_v29  ;;  %7581 = vpow2.f32 %v4435_v59  ;;  %v7116_v16 = vor.u32 %v7418_v10, %v7113_v26  ;;  %5154 = vmatpush.bf16.msrb.mxu2 %v7060_v52 }
 0x4e8   : > { %v4300_v13 = vmin.f32 %v9781_v19, 0.0  ;;  %v4301_v56 = vmin.f32 %v9783_v51, 0.0  ;;  %v4616_v47 = vmul.f32 0.1, %v6986_v63  ;;  %vm4237_vm9 = vcmp.gt.f32.partialorder %v9783_v51, 0.0 }
 0x4e9   : > { %v4681_v9 = vsel %vm4233_vm5, %v9749_v54, %v4617_v25  ;;  %5244 = vmatpush.bf16.msrb.mxu3 %v7116_v16  ;;  %vm4236_vm10 = vcmp.gt.f32.partialorder %v9781_v19, 0.0 }
 0x4ea   : > { %v4364_v27 = vmul.f32 10.0, %v4300_v13  ;;  %v4365_v36 = vmul.f32 10.0, %v4301_v56  ;;  %v9791_v62 = vpack.c.bf16 %v4681_v9, %v4679_v23  ;;  %v4680_v0 = vsel %vm4232_vm6, %v9747_v53, %v4616_v47  ;;  %v7405_v23 = vld [vmem:[%s9526_s25 + $0x14] sm:$0xf0] }
 0x4eb   : > { %v4070_v1 = vpop.f32.mrf.mxu2  ;;  %v3895_v6 = vpop.f32.mrf.mxu0 }
 0x4ec   : > { %v7580_v11 = vpop.eup %7579  ;;  %v4437_v30 = vmul.f32 1.442695, %v4364_v27  ;;  %v4071_v40 = vadd.f32 %v4070_v1, %v9704_v38  ;;  %v4159_v50 = vpop.f32.mrf.mxu3  ;;  %v4439_v5 = vmul.f32 1.442695, %v4365_v36  ;;  %v3896_v8 = vadd.f32 %v3895_v6, %v9692_v12  ;;  %v7055_v27 = vld [vmem:[%s9526_s25 + $0x10] sm:$0xf] }
 0x4ed   : > { %v6988_v39 = vadd.f32 -1.0, %v7580_v11  ;;  %v3984_v35 = vpop.f32.mrf.mxu1  ;;  %v7582_v57 = vpop.eup %7581  ;;  %v7056_v36 = vor.u32 %v7405_v23, %v7055_v27  ;;  %v7111_v1 = vld [vmem:[%s9526_s25 + $0x80] sm:$0xf]  ;;  %v7419_v11 = vld [vmem:[%s9526_s25 + $0x84] sm:$0xf0] }
 0x4ee   : > { %v9795_v58 = vadd.f32 %v4159_v50, %v4071_v40  ;;  %7583 = vpow2.f32 %v4439_v5  ;;  %v9797_v14 = vadd.f32 %v3984_v35, %v3896_v8  ;;  %3934 = vmatmul.bf16.gmra.mxu0 %v11289_v60  ;;  %v6989_v48 = vadd.f32 -1.0, %v7582_v57 }
 0x4ef   : > { %v4618_v54 = vmul.f32 0.1, %v6988_v39  ;;  %7585 = vpow2.f32 %v4437_v30  ;;  %4023 = vmatmul.bf16.gmra.mxu1 %v9647_v4  ;;  %v7112_v47 = vor.u32 %v7419_v11, %v7111_v1  ;;  %4976 = vmatpush.bf16.msrb.mxu0 %v7056_v36 }
 0x4f0   : > { %v4302_v61 = vmin.f32 %v9795_v58, 0.0  ;;  %4112 = vmatmul.bf16.gmra.mxu2 %v11289_v60  ;;  %v4303_v41 = vmin.f32 %v9797_v14, 0.0  ;;  %v4619_v37 = vmul.f32 0.1, %v6989_v48  ;;  %vm4238_vm11 = vcmp.gt.f32.partialorder %v9795_v58, 0.0 }
 0x4f1   : > { %v4682_v46 = vsel %vm4234_vm7, %v9763_v7, %v4618_v54  ;;  %4201 = vmatmul.bf16.gmra.mxu3 %v9647_v4  ;;  %5066 = vmatpush.bf16.msrb.mxu1 %v7112_v47  ;;  %vm4239_vm12 = vcmp.gt.f32.partialorder %v9797_v14, 0.0 }
 0x4f2   : > { %v9809_v42 = vpack.c.bf16 %v4682_v46, %v4680_v0  ;;  %v4366_v3 = vmul.f32 10.0, %v4302_v61  ;;  %v4367_v18 = vmul.f32 10.0, %v4303_v41  ;;  %v4683_v30 = vsel %vm4235_vm8, %v9765_v15, %v4619_v37 }
 0x4f3   : > { %v4073_v33 = vpop.f32.mrf.mxu2  ;;  %v3897_v7 = vpop.f32.mrf.mxu0 }
 0x4f4   : > { %v4441_v31 = vmul.f32 1.442695, %v4366_v3  ;;  %v4074_v53 = vadd.f32 %v4073_v33, %v9704_v38  ;;  %v4162_v2 = vpop.f32.mrf.mxu3  ;;  %v7584_v45 = vpop.eup %7583  ;;  %v4443_v21 = vmul.f32 1.442695, %v4367_v18  ;;  %v3898_v4 = vadd.f32 %v3897_v7, %v9692_v12 }
 0x4f5   : > { %v3986_v59 = vpop.f32.mrf.mxu1  ;;  %v7586_v24 = vpop.eup %7585  ;;  %v6991_v17 = vadd.f32 -1.0, %v7584_v45 }
 0x4f6   : > { %7587 = vpow2.f32 %v4441_v31  ;;  %v9817_v32 = vadd.f32 %v4162_v2, %v4074_v53  ;;  %v9819_v29 = vadd.f32 %v3986_v59, %v3898_v4  ;;  %v6990_v63 = vadd.f32 -1.0, %v7586_v24 }
 0x4f7   : > { %v4621_v25 = vmul.f32 0.1, %v6991_v17  ;;  %7589 = vpow2.f32 %v4443_v21 }
 0x4f8   : > { %v4304_v13 = vmin.f32 %v9817_v32, 0.0  ;;  %v4305_v56 = vmin.f32 %v9819_v29, 0.0  ;;  %v4620_v60 = vmul.f32 0.1, %v6990_v63  ;;  %vm4241_vm13 = vcmp.gt.f32.partialorder %v9819_v29, 0.0 }
 0x4f9   : > { %v4685_v40 = vsel %vm4237_vm9, %v9783_v51, %v4621_v25  ;;  %vm4240_vm14 = vcmp.gt.f32.partialorder %v9817_v32, 0.0 }
 0x4fa   : > { %v4368_v9 = vmul.f32 10.0, %v4304_v13  ;;  %v4369_v50 = vmul.f32 10.0, %v4305_v56  ;;  %v9831_v39 = vpack.c.bf16 %v4685_v40, %v4683_v30  ;;  %v4684_v18 = vsel %vm4236_vm10, %v9781_v19, %v4620_v60 }
 0x4fb   : > { %v4075_v6 = vpop.f32.mrf.mxu2  ;;  %v3900_v54 = vpop.f32.mrf.mxu0  ;;  %vm4921_vm10 = vcmask 523264  }
 0x4fc   : > { %v7588_v5 = vpop.eup %7587  ;;  %v4445_v8 = vmul.f32 1.442695, %v4368_v9  ;;  %v4076_v35 = vadd.f32 %v4075_v6, %v9704_v38  ;;  %v4164_v57 = vpop.f32.mrf.mxu3  ;;  %v4447_v0 = vmul.f32 1.442695, %v4369_v50  ;;  %v3901_v46 = vadd.f32 %v3900_v54, %v9692_v12 }
 0x4fd   : > { %v6992_v61 = vadd.f32 -1.0, %v7588_v5  ;;  %v3989_v15 = vpop.f32.mrf.mxu1  ;;  %v7590_v41 = vpop.eup %7589 }
 0x4fe   : > { %v9835_v51 = vadd.f32 %v4164_v57, %v4076_v35  ;;  %7591 = vpow2.f32 %v4447_v0  ;;  %v9837_v3 = vadd.f32 %v3989_v15, %v3901_v46  ;;  %3939 = vmatmul.bf16.gmra.mxu0 %v11290_v55  ;;  %v6993_v26 = vadd.f32 -1.0, %v7590_v41  ;;  %v11291_v46 = vld [vmem:[#allocation7_spill] sm:$0xff] }
 0x4ff   : > { %v4622_v48 = vmul.f32 0.1, %v6992_v61  ;;  %7593 = vpow2.f32 %v4445_v8  ;;  %4028 = vmatmul.bf16.gmra.mxu1 %v9663_v20 }
 0x500   : > { %v4306_v43 = vmin.f32 %v9835_v51, 0.0  ;;  %4117 = vmatmul.bf16.gmra.mxu2 %v11290_v55  ;;  %v4307_v52 = vmin.f32 %v9837_v3, 0.0  ;;  %v4623_v37 = vmul.f32 0.1, %v6993_v26  ;;  %vm4242_vm15 = vcmp.gt.f32.partialorder %v9835_v51, 0.0 }
 0x501   : > { %v4686_v33 = vsel %vm4238_vm11, %v9795_v58, %v4622_v48  ;;  %4206 = vmatmul.bf16.gmra.mxu3 %v9663_v20  ;;  %v7049_v26 = vld [vmem:[%s9526_s25 + $0x8] sm:$0xf0]  ;;  %vm4243_vm0 = vcmp.gt.f32.partialorder %v9837_v3, 0.0 }
 0x502   : > { %v9849_v10 = vpack.c.bf16 %v4686_v33, %v4684_v18  ;;  %v4370_v31 = vmul.f32 10.0, %v4306_v43  ;;  %v4371_v53 = vmul.f32 10.0, %v4307_v52  ;;  %v4687_v9 = vsel %vm4239_vm12, %v9797_v14, %v4623_v37  ;;  %v7402_v52 = vld [vmem:[%s9526_s25 + $0x4] sm:$0xf] }
 0x503   : > { %v4078_v2 = vpop.f32.mrf.mxu2  ;;  %v3902_v21 = vpop.f32.mrf.mxu0 }
 0x504   : > { %v4449_v7 = vmul.f32 1.442695, %v4370_v31  ;;  %v4079_v16 = vadd.f32 %v4078_v2, %v9704_v38  ;;  %v4167_v45 = vpop.f32.mrf.mxu3  ;;  %v7592_v4 = vpop.eup %7591  ;;  %v4451_v59 = vmul.f32 1.442695, %v4371_v53  ;;  %v3903_v19 = vadd.f32 %v3902_v21, %v9692_v12 }
 0x505   : > { %v3991_v58 = vpop.f32.mrf.mxu1  ;;  %v7594_v24 = vpop.eup %7593  ;;  %v6995_v17 = vadd.f32 -1.0, %v7592_v4  ;;  %v7052_v2 = vor.u32 %v7402_v52, %v7049_v26 }
 0x506   : > { %7595 = vpow2.f32 %v4449_v7  ;;  %v9853_v20 = vadd.f32 %v4167_v45, %v4079_v16  ;;  %v9855_v13 = vadd.f32 %v3991_v58, %v3903_v19  ;;  %v6994_v56 = vadd.f32 -1.0, %v7594_v24 }
 0x507   : > { %v4625_v63 = vmul.f32 0.1, %v6995_v17  ;;  %7597 = vpow2.f32 %v4451_v59  ;;  %5155 = vmatpush.bf16.msrb.mxu2 %v7052_v2 }
 0x508   : > { %v4308_v25 = vmin.f32 %v9853_v20, 0.0  ;;  %v4309_v27 = vmin.f32 %v9855_v13, 0.0  ;;  %v4624_v8 = vmul.f32 0.1, %v6994_v56  ;;  %vm4245_vm1 = vcmp.gt.f32.partialorder %v9855_v13, 0.0 }
 0x509   : > { %v4689_v36 = vsel %vm4241_vm13, %v9819_v29, %v4625_v63  ;;  %vm4244_vm2 = vcmp.gt.f32.partialorder %v9853_v20, 0.0 }
 0x50a   : > { %v4372_v23 = vmul.f32 10.0, %v4308_v25  ;;  %v4373_v1 = vmul.f32 10.0, %v4309_v27  ;;  %v9863_v30 = vpack.c.bf16 %v4689_v36, %v4687_v9  ;;  %v4688_v41 = vsel %vm4240_vm14, %v9817_v32, %v4624_v8  ;;  %v7047_v27 = vld [vmem:[%s9526_s25] sm:$0xf] }
 0x50b   : > { %v4080_v11 = vpop.f32.mrf.mxu2  ;;  %v3905_v5 = vpop.f32.mrf.mxu0 }
 0x50c   : > { %v7596_v40 = vpop.eup %7595  ;;  %v4453_v50 = vmul.f32 1.442695, %v4372_v23  ;;  %v4081_v6 = vadd.f32 %v4080_v11, %v9704_v38  ;;  %v4169_v47 = vpop.f32.mrf.mxu3  ;;  %v4455_v57 = vmul.f32 1.442695, %v4373_v1  ;;  %v3906_v54 = vadd.f32 %v3905_v5, %v9692_v12  ;;  %v7403_v23 = vld [vmem:[%s9526_s25 + $0x4] sm:$0xf0]  ;;  %s10324_s25 = scalar_lea.vmem %s10923_s9, %s11311_s22 }
 0x50d   : > { %v6996_v35 = vadd.f32 -1.0, %v7596_v40  ;;  %v3994_v60 = vpop.f32.mrf.mxu1  ;;  %v7598_v14 = vpop.eup %7597  ;;  %v7048_v36 = vor.u32 %v7403_v23, %v7047_v27 }
 0x50e   : > { %v9867_v61 = vadd.f32 %v4169_v47, %v4081_v6  ;;  %7599 = vpow2.f32 %v4455_v57  ;;  %v9869_v0 = vadd.f32 %v3994_v60, %v3906_v54  ;;  %3944 = vmatmul.bf16.gmra.mxu0 %v11291_v46  ;;  %v6997_v18 = vadd.f32 -1.0, %v7598_v14 }
 0x50f   : > { %v4626_v29 = vmul.f32 0.1, %v6996_v35  ;;  %7601 = vpow2.f32 %v4453_v50  ;;  %4033 = vmatmul.bf16.gmra.mxu1 %v9681_v49  ;;  %4977 = vmatpush.bf16.msrb.mxu0 %v7048_v36 }
 0x510   : > { %v4310_v15 = vmin.f32 %v9867_v61, 0.0  ;;  %4122 = vmatmul.bf16.gmra.mxu2 %v11291_v46  ;;  %v4311_v55 = vmin.f32 %v9869_v0, 0.0  ;;  %v4627_v19 = vmul.f32 0.1, %v6997_v18  ;;  %vm4246_vm3 = vcmp.gt.f32.partialorder %v9867_v61, 0.0 }
 0x511   : > { %v4690_v48 = vsel %vm4242_vm15, %v9835_v51, %v4626_v29  ;;  %4211 = vmatmul.bf16.gmra.mxu3 %v9681_v49  ;;  %vm4247_vm4 = vcmp.gt.f32.partialorder %v9869_v0, 0.0 }
 0x512   : > { %v9881_v43 = vpack.c.bf16 %v4690_v48, %v4688_v41  ;;  %v4374_v33 = vmul.f32 10.0, %v4310_v15  ;;  %v4375_v31 = vmul.f32 10.0, %v4311_v55  ;;  %v4691_v1 = vsel %vm4243_vm0, %v9837_v3, %v4627_v19  ;;  %v11292_v48 = vld [vmem:[#allocation8_spill] sm:$0xff] }
 0x513   : > { %v4083_v53 = vpop.f32.mrf.mxu2  ;;  %v3907_v32 = vpop.f32.mrf.mxu0 }
 0x514   : > { %v4457_v7 = vmul.f32 1.442695, %v4374_v33  ;;  %v4084_v16 = vadd.f32 %v4083_v53, %v9704_v38  ;;  %v4172_v45 = vpop.f32.mrf.mxu3  ;;  %v7600_v21 = vpop.eup %7599  ;;  %v4459_v51 = vmul.f32 1.442695, %v4375_v31  ;;  %v3908_v4 = vadd.f32 %v3907_v32, %v9692_v12 }
 0x515   : > { %v3996_v49 = vpop.f32.mrf.mxu1  ;;  %v7602_v59 = vpop.eup %7601  ;;  %v6999_v58 = vadd.f32 -1.0, %v7600_v21 }
 0x516   : > { %7603 = vpow2.f32 %v4457_v7  ;;  %v9887_v24 = vadd.f32 %v4172_v45, %v4084_v16  ;;  %v9889_v37 = vadd.f32 %v3996_v49, %v3908_v4  ;;  %v6998_v63 = vadd.f32 -1.0, %v7602_v59 }
 0x517   : > { %v4629_v25 = vmul.f32 0.1, %v6999_v58  ;;  %7605 = vpow2.f32 %v4459_v51 }
 0x518   : > { %v4312_v17 = vmin.f32 %v9887_v24, 0.0  ;;  %v4313_v56 = vmin.f32 %v9889_v37, 0.0  ;;  %v4628_v54 = vmul.f32 0.1, %v6998_v63  ;;  %vm4249_vm5 = vcmp.gt.f32.partialorder %v9889_v37, 0.0 }
 0x519   : > { %v4693_v11 = vsel %vm4245_vm1, %v9855_v13, %v4629_v25  ;;  %vm4248_vm6 = vcmp.gt.f32.partialorder %v9887_v24, 0.0 }
 0x51a   : > { %v4376_v9 = vmul.f32 10.0, %v4312_v17  ;;  %v4377_v40 = vmul.f32 10.0, %v4313_v56  ;;  %v9899_v6 = vpack.c.bf16 %v4693_v11, %v4691_v1  ;;  %v4692_v18 = vsel %vm4244_vm2, %v9853_v20, %v4628_v54 }
 0x51b   : > { %v4085_v50 = vpop.f32.mrf.mxu2  ;;  %v3910_v57 = vpop.f32.mrf.mxu0 }
 0x51c   : > { %v7604_v47 = vpop.eup %7603  ;;  %v4461_v5 = vmul.f32 1.442695, %v4376_v9  ;;  %v4086_v8 = vadd.f32 %v4085_v50, %v9704_v38  ;;  %v4174_v35 = vpop.f32.mrf.mxu3  ;;  %v4463_v14 = vmul.f32 1.442695, %v4377_v40  ;;  %v3911_v29 = vadd.f32 %v3910_v57, %v9692_v12 }
 0x51d   : > { %v7000_v60 = vadd.f32 -1.0, %v7604_v47  ;;  %v3999_v46 = vpop.f32.mrf.mxu1  ;;  %v7606_v13 = vpop.eup %7605 }
 0x51e   : > { %v9903_v3 = vadd.f32 %v4174_v35, %v4086_v8  ;;  %7607 = vpow2.f32 %v4463_v14  ;;  %v9905_v41 = vadd.f32 %v3999_v46, %v3911_v29  ;;  %3949 = vmatmul.bf16.gmra.mxu0 %v11292_v48  ;;  %v7001_v31 = vadd.f32 -1.0, %v7606_v13  ;;  %v11293_v13 = vld [vmem:[#allocation9_spill] sm:$0xff] }
 0x51f   : > { %v4630_v15 = vmul.f32 0.1, %v7000_v60  ;;  %7609 = vpow2.f32 %v4461_v5  ;;  %4038 = vmatmul.bf16.gmra.mxu1 %v9715_v44 }
 0x520   : > { %v4314_v55 = vmin.f32 %v9903_v3, 0.0  ;;  %4127 = vmatmul.bf16.gmra.mxu2 %v11292_v48  ;;  %v4315_v52 = vmin.f32 %v9905_v41, 0.0  ;;  %v4631_v59 = vmul.f32 0.1, %v7001_v31  ;;  %vm4250_vm7 = vcmp.gt.f32.partialorder %v9903_v3, 0.0 }
 0x521   : > { %v4694_v33 = vsel %vm4246_vm3, %v9867_v61, %v4630_v15  ;;  %4216 = vmatmul.bf16.gmra.mxu3 %v9715_v44  ;;  %vm4251_vm8 = vcmp.gt.f32.partialorder %v9905_v41, 0.0 }
 0x522   : > { %v9917_v26 = vpack.c.bf16 %v4694_v33, %v4692_v18  ;;  %v4378_v53 = vmul.f32 10.0, %v4314_v55  ;;  %v4379_v2 = vmul.f32 10.0, %v4315_v52  ;;  %v4695_v23 = vsel %vm4247_vm4, %v9869_v0, %v4631_v59 }
 0x523   : > { %v4088_v7 = vpop.f32.mrf.mxu2  ;;  %v3912_v21 = vpop.f32.mrf.mxu0 }
 0x524   : > { %v4465_v16 = vmul.f32 1.442695, %v4378_v53  ;;  %v4089_v45 = vadd.f32 %v4088_v7, %v9704_v38  ;;  %v4177_v32 = vpop.f32.mrf.mxu3  ;;  %v7608_v51 = vpop.eup %7607  ;;  %v4467_v4 = vmul.f32 1.442695, %v4379_v2  ;;  %v3913_v20 = vadd.f32 %v3912_v21, %v9692_v12 }
 0x525   : > { %v4001_v61 = vpop.f32.mrf.mxu1  ;;  %v7610_v49 = vpop.eup %7609  ;;  %v7003_v19 = vadd.f32 -1.0, %v7608_v51 }
 0x526   : > { %7611 = vpow2.f32 %v4465_v16  ;;  %v9921_v44 = vadd.f32 %v4177_v32, %v4089_v45  ;;  %v9923_v58 = vadd.f32 %v4001_v61, %v3913_v20  ;;  %v7002_v63 = vadd.f32 -1.0, %v7610_v49 }
 0x527   : > { %v4633_v25 = vmul.f32 0.1, %v7003_v19  ;;  %7613 = vpow2.f32 %v4467_v4 }
 0x528   : > { %v4316_v17 = vmin.f32 %v9921_v44, 0.0  ;;  %v4317_v56 = vmin.f32 %v9923_v58, 0.0  ;;  %v4632_v35 = vmul.f32 0.1, %v7002_v63  ;;  %vm4253_vm9 = vcmp.gt.f32.partialorder %v9923_v58, 0.0 }
 0x529   : > { %v4697_v9 = vsel %vm4249_vm5, %v9889_v37, %v4633_v25  ;;  %vm4252_vm11 = vcmp.gt.f32.partialorder %v9921_v44, 0.0 }
 0x52a   : > { %v4380_v27 = vmul.f32 10.0, %v4316_v17  ;;  %v4381_v36 = vmul.f32 10.0, %v4317_v56  ;;  %v9931_v11 = vpack.c.bf16 %v4697_v9, %v4695_v23  ;;  %v4696_v48 = vsel %vm4248_vm6, %v9887_v24, %v4632_v35 }
 0x52b   : > { %v4090_v1 = vpop.f32.mrf.mxu2  ;;  %v3915_v8 = vpop.f32.mrf.mxu0 }
 0x52c   : > { %v7612_v40 = vpop.eup %7611  ;;  %v4469_v50 = vmul.f32 1.442695, %v4380_v27  ;;  %v4091_v47 = vadd.f32 %v4090_v1, %v9704_v38  ;;  %v4179_v5 = vpop.f32.mrf.mxu3  ;;  %v4471_v54 = vmul.f32 1.442695, %v4381_v36  ;;  %v3916_v60 = vadd.f32 %v3915_v8, %v9692_v12 }
 0x52d   : > { %v7004_v57 = vadd.f32 -1.0, %v7612_v40  ;;  %v4004_v14 = vpop.f32.mrf.mxu1  ;;  %v7614_v0 = vpop.eup %7613 }
 0x52e   : > { %v9935_v29 = vadd.f32 %v4179_v5, %v4091_v47  ;;  %7615 = vpow2.f32 %v4471_v54  ;;  %v9937_v46 = vadd.f32 %v4004_v14, %v3916_v60  ;;  %3954 = vmatmul.bf16.gmra.mxu0 %v11293_v13  ;;  %v7005_v52 = vadd.f32 -1.0, %v7614_v0 }
 0x52f   : > { %v4634_v37 = vmul.f32 0.1, %v7004_v57  ;;  %7617 = vpow2.f32 %v4469_v50  ;;  %4043 = vmatmul.bf16.gmra.mxu1 %v9743_v34 }
 0x530   : > { %v4318_v15 = vmin.f32 %v9935_v29, 0.0  ;;  %4132 = vmatmul.bf16.gmra.mxu2 %v11293_v13  ;;  %v4319_v18 = vmin.f32 %v9937_v46, 0.0  ;;  %v4635_v20 = vmul.f32 0.1, %v7005_v52  ;;  %vm4254_vm12 = vcmp.gt.f32.partialorder %v9935_v29, 0.0 }
 0x531   : > { %v4698_v55 = vsel %vm4250_vm7, %v9903_v3, %v4634_v37  ;;  %4221 = vmatmul.bf16.gmra.mxu3 %v9743_v34  ;;  %vm4255_vm13 = vcmp.gt.f32.partialorder %v9937_v46, 0.0 }
 0x532   : > { %v9949_v33 = vpack.c.bf16 %v4698_v55, %v4696_v48  ;;  %v4382_v31 = vmul.f32 10.0, %v4318_v15  ;;  %v4383_v53 = vmul.f32 10.0, %v4319_v18  ;;  %v4699_v56 = vsel %vm4251_vm8, %v9905_v41, %v4635_v20 }
 0x533   : > { %v4093_v2 = vpop.f32.mrf.mxu2  ;;  %v3917_v32 = vpop.f32.mrf.mxu0 }
 0x534   : > { %v4473_v7 = vmul.f32 1.442695, %v4382_v31  ;;  %v4094_v16 = vadd.f32 %v4093_v2, %v9704_v38  ;;  %v4182_v45 = vpop.f32.mrf.mxu3  ;;  %v7616_v21 = vpop.eup %7615  ;;  %v4475_v51 = vmul.f32 1.442695, %v4383_v53  ;;  %v3918_v24 = vadd.f32 %v3917_v32, %v9692_v12 }
 0x535   : > { %v4006_v3 = vpop.f32.mrf.mxu1  ;;  %v7618_v4 = vpop.eup %7617  ;;  %v7007_v61 = vadd.f32 -1.0, %v7616_v21 }
 0x536   : > { %7619 = vpow2.f32 %v4473_v7  ;;  %v9953_v34 = vadd.f32 %v4182_v45, %v4094_v16  ;;  %v9955_v49 = vadd.f32 %v4006_v3, %v3918_v24  ;;  %v7006_v17 = vadd.f32 -1.0, %v7618_v4 }
 0x537   : > { %v4637_v19 = vmul.f32 0.1, %v7007_v61  ;;  %7621 = vpow2.f32 %v4475_v51 }
 0x538   : > { %v4320_v59 = vmin.f32 %v9953_v34, 0.0  ;;  %v4321_v25 = vmin.f32 %v9955_v49, 0.0  ;;  %v4636_v8 = vmul.f32 0.1, %v7006_v17  ;;  %vm4257_vm14 = vcmp.gt.f32.partialorder %v9955_v49, 0.0 }
 0x539   : > { %v4701_v27 = vsel %vm4253_vm9, %v9923_v58, %v4637_v19  ;;  %vm4256_vm15 = vcmp.gt.f32.partialorder %v9953_v34, 0.0 }
 0x53a   : > { %v4384_v63 = vmul.f32 10.0, %v4320_v59  ;;  %v4385_v23 = vmul.f32 10.0, %v4321_v25  ;;  %v9963_v36 = vpack.c.bf16 %v4701_v27, %v4699_v56  ;;  %v4700_v13 = vsel %vm4252_vm11, %v9921_v44, %v4636_v8 }
 0x53b   : > { %v4095_v9 = vpop.f32.mrf.mxu2  ;;  %v3920_v5 = vpop.f32.mrf.mxu0 }
 0x53c   : > { %v7620_v1 = vpop.eup %7619  ;;  %v4477_v40 = vmul.f32 1.442695, %v4384_v63  ;;  %v4096_v50 = vadd.f32 %v4095_v9, %v9704_v38  ;;  %v4184_v47 = vpop.f32.mrf.mxu3  ;;  %v4479_v57 = vmul.f32 1.442695, %v4385_v23  ;;  %v3921_v54 = vadd.f32 %v3920_v5, %v9692_v12 }
 0x53d   : > { %v7008_v35 = vadd.f32 -1.0, %v7620_v1  ;;  %v4009_v60 = vpop.f32.mrf.mxu1  ;;  %v7622_v58 = vpop.eup %7621 }
 0x53e   : > { %v9967_v41 = vadd.f32 %v4184_v47, %v4096_v50  ;;  %7623 = vpow2.f32 %v4479_v57  ;;  %v9969_v0 = vadd.f32 %v4009_v60, %v3921_v54  ;;  %4978 = vmatmul.bf16.vlgmr.msrb.gmra.mxu0 %v9759_v22  ;;  %v7009_v18 = vadd.f32 -1.0, %v7622_v58 }
 0x53f   : > { %v4638_v14 = vmul.f32 0.1, %v7008_v35  ;;  %7625 = vpow2.f32 %v4477_v40  ;;  %7141 = vmatmul.msk.bf16.vlgmr.msrb.gmra.mxu1 %vm4921_vm10, %v9777_v28 }
 0x540   : > { %v4322_v37 = vmin.f32 %v9967_v41, 0.0  ;;  %5156 = vmatmul.bf16.vlgmr.msrb.gmra.mxu2 %v9759_v22  ;;  %v4323_v48 = vmin.f32 %v9969_v0, 0.0  ;;  %v4639_v51 = vmul.f32 0.1, %v7009_v18  ;;  %vm4258_vm0 = vcmp.gt.f32.partialorder %v9967_v41, 0.0 }
 0x541   : > { %v4702_v15 = vsel %vm4254_vm12, %v9935_v29, %v4638_v14  ;;  %7157 = vmatmul.msk.bf16.vlgmr.msrb.gmra.mxu3 %vm4921_vm10, %v9777_v28  ;;  %vm4259_vm1 = vcmp.gt.f32.partialorder %v9969_v0, 0.0 }
 0x542   : > { %v9983_v55 = vpack.c.bf16 %v4702_v15, %v4700_v13  ;;  %v4386_v52 = vmul.f32 10.0, %v4322_v37  ;;  %v4387_v31 = vmul.f32 10.0, %v4323_v48  ;;  %v4703_v17 = vsel %vm4255_vm13, %v9937_v46, %v4639_v51 }
 0x543   : > { %v4098_v53 = vpop.f32.mrf.mxu2  ;;  %v3922_v22 = vpop.f32.mrf.mxu0 }
 0x544   : > { %v4481_v2 = vmul.f32 1.442695, %v4386_v52  ;;  %v4099_v7 = vadd.f32 %v4098_v53, %v9704_v38  ;;  %v4187_v16 = vpop.f32.mrf.mxu3  ;;  %v7624_v45 = vpop.eup %7623  ;;  %v4483_v44 = vmul.f32 1.442695, %v4387_v31  ;;  %v3923_v29 = vadd.f32 %v3922_v22, %v9692_v12 }
 0x545   : > { %v4011_v32 = vpop.f32.mrf.mxu1  ;;  %v7626_v21 = vpop.eup %7625  ;;  %v7011_v24 = vadd.f32 -1.0, %v7624_v45 }
 0x546   : > { %7627 = vpow2.f32 %v4481_v2  ;;  %v9987_v28 = vadd.f32 %v4187_v16, %v4099_v7  ;;  %v9989_v3 = vadd.f32 %v4011_v32, %v3923_v29  ;;  %v7010_v61 = vadd.f32 -1.0, %v7626_v21 }
 0x547   : > { %v4641_v20 = vmul.f32 0.1, %v7011_v24  ;;  %7629 = vpow2.f32 %v4483_v44 }
 0x548   : > { %v4324_v4 = vmin.f32 %v9987_v28, 0.0  ;;  %v4325_v59 = vmin.f32 %v9989_v3, 0.0  ;;  %v4640_v47 = vmul.f32 0.1, %v7010_v61  ;;  %vm4261_vm2 = vcmp.gt.f32.partialorder %v9989_v3, 0.0 }
 0x549   : > { %v4705_v25 = vsel %vm4257_vm14, %v9955_v49, %v4641_v20  ;;  %vm4260_vm3 = vcmp.gt.f32.partialorder %v9987_v28, 0.0 }
 0x54a   : > { %v4388_v19 = vmul.f32 10.0, %v4324_v4  ;;  %v4389_v63 = vmul.f32 10.0, %v4325_v59  ;;  %v9997_v27 = vpack.c.bf16 %v4705_v25, %v4703_v17  ;;  %v4704_v14 = vsel %vm4256_vm15, %v9953_v34, %v4640_v47 }
 0x54b   : > { %v4100_v56 = vpop.f32.mrf.mxu2  ;;  %v3925_v50 = vpop.f32.mrf.mxu0 }
 0x54c   : > { %v7628_v23 = vpop.eup %7627  ;;  %v4485_v9 = vmul.f32 1.442695, %v4388_v19  ;;  %v4101_v1 = vadd.f32 %v4100_v56, %v9704_v38  ;;  %v4189_v40 = vpop.f32.mrf.mxu3  ;;  %v4487_v8 = vmul.f32 1.442695, %v4389_v63  ;;  %v3926_v35 = vadd.f32 %v3925_v50, %v9692_v12 }
 0x54d   : > { %v7012_v5 = vadd.f32 -1.0, %v7628_v23  ;;  %v4014_v57 = vpop.f32.mrf.mxu1  ;;  %v7630_v46 = vpop.eup %7629 }
 0x54e   : > { %v10001_v54 = vadd.f32 %v4189_v40, %v4101_v1  ;;  %7631 = vpow2.f32 %v4487_v8  ;;  %v10003_v60 = vadd.f32 %v4014_v57, %v3926_v35  ;;  %4983 = vmatmul.bf16.gmra.mxu0 %v9791_v62  ;;  %v7013_v48 = vadd.f32 -1.0, %v7630_v46 }
 0x54f   : > { %v4642_v49 = vmul.f32 0.1, %v7012_v5  ;;  %7633 = vpow2.f32 %v4485_v9  ;;  %7142 = vmatmul.msk.bf16.gmra.mxu1 %vm4921_vm10, %v9809_v42 }
 0x550   : > { %v4326_v58 = vmin.f32 %v10001_v54, 0.0  ;;  %5161 = vmatmul.bf16.gmra.mxu2 %v9791_v62  ;;  %v4327_v13 = vmin.f32 %v10003_v60, 0.0  ;;  %v4643_v44 = vmul.f32 0.1, %v7013_v48  ;;  %vm4262_vm4 = vcmp.gt.f32.partialorder %v10001_v54, 0.0 }
 0x551   : > { %v4706_v37 = vsel %vm4258_vm0, %v9967_v41, %v4642_v49  ;;  %7158 = vmatmul.msk.bf16.gmra.mxu3 %vm4921_vm10, %v9809_v42  ;;  %vm4263_vm5 = vcmp.gt.f32.partialorder %v10003_v60, 0.0 }
 0x552   : > { %v10017_v15 = vpack.c.bf16 %v4706_v37, %v4704_v14  ;;  %v4390_v18 = vmul.f32 10.0, %v4326_v58  ;;  %v4391_v52 = vmul.f32 10.0, %v4327_v13  ;;  %v4707_v61 = vsel %vm4259_vm1, %v9969_v0, %v4643_v44 }
 0x553   : > { %v4103_v31 = vpop.f32.mrf.mxu2  ;;  %v3927_v62 = vpop.f32.mrf.mxu0 }
 0x554   : > { %v4489_v53 = vmul.f32 1.442695, %v4390_v18  ;;  %v4104_v2 = vadd.f32 %v4103_v31, %v9704_v38  ;;  %v4192_v7 = vpop.f32.mrf.mxu3  ;;  %v7632_v16 = vpop.eup %7631  ;;  %v4491_v34 = vmul.f32 1.442695, %v4391_v52  ;;  %v3928_v41 = vadd.f32 %v3927_v62, %v9692_v12 }
 0x555   : > { %v4016_v22 = vpop.f32.mrf.mxu1  ;;  %v7634_v45 = vpop.eup %7633  ;;  %v7015_v29 = vadd.f32 -1.0, %v7632_v16 }
 0x556   : > { %7635 = vpow2.f32 %v4489_v53  ;;  %v10021_v42 = vadd.f32 %v4192_v7, %v4104_v2  ;;  %v10023_v32 = vadd.f32 %v4016_v22, %v3928_v41  ;;  %v7014_v24 = vadd.f32 -1.0, %v7634_v45 }
 0x557   : > { %v4645_v51 = vmul.f32 0.1, %v7015_v29  ;;  %7637 = vpow2.f32 %v4491_v34 }
 0x558   : > { %v4328_v21 = vmin.f32 %v10021_v42, 0.0  ;;  %v4329_v4 = vmin.f32 %v10023_v32, 0.0  ;;  %v4644_v40 = vmul.f32 0.1, %v7014_v24  ;;  %vm4265_vm6 = vcmp.gt.f32.partialorder %v10023_v32, 0.0 }
 0x559   : > { %v4709_v59 = vsel %vm4261_vm2, %v9989_v3, %v4645_v51  ;;  %vm4264_vm7 = vcmp.gt.f32.partialorder %v10021_v42, 0.0 }
 0x55a   : > { %v4392_v20 = vmul.f32 10.0, %v4328_v21  ;;  %v4393_v19 = vmul.f32 10.0, %v4329_v4  ;;  %v10031_v25 = vpack.c.bf16 %v4709_v59, %v4707_v61  ;;  %v4708_v49 = vsel %vm4260_vm3, %v9987_v28, %v4644_v40 }
 0x55b   : > { %v4105_v17 = vpop.f32.mrf.mxu2  ;;  %v3930_v1 = vpop.f32.mrf.mxu0 }
 0x55c   : > { %v7636_v63 = vpop.eup %7635  ;;  %v4493_v56 = vmul.f32 1.442695, %v4392_v20  ;;  %v4106_v23 = vadd.f32 %v4105_v17, %v9704_v38  ;;  %v4194_v9 = vpop.f32.mrf.mxu3  ;;  %v4495_v47 = vmul.f32 1.442695, %v4393_v19  ;;  %v3931_v5 = vadd.f32 %v3930_v1, %v9692_v12 }
 0x55d   : > { %v7016_v50 = vadd.f32 -1.0, %v7636_v63  ;;  %v4019_v8 = vpop.f32.mrf.mxu1  ;;  %v7638_v0 = vpop.eup %7637 }
 0x55e   : > { %v10035_v35 = vadd.f32 %v4194_v9, %v4106_v23  ;;  %7639 = vpow2.f32 %v4495_v47  ;;  %v10037_v57 = vadd.f32 %v4019_v8, %v3931_v5  ;;  %4988 = vmatmul.bf16.gmra.mxu0 %v9831_v39  ;;  %v7017_v13 = vadd.f32 -1.0, %v7638_v0 }
 0x55f   : > { %v4646_v3 = vmul.f32 0.1, %v7016_v50  ;;  %7641 = vpow2.f32 %v4493_v56  ;;  %7143 = vmatmul.msk.bf16.gmra.mxu1 %vm4921_vm10, %v9849_v10 }
 0x560   : > { %v4330_v46 = vmin.f32 %v10035_v35, 0.0  ;;  %5166 = vmatmul.bf16.gmra.mxu2 %v9831_v39  ;;  %v4331_v14 = vmin.f32 %v10037_v57, 0.0  ;;  %v4647_v34 = vmul.f32 0.1, %v7017_v13  ;;  %vm4266_vm8 = vcmp.gt.f32.partialorder %v10035_v35, 0.0 }
 0x561   : > { %v4710_v58 = vsel %vm4262_vm4, %v10001_v54, %v4646_v3  ;;  %7159 = vmatmul.msk.bf16.gmra.mxu3 %vm4921_vm10, %v9849_v10  ;;  %vm4267_vm9 = vcmp.gt.f32.partialorder %v10037_v57, 0.0 }
 0x562   : > { %v10051_v37 = vpack.c.bf16 %v4710_v58, %v4708_v49  ;;  %v4394_v48 = vmul.f32 10.0, %v4330_v46  ;;  %v4395_v18 = vmul.f32 10.0, %v4331_v14  ;;  %v4711_v24 = vsel %vm4263_vm5, %v10003_v60, %v4647_v34 }
 0x563   : > { %v4108_v52 = vpop.f32.mrf.mxu2  ;;  %v3932_v39 = vpop.f32.mrf.mxu0 }
 0x564   : > { %v4497_v31 = vmul.f32 1.442695, %v4394_v48  ;;  %v4109_v53 = vadd.f32 %v4108_v52, %v9704_v38  ;;  %v4197_v2 = vpop.f32.mrf.mxu3  ;;  %v7640_v7 = vpop.eup %7639  ;;  %v4499_v28 = vmul.f32 1.442695, %v4395_v18  ;;  %v3933_v54 = vadd.f32 %v3932_v39, %v9692_v12 }
 0x565   : > { %v4021_v62 = vpop.f32.mrf.mxu1  ;;  %v7642_v16 = vpop.eup %7641  ;;  %v7019_v41 = vadd.f32 -1.0, %v7640_v7 }
 0x566   : > { %7643 = vpow2.f32 %v4497_v31  ;;  %v10055_v10 = vadd.f32 %v4197_v2, %v4109_v53  ;;  %v10057_v22 = vadd.f32 %v4021_v62, %v3933_v54  ;;  %v7018_v29 = vadd.f32 -1.0, %v7642_v16 }
 0x567   : > { %v4649_v44 = vmul.f32 0.1, %v7019_v41  ;;  %7645 = vpow2.f32 %v4499_v28 }
 0x568   : > { %v4332_v45 = vmin.f32 %v10055_v10, 0.0  ;;  %v4333_v21 = vmin.f32 %v10057_v22, 0.0  ;;  %v4648_v9 = vmul.f32 0.1, %v7018_v29  ;;  %vm4269_vm11 = vcmp.gt.f32.partialorder %v10057_v22, 0.0 }
 0x569   : > { %v4713_v4 = vsel %vm4265_vm6, %v10023_v32, %v4649_v44  ;;  %vm4268_vm12 = vcmp.gt.f32.partialorder %v10055_v10, 0.0 }
 0x56a   : > { %v4396_v51 = vmul.f32 10.0, %v4332_v45  ;;  %v4397_v20 = vmul.f32 10.0, %v4333_v21  ;;  %v10065_v59 = vpack.c.bf16 %v4713_v4, %v4711_v24  ;;  %v4712_v3 = vsel %vm4264_vm7, %v10021_v42, %v4648_v9 }
 0x56b   : > { %v4110_v61 = vpop.f32.mrf.mxu2  ;;  %v3935_v23 = vpop.f32.mrf.mxu0 }
 0x56c   : > { %v7644_v19 = vpop.eup %7643  ;;  %v4501_v17 = vmul.f32 1.442695, %v4396_v51  ;;  %v4111_v63 = vadd.f32 %v4110_v61, %v9704_v38  ;;  %v4199_v56 = vpop.f32.mrf.mxu3  ;;  %v4503_v40 = vmul.f32 1.442695, %v4397_v20  ;;  %v3936_v50 = vadd.f32 %v3935_v23, %v9692_v12 }
 0x56d   : > { %v7020_v1 = vadd.f32 -1.0, %v7644_v19  ;;  %v4024_v47 = vpop.f32.mrf.mxu1  ;;  %v7646_v60 = vpop.eup %7645 }
 0x56e   : > { %v10069_v5 = vadd.f32 %v4199_v56, %v4111_v63  ;;  %7647 = vpow2.f32 %v4503_v40  ;;  %v10071_v8 = vadd.f32 %v4024_v47, %v3936_v50  ;;  %4993 = vmatmul.bf16.gmra.mxu0 %v9863_v30  ;;  %v7021_v14 = vadd.f32 -1.0, %v7646_v60 }
 0x56f   : > { %v4650_v32 = vmul.f32 0.1, %v7020_v1  ;;  %7649 = vpow2.f32 %v4501_v17  ;;  %7144 = vmatmul.msk.bf16.gmra.mxu1 %vm4921_vm10, %v9881_v43 }
 0x570   : > { %v4334_v0 = vmin.f32 %v10069_v5, 0.0  ;;  %5171 = vmatmul.bf16.gmra.mxu2 %v9863_v30  ;;  %v4335_v49 = vmin.f32 %v10071_v8, 0.0  ;;  %v4651_v28 = vmul.f32 0.1, %v7021_v14  ;;  %vm4270_vm13 = vcmp.gt.f32.partialorder %v10069_v5, 0.0 }
 0x571   : > { %v4714_v46 = vsel %vm4266_vm8, %v10035_v35, %v4650_v32  ;;  %7160 = vmatmul.msk.bf16.gmra.mxu3 %vm4921_vm10, %v9881_v43  ;;  %vm4271_vm14 = vcmp.gt.f32.partialorder %v10071_v8, 0.0 }
 0x572   : > { %v10085_v58 = vpack.c.bf16 %v4714_v46, %v4712_v3  ;;  %v4398_v13 = vmul.f32 10.0, %v4334_v0  ;;  %v4399_v48 = vmul.f32 10.0, %v4335_v49  ;;  %v4715_v29 = vsel %vm4267_vm9, %v10037_v57, %v4651_v28 }
 0x573   : > { %v4113_v18 = vpop.f32.mrf.mxu2  ;;  %v3937_v30 = vpop.f32.mrf.mxu0 }
 0x574   : > { %v4505_v52 = vmul.f32 1.442695, %v4398_v13  ;;  %v4114_v31 = vadd.f32 %v4113_v18, %v9704_v38  ;;  %v4202_v53 = vpop.f32.mrf.mxu3  ;;  %v7648_v2 = vpop.eup %7647  ;;  %v4507_v42 = vmul.f32 1.442695, %v4399_v48  ;;  %v3938_v35 = vadd.f32 %v3937_v30, %v9692_v12 }
 0x575   : > { %v4026_v39 = vpop.f32.mrf.mxu1  ;;  %v7650_v7 = vpop.eup %7649  ;;  %v7023_v54 = vadd.f32 -1.0, %v7648_v2 }
 0x576   : > { %7651 = vpow2.f32 %v4505_v52  ;;  %v10089_v43 = vadd.f32 %v4202_v53, %v4114_v31  ;;  %v10091_v62 = vadd.f32 %v4026_v39, %v3938_v35  ;;  %v7022_v41 = vadd.f32 -1.0, %v7650_v7 }
 0x577   : > { %v4653_v34 = vmul.f32 0.1, %v7023_v54  ;;  %7653 = vpow2.f32 %v4507_v42 }
 0x578   : > { %v4336_v16 = vmin.f32 %v10089_v43, 0.0  ;;  %v4337_v45 = vmin.f32 %v10091_v62, 0.0  ;;  %v4652_v56 = vmul.f32 0.1, %v7022_v41  ;;  %vm4273_vm15 = vcmp.gt.f32.partialorder %v10091_v62, 0.0 }
 0x579   : > { %v4717_v21 = vsel %vm4269_vm11, %v10057_v22, %v4653_v34  ;;  %vm4272_vm0 = vcmp.gt.f32.partialorder %v10089_v43, 0.0 }
 0x57a   : > { %v4400_v44 = vmul.f32 10.0, %v4336_v16  ;;  %v4401_v51 = vmul.f32 10.0, %v4337_v45  ;;  %v10099_v4 = vpack.c.bf16 %v4717_v21, %v4715_v29  ;;  %v4716_v32 = vsel %vm4268_vm12, %v10055_v10, %v4652_v56 }
 0x57b   : > { %v4115_v24 = vpop.f32.mrf.mxu2  ;;  %v3940_v63 = vpop.f32.mrf.mxu0 }
 0x57c   : > { %v7652_v20 = vpop.eup %7651  ;;  %v4509_v61 = vmul.f32 1.442695, %v4400_v44  ;;  %v4116_v19 = vadd.f32 %v4115_v24, %v9704_v38  ;;  %v4204_v17 = vpop.f32.mrf.mxu3  ;;  %v4511_v9 = vmul.f32 1.442695, %v4401_v51  ;;  %v3941_v1 = vadd.f32 %v3940_v63, %v9692_v12 }
 0x57d   : > { %v7024_v23 = vadd.f32 -1.0, %v7652_v20  ;;  %v4029_v40 = vpop.f32.mrf.mxu1  ;;  %v7654_v57 = vpop.eup %7653 }
 0x57e   : > { %v10103_v50 = vadd.f32 %v4204_v17, %v4116_v19  ;;  %7655 = vpow2.f32 %v4511_v9  ;;  %v10105_v47 = vadd.f32 %v4029_v40, %v3941_v1  ;;  %4998 = vmatmul.bf16.gmra.mxu0 %v9899_v6  ;;  %v7025_v49 = vadd.f32 -1.0, %v7654_v57 }
 0x57f   : > { %v4654_v22 = vmul.f32 0.1, %v7024_v23  ;;  %7657 = vpow2.f32 %v4509_v61  ;;  %7145 = vmatmul.msk.bf16.gmra.mxu1 %vm4921_vm10, %v9917_v26 }
 0x580   : > { %v4338_v60 = vmin.f32 %v10103_v50, 0.0  ;;  %5176 = vmatmul.bf16.gmra.mxu2 %v9899_v6  ;;  %v4339_v3 = vmin.f32 %v10105_v47, 0.0  ;;  %v4655_v42 = vmul.f32 0.1, %v7025_v49  ;;  %vm4274_vm1 = vcmp.gt.f32.partialorder %v10103_v50, 0.0 }
 0x581   : > { %v4718_v0 = vsel %vm4270_vm13, %v10069_v5, %v4654_v22  ;;  %7161 = vmatmul.msk.bf16.gmra.mxu3 %vm4921_vm10, %v9917_v26  ;;  %vm4275_vm2 = vcmp.gt.f32.partialorder %v10105_v47, 0.0 }
 0x582   : > { %v10119_v46 = vpack.c.bf16 %v4718_v0, %v4716_v32  ;;  %v4402_v14 = vmul.f32 10.0, %v4338_v60  ;;  %v4403_v13 = vmul.f32 10.0, %v4339_v3  ;;  %v4719_v41 = vsel %vm4271_vm14, %v10071_v8, %v4655_v42 }
 0x583   : > { %v4118_v48 = vpop.f32.mrf.mxu2  ;;  %v3942_v6 = vpop.f32.mrf.mxu0 }
 0x584   : > { %v4513_v18 = vmul.f32 1.442695, %v4402_v14  ;;  %v4119_v52 = vadd.f32 %v4118_v48, %v9704_v38  ;;  %v4207_v31 = vpop.f32.mrf.mxu3  ;;  %v7656_v53 = vpop.eup %7655  ;;  %v4515_v10 = vmul.f32 1.442695, %v4403_v13  ;;  %v3943_v5 = vadd.f32 %v3942_v6, %v9692_v12 }
 0x585   : > { %v4031_v30 = vpop.f32.mrf.mxu1  ;;  %v7658_v2 = vpop.eup %7657  ;;  %v7027_v35 = vadd.f32 -1.0, %v7656_v53 }
 0x586   : > { %7659 = vpow2.f32 %v4513_v18  ;;  %v10123_v26 = vadd.f32 %v4207_v31, %v4119_v52  ;;  %v10125_v39 = vadd.f32 %v4031_v30, %v3943_v5  ;;  %v7026_v54 = vadd.f32 -1.0, %v7658_v2 }
 0x587   : > { %v4657_v28 = vmul.f32 0.1, %v7027_v35  ;;  %7661 = vpow2.f32 %v4515_v10 }
 0x588   : > { %v4340_v7 = vmin.f32 %v10123_v26, 0.0  ;;  %v4341_v16 = vmin.f32 %v10125_v39, 0.0  ;;  %v4656_v17 = vmul.f32 0.1, %v7026_v54  ;;  %vm4277_vm3 = vcmp.gt.f32.partialorder %v10125_v39, 0.0 }
 0x589   : > { %v4721_v45 = vsel %vm4273_vm15, %v10091_v62, %v4657_v28  ;;  %vm4276_vm4 = vcmp.gt.f32.partialorder %v10123_v26, 0.0 }
 0x58a   : > { %v4404_v34 = vmul.f32 10.0, %v4340_v7  ;;  %v4405_v44 = vmul.f32 10.0, %v4341_v16  ;;  %v10133_v21 = vpack.c.bf16 %v4721_v45, %v4719_v41  ;;  %v4720_v22 = vsel %vm4272_vm0, %v10089_v43, %v4656_v17 }
 0x58b   : > { %v4120_v29 = vpop.f32.mrf.mxu2  ;;  %v3945_v19 = vpop.f32.mrf.mxu0 }
 0x58c   : > { %v7660_v51 = vpop.eup %7659  ;;  %v4517_v24 = vmul.f32 1.442695, %v4404_v34  ;;  %v4121_v20 = vadd.f32 %v4120_v29, %v9704_v38  ;;  %v4209_v61 = vpop.f32.mrf.mxu3  ;;  %v4519_v56 = vmul.f32 1.442695, %v4405_v44  ;;  %v3946_v23 = vadd.f32 %v3945_v19, %v9692_v12 }
 0x58d   : > { %v7028_v63 = vadd.f32 -1.0, %v7660_v51  ;;  %v4034_v9 = vpop.f32.mrf.mxu1  ;;  %v7662_v8 = vpop.eup %7661 }
 0x58e   : > { %v10137_v1 = vadd.f32 %v4209_v61, %v4121_v20  ;;  %7663 = vpow2.f32 %v4519_v56  ;;  %v10139_v40 = vadd.f32 %v4034_v9, %v3946_v23  ;;  %5003 = vmatmul.bf16.gmra.mxu0 %v9931_v11  ;;  %v7029_v3 = vadd.f32 -1.0, %v7662_v8 }
 0x58f   : > { %v4658_v62 = vmul.f32 0.1, %v7028_v63  ;;  %7665 = vpow2.f32 %v4517_v24  ;;  %7146 = vmatmul.msk.bf16.gmra.mxu1 %vm4921_vm10, %v9949_v33 }
 0x590   : > { %v4342_v57 = vmin.f32 %v10137_v1, 0.0  ;;  %5181 = vmatmul.bf16.gmra.mxu2 %v9931_v11  ;;  %v4343_v32 = vmin.f32 %v10139_v40, 0.0  ;;  %v4659_v10 = vmul.f32 0.1, %v7029_v3  ;;  %vm4278_vm5 = vcmp.gt.f32.partialorder %v10137_v1, 0.0 }
 0x591   : > { %v4722_v60 = vsel %vm4274_vm1, %v10103_v50, %v4658_v62  ;;  %7162 = vmatmul.msk.bf16.gmra.mxu3 %vm4921_vm10, %v9949_v33  ;;  %vm4279_vm6 = vcmp.gt.f32.partialorder %v10139_v40, 0.0 }
 0x592   : > { %v10153_v0 = vpack.c.bf16 %v4722_v60, %v4720_v22  ;;  %v4406_v49 = vmul.f32 10.0, %v4342_v57  ;;  %v4407_v14 = vmul.f32 10.0, %v4343_v32  ;;  %v4723_v54 = vsel %vm4275_vm2, %v10105_v47, %v4659_v10 }
 0x593   : > { %v4123_v13 = vpop.f32.mrf.mxu2  ;;  %v3947_v11 = vpop.f32.mrf.mxu0 }
 0x594   : > { %v4521_v48 = vmul.f32 1.442695, %v4406_v49  ;;  %v4124_v18 = vadd.f32 %v4123_v13, %v9704_v38  ;;  %v4212_v52 = vpop.f32.mrf.mxu3  ;;  %v7664_v31 = vpop.eup %7663  ;;  %v4523_v43 = vmul.f32 1.442695, %v4407_v14  ;;  %v3948_v50 = vadd.f32 %v3947_v11, %v9692_v12 }
 0x595   : > { %v4036_v6 = vpop.f32.mrf.mxu1  ;;  %v7666_v53 = vpop.eup %7665  ;;  %v7031_v5 = vadd.f32 -1.0, %v7664_v31 }
 0x596   : > { %7667 = vpow2.f32 %v4521_v48  ;;  %v10157_v33 = vadd.f32 %v4212_v52, %v4124_v18  ;;  %v10159_v30 = vadd.f32 %v4036_v6, %v3948_v50  ;;  %v7030_v35 = vadd.f32 -1.0, %v7666_v53 }
 0x597   : > { %v4661_v42 = vmul.f32 0.1, %v7031_v5  ;;  %7669 = vpow2.f32 %v4523_v43 }
 0x598   : > { %v4344_v2 = vmin.f32 %v10157_v33, 0.0  ;;  %v4345_v7 = vmin.f32 %v10159_v30, 0.0  ;;  %v4660_v61 = vmul.f32 0.1, %v7030_v35  ;;  %vm4281_vm7 = vcmp.gt.f32.partialorder %v10159_v30, 0.0 }
 0x599   : > { %v4725_v16 = vsel %vm4277_vm3, %v10125_v39, %v4661_v42  ;;  %vm4280_vm8 = vcmp.gt.f32.partialorder %v10157_v33, 0.0 }
 0x59a   : > { %v4408_v28 = vmul.f32 10.0, %v4344_v2  ;;  %v4409_v34 = vmul.f32 10.0, %v4345_v7  ;;  %v10167_v45 = vpack.c.bf16 %v4725_v16, %v4723_v54  ;;  %v4724_v62 = vsel %vm4276_vm4, %v10123_v26, %v4660_v61 }
 0x59b   : > { %v4125_v41 = vpop.f32.mrf.mxu2  ;;  %v3950_v20 = vpop.f32.mrf.mxu0 }
 0x59c   : > { %v7668_v44 = vpop.eup %7667  ;;  %v4525_v29 = vmul.f32 1.442695, %v4408_v28  ;;  %v4126_v51 = vadd.f32 %v4125_v41, %v9704_v38  ;;  %v4214_v24 = vpop.f32.mrf.mxu3  ;;  %v4527_v17 = vmul.f32 1.442695, %v4409_v34  ;;  %v3951_v63 = vadd.f32 %v3950_v20, %v9692_v12 }
 0x59d   : > { %v7032_v19 = vadd.f32 -1.0, %v7668_v44  ;;  %v4039_v56 = vpop.f32.mrf.mxu1  ;;  %v7670_v39 = vpop.eup %7669 }
 0x59e   : > { %v10171_v47 = vadd.f32 %v4214_v24, %v4126_v51  ;;  %7671 = vpow2.f32 %v4527_v17  ;;  %v10173_v9 = vadd.f32 %v4039_v56, %v3951_v63  ;;  %5008 = vmatmul.bf16.gmra.mxu0 %v9963_v36  ;;  %v7033_v32 = vadd.f32 -1.0, %v7670_v39 }
 0x59f   : > { %v4662_v23 = vmul.f32 0.1, %v7032_v19  ;;  %7673 = vpow2.f32 %v4525_v29  ;;  %7147 = vmatmul.msk.bf16.gmra.mxu1 %vm4921_vm10, %v9983_v55 }
 0x5a0   : > { %v4346_v8 = vmin.f32 %v10171_v47, 0.0  ;;  %5186 = vmatmul.bf16.gmra.mxu2 %v9963_v36  ;;  %v4347_v22 = vmin.f32 %v10173_v9, 0.0  ;;  %v4663_v43 = vmul.f32 0.1, %v7033_v32  ;;  %vm4282_vm9 = vcmp.gt.f32.partialorder %v10171_v47, 0.0 }
 0x5a1   : > { %v4726_v57 = vsel %vm4278_vm5, %v10137_v1, %v4662_v23  ;;  %7163 = vmatmul.msk.bf16.gmra.mxu3 %vm4921_vm10, %v9983_v55  ;;  %vm4283_vm11 = vcmp.gt.f32.partialorder %v10173_v9, 0.0  ;;  %vm5911_vm5 = vcmask 261120  }
 0x5a2   : > { %v10190_v60 = vpack.c.bf16 %v4726_v57, %v4724_v62  ;;  %v4410_v3 = vmul.f32 10.0, %v4346_v8  ;;  %v4411_v49 = vmul.f32 10.0, %v4347_v22  ;;  %v4727_v35 = vsel %vm4279_vm6, %v10139_v40, %v4663_v43 }
 0x5a3   : > { %v4128_v14 = vpop.f32.mrf.mxu2  ;;  %v3952_v18 = vpop.f32.mrf.mxu0 }
 0x5a4   : > { %v4529_v13 = vmul.f32 1.442695, %v4410_v3  ;;  %v4129_v48 = vadd.f32 %v4128_v14, %v9704_v38  ;;  %v4217_v36 = vpop.f32.mrf.mxu3  ;;  %v7672_v26 = vpop.eup %7671  ;;  %v4531_v52 = vmul.f32 1.442695, %v4411_v49  ;;  %v3953_v1 = vadd.f32 %v3952_v18, %v9692_v12  ;;  %v4795_v18 = vld [vmem:[%s527_s15] sm:$0x3] }
 0x5a5   : > { %v4041_v11 = vpop.f32.mrf.mxu1  ;;  %v7674_v31 = vpop.eup %7673  ;;  %v7035_v55 = vadd.f32 -1.0, %v7672_v26 }
 0x5a6   : > { %7675 = vpow2.f32 %v4529_v13  ;;  %v10194_v50 = vadd.f32 %v4217_v36, %v4129_v48  ;;  %v10196_v6 = vadd.f32 %v4041_v11, %v3953_v1  ;;  %v7034_v5 = vadd.f32 -1.0, %v7674_v31 }
 0x5a7   : > { %v4665_v10 = vmul.f32 0.1, %v7035_v55  ;;  %7677 = vpow2.f32 %v4531_v52  ;;  %v10245_v55 = vperm.slane %v4795_v18, 0 }
 0x5a8   : > { %v4348_v53 = vmin.f32 %v10194_v50, 0.0  ;;  %v4349_v2 = vmin.f32 %v10196_v6, 0.0  ;;  %v4664_v24 = vmul.f32 0.1, %v7034_v5  ;;  %vm4285_vm12 = vcmp.gt.f32.partialorder %v10196_v6, 0.0 }
 0x5a9   : > { %v4729_v7 = vsel %vm4281_vm7, %v10159_v30, %v4665_v10  ;;  %vm4284_vm13 = vcmp.gt.f32.partialorder %v10194_v50, 0.0 }
 0x5aa   : > { %v4412_v42 = vmul.f32 10.0, %v4348_v53  ;;  %v4413_v28 = vmul.f32 10.0, %v4349_v2  ;;  %v10208_v16 = vpack.c.bf16 %v4729_v7, %v4727_v35  ;;  %v4728_v23 = vsel %vm4280_vm8, %v10157_v33, %v4664_v24 }
 0x5ab   : > { %v4130_v54 = vpop.f32.mrf.mxu2  ;;  %v3955_v51 = vpop.f32.mrf.mxu0 }
 0x5ac   : > { %v7676_v34 = vpop.eup %7675  ;;  %v4533_v41 = vmul.f32 1.442695, %v4412_v42  ;;  %v4131_v44 = vadd.f32 %v4130_v54, %v9704_v38  ;;  %v4219_v29 = vpop.f32.mrf.mxu3  ;;  %v4535_v61 = vmul.f32 1.442695, %v4413_v28  ;;  %v3956_v40 = vadd.f32 %v3955_v51, %v9692_v12 }
 0x5ad   : > { %v7036_v20 = vadd.f32 -1.0, %v7676_v34  ;;  %v4044_v19 = vpop.f32.mrf.mxu1  ;;  %v7678_v17 = vpop.eup %7677 }
 0x5ae   : > { %v10212_v30 = vadd.f32 %v4219_v29, %v4131_v44  ;;  %7679 = vpow2.f32 %v4535_v61  ;;  %v10214_v56 = vadd.f32 %v4044_v19, %v3956_v40  ;;  %5013 = vmatmul.bf16.gmra.mxu0 %v9997_v27  ;;  %v7037_v22 = vadd.f32 -1.0, %v7678_v17 }
 0x5af   : > { %v4666_v63 = vmul.f32 0.1, %v7036_v20  ;;  %7681 = vpow2.f32 %v4533_v41  ;;  %7148 = vmatmul.msk.bf16.gmra.mxu1 %vm4921_vm10, %v10017_v15 }
 0x5b0   : > { %v4350_v39 = vmin.f32 %v10212_v30, 0.0  ;;  %5191 = vmatmul.bf16.gmra.mxu2 %v9997_v27  ;;  %v4351_v62 = vmin.f32 %v10214_v56, 0.0  ;;  %v4667_v52 = vmul.f32 0.1, %v7037_v22  ;;  %vm4286_vm14 = vcmp.gt.f32.partialorder %v10212_v30, 0.0 }
 0x5b1   : > { %v4730_v8 = vsel %vm4282_vm9, %v10171_v47, %v4666_v63  ;;  %7164 = vmatmul.msk.bf16.gmra.mxu3 %vm4921_vm10, %v10017_v15  ;;  %vm4287_vm15 = vcmp.gt.f32.partialorder %v10214_v56, 0.0 }
 0x5b2   : > { %v10229_v57 = vpack.c.bf16 %v4730_v8, %v4728_v23  ;;  %v4414_v32 = vmul.f32 10.0, %v4350_v39  ;;  %v4415_v3 = vmul.f32 10.0, %v4351_v62  ;;  %v4731_v2 = vsel %vm4283_vm11, %v10173_v9, %v4667_v52 }
 0x5b3   : > { %v4133_v27 = vpop.f32.mrf.mxu2  ;;  %v3957_v14 = vpop.f32.mrf.mxu0 }
 0x5b4   : > { %v4537_v49 = vmul.f32 1.442695, %v4414_v32  ;;  %v4134_v33 = vadd.f32 %v4133_v27, %v9704_v38  ;;  %v4222_v47 = vpop.f32.mrf.mxu3  ;;  %v7680_v13 = vpop.eup %7679  ;;  %v4539_v48 = vmul.f32 1.442695, %v4415_v3  ;;  %v3958_v15 = vadd.f32 %v3957_v14, %v9692_v12 }
 0x5b5   : > { %v4046_v36 = vpop.f32.mrf.mxu1  ;;  %v7682_v26 = vpop.eup %7681  ;;  %v7039_v1 = vadd.f32 -1.0, %v7680_v13 }
 0x5b6   : > { %7683 = vpow2.f32 %v4537_v49  ;;  %v10239_v11 = vadd.f32 %v4222_v47, %v4134_v33  ;;  %v10241_v31 = vadd.f32 %v4046_v36, %v3958_v15  ;;  %v7038_v12 = vadd.f32 -1.0, %v7682_v26 }
 0x5b7   : > { %v4669_v53 = vmul.f32 0.1, %v7039_v1  ;;  %7685 = vpow2.f32 %v4539_v48 }
 0x5b8   : > { %v4352_v43 = vmin.f32 %v10239_v11, 0.0  ;;  %v4353_v10 = vmin.f32 %v10241_v31, 0.0  ;;  %v4668_v51 = vmul.f32 0.1, %v7038_v12  ;;  %vm4289_vm0 = vcmp.gt.f32.partialorder %v10241_v31, 0.0 }
 0x5b9   : > { %v4733_v42 = vsel %vm4285_vm12, %v10196_v6, %v4669_v53  ;;  %vm4288_vm1 = vcmp.gt.f32.partialorder %v10239_v11, 0.0 }
 0x5ba   : > { %v4416_v5 = vmul.f32 10.0, %v4352_v43  ;;  %v4417_v35 = vmul.f32 10.0, %v4353_v10  ;;  %v10251_v28 = vpack.c.bf16 %v4733_v42, %v4731_v2  ;;  %v4732_v39 = vsel %vm4284_vm13, %v10194_v50, %v4668_v51  ;;  %v5838_v42 = vld [vmem:[%s533_s21] sm:$0x3] }
 0x5bb   : > { %v4135_v7 = vpop.f32.mrf.mxu2  ;;  %v4979_v29 = vpop.f32.mrf.mxu0 }
 0x5bc   : > { %v7684_v54 = vpop.eup %7683  ;;  %v4541_v34 = vmul.f32 1.442695, %v4416_v5  ;;  %v4136_v41 = vadd.f32 %v4135_v7, %v9704_v38  ;;  %v4224_v44 = vpop.f32.mrf.mxu3  ;;  %v4543_v20 = vmul.f32 1.442695, %v4417_v35  ;;  %v4980_v61 = vadd.f32 %v4979_v29, %v10245_v55 }
 0x5bd   : > { %v7040_v24 = vadd.f32 -1.0, %v7684_v54  ;;  %v5068_v40 = vpop.f32.mrf.mxu1  ;;  %v7686_v6 = vpop.eup %7685  ;;  %v10261_v38 = vperm.slane %v4795_v18, 1 }
 0x5be   : > { %v10256_v9 = vadd.f32 %v4224_v44, %v4136_v41  ;;  %7687 = vpow2.f32 %v4543_v20  ;;  %v10258_v17 = vadd.f32 %v5068_v40, %v4980_v61  ;;  %5018 = vmatmul.bf16.gmra.mxu0 %v10031_v25  ;;  %v7041_v22 = vadd.f32 -1.0, %v7686_v6 }
 0x5bf   : > { %v4670_v19 = vmul.f32 0.1, %v7040_v24  ;;  %7689 = vpow2.f32 %v4541_v34  ;;  %7149 = vmatmul.msk.bf16.gmra.mxu1 %vm4921_vm10, %v10051_v37  ;;  %v5839_v40 = vunpack.c.l.bf16 %v5838_v42 }
 0x5c0   : > { %v4354_v63 = vmin.f32 %v10256_v9, 0.0  ;;  %5196 = vmatmul.bf16.gmra.mxu2 %v10031_v25  ;;  %v5390_v8 = vmin.f32 %v10258_v17, 0.0  ;;  %v4671_v48 = vmul.f32 0.1, %v7041_v22  ;;  %vm4290_vm2 = vcmp.gt.f32.partialorder %v10256_v9, 0.0 }
 0x5c1   : > { %v4734_v23 = vsel %vm4286_vm14, %v10212_v30, %v4670_v19  ;;  %7165 = vmatmul.msk.bf16.gmra.mxu3 %vm4921_vm10, %v10051_v37  ;;  %vm5326_vm3 = vcmp.gt.f32.partialorder %v10258_v17, 0.0 }
 0x5c2   : > { %v10277_v62 = vpack.c.bf16 %v4734_v23, %v4732_v39  ;;  %v4418_v32 = vmul.f32 10.0, %v4354_v63  ;;  %v5454_v3 = vmul.f32 10.0, %v5390_v8  ;;  %v4735_v12 = vsel %vm4287_vm15, %v10214_v56, %v4671_v48 }
 0x5c3   : > { %v5157_v27 = vpop.f32.mrf.mxu2  ;;  %v4981_v50 = vpop.f32.mrf.mxu0 }
 0x5c4   : > { %v4545_v49 = vmul.f32 1.442695, %v4418_v32  ;;  %v5158_v25 = vadd.f32 %v5157_v27, %v10261_v38  ;;  %v5246_v33 = vpop.f32.mrf.mxu3  ;;  %v7688_v30 = vpop.eup %7687  ;;  %v5518_v47 = vmul.f32 1.442695, %v5454_v3  ;;  %v4982_v14 = vadd.f32 %v4981_v50, %v10245_v55 }
 0x5c5   : > { %v5070_v13 = vpop.f32.mrf.mxu1  ;;  %v7690_v37 = vpop.eup %7689  ;;  %v7043_v15 = vadd.f32 -1.0, %v7688_v30  ;;  %v5841_v27 = vperm.slane %v5839_v40, 0 }
 0x5c6   : > { %7691 = vpow2.f32 %v4545_v49  ;;  %v10281_v36 = vadd.f32 %v5246_v33, %v5158_v25  ;;  %v10283_v18 = vadd.f32 %v5070_v13, %v4982_v14  ;;  %v7042_v1 = vadd.f32 -1.0, %v7690_v37 }
 0x5c7   : > { %7693 = vpow2.f32 %v5518_v47  ;;  %v4673_v52 = vmul.f32 0.1, %v7043_v15  ;;  %v5842_v49 = vperm.slane %v5839_v40, 2 }
 0x5c8   : > { %v5391_v26 = vmin.f32 %v10281_v36, 0.0  ;;  %v5392_v43 = vmin.f32 %v10283_v18, 0.0  ;;  %v4672_v51 = vmul.f32 0.1, %v7042_v1  ;;  %vm5327_vm4 = vcmp.gt.f32.partialorder %v10281_v36, 0.0 }
 0x5c9   : > { %v4737_v10 = vsel %vm4289_vm0, %v10241_v31, %v4673_v52  ;;  %v10332_v52 = vperm.slane %v5842_v49, 0  ;;  %vm5328_vm6 = vcmp.gt.f32.partialorder %v10283_v18, 0.0 }
 0x5ca   : > { %v5455_v53 = vmul.f32 10.0, %v5391_v26  ;;  %v5456_v5 = vmul.f32 10.0, %v5392_v43  ;;  %v10297_v35 = vpack.c.bf16 %v4737_v10, %v4735_v12  ;;  %v4736_v23 = vsel %vm4288_vm1, %v10239_v11, %v4672_v51 }
 0x5cb   : > { %v5159_v2 = vpop.f32.mrf.mxu2  ;;  %v4984_v44 = vpop.f32.mrf.mxu0  ;;  %v10330_v26 = vperm.slane %v5841_v27, 0 }
 0x5cc   : > { %v7692_v7 = vpop.eup %7691  ;;  %v5520_v54 = vmul.f32 1.442695, %v5455_v53  ;;  %v5160_v34 = vadd.f32 %v5159_v2, %v10261_v38  ;;  %v5248_v41 = vpop.f32.mrf.mxu3  ;;  %v5522_v20 = vmul.f32 1.442695, %v5456_v5  ;;  %v4985_v56 = vadd.f32 %v4984_v44, %v10245_v55 }
 0x5cd   : > { %v7694_v29 = vpop.eup %7693  ;;  %v7044_v24 = vadd.f32 -1.0, %v7692_v7  ;;  %v5073_v31 = vpop.f32.mrf.mxu1 }
 0x5ce   : > { %7695 = vpow2.f32 %v5520_v54  ;;  %v10301_v61 = vadd.f32 %v5248_v41, %v5160_v34  ;;  %v10304_v19 = vadd.f32 %v5073_v31, %v4985_v56  ;;  %5023 = vmatmul.bf16.gmra.mxu0 %v10065_v59  ;;  %v7173_v39 = vadd.f32 -1.0, %v7694_v29 }
 0x5cf   : > { %v4674_v6 = vmul.f32 0.1, %v7044_v24  ;;  %7697 = vpow2.f32 %v5522_v20  ;;  %7150 = vmatmul.msk.bf16.gmra.mxu1 %vm4921_vm10, %v10085_v58 }
 0x5d0   : > { %v5393_v63 = vmin.f32 %v10301_v61, 0.0  ;;  %5201 = vmatmul.bf16.gmra.mxu2 %v10065_v59  ;;  %v5394_v22 = vmin.f32 %v10304_v19, 0.0  ;;  %v5710_v47 = vmul.f32 0.1, %v7173_v39  ;;  %vm5329_vm7 = vcmp.gt.f32.partialorder %v10301_v61, 0.0 }
 0x5d1   : > { %v4738_v8 = vsel %vm4290_vm2, %v10256_v9, %v4674_v6  ;;  %7166 = vmatmul.msk.bf16.gmra.mxu3 %vm4921_vm10, %v10085_v58  ;;  %vm5330_vm8 = vcmp.gt.f32.partialorder %v10304_v19, 0.0 }
 0x5d2   : > { %v10319_v32 = vpack.c.bf16 %v4738_v8, %v4736_v23  ;;  %v5457_v3 = vmul.f32 10.0, %v5393_v63  ;;  %v5458_v59 = vmul.f32 10.0, %v5394_v22  ;;  %v5774_v12 = vsel %vm5326_vm3, %v10258_v17, %v5710_v47 }
 0x5d3   : > { %v5162_v25 = vpop.f32.mrf.mxu2  ;;  %v4986_v30 = vpop.f32.mrf.mxu0  ;;  %v5847_v41 = vmul.f32 %v10330_v26, %v5774_v12 }
 0x5d4   : > { %v7696_v11 = vpop.eup %7695  ;;  %v5524_v33 = vmul.f32 1.442695, %v5457_v3  ;;  %v5163_v9 = vadd.f32 %v5162_v25, %v10261_v38  ;;  %v5251_v50 = vpop.f32.mrf.mxu3  ;;  %v5526_v13 = vmul.f32 1.442695, %v5458_v59  ;;  %v4987_v37 = vadd.f32 %v4986_v30, %v10245_v55 }
 0x5d5   : > { %v7698_v58 = vpop.eup %7697  ;;  %v7174_v14 = vadd.f32 -1.0, %v7696_v11  ;;  %v5075_v48 = vpop.f32.mrf.mxu1 }
 0x5d6   : > { %7699 = vpow2.f32 %v5524_v33  ;;  %v10328_v15 = vadd.f32 %v5251_v50, %v5163_v9  ;;  %v10335_v1 = vadd.f32 %v5075_v48, %v4987_v37  ;;  %v7175_v10 = vadd.f32 -1.0, %v7698_v58 }
 0x5d7   : > { %7701 = vpow2.f32 %v5526_v13  ;;  %v5711_v43 = vmul.f32 0.1, %v7174_v14 }
 0x5d8   : > { %v5395_v53 = vmin.f32 %v10328_v15, 0.0  ;;  %v5396_v5 = vmin.f32 %v10335_v1, 0.0  ;;  %v5712_v56 = vmul.f32 0.1, %v7175_v10  ;;  %vm5331_vm9 = vcmp.gt.f32.partialorder %v10328_v15, 0.0 }
 0x5d9   : > { %v5775_v2 = vsel %vm5327_vm4, %v10281_v36, %v5711_v43  ;;  %vm5332_vm11 = vcmp.gt.f32.partialorder %v10335_v1, 0.0 }
 0x5da   : > { %v5459_v42 = vmul.f32 10.0, %v5395_v53  ;;  %v5848_v7 = vmul.f32 %v10332_v52, %v5775_v2  ;;  %v5460_v54 = vmul.f32 10.0, %v5396_v5  ;;  %v5776_v27 = vsel %vm5328_vm6, %v10283_v18, %v5712_v56 }
 0x5db   : > { %v5164_v34 = vpop.f32.mrf.mxu2  ;;  %v4989_v20 = vpop.f32.mrf.mxu0  ;;  %v5849_v30 = vmul.f32 %v10330_v26, %v5776_v27 }
 0x5dc   : > { %v7700_v44 = vpop.eup %7699  ;;  %v5528_v29 = vmul.f32 1.442695, %v5459_v42  ;;  %v5165_v51 = vadd.f32 %v5164_v34, %v10261_v38  ;;  %v5253_v24 = vpop.f32.mrf.mxu3  ;;  %v5912_v17 = vsel %vm5911_vm5, %v5848_v7, 0.0  ;;  %v5530_v36 = vmul.f32 1.442695, %v5460_v54 }
 0x5dd   : > { %v7702_v31 = vpop.eup %7701  ;;  %v7176_v40 = vadd.f32 -1.0, %v7700_v44  ;;  %v4990_v6 = vadd.f32 %v4989_v20, %v10245_v55  ;;  %v5078_v63 = vpop.f32.mrf.mxu1  ;;  %v5913_v39 = vadd.f32 %v5912_v17, %v5847_v41 }
 0x5de   : > { %7703 = vpow2.f32 %v5528_v29  ;;  %v10347_v23 = vadd.f32 %v5253_v24, %v5165_v51  ;;  %5028 = vmatmul.bf16.gmra.mxu0 %v10099_v4  ;;  %v7177_v49 = vadd.f32 -1.0, %v7702_v31 }
 0x5df   : > { %7705 = vpow2.f32 %v5530_v36  ;;  %v10350_v8 = vadd.f32 %v5078_v63, %v4990_v6  ;;  %5914 = vadd.xlane.f32.xlu0 %v5913_v39  ;;  %v5713_v22 = vmul.f32 0.1, %v7176_v40  ;;  %7151 = vmatmul.msk.bf16.gmra.mxu1 %vm4921_vm10, %v10119_v46 }
 0x5e0   : > { %v5397_v3 = vmin.f32 %v10347_v23, 0.0  ;;  %5206 = vmatmul.bf16.gmra.mxu2 %v10099_v4  ;;  %v5714_v37 = vmul.f32 0.1, %v7177_v49  ;;  %vm5333_vm12 = vcmp.gt.f32.partialorder %v10347_v23, 0.0 }
 0x5e1   : > { %v5398_v59 = vmin.f32 %v10350_v8, 0.0  ;;  %7167 = vmatmul.msk.bf16.gmra.mxu3 %vm4921_vm10, %v10119_v46  ;;  %v5777_v25 = vsel %vm5329_vm7, %v10301_v61, %v5713_v22  ;;  %vm5334_vm13 = vcmp.gt.f32.partialorder %v10350_v8, 0.0 }
 0x5e2   : > { %v5461_v11 = vmul.f32 10.0, %v5397_v3  ;;  %v5850_v33 = vmul.f32 %v10332_v52, %v5777_v25  ;;  %v5778_v7 = vsel %vm5330_vm8, %v10304_v19, %v5714_v37 }
 0x5e3   : > { %v5462_v9 = vmul.f32 10.0, %v5398_v59  ;;  %v5167_v50 = vpop.f32.mrf.mxu2  ;;  %v4991_v14 = vpop.f32.mrf.mxu0  ;;  %v5851_v20 = vmul.f32 %v10330_v26, %v5778_v7 }
 0x5e4   : > { %v7704_v47 = vpop.eup %7703  ;;  %v5532_v58 = vmul.f32 1.442695, %v5461_v11  ;;  %v5168_v4 = vadd.f32 %v5167_v50, %v10261_v38  ;;  %v5256_v18 = vpop.f32.mrf.mxu3  ;;  %v5916_v13 = vsel %vm5911_vm5, %v5850_v33, 0.0  ;;  %v4992_v61 = vadd.f32 %v4991_v14, %v10245_v55 }
 0x5e5   : > { %v7706_v48 = vpop.eup %7705  ;;  %v7178_v46 = vadd.f32 -1.0, %v7704_v47  ;;  %v5534_v43 = vmul.f32 1.442695, %v5462_v9  ;;  %v5080_v53 = vpop.f32.mrf.mxu1  ;;  %v5917_v12 = vadd.f32 %v5916_v13, %v5849_v30 }
 0x5e6   : > { %7707 = vpow2.f32 %v5532_v58  ;;  %v10368_v10 = vadd.f32 %v5256_v18, %v5168_v4  ;;  %v10371_v5 = vadd.f32 %v5080_v53, %v4992_v61  ;;  %v7179_v54 = vadd.f32 -1.0, %v7706_v48 }
 0x5e7   : > { %7709 = vpow2.f32 %v5534_v43  ;;  %5918 = vadd.xlane.f32.xlu0 %v5917_v12  ;;  %v5715_v2 = vmul.f32 0.1, %v7178_v46 }
 0x5e8   : > { %v5399_v42 = vmin.f32 %v10368_v10, 0.0  ;;  %v5400_v34 = vmin.f32 %v10371_v5, 0.0  ;;  %v5716_v6 = vmul.f32 0.1, %v7179_v54  ;;  %vm5335_vm14 = vcmp.gt.f32.partialorder %v10368_v10, 0.0 }
 0x5e9   : > { %v5779_v41 = vsel %vm5331_vm9, %v10328_v15, %v5715_v2  ;;  %vm5336_vm15 = vcmp.gt.f32.partialorder %v10371_v5, 0.0 }
 0x5ea   : > { %v5463_v44 = vmul.f32 10.0, %v5399_v42  ;;  %v5852_v29 = vmul.f32 %v10332_v52, %v5779_v41  ;;  %v5464_v51 = vmul.f32 10.0, %v5400_v34  ;;  %v5780_v33 = vsel %vm5332_vm11, %v10335_v1, %v5716_v6 }
 0x5eb   : > { %v5169_v24 = vpop.f32.mrf.mxu2  ;;  %v4994_v36 = vpop.f32.mrf.mxu0  ;;  %v5853_v14 = vmul.f32 %v10330_v26, %v5780_v33 }
 0x5ec   : > { %v7708_v17 = vpop.eup %7707  ;;  %v5536_v56 = vmul.f32 1.442695, %v5463_v44  ;;  %v5170_v31 = vadd.f32 %v5169_v24, %v10261_v38  ;;  %v5258_v40 = vpop.f32.mrf.mxu3  ;;  %v5920_v19 = vsel %vm5911_vm5, %v5852_v29, 0.0  ;;  %v5538_v22 = vmul.f32 1.442695, %v5464_v51 }
 0x5ed   : > { %v7710_v63 = vpop.eup %7709  ;;  %v7180_v39 = vadd.f32 -1.0, %v7708_v17  ;;  %v4995_v15 = vadd.f32 %v4994_v36, %v10245_v55  ;;  %v5083_v3 = vpop.f32.mrf.mxu1  ;;  %v5921_v27 = vadd.f32 %v5920_v19, %v5851_v20 }
 0x5ee   : > { %7711 = vpow2.f32 %v5536_v56  ;;  %v10383_v49 = vadd.f32 %v5258_v40, %v5170_v31  ;;  %5033 = vmatmul.bf16.gmra.mxu0 %v10133_v21  ;;  %v7181_v9 = vadd.f32 -1.0, %v7710_v63 }
 0x5ef   : > { %7713 = vpow2.f32 %v5538_v22  ;;  %v10386_v59 = vadd.f32 %v5083_v3, %v4995_v15  ;;  %5922 = vadd.xlane.f32.xlu1 %v5921_v27  ;;  %v5717_v25 = vmul.f32 0.1, %v7180_v39  ;;  %7152 = vmatmul.msk.bf16.gmra.mxu1 %vm4921_vm10, %v10153_v0 }
 0x5f0   : > { %v5401_v11 = vmin.f32 %v10383_v49, 0.0  ;;  %5211 = vmatmul.bf16.gmra.mxu2 %v10133_v21  ;;  %v5718_v43 = vmul.f32 0.1, %v7181_v9  ;;  %vm5337_vm0 = vcmp.gt.f32.partialorder %v10383_v49, 0.0 }
 0x5f1   : > { %v5402_v50 = vmin.f32 %v10386_v59, 0.0  ;;  %7168 = vmatmul.msk.bf16.gmra.mxu3 %vm4921_vm10, %v10153_v0  ;;  %v5781_v30 = vsel %vm5333_vm12, %v10347_v23, %v5717_v25  ;;  %vm5338_vm1 = vcmp.gt.f32.partialorder %v10386_v59, 0.0 }
 0x5f2   : > { %v5465_v47 = vmul.f32 10.0, %v5401_v11  ;;  %v5854_v58 = vmul.f32 %v10332_v52, %v5781_v30  ;;  %v5782_v41 = vsel %vm5334_vm13, %v10350_v8, %v5718_v43 }
 0x5f3   : > { %v5466_v4 = vmul.f32 10.0, %v5402_v50  ;;  %v5172_v18 = vpop.f32.mrf.mxu2  ;;  %v4996_v48 = vpop.f32.mrf.mxu0  ;;  %v5855_v31 = vmul.f32 %v10330_v26, %v5782_v41 }
 0x5f4   : > { %v7712_v13 = vpop.eup %7711  ;;  %v5540_v37 = vmul.f32 1.442695, %v5465_v47  ;;  %v5173_v21 = vadd.f32 %v5172_v18, %v10261_v38  ;;  %v5261_v1 = vpop.f32.mrf.mxu3  ;;  %v5924_v46 = vsel %vm5911_vm5, %v5854_v58, 0.0  ;;  %v4997_v23 = vadd.f32 %v4996_v48, %v10245_v55 }
 0x5f5   : > { %v7714_v61 = vpop.eup %7713  ;;  %v7182_v0 = vadd.f32 -1.0, %v7712_v13  ;;  %v5542_v53 = vmul.f32 1.442695, %v5466_v4  ;;  %v5085_v12 = vpop.f32.mrf.mxu1  ;;  %v5925_v2 = vadd.f32 %v5924_v46, %v5853_v14 }
 0x5f6   : > { %7715 = vpow2.f32 %v5540_v37  ;;  %v10404_v42 = vadd.f32 %v5261_v1, %v5173_v21  ;;  %v10407_v7 = vadd.f32 %v5085_v12, %v4997_v23  ;;  %v7183_v44 = vadd.f32 -1.0, %v7714_v61 }
 0x5f7   : > { %7717 = vpow2.f32 %v5542_v53  ;;  %5926 = vadd.xlane.f32.xlu1 %v5925_v2  ;;  %v5719_v54 = vmul.f32 0.1, %v7182_v0 }
 0x5f8   : > { %v5403_v34 = vmin.f32 %v10404_v42, 0.0  ;;  %v5404_v29 = vmin.f32 %v10407_v7, 0.0  ;;  %v5720_v39 = vmul.f32 0.1, %v7183_v44  ;;  %vm5339_vm2 = vcmp.gt.f32.partialorder %v10404_v42, 0.0 }
 0x5f9   : > { %v5783_v51 = vsel %vm5335_vm14, %v10368_v10, %v5719_v54  ;;  %vm5340_vm3 = vcmp.gt.f32.partialorder %v10407_v7, 0.0 }
 0x5fa   : > { %v5467_v24 = vmul.f32 10.0, %v5403_v34  ;;  %v5856_v20 = vmul.f32 %v10332_v52, %v5783_v51  ;;  %v5468_v17 = vmul.f32 10.0, %v5404_v29  ;;  %v5784_v47 = vsel %vm5336_vm15, %v10371_v5, %v5720_v39 }
 0x5fb   : > { %v5174_v56 = vpop.f32.mrf.mxu2  ;;  %v4999_v63 = vpop.f32.mrf.mxu0  ;;  %v5857_v21 = vmul.f32 %v10330_v26, %v5784_v47 }
 0x5fc   : > { %v7716_v40 = vpop.eup %7715  ;;  %v5544_v36 = vmul.f32 1.442695, %v5467_v24  ;;  %v5175_v19 = vadd.f32 %v5174_v56, %v10261_v38  ;;  %v5263_v6 = vpop.f32.mrf.mxu3  ;;  %v5928_v8 = vsel %vm5911_vm5, %v5856_v20, 0.0  ;;  %v5546_v3 = vmul.f32 1.442695, %v5468_v17 }
 0x5fd   : > { %v7718_v22 = vpop.eup %7717  ;;  %v7184_v15 = vadd.f32 -1.0, %v7716_v40  ;;  %v5000_v10 = vadd.f32 %v4999_v63, %v10245_v55  ;;  %v5088_v27 = vpop.f32.mrf.mxu1  ;;  %v5929_v25 = vadd.f32 %v5928_v8, %v5855_v31 }
 0x5fe   : > { %7719 = vpow2.f32 %v5544_v36  ;;  %v10419_v11 = vadd.f32 %v5263_v6, %v5175_v19  ;;  %5038 = vmatmul.bf16.gmra.mxu0 %v10167_v45  ;;  %v7185_v50 = vadd.f32 -1.0, %v7718_v22 }
 0x5ff   : > { %7721 = vpow2.f32 %v5546_v3  ;;  %v10422_v33 = vadd.f32 %v5088_v27, %v5000_v10  ;;  %5930 = vadd.xlane.f32.xlu2 %v5929_v25  ;;  %v5721_v9 = vmul.f32 0.1, %v7184_v15  ;;  %7153 = vmatmul.msk.bf16.gmra.mxu1 %vm4921_vm10, %v10190_v60 }
 0x600   : > { %v5405_v30 = vmin.f32 %v10419_v11, 0.0  ;;  %5216 = vmatmul.bf16.gmra.mxu2 %v10167_v45  ;;  %v5722_v48 = vmul.f32 0.1, %v7185_v50  ;;  %vm5341_vm4 = vcmp.gt.f32.partialorder %v10419_v11, 0.0 }
 0x601   : > { %v5406_v58 = vmin.f32 %v10422_v33, 0.0  ;;  %7169 = vmatmul.msk.bf16.gmra.mxu3 %vm4921_vm10, %v10190_v60  ;;  %v5785_v4 = vsel %vm5337_vm0, %v10383_v49, %v5721_v9  ;;  %vm5342_vm6 = vcmp.gt.f32.partialorder %v10422_v33, 0.0 }
 0x602   : > { %v5469_v18 = vmul.f32 10.0, %v5405_v30  ;;  %v5858_v14 = vmul.f32 %v10332_v52, %v5785_v4  ;;  %v5786_v44 = vsel %vm5338_vm1, %v10386_v59, %v5722_v48 }
 0x603   : > { %v5470_v13 = vmul.f32 10.0, %v5406_v58  ;;  %v5177_v37 = vpop.f32.mrf.mxu2  ;;  %v5001_v43 = vpop.f32.mrf.mxu0  ;;  %v5859_v40 = vmul.f32 %v10330_v26, %v5786_v44 }
 0x604   : > { %v7720_v1 = vpop.eup %7719  ;;  %v5548_v46 = vmul.f32 1.442695, %v5469_v18  ;;  %v5178_v45 = vadd.f32 %v5177_v37, %v10261_v38  ;;  %v5266_v5 = vpop.f32.mrf.mxu3  ;;  %v5932_v61 = vsel %vm5911_vm5, %v5858_v14, 0.0  ;;  %v5002_v49 = vadd.f32 %v5001_v43, %v10245_v55 }
 0x605   : > { %v7722_v0 = vpop.eup %7721  ;;  %v7186_v60 = vadd.f32 -1.0, %v7720_v1  ;;  %v5550_v53 = vmul.f32 1.442695, %v5470_v13  ;;  %v5090_v23 = vpop.f32.mrf.mxu1  ;;  %v5933_v12 = vadd.f32 %v5932_v61, %v5857_v21 }
 0x606   : > { %7723 = vpow2.f32 %v5548_v46  ;;  %v10440_v2 = vadd.f32 %v5266_v5, %v5178_v45  ;;  %v10443_v34 = vadd.f32 %v5090_v23, %v5002_v49  ;;  %v7187_v29 = vadd.f32 -1.0, %v7722_v0 }
 0x607   : > { %v5723_v54 = vmul.f32 0.1, %v7186_v60  ;;  %7725 = vpow2.f32 %v5550_v53  ;;  %5934 = vadd.xlane.f32.xlu2 %v5933_v12 }
 0x608   : > { %v5407_v41 = vmin.f32 %v10440_v2, 0.0  ;;  %v5408_v24 = vmin.f32 %v10443_v34, 0.0  ;;  %v5724_v39 = vmul.f32 0.1, %v7187_v29  ;;  %vm5343_vm7 = vcmp.gt.f32.partialorder %v10440_v2, 0.0 }
 0x609   : > { %v5787_v51 = vsel %vm5339_vm2, %v10404_v42, %v5723_v54  ;;  %vm5344_vm8 = vcmp.gt.f32.partialorder %v10443_v34, 0.0 }
 0x60a   : > { %v5471_v20 = vmul.f32 10.0, %v5407_v41  ;;  %v5860_v17 = vmul.f32 %v10332_v52, %v5787_v51  ;;  %v5472_v56 = vmul.f32 10.0, %v5408_v24  ;;  %v5788_v58 = vsel %vm5340_vm3, %v10407_v7, %v5724_v39 }
 0x60b   : > { %v5179_v31 = vpop.f32.mrf.mxu2  ;;  %v5004_v8 = vpop.f32.mrf.mxu0  ;;  %v5861_v1 = vmul.f32 %v10330_v26, %v5788_v58 }
 0x60c   : > { %v7724_v36 = vpop.eup %7723  ;;  %v5552_v19 = vmul.f32 1.442695, %v5471_v20  ;;  %v5180_v6 = vadd.f32 %v5179_v31, %v10261_v38  ;;  %v5268_v63 = vpop.f32.mrf.mxu3  ;;  %v5936_v59 = vsel %vm5911_vm5, %v5860_v17, 0.0  ;;  %v5554_v15 = vmul.f32 1.442695, %v5472_v56 }
 0x60d   : > { %v7726_v22 = vpop.eup %7725  ;;  %v7188_v42 = vadd.f32 -1.0, %v7724_v36  ;;  %v5005_v3 = vadd.f32 %v5004_v8, %v10245_v55  ;;  %v5093_v10 = vpop.f32.mrf.mxu1  ;;  %v5937_v27 = vadd.f32 %v5936_v59, %v5859_v40 }
 0x60e   : > { %7727 = vpow2.f32 %v5552_v19  ;;  %v10455_v25 = vadd.f32 %v5268_v63, %v5180_v6  ;;  %5043 = vmatmul.bf16.gmra.mxu0 %v10208_v16  ;;  %v7189_v30 = vadd.f32 -1.0, %v7726_v22 }
 0x60f   : > { %7729 = vpow2.f32 %v5554_v15  ;;  %v10458_v9 = vadd.f32 %v5093_v10, %v5005_v3  ;;  %5938 = vadd.xlane.f32.xlu0 %v5937_v27  ;;  %v5725_v50 = vmul.f32 0.1, %v7188_v42  ;;  %7154 = vmatmul.msk.bf16.gmra.mxu1 %vm4921_vm10, %v10229_v57 }
 0x610   : > { %v5409_v47 = vmin.f32 %v10455_v25, 0.0  ;;  %5221 = vmatmul.bf16.gmra.mxu2 %v10208_v16  ;;  %v5726_v46 = vmul.f32 0.1, %v7189_v30  ;;  %vm5345_vm9 = vcmp.gt.f32.partialorder %v10455_v25, 0.0 }
 0x611   : > { %v5410_v4 = vmin.f32 %v10458_v9, 0.0  ;;  %7170 = vmatmul.msk.bf16.gmra.mxu3 %vm4921_vm10, %v10229_v57  ;;  %v5789_v18 = vsel %vm5341_vm4, %v10419_v11, %v5725_v50  ;;  %vm5346_vm11 = vcmp.gt.f32.partialorder %v10458_v9, 0.0 }
 0x612   : > { %v5473_v14 = vmul.f32 10.0, %v5409_v47  ;;  %v5862_v13 = vmul.f32 %v10332_v52, %v5789_v18  ;;  %v5790_v44 = vsel %vm5342_vm6, %v10422_v33, %v5726_v46 }
 0x613   : > { %v5474_v37 = vmul.f32 10.0, %v5410_v4  ;;  %v5182_v21 = vpop.f32.mrf.mxu2  ;;  %v5006_v5 = vpop.f32.mrf.mxu0  ;;  %v5863_v31 = vmul.f32 %v10330_v26, %v5790_v44 }
 0x614   : > { %v7728_v48 = vpop.eup %7727  ;;  %v5556_v45 = vmul.f32 1.442695, %v5473_v14  ;;  %v5183_v16 = vadd.f32 %v5182_v21, %v10261_v38  ;;  %v5271_v7 = vpop.f32.mrf.mxu3  ;;  %v5940_v43 = vsel %vm5911_vm5, %v5862_v13, 0.0  ;;  %v5007_v11 = vadd.f32 %v5006_v5, %v10245_v55 }
 0x615   : > { %v7730_v61 = vpop.eup %7729  ;;  %v7190_v57 = vadd.f32 -1.0, %v7728_v48  ;;  %v5558_v0 = vmul.f32 1.442695, %v5474_v37  ;;  %v5095_v60 = vpop.f32.mrf.mxu1  ;;  %v5941_v53 = vadd.f32 %v5940_v43, %v5861_v1 }
 0x616   : > { %7731 = vpow2.f32 %v5556_v45  ;;  %v10476_v49 = vadd.f32 %v5271_v7, %v5183_v16  ;;  %v10479_v12 = vadd.f32 %v5095_v60, %v5007_v11  ;;  %v7191_v54 = vadd.f32 -1.0, %v7730_v61 }
 0x617   : > { %v5727_v23 = vmul.f32 0.1, %v7190_v57  ;;  %7733 = vpow2.f32 %v5558_v0  ;;  %5942 = vadd.xlane.f32.xlu1 %v5941_v53 }
 0x618   : > { %v5411_v41 = vmin.f32 %v10476_v49, 0.0  ;;  %v5412_v51 = vmin.f32 %v10479_v12, 0.0  ;;  %v5728_v36 = vmul.f32 0.1, %v7191_v54  ;;  %vm5347_vm12 = vcmp.gt.f32.partialorder %v10476_v49, 0.0 }
 0x619   : > { %v5791_v29 = vsel %vm5343_vm7, %v10440_v2, %v5727_v23  ;;  %vm5348_vm13 = vcmp.gt.f32.partialorder %v10479_v12, 0.0  ;;  %vm6076_vm7 = vcmask 7168  }
 0x61a   : > { %v5475_v24 = vmul.f32 10.0, %v5411_v41  ;;  %v5864_v20 = vmul.f32 %v10332_v52, %v5791_v29  ;;  %v5476_v17 = vmul.f32 10.0, %v5412_v51  ;;  %v5792_v47 = vsel %vm5344_vm8, %v10443_v34, %v5728_v36 }
 0x61b   : > { %v5184_v56 = vpop.f32.mrf.mxu2  ;;  %v5009_v8 = vpop.f32.mrf.mxu0  ;;  %v5865_v21 = vmul.f32 %v10330_v26, %v5792_v47 }
 0x61c   : > { %v7732_v40 = vpop.eup %7731  ;;  %v5560_v19 = vmul.f32 1.442695, %v5475_v24  ;;  %v5185_v6 = vadd.f32 %v5184_v56, %v10261_v38  ;;  %v5273_v63 = vpop.f32.mrf.mxu3  ;;  %v5944_v33 = vsel %vm5911_vm5, %v5864_v20, 0.0  ;;  %v5562_v39 = vmul.f32 1.442695, %v5476_v17 }
 0x61d   : > { %v7734_v59 = vpop.eup %7733  ;;  %v7192_v2 = vadd.f32 -1.0, %v7732_v40  ;;  %v5010_v22 = vadd.f32 %v5009_v8, %v10245_v55  ;;  %v5098_v42 = vpop.f32.mrf.mxu1  ;;  %v5945_v15 = vadd.f32 %v5944_v33, %v5863_v31 }
 0x61e   : > { %7735 = vpow2.f32 %v5560_v19  ;;  %v10491_v3 = vadd.f32 %v5273_v63, %v5185_v6  ;;  %5048 = vmatmul.bf16.gmra.mxu0 %v10251_v28  ;;  %v7193_v50 = vadd.f32 -1.0, %v7734_v59 }
 0x61f   : > { %v5729_v10 = vmul.f32 0.1, %v7192_v2  ;;  %7737 = vpow2.f32 %v5562_v39  ;;  %v10494_v27 = vadd.f32 %v5098_v42, %v5010_v22  ;;  %5946 = vadd.xlane.f32.xlu2 %v5945_v15  ;;  %7155 = vmatmul.msk.bf16.gmra.mxu1 %vm4921_vm10, %v10277_v62 }
 0x620   : > { %v5413_v30 = vmin.f32 %v10491_v3, 0.0  ;;  %5226 = vmatmul.bf16.gmra.mxu2 %v10251_v28  ;;  %v5730_v48 = vmul.f32 0.1, %v7193_v50  ;;  %vm5349_vm14 = vcmp.gt.f32.partialorder %v10491_v3, 0.0 }
 0x621   : > { %v5793_v58 = vsel %vm5345_vm9, %v10455_v25, %v5729_v10  ;;  %v5414_v4 = vmin.f32 %v10494_v27, 0.0  ;;  %7171 = vmatmul.msk.bf16.gmra.mxu3 %vm4921_vm10, %v10277_v62 }
 0x622   : > { %v5477_v18 = vmul.f32 10.0, %v5413_v30  ;;  %v5866_v14 = vmul.f32 %v10332_v52, %v5793_v58  ;;  %v5794_v23 = vsel %vm5346_vm11, %v10458_v9, %v5730_v48 }
 0x623   : > { %v5478_v13 = vmul.f32 10.0, %v5414_v4  ;;  %v5187_v37 = vpop.f32.mrf.mxu2  ;;  %v5011_v45 = vpop.f32.mrf.mxu0  ;;  %v5867_v20 = vmul.f32 %v10330_v26, %v5794_v23 }
 0x624   : > { %v7736_v1 = vpop.eup %7735  ;;  %v5564_v46 = vmul.f32 1.442695, %v5477_v18  ;;  %v5188_v28 = vadd.f32 %v5187_v37, %v10261_v38  ;;  %v5276_v34 = vpop.f32.mrf.mxu3  ;;  %v5948_v25 = vsel %vm5911_vm5, %v5866_v14, 0.0  ;;  %v5012_v62 = vadd.f32 %v5011_v45, %v10245_v55 }
 0x625   : > { %v7738_v16 = vpop.eup %7737  ;;  %v7194_v7 = vadd.f32 -1.0, %v7736_v1  ;;  %v5566_v5 = vmul.f32 1.442695, %v5478_v13  ;;  %v5100_v43 = vpop.f32.mrf.mxu1  ;;  %v5949_v61 = vadd.f32 %v5948_v25, %v5865_v21 }
 0x626   : > { %7739 = vpow2.f32 %v5564_v46  ;;  %v10512_v57 = vadd.f32 %v5276_v34, %v5188_v28  ;;  %v10515_v11 = vadd.f32 %v5100_v43, %v5012_v62  ;;  %v7195_v60 = vadd.f32 -1.0, %v7738_v16 }
 0x627   : > { %v5731_v0 = vmul.f32 0.1, %v7194_v7  ;;  %7741 = vpow2.f32 %v5566_v5  ;;  %5950 = vadd.xlane.f32.xlu0 %v5949_v61 }
 0x628   : > { %v5415_v53 = vmin.f32 %v10512_v57, 0.0  ;;  %v5416_v41 = vmin.f32 %v10515_v11, 0.0  ;;  %v5732_v56 = vmul.f32 0.1, %v7195_v60  ;;  %vm5351_vm15 = vcmp.gt.f32.partialorder %v10512_v57, 0.0 }
 0x629   : > { %v5795_v54 = vsel %vm5347_vm12, %v10476_v49, %v5731_v0  ;;  %vm5352_vm0 = vcmp.gt.f32.partialorder %v10515_v11, 0.0 }
 0x62a   : > { %v5479_v44 = vmul.f32 10.0, %v5415_v53  ;;  %v5868_v29 = vmul.f32 %v10332_v52, %v5795_v54  ;;  %v5480_v51 = vmul.f32 10.0, %v5416_v41  ;;  %v5796_v10 = vsel %vm5348_vm13, %v10479_v12, %v5732_v56 }
 0x62b   : > { %v5189_v24 = vpop.f32.mrf.mxu2  ;;  %v5014_v19 = vpop.f32.mrf.mxu0  ;;  %v5869_v14 = vmul.f32 %v10330_v26, %v5796_v10 }
 0x62c   : > { %v7740_v17 = vpop.eup %7739  ;;  %v5568_v31 = vmul.f32 1.442695, %v5479_v44  ;;  %v5190_v40 = vadd.f32 %v5189_v24, %v10261_v38  ;;  %v5278_v36 = vpop.f32.mrf.mxu3  ;;  %v5952_v9 = vsel %vm5911_vm5, %v5868_v29, 0.0  ;;  %v5570_v63 = vmul.f32 1.442695, %v5480_v51 }
 0x62d   : > { %v7742_v6 = vpop.eup %7741  ;;  %v7196_v49 = vadd.f32 -1.0, %v7740_v17  ;;  %v5015_v8 = vadd.f32 %v5014_v19, %v10245_v55  ;;  %v5103_v33 = vpop.f32.mrf.mxu1  ;;  %v5953_v59 = vadd.f32 %v5952_v9, %v5867_v20 }
 0x62e   : > { %7743 = vpow2.f32 %v5568_v31  ;;  %v10527_v2 = vadd.f32 %v5278_v36, %v5190_v40  ;;  %5053 = vmatmul.bf16.gmra.mxu0 %v10297_v35  ;;  %v7197_v42 = vadd.f32 -1.0, %v7742_v6 }
 0x62f   : > { %v5733_v39 = vmul.f32 0.1, %v7196_v49  ;;  %7745 = vpow2.f32 %v5570_v63  ;;  %v10530_v22 = vadd.f32 %v5103_v33, %v5015_v8  ;;  %5954 = vadd.xlane.f32.xlu1 %v5953_v59  ;;  %7156 = vmatmul.msk.bf16.gmra.mxu1 %vm4921_vm10, %v10319_v32 }
 0x630   : > { %v5417_v15 = vmin.f32 %v10527_v2, 0.0  ;;  %5231 = vmatmul.bf16.gmra.mxu2 %v10297_v35  ;;  %v5734_v37 = vmul.f32 0.1, %v7197_v42  ;;  %vm5353_vm1 = vcmp.gt.f32.partialorder %v10527_v2, 0.0 }
 0x631   : > { %v5797_v50 = vsel %vm5349_vm14, %v10491_v3, %v5733_v39  ;;  %v5418_v30 = vmin.f32 %v10530_v22, 0.0  ;;  %7172 = vmatmul.msk.bf16.gmra.mxu3 %vm4921_vm10, %v10319_v32  ;;  %vm5350_vm10 = vcmp.gt.f32.partialorder %v10494_v27, 0.0  ;;  %vm5354_vm2 = vcmp.gt.f32.partialorder %v10530_v22, 0.0 }
 0x632   : > { %v5481_v47 = vmul.f32 10.0, %v5417_v15  ;;  %v5870_v58 = vmul.f32 %v10332_v52, %v5797_v50  ;;  %v5798_v43 = vsel %vm5350_vm10, %v10494_v27, %v5734_v37 }
 0x633   : > { %v5482_v4 = vmul.f32 10.0, %v5418_v30  ;;  %v5192_v18 = vpop.f32.mrf.mxu2  ;;  %v5016_v1 = vpop.f32.mrf.mxu0  ;;  %v5871_v41 = vmul.f32 %v10330_v26, %v5798_v43 }
 0x634   : > { %v7744_v13 = vpop.eup %7743  ;;  %v5572_v21 = vmul.f32 1.442695, %v5481_v47  ;;  %v5193_v35 = vadd.f32 %v5192_v18, %v10261_v38  ;;  %v5281_v12 = vpop.f32.mrf.mxu3  ;;  %v5956_v3 = vsel %vm5911_vm5, %v5870_v58, 0.0  ;;  %v5017_v32 = vadd.f32 %v5016_v1, %v10245_v55 }
 0x635   : > { %v7746_v48 = vpop.eup %7745  ;;  %v7198_v46 = vadd.f32 -1.0, %v7744_v13  ;;  %v5574_v28 = vmul.f32 1.442695, %v5482_v4  ;;  %v5105_v34 = vpop.f32.mrf.mxu1  ;;  %v5957_v45 = vadd.f32 %v5956_v3, %v5869_v14 }
 0x636   : > { %7747 = vpow2.f32 %v5572_v21  ;;  %v10548_v25 = vadd.f32 %v5281_v12, %v5193_v35  ;;  %v10551_v7 = vadd.f32 %v5105_v34, %v5017_v32  ;;  %v7199_v5 = vadd.f32 -1.0, %v7746_v48 }
 0x637   : > { %v5735_v16 = vmul.f32 0.1, %v7198_v46  ;;  %7749 = vpow2.f32 %v5574_v28  ;;  %5958 = vadd.xlane.f32.xlu2 %v5957_v45 }
 0x638   : > { %v5419_v62 = vmin.f32 %v10548_v25, 0.0  ;;  %v5420_v0 = vmin.f32 %v10551_v7, 0.0  ;;  %v5736_v29 = vmul.f32 0.1, %v7199_v5  ;;  %vm5355_vm3 = vcmp.gt.f32.partialorder %v10548_v25, 0.0 }
 0x639   : > { %v5799_v61 = vsel %vm5351_vm15, %v10512_v57, %v5735_v16  ;;  %vm5356_vm4 = vcmp.gt.f32.partialorder %v10551_v7, 0.0 }
 0x63a   : > { %v5483_v60 = vmul.f32 10.0, %v5419_v62  ;;  %v5872_v53 = vmul.f32 %v10332_v52, %v5799_v61  ;;  %v5484_v23 = vmul.f32 10.0, %v5420_v0  ;;  %v5800_v33 = vsel %vm5352_vm0, %v10515_v11, %v5736_v29 }
 0x63b   : > { %v5194_v54 = vpop.f32.mrf.mxu2  ;;  %v5019_v17 = vpop.f32.mrf.mxu0  ;;  %v5873_v30 = vmul.f32 %v10330_v26, %v5800_v33 }
 0x63c   : > { %v7748_v44 = vpop.eup %7747  ;;  %v5576_v51 = vmul.f32 1.442695, %v5483_v60  ;;  %v5195_v24 = vadd.f32 %v5194_v54, %v10261_v38  ;;  %v5283_v20 = vpop.f32.mrf.mxu3  ;;  %v5960_v27 = vsel %vm5911_vm5, %v5872_v53, 0.0  ;;  %v5578_v31 = vmul.f32 1.442695, %v5484_v23 }
 0x63d   : > { %v7750_v56 = vpop.eup %7749  ;;  %v7200_v57 = vadd.f32 -1.0, %v7748_v44  ;;  %v5020_v40 = vadd.f32 %v5019_v17, %v10245_v55  ;;  %v5108_v36 = vpop.f32.mrf.mxu1  ;;  %v5961_v19 = vadd.f32 %v5960_v27, %v5871_v41 }
 0x63e   : > { %7751 = vpow2.f32 %v5576_v51  ;;  %v10563_v9 = vadd.f32 %v5283_v20, %v5195_v24  ;;  %v7201_v63 = vadd.f32 -1.0, %v7750_v56 }
 0x63f   : > { %v5737_v6 = vmul.f32 0.1, %v7200_v57  ;;  %7753 = vpow2.f32 %v5578_v31  ;;  %v10566_v49 = vadd.f32 %v5108_v36, %v5020_v40  ;;  %5962 = vadd.xlane.f32.xlu0 %v5961_v19  ;;  %v10600_v31 = vld [vmem:[%s10324_s25] ss:$0 sm:$0xff] }
 0x640   : > { %v5421_v8 = vmin.f32 %v10563_v9, 0.0  ;;  %v5738_v58 = vmul.f32 0.1, %v7201_v63  ;;  %vm5357_vm6 = vcmp.gt.f32.partialorder %v10563_v9, 0.0 }
 0x641   : > { %v5801_v59 = vsel %vm5353_vm1, %v10527_v2, %v5737_v6  ;;  %v5422_v39 = vmin.f32 %v10566_v49, 0.0  ;;  %vm5358_vm8 = vcmp.gt.f32.partialorder %v10566_v49, 0.0 }
 0x642   : > { %v5485_v42 = vmul.f32 10.0, %v5421_v8  ;;  %v5874_v15 = vmul.f32 %v10332_v52, %v5801_v59  ;;  %v5802_v34 = vsel %vm5354_vm2, %v10530_v22, %v5738_v58 }
 0x643   : > { %v5486_v10 = vmul.f32 10.0, %v5422_v39  ;;  %v5197_v50 = vpop.f32.mrf.mxu2  ;;  %v5021_v13 = vpop.f32.mrf.mxu0  ;;  %v5875_v0 = vmul.f32 %v10330_v26, %v5802_v34 }
 0x644   : > { %v7752_v47 = vpop.eup %7751  ;;  %v5580_v4 = vmul.f32 1.442695, %v5485_v42  ;;  %v5198_v18 = vadd.f32 %v5197_v50, %v10261_v38  ;;  %v5286_v14 = vpop.f32.mrf.mxu3  ;;  %v5964_v11 = vsel %vm5911_vm5, %v5874_v15, 0.0  ;;  %v5022_v35 = vadd.f32 %v5021_v13, %v10245_v55 }
 0x645   : > { %v7754_v37 = vpop.eup %7753  ;;  %v7202_v2 = vadd.f32 -1.0, %v7752_v47  ;;  %v5582_v21 = vmul.f32 1.442695, %v5486_v10  ;;  %v5110_v12 = vpop.f32.mrf.mxu1  ;;  %v5965_v1 = vadd.f32 %v5964_v11, %v5873_v30 }
 0x646   : > { %7755 = vpow2.f32 %v5580_v4  ;;  %v10578_v3 = vadd.f32 %v5286_v14, %v5198_v18  ;;  %v10581_v46 = vadd.f32 %v5110_v12, %v5022_v35  ;;  %v7203_v28 = vadd.f32 -1.0, %v7754_v37 }
 0x647   : > { %v5739_v48 = vmul.f32 0.1, %v7202_v2  ;;  %7757 = vpow2.f32 %v5582_v21  ;;  %5966 = vadd.xlane.f32.xlu1 %v5965_v1 }
 0x648   : > { %v5423_v32 = vmin.f32 %v10578_v3, 0.0  ;;  %v5424_v16 = vmin.f32 %v10581_v46, 0.0  ;;  %v5740_v53 = vmul.f32 0.1, %v7203_v28  ;;  %vm5359_vm9 = vcmp.gt.f32.partialorder %v10578_v3, 0.0 }
 0x649   : > { %v5803_v45 = vsel %vm5355_vm3, %v10548_v25, %v5739_v48  ;;  %vm5360_vm11 = vcmp.gt.f32.partialorder %v10581_v46, 0.0 }
 0x64a   : > { %v5487_v5 = vmul.f32 10.0, %v5423_v32  ;;  %v5876_v62 = vmul.f32 %v10332_v52, %v5803_v45  ;;  %v5488_v43 = vmul.f32 10.0, %v5424_v16  ;;  %v5804_v19 = vsel %vm5356_vm4, %v10551_v7, %v5740_v53 }
 0x64b   : > { %v5199_v61 = vpop.f32.mrf.mxu2  ;;  %v5024_v44 = vpop.f32.mrf.mxu0  ;;  %v5877_v7 = vmul.f32 %v10330_v26, %v5804_v19 }
 0x64c   : > { %v7756_v60 = vpop.eup %7755  ;;  %v5584_v23 = vmul.f32 1.442695, %v5487_v5  ;;  %v5200_v54 = vadd.f32 %v5199_v61, %v10261_v38  ;;  %v5288_v41 = vpop.f32.mrf.mxu3  ;;  %v5968_v22 = vsel %vm5911_vm5, %v5876_v62, 0.0  ;;  %v5586_v51 = vmul.f32 1.442695, %v5488_v43 }
 0x64d   : > { %v7758_v25 = vpop.eup %7757  ;;  %v7204_v29 = vadd.f32 -1.0, %v7756_v60  ;;  %v5025_v24 = vadd.f32 %v5024_v44, %v10245_v55  ;;  %v5113_v20 = vpop.f32.mrf.mxu1  ;;  %v5969_v17 = vadd.f32 %v5968_v22, %v5875_v0 }
 0x64e   : > { %7759 = vpow2.f32 %v5584_v23  ;;  %v10593_v27 = vadd.f32 %v5288_v41, %v5200_v54  ;;  %v7205_v40 = vadd.f32 -1.0, %v7758_v25 }
 0x64f   : > { %v5741_v56 = vmul.f32 0.1, %v7204_v29  ;;  %7761 = vpow2.f32 %v5586_v51  ;;  %v10596_v57 = vadd.f32 %v5113_v20, %v5025_v24  ;;  %5970 = vadd.xlane.f32.xlu2 %v5969_v17 }
 0x650   : > { %v5425_v36 = vmin.f32 %v10593_v27, 0.0  ;;  %v5742_v10 = vmul.f32 0.1, %v7205_v40  ;;  %vm5361_vm12 = vcmp.gt.f32.partialorder %v10593_v27, 0.0 }
 0x651   : > { %v5805_v6 = vsel %vm5357_vm6, %v10563_v9, %v5741_v56  ;;  %v5426_v63 = vmin.f32 %v10596_v57, 0.0  ;;  %vm5362_vm13 = vcmp.gt.f32.partialorder %v10596_v57, 0.0 }
 0x652   : > { %v5489_v8 = vmul.f32 10.0, %v5425_v36  ;;  %v5915_v33 = vpop.xlane.xlu0 %5914  ;;  %v5878_v59 = vmul.f32 %v10332_v52, %v5805_v6  ;;  %v5806_v28 = vsel %vm5358_vm8, %v10566_v49, %v5742_v10 }
 0x653   : > { %v5490_v39 = vmul.f32 10.0, %v5426_v63  ;;  %v6044_v42 = vadd.f32 %v10600_v31, %v5915_v33  ;;  %v5202_v15 = vpop.f32.mrf.mxu2  ;;  %v5026_v58 = vpop.f32.mrf.mxu0  ;;  %v5879_v0 = vmul.f32 %v10330_v26, %v5806_v28 }
 0x654   : > { %v7760_v9 = vpop.eup %7759  ;;  %v5588_v50 = vmul.f32 1.442695, %v5489_v8  ;;  %v5203_v30 = vadd.f32 %v5202_v15, %v10261_v38  ;;  %v5291_v47 = vpop.f32.mrf.mxu3  ;;  %v5972_v4 = vsel %vm5911_vm5, %v5878_v59, 0.0  ;;  %v5027_v11 = vadd.f32 %v5026_v58, %v10245_v55 }
 0x655   : > { %v7762_v18 = vpop.eup %7761  ;;  %v7206_v14 = vadd.f32 -1.0, %v7760_v9  ;;  %v5590_v13 = vmul.f32 1.442695, %v5490_v39  ;;  %6077 = vst.msk [vmem:[%s10610_s29] sm:$0xff] %vm6076_vm7, %v6044_v42  ;;  %v5115_v37 = vpop.f32.mrf.mxu1  ;;  %v5973_v2 = vadd.f32 %v5972_v4, %v5877_v7 }
 0x656   : > { %7763 = vpow2.f32 %v5588_v50  ;;  %v10620_v21 = vadd.f32 %v5291_v47, %v5203_v30  ;;  %v10623_v12 = vadd.f32 %v5115_v37, %v5027_v11  ;;  %v7207_v1 = vadd.f32 -1.0, %v7762_v18 }
 0x657   : > { %v5743_v35 = vmul.f32 0.1, %v7206_v14  ;;  %7765 = vpow2.f32 %v5590_v13  ;;  %5974 = vadd.xlane.f32.xlu0 %v5973_v2 }
 0x658   : > { %v5427_v48 = vmin.f32 %v10620_v21, 0.0  ;;  %v5428_v34 = vmin.f32 %v10623_v12, 0.0  ;;  %v5744_v53 = vmul.f32 0.1, %v7207_v1  ;;  %vm5363_vm14 = vcmp.gt.f32.partialorder %v10620_v21, 0.0 }
 0x659   : > { %v5807_v32 = vsel %vm5359_vm9, %v10578_v3, %v5743_v35  ;;  %vm5364_vm10 = vcmp.gt.f32.partialorder %v10623_v12, 0.0 }
 0x65a   : > { %v5491_v45 = vmul.f32 10.0, %v5427_v48  ;;  %v5919_v16 = vpop.xlane.xlu0 %5918  ;;  %v5880_v5 = vmul.f32 %v10332_v52, %v5807_v32  ;;  %v5492_v62 = vmul.f32 10.0, %v5428_v34  ;;  %v5808_v19 = vsel %vm5360_vm11, %v10581_v46, %v5744_v53 }
 0x65b   : > { %v6045_v43 = vadd.f32 %v10600_v31, %v5919_v16  ;;  %v5204_v61 = vpop.f32.mrf.mxu2  ;;  %v5029_v3 = vpop.f32.mrf.mxu0  ;;  %v5881_v7 = vmul.f32 %v10330_v26, %v5808_v19 }
 0x65c   : > { %v7764_v60 = vpop.eup %7763  ;;  %v5592_v23 = vmul.f32 1.442695, %v5491_v45  ;;  %v5205_v49 = vadd.f32 %v5204_v61, %v10261_v38  ;;  %v5293_v54 = vpop.f32.mrf.mxu3  ;;  %v5976_v41 = vsel %vm5911_vm5, %v5880_v5, 0.0  ;;  %v5594_v25 = vmul.f32 1.442695, %v5492_v62 }
 0x65d   : > { %v7766_v44 = vpop.eup %7765  ;;  %v7208_v22 = vadd.f32 -1.0, %v7764_v60  ;;  %6078 = vst.msk [vmem:[%s10610_s29 + $0x8] sm:$0xff] %vm6076_vm7, %v6045_v43  ;;  %v5030_v29 = vadd.f32 %v5029_v3, %v10245_v55  ;;  %v5118_v51 = vpop.f32.mrf.mxu1  ;;  %v5977_v24 = vadd.f32 %v5976_v41, %v5879_v0 }
 0x65e   : > { %7767 = vpow2.f32 %v5592_v23  ;;  %v10638_v20 = vadd.f32 %v5293_v54, %v5205_v49  ;;  %v7209_v40 = vadd.f32 -1.0, %v7766_v44 }
 0x65f   : > { %v5745_v17 = vmul.f32 0.1, %v7208_v22  ;;  %7769 = vpow2.f32 %v5594_v25  ;;  %v10641_v56 = vadd.f32 %v5118_v51, %v5030_v29  ;;  %5978 = vadd.xlane.f32.xlu1 %v5977_v24 }
 0x660   : > { %v5429_v36 = vmin.f32 %v10638_v20, 0.0  ;;  %v5746_v10 = vmul.f32 0.1, %v7209_v40  ;;  %vm5365_vm15 = vcmp.gt.f32.partialorder %v10638_v20, 0.0 }
 0x661   : > { %v5809_v6 = vsel %vm5361_vm12, %v10593_v27, %v5745_v17  ;;  %v5430_v63 = vmin.f32 %v10641_v56, 0.0  ;;  %vm5366_vm0 = vcmp.gt.f32.partialorder %v10641_v56, 0.0 }
 0x662   : > { %v5493_v8 = vmul.f32 10.0, %v5429_v36  ;;  %v5923_v33 = vpop.xlane.xlu1 %5922  ;;  %v5882_v59 = vmul.f32 %v10332_v52, %v5809_v6  ;;  %v5810_v28 = vsel %vm5362_vm13, %v10596_v57, %v5746_v10 }
 0x663   : > { %v5494_v39 = vmul.f32 10.0, %v5430_v63  ;;  %v6046_v42 = vadd.f32 %v10600_v31, %v5923_v33  ;;  %v5207_v15 = vpop.f32.mrf.mxu2  ;;  %v5031_v27 = vpop.f32.mrf.mxu0  ;;  %v5883_v0 = vmul.f32 %v10330_v26, %v5810_v28 }
 0x664   : > { %v7768_v9 = vpop.eup %7767  ;;  %v5596_v50 = vmul.f32 1.442695, %v5493_v8  ;;  %v5208_v46 = vadd.f32 %v5207_v15, %v10261_v38  ;;  %v5296_v30 = vpop.f32.mrf.mxu3  ;;  %v5980_v47 = vsel %vm5911_vm5, %v5882_v59, 0.0  ;;  %v5032_v14 = vadd.f32 %v5031_v27, %v10245_v55 }
 0x665   : > { %v7770_v58 = vpop.eup %7769  ;;  %v7210_v4 = vadd.f32 -1.0, %v7768_v9  ;;  %v5598_v18 = vmul.f32 1.442695, %v5494_v39  ;;  %6079 = vst.msk [vmem:[%s10610_s29 + $0x10] sm:$0xff] %vm6076_vm7, %v6046_v42  ;;  %v5120_v13 = vpop.f32.mrf.mxu1  ;;  %v5981_v11 = vadd.f32 %v5980_v47, %v5881_v7 }
 0x666   : > { %7771 = vpow2.f32 %v5596_v50  ;;  %v10656_v37 = vadd.f32 %v5296_v30, %v5208_v46  ;;  %v10659_v35 = vadd.f32 %v5120_v13, %v5032_v14  ;;  %v7211_v1 = vadd.f32 -1.0, %v7770_v58 }
 0x667   : > { %v5747_v2 = vmul.f32 0.1, %v7210_v4  ;;  %7773 = vpow2.f32 %v5598_v18  ;;  %5982 = vadd.xlane.f32.xlu2 %v5981_v11 }
 0x668   : > { %v5431_v48 = vmin.f32 %v10656_v37, 0.0  ;;  %v5432_v34 = vmin.f32 %v10659_v35, 0.0  ;;  %v5748_v53 = vmul.f32 0.1, %v7211_v1  ;;  %vm5367_vm1 = vcmp.gt.f32.partialorder %v10656_v37, 0.0 }
 0x669   : > { %v5811_v32 = vsel %vm5363_vm14, %v10620_v21, %v5747_v2  ;;  %vm5368_vm2 = vcmp.gt.f32.partialorder %v10659_v35, 0.0 }
 0x66a   : > { %v5495_v45 = vmul.f32 10.0, %v5431_v48  ;;  %v5927_v16 = vpop.xlane.xlu1 %5926  ;;  %v5884_v5 = vmul.f32 %v10332_v52, %v5811_v32  ;;  %v5496_v62 = vmul.f32 10.0, %v5432_v34  ;;  %v5812_v19 = vsel %vm5364_vm10, %v10623_v12, %v5748_v53 }
 0x66b   : > { %v6047_v43 = vadd.f32 %v10600_v31, %v5927_v16  ;;  %v5209_v61 = vpop.f32.mrf.mxu2  ;;  %v5034_v21 = vpop.f32.mrf.mxu0  ;;  %v5885_v7 = vmul.f32 %v10330_v26, %v5812_v19 }
 0x66c   : > { %v7772_v60 = vpop.eup %7771  ;;  %v5600_v23 = vmul.f32 1.442695, %v5495_v45  ;;  %v5210_v57 = vadd.f32 %v5209_v61, %v10261_v38  ;;  %v5298_v49 = vpop.f32.mrf.mxu3  ;;  %v5984_v54 = vsel %vm5911_vm5, %v5884_v5, 0.0  ;;  %v5602_v44 = vmul.f32 1.442695, %v5496_v62 }
 0x66d   : > { %v7774_v3 = vpop.eup %7773  ;;  %v7212_v41 = vadd.f32 -1.0, %v7772_v60  ;;  %6080 = vst.msk [vmem:[%s10610_s29 + $0x18] sm:$0xff] %vm6076_vm7, %v6047_v43  ;;  %v5035_v22 = vadd.f32 %v5034_v21, %v10245_v55  ;;  %v5123_v25 = vpop.f32.mrf.mxu1  ;;  %v5985_v29 = vadd.f32 %v5984_v54, %v5883_v0 }
 0x66e   : > { %7775 = vpow2.f32 %v5600_v23  ;;  %v10674_v51 = vadd.f32 %v5298_v49, %v5210_v57  ;;  %v7213_v40 = vadd.f32 -1.0, %v7774_v3 }
 0x66f   : > { %v5749_v24 = vmul.f32 0.1, %v7212_v41  ;;  %7777 = vpow2.f32 %v5602_v44  ;;  %v10677_v17 = vadd.f32 %v5123_v25, %v5035_v22  ;;  %5986 = vadd.xlane.f32.xlu0 %v5985_v29 }
 0x670   : > { %v5433_v36 = vmin.f32 %v10674_v51, 0.0  ;;  %v5750_v10 = vmul.f32 0.1, %v7213_v40  ;;  %vm5369_vm3 = vcmp.gt.f32.partialorder %v10674_v51, 0.0 }
 0x671   : > { %v5813_v6 = vsel %vm5365_vm15, %v10638_v20, %v5749_v24  ;;  %v5434_v63 = vmin.f32 %v10677_v17, 0.0  ;;  %vm5370_vm4 = vcmp.gt.f32.partialorder %v10677_v17, 0.0 }
 0x672   : > { %v5497_v8 = vmul.f32 10.0, %v5433_v36  ;;  %v5931_v33 = vpop.xlane.xlu2 %5930  ;;  %v5886_v59 = vmul.f32 %v10332_v52, %v5813_v6  ;;  %v5814_v28 = vsel %vm5366_vm0, %v10641_v56, %v5750_v10 }
 0x673   : > { %v5498_v39 = vmul.f32 10.0, %v5434_v63  ;;  %v6048_v42 = vadd.f32 %v10600_v31, %v5931_v33  ;;  %v5212_v15 = vpop.f32.mrf.mxu2  ;;  %v5036_v20 = vpop.f32.mrf.mxu0  ;;  %v5887_v0 = vmul.f32 %v10330_v26, %v5814_v28 }
 0x674   : > { %v7776_v9 = vpop.eup %7775  ;;  %v5604_v50 = vmul.f32 1.442695, %v5497_v8  ;;  %v5213_v12 = vadd.f32 %v5212_v15, %v10261_v38  ;;  %v5301_v46 = vpop.f32.mrf.mxu3  ;;  %v5988_v30 = vsel %vm5911_vm5, %v5886_v59, 0.0  ;;  %v5037_v4 = vadd.f32 %v5036_v20, %v10245_v55 }
 0x675   : > { %v7778_v27 = vpop.eup %7777  ;;  %v7214_v47 = vadd.f32 -1.0, %v7776_v9  ;;  %v5606_v58 = vmul.f32 1.442695, %v5498_v39  ;;  %6081 = vst.msk [vmem:[%s10610_s29 + $0x20] sm:$0xff] %vm6076_vm7, %v6048_v42  ;;  %v5125_v18 = vpop.f32.mrf.mxu1  ;;  %v5989_v14 = vadd.f32 %v5988_v30, %v5885_v7 }
 0x676   : > { %7779 = vpow2.f32 %v5604_v50  ;;  %v10692_v13 = vadd.f32 %v5301_v46, %v5213_v12  ;;  %v10695_v2 = vadd.f32 %v5125_v18, %v5037_v4  ;;  %v7215_v1 = vadd.f32 -1.0, %v7778_v27 }
 0x677   : > { %v5751_v11 = vmul.f32 0.1, %v7214_v47  ;;  %7781 = vpow2.f32 %v5606_v58  ;;  %5990 = vadd.xlane.f32.xlu1 %v5989_v14 }
 0x678   : > { %v5435_v48 = vmin.f32 %v10692_v13, 0.0  ;;  %v5436_v34 = vmin.f32 %v10695_v2, 0.0  ;;  %v5752_v53 = vmul.f32 0.1, %v7215_v1  ;;  %vm5371_vm6 = vcmp.gt.f32.partialorder %v10692_v13, 0.0 }
 0x679   : > { %v5815_v32 = vsel %vm5367_vm1, %v10656_v37, %v5751_v11  ;;  %vm5372_vm8 = vcmp.gt.f32.partialorder %v10695_v2, 0.0 }
 0x67a   : > { %v5499_v45 = vmul.f32 10.0, %v5435_v48  ;;  %v5935_v16 = vpop.xlane.xlu2 %5934  ;;  %v5888_v5 = vmul.f32 %v10332_v52, %v5815_v32  ;;  %v5500_v62 = vmul.f32 10.0, %v5436_v34  ;;  %v5816_v19 = vsel %vm5368_vm2, %v10659_v35, %v5752_v53 }
 0x67b   : > { %v6049_v43 = vadd.f32 %v10600_v31, %v5935_v16  ;;  %v5214_v61 = vpop.f32.mrf.mxu2  ;;  %v5039_v37 = vpop.f32.mrf.mxu0  ;;  %v5889_v7 = vmul.f32 %v10330_v26, %v5816_v19 }
 0x67c   : > { %v7780_v60 = vpop.eup %7779  ;;  %v5608_v23 = vmul.f32 1.442695, %v5499_v45  ;;  %v5215_v56 = vadd.f32 %v5214_v61, %v10261_v38  ;;  %v5303_v57 = vpop.f32.mrf.mxu3  ;;  %v5992_v49 = vsel %vm5911_vm5, %v5888_v5, 0.0  ;;  %v5610_v3 = vmul.f32 1.442695, %v5500_v62 }
 0x67d   : > { %v7782_v21 = vpop.eup %7781  ;;  %v7216_v54 = vadd.f32 -1.0, %v7780_v60  ;;  %6082 = vst.msk [vmem:[%s10610_s29 + $0x28] sm:$0xff] %vm6076_vm7, %v6049_v43  ;;  %v5040_v41 = vadd.f32 %v5039_v37, %v10245_v55  ;;  %v5128_v44 = vpop.f32.mrf.mxu1  ;;  %v5993_v22 = vadd.f32 %v5992_v49, %v5887_v0 }
 0x67e   : > { %7783 = vpow2.f32 %v5608_v23  ;;  %v10710_v25 = vadd.f32 %v5303_v57, %v5215_v56  ;;  %v7217_v40 = vadd.f32 -1.0, %v7782_v21 }
 0x67f   : > { %v5753_v29 = vmul.f32 0.1, %v7216_v54  ;;  %7785 = vpow2.f32 %v5610_v3  ;;  %v10713_v24 = vadd.f32 %v5128_v44, %v5040_v41  ;;  %5994 = vadd.xlane.f32.xlu2 %v5993_v22 }
 0x680   : > { %v5437_v36 = vmin.f32 %v10710_v25, 0.0  ;;  %v5754_v10 = vmul.f32 0.1, %v7217_v40  ;;  %vm5373_vm9 = vcmp.gt.f32.partialorder %v10710_v25, 0.0 }
 0x681   : > { %v5817_v6 = vsel %vm5369_vm3, %v10674_v51, %v5753_v29  ;;  %v5438_v63 = vmin.f32 %v10713_v24, 0.0  ;;  %vm5374_vm11 = vcmp.gt.f32.partialorder %v10713_v24, 0.0 }
 0x682   : > { %v5501_v8 = vmul.f32 10.0, %v5437_v36  ;;  %v5939_v33 = vpop.xlane.xlu0 %5938  ;;  %v5890_v59 = vmul.f32 %v10332_v52, %v5817_v6  ;;  %v5818_v28 = vsel %vm5370_vm4, %v10677_v17, %v5754_v10 }
 0x683   : > { %v5502_v39 = vmul.f32 10.0, %v5438_v63  ;;  %v6050_v42 = vadd.f32 %v10600_v31, %v5939_v33  ;;  %v5217_v15 = vpop.f32.mrf.mxu2  ;;  %v5041_v51 = vpop.f32.mrf.mxu0  ;;  %v5891_v0 = vmul.f32 %v10330_v26, %v5818_v28 }
 0x684   : > { %v7784_v9 = vpop.eup %7783  ;;  %v5612_v50 = vmul.f32 1.442695, %v5501_v8  ;;  %v5218_v35 = vadd.f32 %v5217_v15, %v10261_v38  ;;  %v5306_v12 = vpop.f32.mrf.mxu3  ;;  %v5996_v46 = vsel %vm5911_vm5, %v5890_v59, 0.0  ;;  %v5042_v47 = vadd.f32 %v5041_v51, %v10245_v55 }
 0x685   : > { %v7786_v20 = vpop.eup %7785  ;;  %v7218_v30 = vadd.f32 -1.0, %v7784_v9  ;;  %v5614_v27 = vmul.f32 1.442695, %v5502_v39  ;;  %6083 = vst.msk [vmem:[%s10610_s29 + $0x30] sm:$0xff] %vm6076_vm7, %v6050_v42  ;;  %v5130_v58 = vpop.f32.mrf.mxu1  ;;  %v5997_v4 = vadd.f32 %v5996_v46, %v5889_v7 }
 0x686   : > { %7787 = vpow2.f32 %v5612_v50  ;;  %v10728_v18 = vadd.f32 %v5306_v12, %v5218_v35  ;;  %v10731_v11 = vadd.f32 %v5130_v58, %v5042_v47  ;;  %v7219_v1 = vadd.f32 -1.0, %v7786_v20 }
 0x687   : > { %v5755_v14 = vmul.f32 0.1, %v7218_v30  ;;  %7789 = vpow2.f32 %v5614_v27  ;;  %5998 = vadd.xlane.f32.xlu0 %v5997_v4 }
 0x688   : > { %v5439_v48 = vmin.f32 %v10728_v18, 0.0  ;;  %v5440_v34 = vmin.f32 %v10731_v11, 0.0  ;;  %v5756_v53 = vmul.f32 0.1, %v7219_v1  ;;  %vm5375_vm12 = vcmp.gt.f32.partialorder %v10728_v18, 0.0 }
 0x689   : > { %v5819_v32 = vsel %vm5371_vm6, %v10692_v13, %v5755_v14  ;;  %vm5376_vm13 = vcmp.gt.f32.partialorder %v10731_v11, 0.0 }
 0x68a   : > { %v5503_v45 = vmul.f32 10.0, %v5439_v48  ;;  %v5943_v16 = vpop.xlane.xlu1 %5942  ;;  %v5892_v5 = vmul.f32 %v10332_v52, %v5819_v32  ;;  %v5504_v62 = vmul.f32 10.0, %v5440_v34  ;;  %v5820_v19 = vsel %vm5372_vm8, %v10695_v2, %v5756_v53 }
 0x68b   : > { %v6051_v43 = vadd.f32 %v10600_v31, %v5943_v16  ;;  %v5219_v61 = vpop.f32.mrf.mxu2  ;;  %v5044_v13 = vpop.f32.mrf.mxu0  ;;  %v5893_v7 = vmul.f32 %v10330_v26, %v5820_v19 }
 0x68c   : > { %v7788_v60 = vpop.eup %7787  ;;  %v5616_v23 = vmul.f32 1.442695, %v5503_v45  ;;  %v5220_v17 = vadd.f32 %v5219_v61, %v10261_v38  ;;  %v5308_v56 = vpop.f32.mrf.mxu3  ;;  %v6000_v57 = vsel %vm5911_vm5, %v5892_v5, 0.0  ;;  %v5618_v21 = vmul.f32 1.442695, %v5504_v62 }
 0x68d   : > { %v7790_v37 = vpop.eup %7789  ;;  %v7220_v49 = vadd.f32 -1.0, %v7788_v60  ;;  %6084 = vst.msk [vmem:[%s10610_s29 + $0x38] sm:$0xff] %vm6076_vm7, %v6051_v43  ;;  %v5045_v54 = vadd.f32 %v5044_v13, %v10245_v55  ;;  %v5133_v3 = vpop.f32.mrf.mxu1  ;;  %v6001_v41 = vadd.f32 %v6000_v57, %v5891_v0 }
 0x68e   : > { %7791 = vpow2.f32 %v5616_v23  ;;  %v10746_v44 = vadd.f32 %v5308_v56, %v5220_v17  ;;  %v7221_v40 = vadd.f32 -1.0, %v7790_v37 }
 0x68f   : > { %v5757_v22 = vmul.f32 0.1, %v7220_v49  ;;  %7793 = vpow2.f32 %v5618_v21  ;;  %v10749_v29 = vadd.f32 %v5133_v3, %v5045_v54  ;;  %6002 = vadd.xlane.f32.xlu1 %v6001_v41 }
 0x690   : > { %v5441_v36 = vmin.f32 %v10746_v44, 0.0  ;;  %v5758_v10 = vmul.f32 0.1, %v7221_v40  ;;  %vm5377_vm14 = vcmp.gt.f32.partialorder %v10746_v44, 0.0 }
 0x691   : > { %v5821_v6 = vsel %vm5373_vm9, %v10710_v25, %v5757_v22  ;;  %v5442_v63 = vmin.f32 %v10749_v29, 0.0  ;;  %vm5378_vm10 = vcmp.gt.f32.partialorder %v10749_v29, 0.0 }
 0x692   : > { %v5505_v8 = vmul.f32 10.0, %v5441_v36  ;;  %v5947_v33 = vpop.xlane.xlu2 %5946  ;;  %v5894_v59 = vmul.f32 %v10332_v52, %v5821_v6  ;;  %v5822_v28 = vsel %vm5374_vm11, %v10713_v24, %v5758_v10 }
 0x693   : > { %v5506_v39 = vmul.f32 10.0, %v5442_v63  ;;  %v6052_v42 = vadd.f32 %v10600_v31, %v5947_v33  ;;  %v5222_v15 = vpop.f32.mrf.mxu2  ;;  %v5046_v25 = vpop.f32.mrf.mxu0  ;;  %v5895_v0 = vmul.f32 %v10330_v26, %v5822_v28 }
 0x694   : > { %v7792_v9 = vpop.eup %7791  ;;  %v5620_v50 = vmul.f32 1.442695, %v5505_v8  ;;  %v5223_v2 = vadd.f32 %v5222_v15, %v10261_v38  ;;  %v5311_v35 = vpop.f32.mrf.mxu3  ;;  %v6004_v12 = vsel %vm5911_vm5, %v5894_v59, 0.0  ;;  %v5047_v30 = vadd.f32 %v5046_v25, %v10245_v55 }
 0x695   : > { %v7794_v51 = vpop.eup %7793  ;;  %v7222_v46 = vadd.f32 -1.0, %v7792_v9  ;;  %v5622_v20 = vmul.f32 1.442695, %v5506_v39  ;;  %6085 = vst.msk [vmem:[%s10610_s29 + $0x40] sm:$0xff] %vm6076_vm7, %v6052_v42  ;;  %v5135_v27 = vpop.f32.mrf.mxu1  ;;  %v6005_v47 = vadd.f32 %v6004_v12, %v5893_v7 }
 0x696   : > { %7795 = vpow2.f32 %v5620_v50  ;;  %v10764_v58 = vadd.f32 %v5311_v35, %v5223_v2  ;;  %v10767_v14 = vadd.f32 %v5135_v27, %v5047_v30  ;;  %v7223_v1 = vadd.f32 -1.0, %v7794_v51 }
 0x697   : > { %v5759_v4 = vmul.f32 0.1, %v7222_v46  ;;  %7797 = vpow2.f32 %v5622_v20  ;;  %6006 = vadd.xlane.f32.xlu2 %v6005_v47 }
 0x698   : > { %v5443_v48 = vmin.f32 %v10764_v58, 0.0  ;;  %v5444_v34 = vmin.f32 %v10767_v14, 0.0  ;;  %v5760_v53 = vmul.f32 0.1, %v7223_v1  ;;  %vm5379_vm15 = vcmp.gt.f32.partialorder %v10764_v58, 0.0 }
 0x699   : > { %v5823_v32 = vsel %vm5375_vm12, %v10728_v18, %v5759_v4  ;;  %vm5380_vm0 = vcmp.gt.f32.partialorder %v10767_v14, 0.0 }
 0x69a   : > { %v5507_v45 = vmul.f32 10.0, %v5443_v48  ;;  %v5951_v16 = vpop.xlane.xlu0 %5950  ;;  %v5896_v5 = vmul.f32 %v10332_v52, %v5823_v32  ;;  %v5508_v62 = vmul.f32 10.0, %v5444_v34  ;;  %v5824_v19 = vsel %vm5376_vm13, %v10731_v11, %v5760_v53 }
 0x69b   : > { %v6053_v43 = vadd.f32 %v10600_v31, %v5951_v16  ;;  %v5224_v61 = vpop.f32.mrf.mxu2  ;;  %v5049_v18 = vpop.f32.mrf.mxu0  ;;  %v5897_v7 = vmul.f32 %v10330_v26, %v5824_v19 }
 0x69c   : > { %v7796_v60 = vpop.eup %7795  ;;  %v5624_v23 = vmul.f32 1.442695, %v5507_v45  ;;  %v5225_v24 = vadd.f32 %v5224_v61, %v10261_v38  ;;  %v5313_v17 = vpop.f32.mrf.mxu3  ;;  %v6008_v56 = vsel %vm5911_vm5, %v5896_v5, 0.0  ;;  %v5626_v37 = vmul.f32 1.442695, %v5508_v62 }
 0x69d   : > { %v7798_v13 = vpop.eup %7797  ;;  %v7224_v57 = vadd.f32 -1.0, %v7796_v60  ;;  %6086 = vst.msk [vmem:[%s10610_s29 + $0x48] sm:$0xff] %vm6076_vm7, %v6053_v43  ;;  %v5050_v49 = vadd.f32 %v5049_v18, %v10245_v55  ;;  %v5138_v21 = vpop.f32.mrf.mxu1  ;;  %v6009_v54 = vadd.f32 %v6008_v56, %v5895_v0 }
 0x69e   : > { %7799 = vpow2.f32 %v5624_v23  ;;  %v10782_v3 = vadd.f32 %v5313_v17, %v5225_v24  ;;  %v7225_v40 = vadd.f32 -1.0, %v7798_v13 }
 0x69f   : > { %v5761_v41 = vmul.f32 0.1, %v7224_v57  ;;  %7801 = vpow2.f32 %v5626_v37  ;;  %v10785_v22 = vadd.f32 %v5138_v21, %v5050_v49  ;;  %6010 = vadd.xlane.f32.xlu0 %v6009_v54 }
 0x6a0   : > { %v5445_v36 = vmin.f32 %v10782_v3, 0.0  ;;  %v5762_v10 = vmul.f32 0.1, %v7225_v40  ;;  %vm5381_vm1 = vcmp.gt.f32.partialorder %v10782_v3, 0.0 }
 0x6a1   : > { %v5825_v6 = vsel %vm5377_vm14, %v10746_v44, %v5761_v41  ;;  %v5446_v63 = vmin.f32 %v10785_v22, 0.0  ;;  %vm5382_vm2 = vcmp.gt.f32.partialorder %v10785_v22, 0.0 }
 0x6a2   : > { %v5509_v8 = vmul.f32 10.0, %v5445_v36  ;;  %v5955_v33 = vpop.xlane.xlu1 %5954  ;;  %v5898_v59 = vmul.f32 %v10332_v52, %v5825_v6  ;;  %v5826_v28 = vsel %vm5378_vm10, %v10749_v29, %v5762_v10 }
 0x6a3   : > { %v5510_v39 = vmul.f32 10.0, %v5446_v63  ;;  %v6054_v42 = vadd.f32 %v10600_v31, %v5955_v33  ;;  %v5227_v15 = vpop.f32.mrf.mxu2  ;;  %v5051_v44 = vpop.f32.mrf.mxu0  ;;  %v5899_v0 = vmul.f32 %v10330_v26, %v5826_v28 }
 0x6a4   : > { %v7800_v9 = vpop.eup %7799  ;;  %v5628_v50 = vmul.f32 1.442695, %v5509_v8  ;;  %v5228_v11 = vadd.f32 %v5227_v15, %v10261_v38  ;;  %v5316_v2 = vpop.f32.mrf.mxu3  ;;  %v6012_v35 = vsel %vm5911_vm5, %v5898_v59, 0.0  ;;  %v5052_v46 = vadd.f32 %v5051_v44, %v10245_v55 }
 0x6a5   : > { %v7802_v25 = vpop.eup %7801  ;;  %v7226_v12 = vadd.f32 -1.0, %v7800_v9  ;;  %v5630_v51 = vmul.f32 1.442695, %v5510_v39  ;;  %6087 = vst.msk [vmem:[%s10610_s29 + $0x50] sm:$0xff] %vm6076_vm7, %v6054_v42  ;;  %v5140_v20 = vpop.f32.mrf.mxu1  ;;  %v6013_v30 = vadd.f32 %v6012_v35, %v5897_v7 }
 0x6a6   : > { %7803 = vpow2.f32 %v5628_v50  ;;  %v10800_v27 = vadd.f32 %v5316_v2, %v5228_v11  ;;  %v10803_v4 = vadd.f32 %v5140_v20, %v5052_v46  ;;  %v7227_v1 = vadd.f32 -1.0, %v7802_v25 }
 0x6a7   : > { %v5763_v47 = vmul.f32 0.1, %v7226_v12  ;;  %7805 = vpow2.f32 %v5630_v51  ;;  %6014 = vadd.xlane.f32.xlu1 %v6013_v30 }
 0x6a8   : > { %v5447_v48 = vmin.f32 %v10800_v27, 0.0  ;;  %v5448_v34 = vmin.f32 %v10803_v4, 0.0  ;;  %v5764_v53 = vmul.f32 0.1, %v7227_v1  ;;  %vm5383_vm3 = vcmp.gt.f32.partialorder %v10800_v27, 0.0 }
 0x6a9   : > { %v5827_v32 = vsel %vm5379_vm15, %v10764_v58, %v5763_v47  ;;  %vm5384_vm4 = vcmp.gt.f32.partialorder %v10803_v4, 0.0 }
 0x6aa   : > { %v5511_v45 = vmul.f32 10.0, %v5447_v48  ;;  %v5959_v16 = vpop.xlane.xlu2 %5958  ;;  %v5900_v5 = vmul.f32 %v10332_v52, %v5827_v32  ;;  %v5512_v62 = vmul.f32 10.0, %v5448_v34  ;;  %v5828_v19 = vsel %vm5380_vm0, %v10767_v14, %v5764_v53 }
 0x6ab   : > { %v6055_v43 = vadd.f32 %v10600_v31, %v5959_v16  ;;  %v5229_v61 = vpop.f32.mrf.mxu2  ;;  %v5054_v58 = vpop.f32.mrf.mxu0  ;;  %v5901_v7 = vmul.f32 %v10330_v26, %v5828_v19 }
 0x6ac   : > { %v7804_v60 = vpop.eup %7803  ;;  %v5632_v23 = vmul.f32 1.442695, %v5511_v45  ;;  %v5230_v29 = vadd.f32 %v5229_v61, %v10261_v38  ;;  %v5318_v24 = vpop.f32.mrf.mxu3  ;;  %v6016_v17 = vsel %vm5911_vm5, %v5900_v5, 0.0  ;;  %v5634_v13 = vmul.f32 1.442695, %v5512_v62 }
 0x6ad   : > { %v7806_v18 = vpop.eup %7805  ;;  %v7228_v56 = vadd.f32 -1.0, %v7804_v60  ;;  %6088 = vst.msk [vmem:[%s10610_s29 + $0x58] sm:$0xff] %vm6076_vm7, %v6055_v43  ;;  %v5055_v57 = vadd.f32 %v5054_v58, %v10245_v55  ;;  %v5143_v37 = vpop.f32.mrf.mxu1  ;;  %v6017_v49 = vadd.f32 %v6016_v17, %v5899_v0 }
 0x6ae   : > { %7807 = vpow2.f32 %v5632_v23  ;;  %v10818_v21 = vadd.f32 %v5318_v24, %v5230_v29  ;;  %v7229_v40 = vadd.f32 -1.0, %v7806_v18 }
 0x6af   : > { %v5765_v54 = vmul.f32 0.1, %v7228_v56  ;;  %7809 = vpow2.f32 %v5634_v13  ;;  %v10821_v41 = vadd.f32 %v5143_v37, %v5055_v57  ;;  %6018 = vadd.xlane.f32.xlu2 %v6017_v49 }
 0x6b0   : > { %v5449_v36 = vmin.f32 %v10818_v21, 0.0  ;;  %v5766_v10 = vmul.f32 0.1, %v7229_v40  ;;  %vm5385_vm6 = vcmp.gt.f32.partialorder %v10818_v21, 0.0 }
 0x6b1   : > { %v5829_v6 = vsel %vm5381_vm1, %v10782_v3, %v5765_v54  ;;  %v5450_v63 = vmin.f32 %v10821_v41, 0.0  ;;  %vm5386_vm8 = vcmp.gt.f32.partialorder %v10821_v41, 0.0 }
 0x6b2   : > { %v5513_v8 = vmul.f32 10.0, %v5449_v36  ;;  %v5963_v33 = vpop.xlane.xlu0 %5962  ;;  %v5902_v59 = vmul.f32 %v10332_v52, %v5829_v6  ;;  %v5830_v28 = vsel %vm5382_vm2, %v10785_v22, %v5766_v10 }
 0x6b3   : > { %v5514_v39 = vmul.f32 10.0, %v5450_v63  ;;  %v6056_v42 = vadd.f32 %v10600_v31, %v5963_v33  ;;  %v5232_v15 = vpop.f32.mrf.mxu2  ;;  %v5056_v3 = vpop.f32.mrf.mxu0  ;;  %v5903_v61 = vmul.f32 %v10330_v26, %v5830_v28 }
 0x6b4   : > { %v7808_v9 = vpop.eup %7807  ;;  %v5636_v50 = vmul.f32 1.442695, %v5513_v8  ;;  %v5233_v14 = vadd.f32 %v5232_v15, %v10261_v38  ;;  %v5321_v11 = vpop.f32.mrf.mxu3  ;;  %v6020_v2 = vsel %vm5911_vm5, %v5902_v59, 0.0  ;;  %v5057_v12 = vadd.f32 %v5056_v3, %v10245_v55 }
 0x6b5   : > { %v7810_v44 = vpop.eup %7809  ;;  %v7230_v35 = vadd.f32 -1.0, %v7808_v9  ;;  %v5638_v25 = vmul.f32 1.442695, %v5514_v39  ;;  %6089 = vst.msk [vmem:[%s10610_s29 + $0x60] sm:$0xff] %vm6076_vm7, %v6056_v42  ;;  %v6021_v51 = vadd.f32 %v6020_v2, %v5901_v7  ;;  %v5145_v20 = vpop.f32.mrf.mxu1 }
 0x6b6   : > { %7811 = vpow2.f32 %v5636_v50  ;;  %v10836_v46 = vadd.f32 %v5321_v11, %v5233_v14  ;;  %v10839_v47 = vadd.f32 %v5145_v20, %v5057_v12  ;;  %v7231_v1 = vadd.f32 -1.0, %v7810_v44 }
 0x6b7   : > { %v5767_v30 = vmul.f32 0.1, %v7230_v35  ;;  %7813 = vpow2.f32 %v5638_v25  ;;  %6022 = vadd.xlane.f32.xlu0 %v6021_v51 }
 0x6b8   : > { %v5451_v48 = vmin.f32 %v10836_v46, 0.0  ;;  %v5452_v32 = vmin.f32 %v10839_v47, 0.0  ;;  %v5768_v60 = vmul.f32 0.1, %v7231_v1  ;;  %vm5387_vm9 = vcmp.gt.f32.partialorder %v10836_v46, 0.0 }
 0x6b9   : > { %v5831_v55 = vsel %vm5383_vm3, %v10800_v27, %v5767_v30  ;;  %vm5388_vm11 = vcmp.gt.f32.partialorder %v10839_v47, 0.0 }
 0x6ba   : > { %v5515_v34 = vmul.f32 10.0, %v5451_v48  ;;  %v5967_v45 = vpop.xlane.xlu1 %5966  ;;  %v5904_v16 = vmul.f32 %v10332_v52, %v5831_v55  ;;  %v5516_v5 = vmul.f32 10.0, %v5452_v32  ;;  %v5832_v57 = vsel %vm5384_vm4, %v10803_v4, %v5768_v60 }
 0x6bb   : > { %v6057_v62 = vadd.f32 %v10600_v31, %v5967_v45  ;;  %v5234_v43 = vpop.f32.mrf.mxu2  ;;  %v5905_v19 = vmul.f32 %v10330_v26, %v5832_v57 }
 0x6bc   : > { %v7812_v0 = vpop.eup %7811  ;;  %v5640_v53 = vmul.f32 1.442695, %v5515_v34  ;;  %v5235_v22 = vadd.f32 %v5234_v43, %v10261_v38  ;;  %v6024_v27 = vsel %vm5911_vm5, %v5904_v16, 0.0  ;;  %v5642_v24 = vmul.f32 1.442695, %v5516_v5  ;;  %v5323_v58 = vpop.f32.mrf.mxu3 }
 0x6bd   : > { %v7814_v23 = vpop.eup %7813  ;;  %v7232_v29 = vadd.f32 -1.0, %v7812_v0  ;;  %6090 = vst.msk [vmem:[%s10610_s29 + $0x68] sm:$0xff] %vm6076_vm7, %v6057_v62  ;;  %v6025_v17 = vadd.f32 %v6024_v27, %v5903_v61 }
 0x6be   : > { %7815 = vpow2.f32 %v5640_v53  ;;  %v5324_v18 = vadd.f32 %v5323_v58, %v5235_v22  ;;  %v7233_v38 = vadd.f32 -1.0, %v7814_v23 }
 0x6bf   : > { %v5769_v56 = vmul.f32 0.1, %v7232_v29  ;;  %7817 = vpow2.f32 %v5642_v24  ;;  %6026 = vadd.xlane.f32.xlu1 %v6025_v17 }
 0x6c0   : > { %v5453_v13 = vmin.f32 %v5324_v18, 0.0  ;;  %v5770_v63 = vmul.f32 0.1, %v7233_v38  ;;  %vm5389_vm12 = vcmp.gt.f32.partialorder %v5324_v18, 0.0 }
 0x6c1   : > { %v5833_v37 = vsel %vm5385_vm6, %v10818_v21, %v5769_v56 }
 0x6c2   : > { %v5517_v49 = vmul.f32 10.0, %v5453_v13  ;;  %v5971_v54 = vpop.xlane.xlu2 %5970  ;;  %v5906_v40 = vmul.f32 %v10332_v52, %v5833_v37  ;;  %v5834_v15 = vsel %vm5386_vm8, %v10821_v41, %v5770_v63 }
 0x6c3   : > { %v6058_v36 = vadd.f32 %v10600_v31, %v5971_v54  ;;  %v5907_v14 = vmul.f32 %v10330_v26, %v5834_v15 }
 0x6c4   : > { %v7816_v6 = vpop.eup %7815  ;;  %v5644_v8 = vmul.f32 1.442695, %v5517_v49  ;;  %v6028_v33 = vsel %vm5911_vm5, %v5906_v40, 0.0 }
 0x6c5   : > { %v7818_v59 = vpop.eup %7817  ;;  %v7234_v39 = vadd.f32 -1.0, %v7816_v6  ;;  %6091 = vst.msk [vmem:[%s10610_s29 + $0x70] sm:$0xff] %vm6076_vm7, %v6058_v36  ;;  %v6029_v4 = vadd.f32 %v6028_v33, %v5905_v19 }
 0x6c6   : > { %7819 = vpow2.f32 %v5644_v8  ;;  %v7235_v42 = vadd.f32 -1.0, %v7818_v59 }
 0x6c7   : > { %v5771_v21 = vmul.f32 0.1, %v7234_v39  ;;  %6030 = vadd.xlane.f32.xlu2 %v6029_v4 }
 0x6c8   : > { %v5772_v3 = vmul.f32 0.1, %v7235_v42 }
 0x6c9   : > { %v5835_v7 = vsel %vm5387_vm9, %v10836_v46, %v5771_v21  ;;  %v7822_v46 = vld [vmem:[%s10324_s25] ss:$0 sm:$0xff] }
 0x6ca   : > { %v5975_v9 = vpop.xlane.xlu0 %5974  ;;  %v5908_v10 = vmul.f32 %v10332_v52, %v5835_v7 }
 0x6cb   : > { %v6059_v50 = vadd.f32 %v10600_v31, %v5975_v9  ;;  %v5836_v31 = vsel %vm5388_vm11, %v10839_v47, %v5772_v3 }
 0x6cc   : > { %v7820_v11 = vpop.eup %7819  ;;  %v6032_v2 = vsel %vm5911_vm5, %v5908_v10, 0.0  ;;  %v5909_v30 = vmul.f32 %v10330_v26, %v5836_v31 }
 0x6cd   : > { %v7236_v44 = vadd.f32 -1.0, %v7820_v11  ;;  %6092 = vst.msk [vmem:[%s10610_s29 + $0x78] sm:$0xff] %vm6076_vm7, %v6059_v50  ;;  %v6033_v35 = vadd.f32 %v6032_v2, %v5907_v14 }
 0x6cf   : > { %v5773_v41 = vmul.f32 0.1, %v7236_v44  ;;  %6034 = vadd.xlane.f32.xlu0 %v6033_v35 }
 0x6d1   : > { %v5837_v25 = vsel %vm5389_vm12, %v5324_v18, %v5773_v41 }
 0x6d2   : > { %v5979_v12 = vpop.xlane.xlu1 %5978  ;;  %v5910_v51 = vmul.f32 %v10332_v52, %v5837_v25 }
 0x6d3   : > { %v6060_v20 = vadd.f32 %v7822_v46, %v5979_v12 }
 0x6d4   : > { %v6036_v1 = vsel %vm5911_vm5, %v5910_v51, 0.0 }
 0x6d5   : > { %6093 = vst.msk [vmem:[%s10610_s29 + $0x80] sm:$0xff] %vm6076_vm7, %v6060_v20  ;;  %v6037_v48 = vadd.f32 %v6036_v1, %v5909_v30 }
 0x6d7   : > { %6038 = vadd.xlane.f32.xlu1 %v6037_v48 }
 0x6da   : > { %v5983_v28 = vpop.xlane.xlu2 %5982 }
 0x6db   : > { %v6061_v47 = vadd.f32 %v7822_v46, %v5983_v28 }
 0x6dd   : > { %6094 = vst.msk [vmem:[%s10610_s29 + $0x88] sm:$0xff] %vm6076_vm7, %v6061_v47 }
 0x6e2   : > { %v5987_v55 = vpop.xlane.xlu0 %5986 }
 0x6e3   : > { %v6062_v52 = vadd.f32 %v7822_v46, %v5987_v55 }
 0x6e5   : > { %6095 = vst.msk [vmem:[%s10610_s29 + $0x90] sm:$0xff] %vm6076_vm7, %v6062_v52 }
 0x6ea   : > { %v5991_v32 = vpop.xlane.xlu1 %5990 }
 0x6eb   : > { %v6063_v26 = vadd.f32 %v7822_v46, %v5991_v32 }
 0x6ed   : > { %6096 = vst.msk [vmem:[%s10610_s29 + $0x98] sm:$0xff] %vm6076_vm7, %v6063_v26 }
 0x6f2   : > { %v5995_v34 = vpop.xlane.xlu2 %5994 }
 0x6f3   : > { %v6064_v45 = vadd.f32 %v7822_v46, %v5995_v34 }
 0x6f5   : > { %6097 = vst.msk [vmem:[%s10610_s29 + $0xa0] sm:$0xff] %vm6076_vm7, %v6064_v45 }
 0x6fa   : > { %v5999_v16 = vpop.xlane.xlu0 %5998 }
 0x6fb   : > { %v6065_v5 = vadd.f32 %v7822_v46, %v5999_v16 }
 0x6fd   : > { %6098 = vst.msk [vmem:[%s10610_s29 + $0xa8] sm:$0xff] %vm6076_vm7, %v6065_v5 }
 0x702   : > { %v6003_v62 = vpop.xlane.xlu1 %6002 }
 0x703   : > { %v6066_v43 = vadd.f32 %v7822_v46, %v6003_v62 }
 0x705   : > { %6099 = vst.msk [vmem:[%s10610_s29 + $0xb0] sm:$0xff] %vm6076_vm7, %v6066_v43 }
 0x70a   : > { %v6007_v61 = vpop.xlane.xlu2 %6006 }
 0x70b   : > { %v6067_v0 = vadd.f32 %v7822_v46, %v6007_v61 }
 0x70d   : > { %6100 = vst.msk [vmem:[%s10610_s29 + $0xb8] sm:$0xff] %vm6076_vm7, %v6067_v0 }
 0x712   : > { %v6011_v60 = vpop.xlane.xlu0 %6010 }
 0x713   : > { %v6068_v53 = vadd.f32 %v7822_v46, %v6011_v60 }
 0x715   : > { %6101 = vst.msk [vmem:[%s10610_s29 + $0xc0] sm:$0xff] %vm6076_vm7, %v6068_v53 }
 0x71a   : > { %v6015_v22 = vpop.xlane.xlu1 %6014 }
 0x71b   : > { %v6069_v27 = vadd.f32 %v7822_v46, %v6015_v22 }
 0x71d   : > { %6102 = vst.msk [vmem:[%s10610_s29 + $0xc8] sm:$0xff] %vm6076_vm7, %v6069_v27 }
 0x722   : > { %v6019_v23 = vpop.xlane.xlu2 %6018 }
 0x723   : > { %v6070_v29 = vadd.f32 %v7822_v46, %v6019_v23 }
 0x725   : > { %6103 = vst.msk [vmem:[%s10610_s29 + $0xd0] sm:$0xff] %vm6076_vm7, %v6070_v29 }
 0x72a   : > { %v6023_v24 = vpop.xlane.xlu0 %6022 }
 0x72b   : > { %v6071_v58 = vadd.f32 %v7822_v46, %v6023_v24 }
 0x72d   : > { %6104 = vst.msk [vmem:[%s10610_s29 + $0xd8] sm:$0xff] %vm6076_vm7, %v6071_v58 }
 0x732   : > { %v6027_v17 = vpop.xlane.xlu1 %6026 }
 0x733   : > { %v6072_v18 = vadd.f32 %v7822_v46, %v6027_v17 }
 0x735   : > { %6105 = vst.msk [vmem:[%s10610_s29 + $0xe0] sm:$0xff] %vm6076_vm7, %v6072_v18 }
 0x73a   : > { %v6031_v56 = vpop.xlane.xlu2 %6030 }
 0x73b   : > { %v6073_v38 = vadd.f32 %v7822_v46, %v6031_v56 }
 0x73d   : > { %6106 = vst.msk [vmem:[%s10610_s29 + $0xe8] sm:$0xff] %vm6076_vm7, %v6073_v38 }
 0x742   : > { %v6035_v13 = vpop.xlane.xlu0 %6034 }
 0x743   : > { %v6074_v57 = vadd.f32 %v7822_v46, %v6035_v13 }
 0x745   : > { %6107 = vst.msk [vmem:[%s10610_s29 + $0xf0] sm:$0xff] %vm6076_vm7, %v6074_v57 }
 0x74a   : > { %v6039_v37 = vpop.xlane.xlu1 %6038 }
 0x74b   : > { %v6075_v49 = vadd.f32 %v7822_v46, %v6039_v37 }
 0x74d   : > { %6108 = vst.msk [vmem:[%s10610_s29 + $0xf8] sm:$0xff] %vm6076_vm7, %v6075_v49 }
 0x74e PF: > { %s28_s17 = sadd.s32 1, %s7843_s17  }
 0x74f   : > { %p25_p12 = scmp.ge.s32.totalorder %s28_s17, 10  }
 0x751   :  { %27 = sbr.rel (!%p25_p12) target bundleno = 7 (0x7), region = 110 }

// kernel: split.1
= control target key start
LH: loop header
LB: loop body
LE: loop exit
PB: predicated region body
PF: predicated region fallthrough
CT: control target
= control target key end

     0   :  { %s38_s0 = inlined_call_operand.vmem [shape: bf16[2,8,1008], index: 0, kind: input, shape index: {}]   ;;  %s39_s1 = inlined_call_operand.vmem [shape: bf16[2,8,112], index: 1, kind: output, shape index: {}]  }
   0x1   :  { %v2_v0 = vld [vmem:[%s38_s0] sm:$0xf] }
   0x2   :  { %v14_v1 = vld [vmem:[%s38_s0 + $0x20] sm:$0xf]  ;;  %6 = vst [vmem:[%s39_s1] sm:$0xf] %v2_v0 }
   0x3   :  { %15 = vst [vmem:[%s39_s1 + $0x4] sm:$0xf] %v14_v1 }

// kernel: split.0
= control target key start
LH: loop header
LB: loop body
LE: loop exit
PB: predicated region body
PF: predicated region fallthrough
CT: control target
= control target key end

     0   :  { %v9_v0 = vlaneseq  ;;  %s276_s18 = smov 16   ;;  %s349_s0 = inlined_call_operand.vmem [shape: bf16[2,8,1008], index: 0, kind: input, shape index: {}]   ;;  %s350_s1 = inlined_call_operand.vmem [shape: bf16[2,8,896], index: 1, kind: output, shape index: {}]  }
   0x1   :  { %v210_v1 = vld [vmem:[%s349_s0 + $0x8] sm:$0xff]   ;;  %v232_v3 = vld [vmem:[%s349_s0] sm:$0xff]   ;;  %v217_v9 = vld [vmem:[%s349_s0 + $0x10] sm:$0xff]  }
   0x2   :  { %v213_v2 = vld [vmem:[%s349_s0 + $0x28] sm:$0xff]   ;;  %v10_v4 = vand.u32 127, %v9_v0  ;;  %v32_v5 = vunpack.c.l.bf16 %v210_v1  ;;  %v60_v7 = vunpack.c.h.bf16 %v210_v1  ;;  %v239_v8 = vld [vmem:[%s349_s0 + $0x20] sm:$0xff]   ;;  %v219_v10 = vld [vmem:[%s349_s0 + $0x30] sm:$0xff]   ;;  %v233_v12 = vunpack.c.l.bf16 %v232_v3 }
   0x3   :  { %v46_v6 = vunpack.c.l.bf16 %v213_v2  ;;  %v71_v11 = vunpack.c.h.bf16 %v213_v2  ;;  %v234_v13 = vunpack.c.h.bf16 %v232_v3  ;;  %v237_v14 = vunpack.c.l.bf16 %v239_v8  ;;  %v223_v30 = vld [vmem:[%s349_s0 + $0x18] sm:$0xff]  }
   0x4   :  { %vm11_vm0 = vcmp.lt.s32.totalorder %v10_v4, 112  ;;  %v238_v15 = vunpack.c.h.bf16 %v239_v8  ;;  %v82_v16 = vunpack.c.l.bf16 %v217_v9  ;;  %v96_v20 = vunpack.c.l.bf16 %v219_v10  ;;  %v225_v31 = vld [vmem:[%s349_s0 + $0x38] sm:$0xff]  }
   0x5   :  { %v65_v17 = vsel %vm11_vm0, %v60_v7, %v32_v5  ;;  %v76_v18 = vsel %vm11_vm0, %v71_v11, %v46_v6  ;;  %v12_v19 = vsel %vm11_vm0, %v234_v13, %v233_v12  ;;  %v110_v26 = vunpack.c.h.bf16 %v217_v9 }
   0x6   :  { %v251_v21 = vpack.i.bf16 %v76_v18, %v65_v17  ;;  %v26_v22 = vsel %vm11_vm0, %v238_v15, %v237_v14  ;;  %v87_v24 = vsel %vm11_vm0, %v82_v16, %v60_v7  ;;  %v101_v25 = vsel %vm11_vm0, %v96_v20, %v71_v11 }
   0x7   :  { %v241_v23 = vpack.i.bf16 %v26_v22, %v12_v19  ;;  %v121_v27 = vunpack.c.h.bf16 %v219_v10  ;;  %v37_v28 = vsel %vm11_vm0, %v32_v5, %v234_v13  ;;  %v51_v29 = vsel %vm11_vm0, %v46_v6, %v238_v15 }
   0x8   :  { %252 = vrot.lane.b32.xlu1 %v251_v21, %s276_s18  ;;  %v115_v32 = vsel %vm11_vm0, %v110_v26, %v82_v16  ;;  %v256_v34 = vpack.i.bf16 %v101_v25, %v87_v24  ;;  %v246_v36 = vpack.i.bf16 %v51_v29, %v37_v28  ;;  %v132_v37 = vunpack.c.l.bf16 %v223_v30 }
   0x9   :  { %242 = vrot.lane.b32.xlu0 %v241_v23, %s276_s18  ;;  %v126_v33 = vsel %vm11_vm0, %v121_v27, %v96_v20  ;;  %v146_v38 = vunpack.c.l.bf16 %v225_v31  ;;  %v169_v39 = vunpack.c.h.bf16 %v223_v30  ;;  %v191_v40 = vunpack.c.h.bf16 %v225_v31 }
   0xa   :  { %v261_v35 = vpack.i.bf16 %v126_v33, %v115_v32  ;;  %v137_v41 = vsel %vm11_vm0, %v132_v37, %v110_v26 }
   0xb   :  { %v151_v42 = vsel %vm11_vm0, %v146_v38, %v121_v27  ;;  %v174_v43 = vsel %vm11_vm0, %v169_v39, %v132_v37  ;;  %v196_v44 = vsel %vm11_vm0, %v191_v40, %v146_v38 }
   0xc   :  { %262 = vrot.lane.b32.xlu2 %v261_v35, %s276_s18  ;;  %v266_v45 = vpack.i.bf16 %v151_v42, %v137_v41  ;;  %v271_v46 = vpack.i.bf16 %v196_v44, %v174_v43 }
  0x10   :  { %257 = vrot.lane.b32.xlu1 %v256_v34, %s276_s18 }
  0x11   :  { %247 = vrot.lane.b32.xlu0 %v246_v36, %s276_s18 }
  0x14   :  { %267 = vrot.lane.b32.xlu2 %v266_v45, %s276_s18 }
  0x19   :  { %272 = vrot.lane.b32.xlu0 %v271_v46, %s276_s18 }
  0x66   :  { %v263_v47 = vpop.permute.xlu2 %262 }
  0x67   :  { %v265_v48 = vunpack.i.h.bf16 %v263_v47  ;;  %v264_v49 = vunpack.i.l.bf16 %v263_v47 }
  0x6e   :  { %v268_v50 = vpop.permute.xlu2 %267 }
  0x6f   :  { %v270_v51 = vunpack.i.h.bf16 %v268_v50  ;;  %v269_v52 = vunpack.i.l.bf16 %v268_v50 }
  0x71   :  { %v142_v53 = vpack.c.bf16 %v269_v52, %v264_v49  ;;  %v156_v54 = vpack.c.bf16 %v270_v51, %v265_v48 }
  0x73   :  { %224 = vst [vmem:[%s350_s1 + $0x10] sm:$0xff] %v142_v53 }
  0x74   :  { %226 = vst [vmem:[%s350_s1 + $0x2c] sm:$0xff] %v156_v54 }
  0x7a   :  { %v253_v55 = vpop.permute.xlu1 %252 }
  0x7b   :  { %v243_v56 = vpop.permute.xlu0 %242  ;;  %v255_v57 = vunpack.i.h.bf16 %v253_v55  ;;  %v254_v58 = vunpack.i.l.bf16 %v253_v55 }
  0x7c   :  { %v245_v63 = vunpack.i.h.bf16 %v243_v56  ;;  %v244_v0 = vunpack.i.l.bf16 %v243_v56 }
  0x82   :  { %v258_v59 = vpop.permute.xlu1 %257 }
  0x83   :  { %v260_v60 = vunpack.i.h.bf16 %v258_v59  ;;  %v259_v61 = vunpack.i.l.bf16 %v258_v59  ;;  %v248_v62 = vpop.permute.xlu0 %247 }
  0x84   :  { %v250_v1 = vunpack.i.h.bf16 %v248_v62  ;;  %v249_v2 = vunpack.i.l.bf16 %v248_v62 }
  0x85   :  { %v92_v3 = vpack.c.bf16 %v259_v61, %v254_v58  ;;  %v106_v4 = vpack.c.bf16 %v260_v60, %v255_v57 }
  0x86   :  { %v42_v5 = vpack.c.bf16 %v249_v2, %v244_v0  ;;  %v56_v6 = vpack.c.bf16 %v250_v1, %v245_v63 }
  0x87   :  { %218 = vst [vmem:[%s350_s1 + $0x8] sm:$0xff] %v92_v3 }
  0x88   :  { %220 = vst [vmem:[%s350_s1 + $0x24] sm:$0xff] %v106_v4 }
  0x89   :  { %212 = vst [vmem:[%s350_s1] sm:$0xff] %v42_v5 }
  0x8a   :  { %214 = vst [vmem:[%s350_s1 + $0x1c] sm:$0xff] %v56_v6 }
  0x8b   :  { %v273_v7 = vpop.permute.xlu0 %272 }
  0x8c   :  { %v275_v8 = vunpack.i.h.bf16 %v273_v7  ;;  %v274_v9 = vunpack.i.l.bf16 %v273_v7 }
  0x8e   :  { %v200_v10 = vpack.c.bf16 0.0, %v275_v8  ;;  %v178_v11 = vpack.c.bf16 0.0, %v274_v9 }
  0x90   :  { %230 = vst [vmem:[%s350_s1 + $0x34] sm:$0xf] %v200_v10 }
  0x91   :  { %228 = vst [vmem:[%s350_s1 + $0x18] sm:$0xf] %v178_v11 }

</bundles_post_ra>
